<compile_context>
chip_gen: v5e
topology: v5e:2x2
jax: 0.10.0
libtpu: 0.0.40
codegen_flags: <defaults>
</compile_context>

<pallas_src>
import functools

import numpy as np
import jax
import jax.numpy as jnp
from jax.experimental import pallas as pl
from jax.experimental.pallas import tpu as pltpu

_VMEM = pl.BlockSpec(memory_space=pltpu.MemorySpace.VMEM)
_BN_EPS = 1e-5


def _pick_vmem_limit_bytes():
    """Generation-aware VMEM cap: ~half of physical (v5e/v6e 128MiB -> 64MiB,
    v7x 64MiB -> 32MiB); conservative 32MiB fallback if the query fails."""
    try:
        cap = int(getattr(pltpu.get_tpu_info(), "vmem_capacity_bytes", 0))
    except Exception:
        cap = 0
    if cap <= 0:
        return 32 * 1024 * 1024
    return int(min(max(cap // 2, 32 * 1024 * 1024), 100 * 1024 * 1024))


_COMPILER_PARAMS = pltpu.CompilerParams(vmem_limit_bytes=_pick_vmem_limit_bytes())


# ------------------------------ helper (host) --------------------------------

def _valid_mask(n, hg, wg, ho, wo, r_out):
    """(r_out, 1) f32 mask of the valid (ho, wo) region on the (hg, wg) grid."""
    m = np.zeros((n, hg, wg), np.float32)
    m[:, :ho, :wo] = 1.0
    return jnp.asarray(m.reshape(-1, 1)[:r_out])


# ---------------------- fused encoder-stage Pallas kernel --------------------
# The stage input is presented as 4 parity phases of the 1-padded input
# (total bytes ~= input, never a 9x im2col in HBM).  Inside the kernel the 9
# shifted row-windows are lane-concatenated into ONE (r_out, 9*cin) lhs and a
# single MXU matmul (K = 9*cin) produces the conv; bias + ReLU + single-pass
# BatchNorm (training mode, biased variance) follow without leaving VMEM.

def _enc_stage_kernel(ph_ref, w_ref, b_ref, g_ref, be_ref, m_ref, o_ref, *,
                      shifts, r_out, count):
    lhs = jnp.concatenate(
        [ph_ref[p, s:s + r_out, :] for (p, s) in shifts], axis=-1)
    y = jnp.dot(lhs, w_ref[...], preferred_element_type=jnp.float32) + b_ref[...]
    y = jnp.maximum(y, 0.0)                            # ReLU
    m = m_ref[...]                                     # (r_out, 1) validity mask
    ym = y * m
    inv_n = 1.0 / count
    mean = jnp.sum(ym, axis=0, keepdims=True) * inv_n
    var = jnp.sum(ym * y, axis=0, keepdims=True) * inv_n - mean * mean
    var = jnp.maximum(var, 0.0)                        # cancellation guard
    o_ref[...] = (g_ref[...] * (y - mean) * jax.lax.rsqrt(var + _BN_EPS)
                  + be_ref[...]).astype(o_ref.dtype)


def encoder_stage(x_nhwc, stage_params, *, out_dtype):
    w9, bias, gamma, beta = stage_params
    n, h, w, c = x_nhwc.shape
    ho, wo = h // 2, w // 2
    hh, wh = ho + 1, wo + 1
    xp = jnp.pad(x_nhwc, ((0, 0), (1, 1), (1, 1), (0, 0)))
    phases = jnp.stack([xp[:, a::2, b::2, :] for a in range(2) for b in range(2)],
                       axis=0)
    ph2d = phases.reshape(4, n * hh * wh, c).astype(jnp.bfloat16)
    r_out = n * hh * wh - (wh + 1)
    # tap (dh, dw) -> (phase = (dh%2, dw%2), row shift on the (hh, wh) grid)
    shifts = tuple(((dh % 2) * 2 + (dw % 2), (dh // 2) * wh + (dw // 2))
                   for dh in range(3) for dw in range(3))
    cout = w9.shape[-1]
    kern = functools.partial(_enc_stage_kernel, shifts=shifts, r_out=r_out,
                             count=float(n * ho * wo))
    out2d = pl.pallas_call(
        kern,
        out_shape=jax.ShapeDtypeStruct((r_out, cout), out_dtype),
        in_specs=[_VMEM] * 6,
        out_specs=_VMEM,
        compiler_params=_COMPILER_PARAMS,
    )(ph2d, w9, bias, gamma, beta, _valid_mask(n, hh, wh, ho, wo, r_out))
    # pad dropped tail rows back, reshape to the grid, keep the valid region
    full = jnp.pad(out2d, ((0, n * hh * wh - r_out), (0, 0)))
    return full.reshape(n, hh, wh, cout)[:, :ho, :wo, :]


# ---------------------- fused decoder-stage Pallas kernel --------------------
# Sub-pixel decomposition of ConvTranspose2d(3, s=2, p=1, op=1): with x padded
# by one zero row/col at the bottom/right and flattened to rows, the 4 output
# parities are
#   out[2a  , 2b  ] = x[a,b]@W11
#   out[2a  , 2b+1] = x[a,b]@W12 + x[a,b+1]@W10
#   out[2a+1, 2b  ] = x[a,b]@W21 + x[a+1,b]@W01
#   out[2a+1, 2b+1] = x[a,b]@W22 + x[a,b+1]@W20 + x[a+1,b]@W02 + x[a+1,b+1]@W00
# (W[kh,kw] = torch ConvT weight slice, (cin, cout)).  Each phase is one MXU
# matmul with a lane-concatenated lhs; bias + ReLU + BN (or sigmoid) stay in
# VMEM; the 4 phases are stored lane-stacked as (r_out, 4*cout).

def _dec_stage_kernel(*refs, r_out, wp, mode, count=None):
    if mode == "relu_bn":
        (x_ref, wee_ref, weo_ref, woe_ref, woo_ref,
         b_ref, g_ref, be_ref, m_ref, o_ref) = refs
    else:  # "sigmoid"
        x_ref, wee_ref, weo_ref, woe_ref, woo_ref, b_ref, o_ref = refs

    w00 = x_ref[0:r_out, :]
    w01 = x_ref[1:1 + r_out, :]
    w10 = x_ref[wp:wp + r_out, :]
    w11 = x_ref[wp + 1:wp + 1 + r_out, :]
    b = b_ref[...]
    y_ee = jnp.dot(w00, wee_ref[...], preferred_element_type=jnp.float32) + b
    y_eo = jnp.dot(jnp.concatenate([w00, w01], axis=-1), weo_ref[...],
                   preferred_element_type=jnp.float32) + b
    y_oe = jnp.dot(jnp.concatenate([w00, w10], axis=-1), woe_ref[...],
                   preferred_element_type=jnp.float32) + b
    y_oo = jnp.dot(jnp.concatenate([w00, w01, w10, w11], axis=-1), woo_ref[...],
                   preferred_element_type=jnp.float32) + b
    phases = (y_ee, y_eo, y_oe, y_oo)

    if mode == "relu_bn":
        phases = tuple(jnp.maximum(y, 0.0) for y in phases)      # ReLU
        m = m_ref[...]
        s1 = jnp.zeros((1, phases[0].shape[-1]), jnp.float32)
        s2 = jnp.zeros((1, phases[0].shape[-1]), jnp.float32)
        for y in phases:                                          # one pass
            ym = y * m
            s1 = s1 + jnp.sum(ym, axis=0, keepdims=True)
            s2 = s2 + jnp.sum(ym * y, axis=0, keepdims=True)
        inv_n = 1.0 / count
        mean = s1 * inv_n
        var = jnp.maximum(s2 * inv_n - mean * mean, 0.0)          # biased var
        inv_std = jax.lax.rsqrt(var + _BN_EPS)
        g, be = g_ref[...], be_ref[...]
        phases = tuple(g * (y - mean) * inv_std + be for y in phases)
    else:
        # sigmoid via EUP exp + approximate EUP reciprocal
        phases = tuple(pl.reciprocal(1.0 + jnp.exp(-y), approx=True)
                       for y in phases)

    o_ref[...] = jnp.concatenate(phases, axis=-1).astype(o_ref.dtype)


def decoder_stage(x_nhwc, stage_params, *, mode, out_dtype):
    wee, weo, woe, woo, bias, gamma, beta = stage_params
    n, h, w, c = x_nhwc.shape
    hp, wp = h + 1, w + 1
    xp = jnp.pad(x_nhwc, ((0, 0), (0, 1), (0, 1), (0, 0)))
    x2d = xp.reshape(n * hp * wp, c).astype(jnp.bfloat16)
    r_out = n * hp * wp - (wp + 1)
    cout = wee.shape[-1]

    if mode == "relu_bn":
        kern = functools.partial(_dec_stage_kernel, r_out=r_out, wp=wp,
                                 mode=mode, count=float(n * 4 * h * w))
        inputs = (x2d, wee, weo, woe, woo, bias, gamma, beta,
                  _valid_mask(n, hp, wp, h, w, r_out))
    else:
        kern = functools.partial(_dec_stage_kernel, r_out=r_out, wp=wp,
                                 mode=mode)
        inputs = (x2d, wee, weo, woe, woo, bias)

    out2d = pl.pallas_call(
        kern,
        out_shape=jax.ShapeDtypeStruct((r_out, 4 * cout), out_dtype),
        in_specs=[_VMEM] * len(inputs),
        out_specs=_VMEM,
        compiler_params=_COMPILER_PARAMS,
    )(*inputs)
    # TODO(synk): for the cout=1 sigmoid stage the store is still only 4 lanes
    # wide; packing rows into lanes inside the kernel would make it fully dense.

    # depth-to-space reassembly of the 4 lane-stacked output phases
    full = jnp.pad(out2d, ((0, n * hp * wp - r_out), (0, 0)))
    full = full.reshape(n, hp, wp, 2, 2, cout)[:, :h, :w]         # (n,h,w,2,2,c)
    return full.transpose(0, 1, 3, 2, 4, 5).reshape(n, 2 * h, 2 * w, cout)


# --------------------- fused latent-path Pallas kernel -----------------------
# fc_mu and fc_ep share their input, so their layer-1 weights are concatenated
# and their layer-2 weights are block-diagonal -> 2 matmuls produce [mu|logvar]
# as ONE output.  Reparameterization and ReLU(fc_dc(z[:, :-1])) are fused in.

def _latent_kernel(flat_ref, eps_ref, w1_ref, b1_ref, w2_ref, b2_ref,
                   wdc_ref, bdc_ref, mz_ref, hdc_ref, *, lt_dim):
    L = lt_dim + 1
    h1 = jnp.dot(flat_ref[...], w1_ref[...],
                 preferred_element_type=jnp.float32) + b1_ref[...]
    mz = jnp.dot(h1, w2_ref[...],
                 preferred_element_type=jnp.float32) + b2_ref[...]
    mu = mz[:, :L]
    lv = mz[:, L:]
    z = mu + eps_ref[...] * jnp.exp(0.5 * lv)          # reparameterize
    zdec = z[:, :lt_dim]                               # drop the rotation latent
    hdc = jnp.maximum(
        jnp.dot(zdec, wdc_ref[...], preferred_element_type=jnp.float32)
        + bdc_ref[...], 0.0)                           # ReLU(fc_dc(z_dec))
    mz_ref[...] = mz
    hdc_ref[...] = hdc


def latent_block(flat, eps, fc_params, *, lt_dim):
    w1m, b1m, w2m, b2m, wdc, bdc = fc_params
    L = lt_dim + 1
    n, flat_dim = flat.shape
    kern = functools.partial(_latent_kernel, lt_dim=lt_dim)
    return pl.pallas_call(
        kern,
        out_shape=(jax.ShapeDtypeStruct((n, 2 * L), jnp.float32),
                   jax.ShapeDtypeStruct((n, flat_dim), jnp.float32)),
        in_specs=[_VMEM] * 8,
        out_specs=(_VMEM, _VMEM),
        compiler_params=_COMPILER_PARAMS,
    )(flat.astype(jnp.float32), eps.astype(jnp.float32),
      w1m, b1m, w2m, b2m, wdc, bdc)


# ----------------------------- parameter creation ----------------------------
# Weights are stored in matmul-ready layouts: encoder conv weights as
# (9*cin, cout) bf16, decoder ConvT weights as the 4 sub-pixel phase matrices,
# fc_mu/fc_ep pre-merged, and the NCHW-flatten permutation folded into the fc
# weights so the forward never transposes activations around the latent path.

def init_params(key, k, lt_dim):
    def nrm(kk, shape, scale=0.1):
        return scale * jax.random.normal(kk, shape, jnp.float32)

    keys = iter(jax.random.split(key, 64))
    params = {}

    enc = []
    for i in range(len(k) - 1):
        cin, cout = k[i], k[i + 1]
        w = nrm(next(keys), (cout, cin, 3, 3))            # Conv2d (O,I,kh,kw)
        w9 = jnp.transpose(w, (2, 3, 1, 0)).reshape(9 * cin, cout)
        enc.append((w9.astype(jnp.bfloat16),
                    nrm(next(keys), (cout,)).reshape(1, cout),
                    jnp.ones((1, cout), jnp.float32),
                    jnp.zeros((1, cout), jnp.float32)))
    params["enc"] = enc

    dec = []
    for i in range(len(k) - 1, 0, -1):
        cin, cout = k[i], k[i - 1]
        w = nrm(next(keys), (cin, cout, 3, 3))            # ConvT (I,O,kh,kw)
        tap = lambda kh, kw: w[:, :, kh, kw]              # (cin, cout)
        wee = tap(1, 1)
        weo = jnp.concatenate([tap(1, 2), tap(1, 0)], axis=0)
        woe = jnp.concatenate([tap(2, 1), tap(0, 1)], axis=0)
        woo = jnp.concatenate([tap(2, 2), tap(2, 0), tap(0, 2), tap(0, 0)],
                              axis=0)
        dec.append((wee.astype(jnp.bfloat16), weo.astype(jnp.bfloat16),
                    woe.astype(jnp.bfloat16), woo.astype(jnp.bfloat16),
                    nrm(next(keys), (cout,)).reshape(1, cout),
                    jnp.ones((1, cout), jnp.float32),
                    jnp.zeros((1, cout), jnp.float32)))
    params["dec"] = dec

    flat = k[-1] * 2 * 2
    L = lt_dim + 1
    hdim = 2 * L
    # permutation: NHWC flat position (h, w, c) -> PyTorch NCHW flat index
    perm = np.array([c * 4 + h * 2 + w for h in range(2) for w in range(2)
                     for c in range(k[-1])])
    w1_mu, b1_mu = nrm(next(keys), (flat, hdim)), nrm(next(keys), (hdim,))
    w2_mu, b2_mu = nrm(next(keys), (hdim, L)), nrm(next(keys), (L,))
    w1_ep, b1_ep = nrm(next(keys), (flat, hdim)), nrm(next(keys), (hdim,))
    w2_ep, b2_ep = nrm(next(keys), (hdim, L)), nrm(next(keys), (L,))
    w1m = jnp.concatenate([w1_mu, w1_ep], axis=1)[perm, :]      # (flat, 4L)
    b1m = jnp.concatenate([b1_mu, b1_ep], axis=0).reshape(1, -1)
    zblk = jnp.zeros((hdim, L), jnp.float32)
    w2m = jnp.concatenate([jnp.concatenate([w2_mu, zblk], axis=1),
                           jnp.concatenate([zblk, w2_ep], axis=1)],
                          axis=0)                               # (4L, 2L)
    b2m = jnp.concatenate([b2_mu, b2_ep], axis=0).reshape(1, -1)
    wdc = nrm(next(keys), (lt_dim, flat))[:, perm]              # cols -> NHWC hdc
    bdc = nrm(next(keys), (flat,))[perm].reshape(1, -1)
    params["fc"] = (w1m, b1m, w2m, b2m, wdc, bdc)
    return params


# ------------------------------- RotVAE forward -------------------------------

def rotvae_forward(params, x_nchw, eps, *, k, lt_dim):
    n = x_nchw.shape[0]
    x = jnp.transpose(x_nchw, (0, 2, 3, 1)).astype(jnp.float32)   # NCHW -> NHWC

    # encoder: [Conv(s=2) + ReLU + BN] fused per stage (bf16 between stages;
    # intentional deviation from PyTorch f32 activations, matmuls are bf16/MXU)
    n_enc = len(params["enc"])
    for i, st in enumerate(params["enc"]):
        x = encoder_stage(
            x, st, out_dtype=jnp.float32 if i == n_enc - 1 else jnp.bfloat16)

    # flatten in NHWC order; the fc weights were pre-permuted in init_params so
    # this matches PyTorch's encoded.view(-1, k[-1]*2*2) NCHW flatten.
    flat = x.reshape(n, k[-1] * 2 * 2)

    # fc_mu + fc_ep (merged) + reparameterize + ReLU(fc_dc) in one kernel
    mz, hdc = latent_block(flat, eps, params["fc"], lt_dim=lt_dim)
    L = lt_dim + 1
    mu, logvar = mz[:, :L], mz[:, L:]

    # decode: [ConvT + ReLU + BN]* -> ConvT + sigmoid (sub-pixel decomposition)
    xdec = hdc.reshape(n, 2, 2, k[-1])                  # NHWC (fc_dc pre-permuted)
    n_dec = len(params["dec"])
    for i, st in enumerate(params["dec"]):
        last = i == n_dec - 1
        xdec = decoder_stage(xdec, st,
                             mode="sigmoid" if last else "relu_bn",
                             out_dtype=jnp.float32 if last else jnp.bfloat16)

    d = jnp.transpose(xdec, (0, 3, 1, 2))               # NHWC -> NCHW
    return d, mu, logvar


# ------------------------------------ main ------------------------------------

if __name__ == "__main__":
    # Scaled-down config: 3 stride-2 conv stages take spatial 16 -> 8 -> 4 -> 2,
    # matching the module's assumption of a 2x2 bottleneck before the flatten.
    K_LIST = [1, 8, 16, 32]
    LT_DIM = 3
    BATCH = 2
    SPATIAL = 2 ** len(K_LIST)  # 16

    root = jax.random.PRNGKey(0)
    k_params, k_x, k_eps = jax.random.split(root, 3)

    params = init_params(k_params, K_LIST, LT_DIM)
    x = jax.random.normal(k_x, (BATCH, K_LIST[0], SPATIAL, SPATIAL), jnp.float32)
    eps = jax.random.normal(k_eps, (BATCH, LT_DIM + 1), jnp.float32)

    fwd = jax.jit(functools.partial(rotvae_forward, k=K_LIST, lt_dim=LT_DIM))
    d, mu, logvar = fwd(params, x, eps)
    jax.block_until_ready((d, mu, logvar))

    assert d.shape == (BATCH, K_LIST[0], SPATIAL, SPATIAL)
    assert mu.shape == (BATCH, LT_DIM + 1)
    assert logvar.shape == (BATCH, LT_DIM + 1)
    print("KERNEL_OK")
</pallas_src>

<mosaic_0001>
module attributes {stable_mosaic.version = 11 : i64} {
  func.func @_enc_stage_kernel(%arg0: memref<4x162x1xbf16, #tpu.memory_space<vmem>>, %arg1: memref<9x8xbf16, #tpu.memory_space<vmem>>, %arg2: memref<1x8xf32, #tpu.memory_space<vmem>>, %arg3: memref<1x8xf32, #tpu.memory_space<vmem>>, %arg4: memref<1x8xf32, #tpu.memory_space<vmem>>, %arg5: memref<152x1xf32, #tpu.memory_space<vmem>>, %arg6: memref<152x8xbf16, #tpu.memory_space<vmem>>) attributes {dimension_semantics = [], scalar_prefetch = 0 : i64, scratch_operands = 0 : i64, tpu.core_type = #tpu.core_type<tc>} {
    %c0 = arith.constant 0 : index
    %c0_0 = arith.constant 0 : index
    %c0_1 = arith.constant 0 : index
    %0 = vector.load %arg0[%c0, %c0_0, %c0_1] : memref<4x162x1xbf16, #tpu.memory_space<vmem>>, vector<1x152x1xbf16>
    %1 = vector.shape_cast %0 : vector<1x152x1xbf16> to vector<152x1xbf16>
    %c1 = arith.constant 1 : index
    %c0_2 = arith.constant 0 : index
    %c0_3 = arith.constant 0 : index
    %2 = vector.load %arg0[%c1, %c0_2, %c0_3] : memref<4x162x1xbf16, #tpu.memory_space<vmem>>, vector<1x152x1xbf16>
    %3 = vector.shape_cast %2 : vector<1x152x1xbf16> to vector<152x1xbf16>
    %c0_4 = arith.constant 0 : index
    %c1_5 = arith.constant 1 : index
    %c0_6 = arith.constant 0 : index
    %4 = vector.load %arg0[%c0_4, %c1_5, %c0_6] : memref<4x162x1xbf16, #tpu.memory_space<vmem>>, vector<1x152x1xbf16>
    %5 = vector.shape_cast %4 : vector<1x152x1xbf16> to vector<152x1xbf16>
    %c2 = arith.constant 2 : index
    %c0_7 = arith.constant 0 : index
    %c0_8 = arith.constant 0 : index
    %6 = vector.load %arg0[%c2, %c0_7, %c0_8] : memref<4x162x1xbf16, #tpu.memory_space<vmem>>, vector<1x152x1xbf16>
    %7 = vector.shape_cast %6 : vector<1x152x1xbf16> to vector<152x1xbf16>
    %c3 = arith.constant 3 : index
    %c0_9 = arith.constant 0 : index
    %c0_10 = arith.constant 0 : index
    %8 = vector.load %arg0[%c3, %c0_9, %c0_10] : memref<4x162x1xbf16, #tpu.memory_space<vmem>>, vector<1x152x1xbf16>
    %9 = vector.shape_cast %8 : vector<1x152x1xbf16> to vector<152x1xbf16>
    %c2_11 = arith.constant 2 : index
    %c1_12 = arith.constant 1 : index
    %c0_13 = arith.constant 0 : index
    %10 = vector.load %arg0[%c2_11, %c1_12, %c0_13] : memref<4x162x1xbf16, #tpu.memory_space<vmem>>, vector<1x152x1xbf16>
    %11 = vector.shape_cast %10 : vector<1x152x1xbf16> to vector<152x1xbf16>
    %c0_14 = arith.constant 0 : index
    %c9 = arith.constant 9 : index
    %c0_15 = arith.constant 0 : index
    %12 = vector.load %arg0[%c0_14, %c9, %c0_15] : memref<4x162x1xbf16, #tpu.memory_space<vmem>>, vector<1x152x1xbf16>
    %13 = vector.shape_cast %12 : vector<1x152x1xbf16> to vector<152x1xbf16>
    %c1_16 = arith.constant 1 : index
    %c9_17 = arith.constant 9 : index
    %c0_18 = arith.constant 0 : index
    %14 = vector.load %arg0[%c1_16, %c9_17, %c0_18] : memref<4x162x1xbf16, #tpu.memory_space<vmem>>, vector<1x152x1xbf16>
    %15 = vector.shape_cast %14 : vector<1x152x1xbf16> to vector<152x1xbf16>
    %c0_19 = arith.constant 0 : index
    %c10 = arith.constant 10 : index
    %c0_20 = arith.constant 0 : index
    %16 = vector.load %arg0[%c0_19, %c10, %c0_20] : memref<4x162x1xbf16, #tpu.memory_space<vmem>>, vector<1x152x1xbf16>
    %17 = vector.shape_cast %16 : vector<1x152x1xbf16> to vector<152x1xbf16>
    %18 = tpu.concatenate %1, %3, %5, %7, %9, %11, %13, %15, %17 in 1 : vector<152x1xbf16>, vector<152x1xbf16>, vector<152x1xbf16>, vector<152x1xbf16>, vector<152x1xbf16>, vector<152x1xbf16>, vector<152x1xbf16>, vector<152x1xbf16>, vector<152x1xbf16> -> vector<152x9xbf16>
    %c0_21 = arith.constant 0 : index
    %c0_22 = arith.constant 0 : index
    %19 = vector.load %arg1[%c0_21, %c0_22] : memref<9x8xbf16, #tpu.memory_space<vmem>>, vector<9x8xbf16>
    %cst = arith.constant dense<0.000000e+00> : vector<152x8xf32>
    %20 = tpu.matmul %18, %19, %cst {dimension_numbers = #tpu.dot_dimension_numbers<[1], [0], [0], [1], [0, 0, 1, 1], [], []>} : vector<152x9xbf16>, vector<9x8xbf16>, vector<152x8xf32> -> vector<152x8xf32>
    %c0_23 = arith.constant 0 : index
    %c0_24 = arith.constant 0 : index
    %21 = vector.load %arg2[%c0_23, %c0_24] : memref<1x8xf32, #tpu.memory_space<vmem>>, vector<1x8xf32>
    %22 = vector.broadcast %21 : vector<1x8xf32> to vector<152x8xf32>
    %23 = arith.addf %20, %22 : vector<152x8xf32>
    %cst_25 = arith.constant 0.000000e+00 : f32
    %24 = vector.broadcast %cst_25 : f32 to vector<152x8xf32>
    %25 = arith.maximumf %23, %24 : vector<152x8xf32>
    %c0_26 = arith.constant 0 : index
    %c0_27 = arith.constant 0 : index
    %26 = vector.load %arg5[%c0_26, %c0_27] : memref<152x1xf32, #tpu.memory_space<vmem>>, vector<152x1xf32>
    %27 = vector.broadcast %26 : vector<152x1xf32> to vector<152x8xf32>
    %28 = arith.mulf %25, %27 : vector<152x8xf32>
    %cst_28 = arith.constant dense<0.000000e+00> : vector<8xf32>
    %29 = vector.multi_reduction <add>, %28, %cst_28 [0] : vector<152x8xf32> to vector<8xf32>
    %30 = vector.shape_cast %29 : vector<8xf32> to vector<1x8xf32>
    %cst_29 = arith.constant 7.812500e-03 : f32
    %31 = vector.broadcast %cst_29 : f32 to vector<1x8xf32>
    %32 = arith.mulf %30, %31 : vector<1x8xf32>
    %33 = arith.mulf %28, %25 : vector<152x8xf32>
    %cst_30 = arith.constant dense<0.000000e+00> : vector<8xf32>
    %34 = vector.multi_reduction <add>, %33, %cst_30 [0] : vector<152x8xf32> to vector<8xf32>
    %35 = vector.shape_cast %34 : vector<8xf32> to vector<1x8xf32>
    %cst_31 = arith.constant 7.812500e-03 : f32
    %36 = vector.broadcast %cst_31 : f32 to vector<1x8xf32>
    %37 = arith.mulf %35, %36 : vector<1x8xf32>
    %38 = arith.mulf %32, %32 : vector<1x8xf32>
    %39 = arith.subf %37, %38 : vector<1x8xf32>
    %cst_32 = arith.constant 0.000000e+00 : f32
    %40 = vector.broadcast %cst_32 : f32 to vector<1x8xf32>
    %41 = arith.maximumf %39, %40 : vector<1x8xf32>
    %c0_33 = arith.constant 0 : index
    %c0_34 = arith.constant 0 : index
    %42 = vector.load %arg3[%c0_33, %c0_34] : memref<1x8xf32, #tpu.memory_space<vmem>>, vector<1x8xf32>
    %43 = vector.broadcast %32 : vector<1x8xf32> to vector<152x8xf32>
    %44 = arith.subf %25, %43 : vector<152x8xf32>
    %45 = vector.broadcast %42 : vector<1x8xf32> to vector<152x8xf32>
    %46 = arith.mulf %45, %44 : vector<152x8xf32>
    %cst_35 = arith.constant 9.99999974E-6 : f32
    %47 = vector.broadcast %cst_35 : f32 to vector<1x8xf32>
    %48 = arith.addf %41, %47 : vector<1x8xf32>
    %49 = math.rsqrt %48 : vector<1x8xf32>
    %50 = vector.broadcast %49 : vector<1x8xf32> to vector<152x8xf32>
    %51 = arith.mulf %46, %50 : vector<152x8xf32>
    %c0_36 = arith.constant 0 : index
    %c0_37 = arith.constant 0 : index
    %52 = vector.load %arg4[%c0_36, %c0_37] : memref<1x8xf32, #tpu.memory_space<vmem>>, vector<1x8xf32>
    %53 = vector.broadcast %52 : vector<1x8xf32> to vector<152x8xf32>
    %54 = arith.addf %51, %53 : vector<152x8xf32>
    %55 = arith.truncf %54 : vector<152x8xf32> to vector<152x8xbf16>
    %c0_38 = arith.constant 0 : index
    %c0_39 = arith.constant 0 : index
    %56 = vector.load %arg6[%c0_38, %c0_39] : memref<152x8xbf16, #tpu.memory_space<vmem>>, vector<152x8xbf16>
    tpu.vector_store %arg6[%c0_38, %c0_39], %55 {strides = array<i32>} : memref<152x8xbf16, #tpu.memory_space<vmem>>, vector<152x8xbf16>,
    return
  }
}

module attributes {stable_mosaic.version = 11 : i64} {
  func.func @_enc_stage_kernel(%arg0: memref<4x50x8xbf16, #tpu.memory_space<vmem>>, %arg1: memref<72x16xbf16, #tpu.memory_space<vmem>>, %arg2: memref<1x16xf32, #tpu.memory_space<vmem>>, %arg3: memref<1x16xf32, #tpu.memory_space<vmem>>, %arg4: memref<1x16xf32, #tpu.memory_space<vmem>>, %arg5: memref<44x1xf32, #tpu.memory_space<vmem>>, %arg6: memref<44x16xbf16, #tpu.memory_space<vmem>>) attributes {dimension_semantics = [], scalar_prefetch = 0 : i64, scratch_operands = 0 : i64, tpu.core_type = #tpu.core_type<tc>} {
    %c0 = arith.constant 0 : index
    %c0_0 = arith.constant 0 : index
    %c0_1 = arith.constant 0 : index
    %0 = vector.load %arg0[%c0, %c0_0, %c0_1] : memref<4x50x8xbf16, #tpu.memory_space<vmem>>, vector<1x44x8xbf16>
    %1 = vector.shape_cast %0 : vector<1x44x8xbf16> to vector<44x8xbf16>
    %c1 = arith.constant 1 : index
    %c0_2 = arith.constant 0 : index
    %c0_3 = arith.constant 0 : index
    %2 = vector.load %arg0[%c1, %c0_2, %c0_3] : memref<4x50x8xbf16, #tpu.memory_space<vmem>>, vector<1x44x8xbf16>
    %3 = vector.shape_cast %2 : vector<1x44x8xbf16> to vector<44x8xbf16>
    %c0_4 = arith.constant 0 : index
    %c1_5 = arith.constant 1 : index
    %c0_6 = arith.constant 0 : index
    %4 = vector.load %arg0[%c0_4, %c1_5, %c0_6] : memref<4x50x8xbf16, #tpu.memory_space<vmem>>, vector<1x44x8xbf16>
    %5 = vector.shape_cast %4 : vector<1x44x8xbf16> to vector<44x8xbf16>
    %c2 = arith.constant 2 : index
    %c0_7 = arith.constant 0 : index
    %c0_8 = arith.constant 0 : index
    %6 = vector.load %arg0[%c2, %c0_7, %c0_8] : memref<4x50x8xbf16, #tpu.memory_space<vmem>>, vector<1x44x8xbf16>
    %7 = vector.shape_cast %6 : vector<1x44x8xbf16> to vector<44x8xbf16>
    %c3 = arith.constant 3 : index
    %c0_9 = arith.constant 0 : index
    %c0_10 = arith.constant 0 : index
    %8 = vector.load %arg0[%c3, %c0_9, %c0_10] : memref<4x50x8xbf16, #tpu.memory_space<vmem>>, vector<1x44x8xbf16>
    %9 = vector.shape_cast %8 : vector<1x44x8xbf16> to vector<44x8xbf16>
    %c2_11 = arith.constant 2 : index
    %c1_12 = arith.constant 1 : index
    %c0_13 = arith.constant 0 : index
    %10 = vector.load %arg0[%c2_11, %c1_12, %c0_13] : memref<4x50x8xbf16, #tpu.memory_space<vmem>>, vector<1x44x8xbf16>
    %11 = vector.shape_cast %10 : vector<1x44x8xbf16> to vector<44x8xbf16>
    %c0_14 = arith.constant 0 : index
    %c5 = arith.constant 5 : index
    %c0_15 = arith.constant 0 : index
    %12 = vector.load %arg0[%c0_14, %c5, %c0_15] : memref<4x50x8xbf16, #tpu.memory_space<vmem>>, vector<1x44x8xbf16>
    %13 = vector.shape_cast %12 : vector<1x44x8xbf16> to vector<44x8xbf16>
    %c1_16 = arith.constant 1 : index
    %c5_17 = arith.constant 5 : index
    %c0_18 = arith.constant 0 : index
    %14 = vector.load %arg0[%c1_16, %c5_17, %c0_18] : memref<4x50x8xbf16, #tpu.memory_space<vmem>>, vector<1x44x8xbf16>
    %15 = vector.shape_cast %14 : vector<1x44x8xbf16> to vector<44x8xbf16>
    %c0_19 = arith.constant 0 : index
    %c6 = arith.constant 6 : index
    %c0_20 = arith.constant 0 : index
    %16 = vector.load %arg0[%c0_19, %c6, %c0_20] : memref<4x50x8xbf16, #tpu.memory_space<vmem>>, vector<1x44x8xbf16>
    %17 = vector.shape_cast %16 : vector<1x44x8xbf16> to vector<44x8xbf16>
    %18 = tpu.concatenate %1, %3, %5, %7, %9, %11, %13, %15, %17 in 1 : vector<44x8xbf16>, vector<44x8xbf16>, vector<44x8xbf16>, vector<44x8xbf16>, vector<44x8xbf16>, vector<44x8xbf16>, vector<44x8xbf16>, vector<44x8xbf16>, vector<44x8xbf16> -> vector<44x72xbf16>
    %c0_21 = arith.constant 0 : index
    %c0_22 = arith.constant 0 : index
    %19 = vector.load %arg1[%c0_21, %c0_22] : memref<72x16xbf16, #tpu.memory_space<vmem>>, vector<72x16xbf16>
    %cst = arith.constant dense<0.000000e+00> : vector<44x16xf32>
    %20 = tpu.matmul %18, %19, %cst {dimension_numbers = #tpu.dot_dimension_numbers<[1], [0], [0], [1], [0, 0, 1, 1], [], []>} : vector<44x72xbf16>, vector<72x16xbf16>, vector<44x16xf32> -> vector<44x16xf32>
    %c0_23 = arith.constant 0 : index
    %c0_24 = arith.constant 0 : index
    %21 = vector.load %arg2[%c0_23, %c0_24] : memref<1x16xf32, #tpu.memory_space<vmem>>, vector<1x16xf32>
    %22 = vector.broadcast %21 : vector<1x16xf32> to vector<44x16xf32>
    %23 = arith.addf %20, %22 : vector<44x16xf32>
    %cst_25 = arith.constant 0.000000e+00 : f32
    %24 = vector.broadcast %cst_25 : f32 to vector<44x16xf32>
    %25 = arith.maximumf %23, %24 : vector<44x16xf32>
    %c0_26 = arith.constant 0 : index
    %c0_27 = arith.constant 0 : index
    %26 = vector.load %arg5[%c0_26, %c0_27] : memref<44x1xf32, #tpu.memory_space<vmem>>, vector<44x1xf32>
    %27 = vector.broadcast %26 : vector<44x1xf32> to vector<44x16xf32>
    %28 = arith.mulf %25, %27 : vector<44x16xf32>
    %cst_28 = arith.constant dense<0.000000e+00> : vector<16xf32>
    %29 = vector.multi_reduction <add>, %28, %cst_28 [0] : vector<44x16xf32> to vector<16xf32>
    %30 = vector.shape_cast %29 : vector<16xf32> to vector<1x16xf32>
    %cst_29 = arith.constant 3.125000e-02 : f32
    %31 = vector.broadcast %cst_29 : f32 to vector<1x16xf32>
    %32 = arith.mulf %30, %31 : vector<1x16xf32>
    %33 = arith.mulf %28, %25 : vector<44x16xf32>
    %cst_30 = arith.constant dense<0.000000e+00> : vector<16xf32>
    %34 = vector.multi_reduction <add>, %33, %cst_30 [0] : vector<44x16xf32> to vector<16xf32>
    %35 = vector.shape_cast %34 : vector<16xf32> to vector<1x16xf32>
    %cst_31 = arith.constant 3.125000e-02 : f32
    %36 = vector.broadcast %cst_31 : f32 to vector<1x16xf32>
    %37 = arith.mulf %35, %36 : vector<1x16xf32>
    %38 = arith.mulf %32, %32 : vector<1x16xf32>
    %39 = arith.subf %37, %38 : vector<1x16xf32>
    %cst_32 = arith.constant 0.000000e+00 : f32
    %40 = vector.broadcast %cst_32 : f32 to vector<1x16xf32>
    %41 = arith.maximumf %39, %40 : vector<1x16xf32>
    %c0_33 = arith.constant 0 : index
    %c0_34 = arith.constant 0 : index
    %42 = vector.load %arg3[%c0_33, %c0_34] : memref<1x16xf32, #tpu.memory_space<vmem>>, vector<1x16xf32>
    %43 = vector.broadcast %32 : vector<1x16xf32> to vector<44x16xf32>
    %44 = arith.subf %25, %43 : vector<44x16xf32>
    %45 = vector.broadcast %42 : vector<1x16xf32> to vector<44x16xf32>
    %46 = arith.mulf %45, %44 : vector<44x16xf32>
    %cst_35 = arith.constant 9.99999974E-6 : f32
    %47 = vector.broadcast %cst_35 : f32 to vector<1x16xf32>
    %48 = arith.addf %41, %47 : vector<1x16xf32>
    %49 = math.rsqrt %48 : vector<1x16xf32>
    %50 = vector.broadcast %49 : vector<1x16xf32> to vector<44x16xf32>
    %51 = arith.mulf %46, %50 : vector<44x16xf32>
    %c0_36 = arith.constant 0 : index
    %c0_37 = arith.constant 0 : index
    %52 = vector.load %arg4[%c0_36, %c0_37] : memref<1x16xf32, #tpu.memory_space<vmem>>, vector<1x16xf32>
    %53 = vector.broadcast %52 : vector<1x16xf32> to vector<44x16xf32>
    %54 = arith.addf %51, %53 : vector<44x16xf32>
    %55 = arith.truncf %54 : vector<44x16xf32> to vector<44x16xbf16>
    %c0_38 = arith.constant 0 : index
    %c0_39 = arith.constant 0 : index
    %56 = vector.load %arg6[%c0_38, %c0_39] : memref<44x16xbf16, #tpu.memory_space<vmem>>, vector<44x16xbf16>
    tpu.vector_store %arg6[%c0_38, %c0_39], %55 {strides = array<i32>} : memref<44x16xbf16, #tpu.memory_space<vmem>>, vector<44x16xbf16>,
    return
  }
}

module attributes {stable_mosaic.version = 11 : i64} {
  func.func @_enc_stage_kernel(%arg0: memref<4x18x16xbf16, #tpu.memory_space<vmem>>, %arg1: memref<144x32xbf16, #tpu.memory_space<vmem>>, %arg2: memref<1x32xf32, #tpu.memory_space<vmem>>, %arg3: memref<1x32xf32, #tpu.memory_space<vmem>>, %arg4: memref<1x32xf32, #tpu.memory_space<vmem>>, %arg5: memref<14x1xf32, #tpu.memory_space<vmem>>, %arg6: memref<14x32xf32, #tpu.memory_space<vmem>>) attributes {dimension_semantics = [], scalar_prefetch = 0 : i64, scratch_operands = 0 : i64, tpu.core_type = #tpu.core_type<tc>} {
    %c0 = arith.constant 0 : index
    %c0_0 = arith.constant 0 : index
    %c0_1 = arith.constant 0 : index
    %0 = vector.load %arg0[%c0, %c0_0, %c0_1] : memref<4x18x16xbf16, #tpu.memory_space<vmem>>, vector<1x14x16xbf16>
    %1 = vector.shape_cast %0 : vector<1x14x16xbf16> to vector<14x16xbf16>
    %c1 = arith.constant 1 : index
    %c0_2 = arith.constant 0 : index
    %c0_3 = arith.constant 0 : index
    %2 = vector.load %arg0[%c1, %c0_2, %c0_3] : memref<4x18x16xbf16, #tpu.memory_space<vmem>>, vector<1x14x16xbf16>
    %3 = vector.shape_cast %2 : vector<1x14x16xbf16> to vector<14x16xbf16>
    %c0_4 = arith.constant 0 : index
    %c1_5 = arith.constant 1 : index
    %c0_6 = arith.constant 0 : index
    %4 = vector.load %arg0[%c0_4, %c1_5, %c0_6] : memref<4x18x16xbf16, #tpu.memory_space<vmem>>, vector<1x14x16xbf16>
    %5 = vector.shape_cast %4 : vector<1x14x16xbf16> to vector<14x16xbf16>
    %c2 = arith.constant 2 : index
    %c0_7 = arith.constant 0 : index
    %c0_8 = arith.constant 0 : index
    %6 = vector.load %arg0[%c2, %c0_7, %c0_8] : memref<4x18x16xbf16, #tpu.memory_space<vmem>>, vector<1x14x16xbf16>
    %7 = vector.shape_cast %6 : vector<1x14x16xbf16> to vector<14x16xbf16>
    %c3 = arith.constant 3 : index
    %c0_9 = arith.constant 0 : index
    %c0_10 = arith.constant 0 : index
    %8 = vector.load %arg0[%c3, %c0_9, %c0_10] : memref<4x18x16xbf16, #tpu.memory_space<vmem>>, vector<1x14x16xbf16>
    %9 = vector.shape_cast %8 : vector<1x14x16xbf16> to vector<14x16xbf16>
    %c2_11 = arith.constant 2 : index
    %c1_12 = arith.constant 1 : index
    %c0_13 = arith.constant 0 : index
    %10 = vector.load %arg0[%c2_11, %c1_12, %c0_13] : memref<4x18x16xbf16, #tpu.memory_space<vmem>>, vector<1x14x16xbf16>
    %11 = vector.shape_cast %10 : vector<1x14x16xbf16> to vector<14x16xbf16>
    %c0_14 = arith.constant 0 : index
    %c3_15 = arith.constant 3 : index
    %c0_16 = arith.constant 0 : index
    %12 = vector.load %arg0[%c0_14, %c3_15, %c0_16] : memref<4x18x16xbf16, #tpu.memory_space<vmem>>, vector<1x14x16xbf16>
    %13 = vector.shape_cast %12 : vector<1x14x16xbf16> to vector<14x16xbf16>
    %c1_17 = arith.constant 1 : index
    %c3_18 = arith.constant 3 : index
    %c0_19 = arith.constant 0 : index
    %14 = vector.load %arg0[%c1_17, %c3_18, %c0_19] : memref<4x18x16xbf16, #tpu.memory_space<vmem>>, vector<1x14x16xbf16>
    %15 = vector.shape_cast %14 : vector<1x14x16xbf16> to vector<14x16xbf16>
    %c0_20 = arith.constant 0 : index
    %c4 = arith.constant 4 : index
    %c0_21 = arith.constant 0 : index
    %16 = vector.load %arg0[%c0_20, %c4, %c0_21] : memref<4x18x16xbf16, #tpu.memory_space<vmem>>, vector<1x14x16xbf16>
    %17 = vector.shape_cast %16 : vector<1x14x16xbf16> to vector<14x16xbf16>
    %18 = tpu.concatenate %1, %3, %5, %7, %9, %11, %13, %15, %17 in 1 : vector<14x16xbf16>, vector<14x16xbf16>, vector<14x16xbf16>, vector<14x16xbf16>, vector<14x16xbf16>, vector<14x16xbf16>, vector<14x16xbf16>, vector<14x16xbf16>, vector<14x16xbf16> -> vector<14x144xbf16>
    %c0_22 = arith.constant 0 : index
    %c0_23 = arith.constant 0 : index
    %19 = vector.load %arg1[%c0_22, %c0_23] : memref<144x32xbf16, #tpu.memory_space<vmem>>, vector<144x32xbf16>
    %cst = arith.constant dense<0.000000e+00> : vector<14x32xf32>
    %20 = tpu.matmul %18, %19, %cst {dimension_numbers = #tpu.dot_dimension_numbers<[1], [0], [0], [1], [0, 0, 1, 1], [], []>} : vector<14x144xbf16>, vector<144x32xbf16>, vector<14x32xf32> -> vector<14x32xf32>
    %c0_24 = arith.constant 0 : index
    %c0_25 = arith.constant 0 : index
    %21 = vector.load %arg2[%c0_24, %c0_25] : memref<1x32xf32, #tpu.memory_space<vmem>>, vector<1x32xf32>
    %22 = vector.broadcast %21 : vector<1x32xf32> to vector<14x32xf32>
    %23 = arith.addf %20, %22 : vector<14x32xf32>
    %cst_26 = arith.constant 0.000000e+00 : f32
    %24 = vector.broadcast %cst_26 : f32 to vector<14x32xf32>
    %25 = arith.maximumf %23, %24 : vector<14x32xf32>
    %c0_27 = arith.constant 0 : index
    %c0_28 = arith.constant 0 : index
    %26 = vector.load %arg5[%c0_27, %c0_28] : memref<14x1xf32, #tpu.memory_space<vmem>>, vector<14x1xf32>
    %27 = vector.broadcast %26 : vector<14x1xf32> to vector<14x32xf32>
    %28 = arith.mulf %25, %27 : vector<14x32xf32>
    %cst_29 = arith.constant dense<0.000000e+00> : vector<32xf32>
    %29 = vector.multi_reduction <add>, %28, %cst_29 [0] : vector<14x32xf32> to vector<32xf32>
    %30 = vector.shape_cast %29 : vector<32xf32> to vector<1x32xf32>
    %cst_30 = arith.constant 1.250000e-01 : f32
    %31 = vector.broadcast %cst_30 : f32 to vector<1x32xf32>
    %32 = arith.mulf %30, %31 : vector<1x32xf32>
    %33 = arith.mulf %28, %25 : vector<14x32xf32>
    %cst_31 = arith.constant dense<0.000000e+00> : vector<32xf32>
    %34 = vector.multi_reduction <add>, %33, %cst_31 [0] : vector<14x32xf32> to vector<32xf32>
    %35 = vector.shape_cast %34 : vector<32xf32> to vector<1x32xf32>
    %cst_32 = arith.constant 1.250000e-01 : f32
    %36 = vector.broadcast %cst_32 : f32 to vector<1x32xf32>
    %37 = arith.mulf %35, %36 : vector<1x32xf32>
    %38 = arith.mulf %32, %32 : vector<1x32xf32>
    %39 = arith.subf %37, %38 : vector<1x32xf32>
    %cst_33 = arith.constant 0.000000e+00 : f32
    %40 = vector.broadcast %cst_33 : f32 to vector<1x32xf32>
    %41 = arith.maximumf %39, %40 : vector<1x32xf32>
    %c0_34 = arith.constant 0 : index
    %c0_35 = arith.constant 0 : index
    %42 = vector.load %arg3[%c0_34, %c0_35] : memref<1x32xf32, #tpu.memory_space<vmem>>, vector<1x32xf32>
    %43 = vector.broadcast %32 : vector<1x32xf32> to vector<14x32xf32>
    %44 = arith.subf %25, %43 : vector<14x32xf32>
    %45 = vector.broadcast %42 : vector<1x32xf32> to vector<14x32xf32>
    %46 = arith.mulf %45, %44 : vector<14x32xf32>
    %cst_36 = arith.constant 9.99999974E-6 : f32
    %47 = vector.broadcast %cst_36 : f32 to vector<1x32xf32>
    %48 = arith.addf %41, %47 : vector<1x32xf32>
    %49 = math.rsqrt %48 : vector<1x32xf32>
    %50 = vector.broadcast %49 : vector<1x32xf32> to vector<14x32xf32>
    %51 = arith.mulf %46, %50 : vector<14x32xf32>
    %c0_37 = arith.constant 0 : index
    %c0_38 = arith.constant 0 : index
    %52 = vector.load %arg4[%c0_37, %c0_38] : memref<1x32xf32, #tpu.memory_space<vmem>>, vector<1x32xf32>
    %53 = vector.broadcast %52 : vector<1x32xf32> to vector<14x32xf32>
    %54 = arith.addf %51, %53 : vector<14x32xf32>
    %c0_39 = arith.constant 0 : index
    %c0_40 = arith.constant 0 : index
    %55 = vector.load %arg6[%c0_39, %c0_40] : memref<14x32xf32, #tpu.memory_space<vmem>>, vector<14x32xf32>
    tpu.vector_store %arg6[%c0_39, %c0_40], %54 {strides = array<i32>} : memref<14x32xf32, #tpu.memory_space<vmem>>, vector<14x32xf32>,
    return
  }
}

module attributes {stable_mosaic.version = 11 : i64} {
  func.func @_latent_kernel(%arg0: memref<2x128xf32, #tpu.memory_space<vmem>>, %arg1: memref<2x4xf32, #tpu.memory_space<vmem>>, %arg2: memref<128x16xf32, #tpu.memory_space<vmem>>, %arg3: memref<1x16xf32, #tpu.memory_space<vmem>>, %arg4: memref<16x8xf32, #tpu.memory_space<vmem>>, %arg5: memref<1x8xf32, #tpu.memory_space<vmem>>, %arg6: memref<3x128xf32, #tpu.memory_space<vmem>>, %arg7: memref<1x128xf32, #tpu.memory_space<vmem>>, %arg8: memref<2x8xf32, #tpu.memory_space<vmem>>, %arg9: memref<2x128xf32, #tpu.memory_space<vmem>>) attributes {dimension_semantics = [], scalar_prefetch = 0 : i64, scratch_operands = 0 : i64, tpu.core_type = #tpu.core_type<tc>} {
    %c0 = arith.constant 0 : index
    %c0_0 = arith.constant 0 : index
    %0 = vector.load %arg0[%c0, %c0_0] : memref<2x128xf32, #tpu.memory_space<vmem>>, vector<2x128xf32>
    %c0_1 = arith.constant 0 : index
    %c0_2 = arith.constant 0 : index
    %1 = vector.load %arg2[%c0_1, %c0_2] : memref<128x16xf32, #tpu.memory_space<vmem>>, vector<128x16xf32>
    %cst = arith.constant dense<0.000000e+00> : vector<2x16xf32>
    %2 = tpu.matmul %0, %1, %cst {dimension_numbers = #tpu.dot_dimension_numbers<[1], [0], [0], [1], [0, 0, 1, 1], [], []>} : vector<2x128xf32>, vector<128x16xf32>, vector<2x16xf32> -> vector<2x16xf32>
    %c0_3 = arith.constant 0 : index
    %c0_4 = arith.constant 0 : index
    %3 = vector.load %arg3[%c0_3, %c0_4] : memref<1x16xf32, #tpu.memory_space<vmem>>, vector<1x16xf32>
    %4 = vector.broadcast %3 : vector<1x16xf32> to vector<2x16xf32>
    %5 = arith.addf %2, %4 : vector<2x16xf32>
    %c0_5 = arith.constant 0 : index
    %c0_6 = arith.constant 0 : index
    %6 = vector.load %arg4[%c0_5, %c0_6] : memref<16x8xf32, #tpu.memory_space<vmem>>, vector<16x8xf32>
    %cst_7 = arith.constant dense<0.000000e+00> : vector<2x8xf32>
    %7 = tpu.matmul %5, %6, %cst_7 {dimension_numbers = #tpu.dot_dimension_numbers<[1], [0], [0], [1], [0, 0, 1, 1], [], []>} : vector<2x16xf32>, vector<16x8xf32>, vector<2x8xf32> -> vector<2x8xf32>
    %c0_8 = arith.constant 0 : index
    %c0_9 = arith.constant 0 : index
    %8 = vector.load %arg5[%c0_8, %c0_9] : memref<1x8xf32, #tpu.memory_space<vmem>>, vector<1x8xf32>
    %9 = vector.broadcast %8 : vector<1x8xf32> to vector<2x8xf32>
    %10 = arith.addf %7, %9 : vector<2x8xf32>
    %11 = vector.extract_strided_slice %10 {offsets = [0, 0], sizes = [2, 4], strides = [1, 1]} : vector<2x8xf32> to vector<2x4xf32>
    %12 = vector.extract_strided_slice %10 {offsets = [0, 4], sizes = [2, 4], strides = [1, 1]} : vector<2x8xf32> to vector<2x4xf32>
    %c0_10 = arith.constant 0 : index
    %c0_11 = arith.constant 0 : index
    %13 = vector.load %arg1[%c0_10, %c0_11] : memref<2x4xf32, #tpu.memory_space<vmem>>, vector<2x4xf32>
    %cst_12 = arith.constant 5.000000e-01 : f32
    %14 = vector.broadcast %cst_12 : f32 to vector<2x4xf32>
    %15 = arith.mulf %14, %12 : vector<2x4xf32>
    %16 = math.exp %15 : vector<2x4xf32>
    %17 = arith.mulf %13, %16 : vector<2x4xf32>
    %18 = arith.addf %11, %17 : vector<2x4xf32>
    %19 = vector.extract_strided_slice %18 {offsets = [0, 0], sizes = [2, 3], strides = [1, 1]} : vector<2x4xf32> to vector<2x3xf32>
    %c0_13 = arith.constant 0 : index
    %c0_14 = arith.constant 0 : index
    %20 = vector.load %arg6[%c0_13, %c0_14] : memref<3x128xf32, #tpu.memory_space<vmem>>, vector<3x128xf32>
    %cst_15 = arith.constant dense<0.000000e+00> : vector<2x128xf32>
    %21 = tpu.matmul %19, %20, %cst_15 {dimension_numbers = #tpu.dot_dimension_numbers<[1], [0], [0], [1], [0, 0, 1, 1], [], []>} : vector<2x3xf32>, vector<3x128xf32>, vector<2x128xf32> -> vector<2x128xf32>
    %c0_16 = arith.constant 0 : index
    %c0_17 = arith.constant 0 : index
    %22 = vector.load %arg7[%c0_16, %c0_17] : memref<1x128xf32, #tpu.memory_space<vmem>>, vector<1x128xf32>
    %23 = vector.broadcast %22 : vector<1x128xf32> to vector<2x128xf32>
    %24 = arith.addf %21, %23 : vector<2x128xf32>
    %cst_18 = arith.constant 0.000000e+00 : f32
    %25 = vector.broadcast %cst_18 : f32 to vector<2x128xf32>
    %26 = arith.maximumf %24, %25 : vector<2x128xf32>
    %c0_19 = arith.constant 0 : index
    %c0_20 = arith.constant 0 : index
    %27 = vector.load %arg8[%c0_19, %c0_20] : memref<2x8xf32, #tpu.memory_space<vmem>>, vector<2x8xf32>
    tpu.vector_store %arg8[%c0_19, %c0_20], %10 {strides = array<i32>} : memref<2x8xf32, #tpu.memory_space<vmem>>, vector<2x8xf32>,
    %c0_21 = arith.constant 0 : index
    %c0_22 = arith.constant 0 : index
    %28 = vector.load %arg9[%c0_21, %c0_22] : memref<2x128xf32, #tpu.memory_space<vmem>>, vector<2x128xf32>
    tpu.vector_store %arg9[%c0_21, %c0_22], %26 {strides = array<i32>} : memref<2x128xf32, #tpu.memory_space<vmem>>, vector<2x128xf32>,
    return
  }
}

module attributes {stable_mosaic.version = 11 : i64} {
  func.func @_dec_stage_kernel(%arg0: memref<18x32xbf16, #tpu.memory_space<vmem>>, %arg1: memref<32x16xbf16, #tpu.memory_space<vmem>>, %arg2: memref<64x16xbf16, #tpu.memory_space<vmem>>, %arg3: memref<64x16xbf16, #tpu.memory_space<vmem>>, %arg4: memref<128x16xbf16, #tpu.memory_space<vmem>>, %arg5: memref<1x16xf32, #tpu.memory_space<vmem>>, %arg6: memref<1x16xf32, #tpu.memory_space<vmem>>, %arg7: memref<1x16xf32, #tpu.memory_space<vmem>>, %arg8: memref<14x1xf32, #tpu.memory_space<vmem>>, %arg9: memref<14x64xbf16, #tpu.memory_space<vmem>>) attributes {dimension_semantics = [], scalar_prefetch = 0 : i64, scratch_operands = 0 : i64, tpu.core_type = #tpu.core_type<tc>} {
    %c0 = arith.constant 0 : index
    %c0_0 = arith.constant 0 : index
    %0 = vector.load %arg0[%c0, %c0_0] : memref<18x32xbf16, #tpu.memory_space<vmem>>, vector<14x32xbf16>
    %c1 = arith.constant 1 : index
    %c0_1 = arith.constant 0 : index
    %1 = vector.load %arg0[%c1, %c0_1] : memref<18x32xbf16, #tpu.memory_space<vmem>>, vector<14x32xbf16>
    %c3 = arith.constant 3 : index
    %c0_2 = arith.constant 0 : index
    %2 = vector.load %arg0[%c3, %c0_2] : memref<18x32xbf16, #tpu.memory_space<vmem>>, vector<14x32xbf16>
    %c4 = arith.constant 4 : index
    %c0_3 = arith.constant 0 : index
    %3 = vector.load %arg0[%c4, %c0_3] : memref<18x32xbf16, #tpu.memory_space<vmem>>, vector<14x32xbf16>
    %c0_4 = arith.constant 0 : index
    %c0_5 = arith.constant 0 : index
    %4 = vector.load %arg5[%c0_4, %c0_5] : memref<1x16xf32, #tpu.memory_space<vmem>>, vector<1x16xf32>
    %c0_6 = arith.constant 0 : index
    %c0_7 = arith.constant 0 : index
    %5 = vector.load %arg1[%c0_6, %c0_7] : memref<32x16xbf16, #tpu.memory_space<vmem>>, vector<32x16xbf16>
    %cst = arith.constant dense<0.000000e+00> : vector<14x16xf32>
    %6 = tpu.matmul %0, %5, %cst {dimension_numbers = #tpu.dot_dimension_numbers<[1], [0], [0], [1], [0, 0, 1, 1], [], []>} : vector<14x32xbf16>, vector<32x16xbf16>, vector<14x16xf32> -> vector<14x16xf32>
    %7 = vector.broadcast %4 : vector<1x16xf32> to vector<14x16xf32>
    %8 = arith.addf %6, %7 : vector<14x16xf32>
    %9 = tpu.concatenate %0, %1 in 1 : vector<14x32xbf16>, vector<14x32xbf16> -> vector<14x64xbf16>
    %c0_8 = arith.constant 0 : index
    %c0_9 = arith.constant 0 : index
    %10 = vector.load %arg2[%c0_8, %c0_9] : memref<64x16xbf16, #tpu.memory_space<vmem>>, vector<64x16xbf16>
    %cst_10 = arith.constant dense<0.000000e+00> : vector<14x16xf32>
    %11 = tpu.matmul %9, %10, %cst_10 {dimension_numbers = #tpu.dot_dimension_numbers<[1], [0], [0], [1], [0, 0, 1, 1], [], []>} : vector<14x64xbf16>, vector<64x16xbf16>, vector<14x16xf32> -> vector<14x16xf32>
    %12 = vector.broadcast %4 : vector<1x16xf32> to vector<14x16xf32>
    %13 = arith.addf %11, %12 : vector<14x16xf32>
    %14 = tpu.concatenate %0, %2 in 1 : vector<14x32xbf16>, vector<14x32xbf16> -> vector<14x64xbf16>
    %c0_11 = arith.constant 0 : index
    %c0_12 = arith.constant 0 : index
    %15 = vector.load %arg3[%c0_11, %c0_12] : memref<64x16xbf16, #tpu.memory_space<vmem>>, vector<64x16xbf16>
    %cst_13 = arith.constant dense<0.000000e+00> : vector<14x16xf32>
    %16 = tpu.matmul %14, %15, %cst_13 {dimension_numbers = #tpu.dot_dimension_numbers<[1], [0], [0], [1], [0, 0, 1, 1], [], []>} : vector<14x64xbf16>, vector<64x16xbf16>, vector<14x16xf32> -> vector<14x16xf32>
    %17 = vector.broadcast %4 : vector<1x16xf32> to vector<14x16xf32>
    %18 = arith.addf %16, %17 : vector<14x16xf32>
    %19 = tpu.concatenate %0, %1, %2, %3 in 1 : vector<14x32xbf16>, vector<14x32xbf16>, vector<14x32xbf16>, vector<14x32xbf16> -> vector<14x128xbf16>
    %c0_14 = arith.constant 0 : index
    %c0_15 = arith.constant 0 : index
    %20 = vector.load %arg4[%c0_14, %c0_15] : memref<128x16xbf16, #tpu.memory_space<vmem>>, vector<128x16xbf16>
    %cst_16 = arith.constant dense<0.000000e+00> : vector<14x16xf32>
    %21 = tpu.matmul %19, %20, %cst_16 {dimension_numbers = #tpu.dot_dimension_numbers<[1], [0], [0], [1], [0, 0, 1, 1], [], []>} : vector<14x128xbf16>, vector<128x16xbf16>, vector<14x16xf32> -> vector<14x16xf32>
    %22 = vector.broadcast %4 : vector<1x16xf32> to vector<14x16xf32>
    %23 = arith.addf %21, %22 : vector<14x16xf32>
    %cst_17 = arith.constant 0.000000e+00 : f32
    %24 = vector.broadcast %cst_17 : f32 to vector<14x16xf32>
    %25 = arith.maximumf %8, %24 : vector<14x16xf32>
    %cst_18 = arith.constant 0.000000e+00 : f32
    %26 = vector.broadcast %cst_18 : f32 to vector<14x16xf32>
    %27 = arith.maximumf %13, %26 : vector<14x16xf32>
    %cst_19 = arith.constant 0.000000e+00 : f32
    %28 = vector.broadcast %cst_19 : f32 to vector<14x16xf32>
    %29 = arith.maximumf %18, %28 : vector<14x16xf32>
    %cst_20 = arith.constant 0.000000e+00 : f32
    %30 = vector.broadcast %cst_20 : f32 to vector<14x16xf32>
    %31 = arith.maximumf %23, %30 : vector<14x16xf32>
    %c0_21 = arith.constant 0 : index
    %c0_22 = arith.constant 0 : index
    %32 = vector.load %arg8[%c0_21, %c0_22] : memref<14x1xf32, #tpu.memory_space<vmem>>, vector<14x1xf32>
    %cst_23 = arith.constant 0.000000e+00 : f32
    %33 = vector.broadcast %cst_23 : f32 to vector<1x16xf32>
    %cst_24 = arith.constant 0.000000e+00 : f32
    %34 = vector.broadcast %cst_24 : f32 to vector<1x16xf32>
    %35 = vector.broadcast %32 : vector<14x1xf32> to vector<14x16xf32>
    %36 = arith.mulf %25, %35 : vector<14x16xf32>
    %cst_25 = arith.constant dense<0.000000e+00> : vector<16xf32>
    %37 = vector.multi_reduction <add>, %36, %cst_25 [0] : vector<14x16xf32> to vector<16xf32>
    %38 = vector.shape_cast %37 : vector<16xf32> to vector<1x16xf32>
    %39 = arith.addf %33, %38 : vector<1x16xf32>
    %40 = arith.mulf %36, %25 : vector<14x16xf32>
    %cst_26 = arith.constant dense<0.000000e+00> : vector<16xf32>
    %41 = vector.multi_reduction <add>, %40, %cst_26 [0] : vector<14x16xf32> to vector<16xf32>
    %42 = vector.shape_cast %41 : vector<16xf32> to vector<1x16xf32>
    %43 = arith.addf %34, %42 : vector<1x16xf32>
    %44 = vector.broadcast %32 : vector<14x1xf32> to vector<14x16xf32>
    %45 = arith.mulf %27, %44 : vector<14x16xf32>
    %cst_27 = arith.constant dense<0.000000e+00> : vector<16xf32>
    %46 = vector.multi_reduction <add>, %45, %cst_27 [0] : vector<14x16xf32> to vector<16xf32>
    %47 = vector.shape_cast %46 : vector<16xf32> to vector<1x16xf32>
    %48 = arith.addf %39, %47 : vector<1x16xf32>
    %49 = arith.mulf %45, %27 : vector<14x16xf32>
    %cst_28 = arith.constant dense<0.000000e+00> : vector<16xf32>
    %50 = vector.multi_reduction <add>, %49, %cst_28 [0] : vector<14x16xf32> to vector<16xf32>
    %51 = vector.shape_cast %50 : vector<16xf32> to vector<1x16xf32>
    %52 = arith.addf %43, %51 : vector<1x16xf32>
    %53 = vector.broadcast %32 : vector<14x1xf32> to vector<14x16xf32>
    %54 = arith.mulf %29, %53 : vector<14x16xf32>
    %cst_29 = arith.constant dense<0.000000e+00> : vector<16xf32>
    %55 = vector.multi_reduction <add>, %54, %cst_29 [0] : vector<14x16xf32> to vector<16xf32>
    %56 = vector.shape_cast %55 : vector<16xf32> to vector<1x16xf32>
    %57 = arith.addf %48, %56 : vector<1x16xf32>
    %58 = arith.mulf %54, %29 : vector<14x16xf32>
    %cst_30 = arith.constant dense<0.000000e+00> : vector<16xf32>
    %59 = vector.multi_reduction <add>, %58, %cst_30 [0] : vector<14x16xf32> to vector<16xf32>
    %60 = vector.shape_cast %59 : vector<16xf32> to vector<1x16xf32>
    %61 = arith.addf %52, %60 : vector<1x16xf32>
    %62 = vector.broadcast %32 : vector<14x1xf32> to vector<14x16xf32>
    %63 = arith.mulf %31, %62 : vector<14x16xf32>
    %cst_31 = arith.constant dense<0.000000e+00> : vector<16xf32>
    %64 = vector.multi_reduction <add>, %63, %cst_31 [0] : vector<14x16xf32> to vector<16xf32>
    %65 = vector.shape_cast %64 : vector<16xf32> to vector<1x16xf32>
    %66 = arith.addf %57, %65 : vector<1x16xf32>
    %67 = arith.mulf %63, %31 : vector<14x16xf32>
    %cst_32 = arith.constant dense<0.000000e+00> : vector<16xf32>
    %68 = vector.multi_reduction <add>, %67, %cst_32 [0] : vector<14x16xf32> to vector<16xf32>
    %69 = vector.shape_cast %68 : vector<16xf32> to vector<1x16xf32>
    %70 = arith.addf %61, %69 : vector<1x16xf32>
    %cst_33 = arith.constant 3.125000e-02 : f32
    %71 = vector.broadcast %cst_33 : f32 to vector<1x16xf32>
    %72 = arith.mulf %66, %71 : vector<1x16xf32>
    %cst_34 = arith.constant 3.125000e-02 : f32
    %73 = vector.broadcast %cst_34 : f32 to vector<1x16xf32>
    %74 = arith.mulf %70, %73 : vector<1x16xf32>
    %75 = arith.mulf %72, %72 : vector<1x16xf32>
    %76 = arith.subf %74, %75 : vector<1x16xf32>
    %cst_35 = arith.constant 0.000000e+00 : f32
    %77 = vector.broadcast %cst_35 : f32 to vector<1x16xf32>
    %78 = arith.maximumf %76, %77 : vector<1x16xf32>
    %cst_36 = arith.constant 9.99999974E-6 : f32
    %79 = vector.broadcast %cst_36 : f32 to vector<1x16xf32>
    %80 = arith.addf %78, %79 : vector<1x16xf32>
    %81 = math.rsqrt %80 : vector<1x16xf32>
    %c0_37 = arith.constant 0 : index
    %c0_38 = arith.constant 0 : index
    %82 = vector.load %arg6[%c0_37, %c0_38] : memref<1x16xf32, #tpu.memory_space<vmem>>, vector<1x16xf32>
    %c0_39 = arith.constant 0 : index
    %c0_40 = arith.constant 0 : index
    %83 = vector.load %arg7[%c0_39, %c0_40] : memref<1x16xf32, #tpu.memory_space<vmem>>, vector<1x16xf32>
    %84 = vector.broadcast %72 : vector<1x16xf32> to vector<14x16xf32>
    %85 = arith.subf %25, %84 : vector<14x16xf32>
    %86 = vector.broadcast %82 : vector<1x16xf32> to vector<14x16xf32>
    %87 = arith.mulf %86, %85 : vector<14x16xf32>
    %88 = vector.broadcast %81 : vector<1x16xf32> to vector<14x16xf32>
    %89 = arith.mulf %87, %88 : vector<14x16xf32>
    %90 = vector.broadcast %83 : vector<1x16xf32> to vector<14x16xf32>
    %91 = arith.addf %89, %90 : vector<14x16xf32>
    %92 = vector.broadcast %72 : vector<1x16xf32> to vector<14x16xf32>
    %93 = arith.subf %27, %92 : vector<14x16xf32>
    %94 = vector.broadcast %82 : vector<1x16xf32> to vector<14x16xf32>
    %95 = arith.mulf %94, %93 : vector<14x16xf32>
    %96 = vector.broadcast %81 : vector<1x16xf32> to vector<14x16xf32>
    %97 = arith.mulf %95, %96 : vector<14x16xf32>
    %98 = vector.broadcast %83 : vector<1x16xf32> to vector<14x16xf32>
    %99 = arith.addf %97, %98 : vector<14x16xf32>
    %100 = vector.broadcast %72 : vector<1x16xf32> to vector<14x16xf32>
    %101 = arith.subf %29, %100 : vector<14x16xf32>
    %102 = vector.broadcast %82 : vector<1x16xf32> to vector<14x16xf32>
    %103 = arith.mulf %102, %101 : vector<14x16xf32>
    %104 = vector.broadcast %81 : vector<1x16xf32> to vector<14x16xf32>
    %105 = arith.mulf %103, %104 : vector<14x16xf32>
    %106 = vector.broadcast %83 : vector<1x16xf32> to vector<14x16xf32>
    %107 = arith.addf %105, %106 : vector<14x16xf32>
    %108 = vector.broadcast %72 : vector<1x16xf32> to vector<14x16xf32>
    %109 = arith.subf %31, %108 : vector<14x16xf32>
    %110 = vector.broadcast %82 : vector<1x16xf32> to vector<14x16xf32>
    %111 = arith.mulf %110, %109 : vector<14x16xf32>
    %112 = vector.broadcast %81 : vector<1x16xf32> to vector<14x16xf32>
    %113 = arith.mulf %111, %112 : vector<14x16xf32>
    %114 = vector.broadcast %83 : vector<1x16xf32> to vector<14x16xf32>
    %115 = arith.addf %113, %114 : vector<14x16xf32>
    %116 = tpu.concatenate %91, %99, %107, %115 in 1 : vector<14x16xf32>, vector<14x16xf32>, vector<14x16xf32>, vector<14x16xf32> -> vector<14x64xf32>
    %117 = arith.truncf %116 : vector<14x64xf32> to vector<14x64xbf16>
    %c0_41 = arith.constant 0 : index
    %c0_42 = arith.constant 0 : index
    %118 = vector.load %arg9[%c0_41, %c0_42] : memref<14x64xbf16, #tpu.memory_space<vmem>>, vector<14x64xbf16>
    tpu.vector_store %arg9[%c0_41, %c0_42], %117 {strides = array<i32>} : memref<14x64xbf16, #tpu.memory_space<vmem>>, vector<14x64xbf16>,
    return
  }
}

module attributes {stable_mosaic.version = 11 : i64} {
  func.func @_dec_stage_kernel(%arg0: memref<50x16xbf16, #tpu.memory_space<vmem>>, %arg1: memref<16x8xbf16, #tpu.memory_space<vmem>>, %arg2: memref<32x8xbf16, #tpu.memory_space<vmem>>, %arg3: memref<32x8xbf16, #tpu.memory_space<vmem>>, %arg4: memref<64x8xbf16, #tpu.memory_space<vmem>>, %arg5: memref<1x8xf32, #tpu.memory_space<vmem>>, %arg6: memref<1x8xf32, #tpu.memory_space<vmem>>, %arg7: memref<1x8xf32, #tpu.memory_space<vmem>>, %arg8: memref<44x1xf32, #tpu.memory_space<vmem>>, %arg9: memref<44x32xbf16, #tpu.memory_space<vmem>>) attributes {dimension_semantics = [], scalar_prefetch = 0 : i64, scratch_operands = 0 : i64, tpu.core_type = #tpu.core_type<tc>} {
    %c0 = arith.constant 0 : index
    %c0_0 = arith.constant 0 : index
    %0 = vector.load %arg0[%c0, %c0_0] : memref<50x16xbf16, #tpu.memory_space<vmem>>, vector<44x16xbf16>
    %c1 = arith.constant 1 : index
    %c0_1 = arith.constant 0 : index
    %1 = vector.load %arg0[%c1, %c0_1] : memref<50x16xbf16, #tpu.memory_space<vmem>>, vector<44x16xbf16>
    %c5 = arith.constant 5 : index
    %c0_2 = arith.constant 0 : index
    %2 = vector.load %arg0[%c5, %c0_2] : memref<50x16xbf16, #tpu.memory_space<vmem>>, vector<44x16xbf16>
    %c6 = arith.constant 6 : index
    %c0_3 = arith.constant 0 : index
    %3 = vector.load %arg0[%c6, %c0_3] : memref<50x16xbf16, #tpu.memory_space<vmem>>, vector<44x16xbf16>
    %c0_4 = arith.constant 0 : index
    %c0_5 = arith.constant 0 : index
    %4 = vector.load %arg5[%c0_4, %c0_5] : memref<1x8xf32, #tpu.memory_space<vmem>>, vector<1x8xf32>
    %c0_6 = arith.constant 0 : index
    %c0_7 = arith.constant 0 : index
    %5 = vector.load %arg1[%c0_6, %c0_7] : memref<16x8xbf16, #tpu.memory_space<vmem>>, vector<16x8xbf16>
    %cst = arith.constant dense<0.000000e+00> : vector<44x8xf32>
    %6 = tpu.matmul %0, %5, %cst {dimension_numbers = #tpu.dot_dimension_numbers<[1], [0], [0], [1], [0, 0, 1, 1], [], []>} : vector<44x16xbf16>, vector<16x8xbf16>, vector<44x8xf32> -> vector<44x8xf32>
    %7 = vector.broadcast %4 : vector<1x8xf32> to vector<44x8xf32>
    %8 = arith.addf %6, %7 : vector<44x8xf32>
    %9 = tpu.concatenate %0, %1 in 1 : vector<44x16xbf16>, vector<44x16xbf16> -> vector<44x32xbf16>
    %c0_8 = arith.constant 0 : index
    %c0_9 = arith.constant 0 : index
    %10 = vector.load %arg2[%c0_8, %c0_9] : memref<32x8xbf16, #tpu.memory_space<vmem>>, vector<32x8xbf16>
    %cst_10 = arith.constant dense<0.000000e+00> : vector<44x8xf32>
    %11 = tpu.matmul %9, %10, %cst_10 {dimension_numbers = #tpu.dot_dimension_numbers<[1], [0], [0], [1], [0, 0, 1, 1], [], []>} : vector<44x32xbf16>, vector<32x8xbf16>, vector<44x8xf32> -> vector<44x8xf32>
    %12 = vector.broadcast %4 : vector<1x8xf32> to vector<44x8xf32>
    %13 = arith.addf %11, %12 : vector<44x8xf32>
    %14 = tpu.concatenate %0, %2 in 1 : vector<44x16xbf16>, vector<44x16xbf16> -> vector<44x32xbf16>
    %c0_11 = arith.constant 0 : index
    %c0_12 = arith.constant 0 : index
    %15 = vector.load %arg3[%c0_11, %c0_12] : memref<32x8xbf16, #tpu.memory_space<vmem>>, vector<32x8xbf16>
    %cst_13 = arith.constant dense<0.000000e+00> : vector<44x8xf32>
    %16 = tpu.matmul %14, %15, %cst_13 {dimension_numbers = #tpu.dot_dimension_numbers<[1], [0], [0], [1], [0, 0, 1, 1], [], []>} : vector<44x32xbf16>, vector<32x8xbf16>, vector<44x8xf32> -> vector<44x8xf32>
    %17 = vector.broadcast %4 : vector<1x8xf32> to vector<44x8xf32>
    %18 = arith.addf %16, %17 : vector<44x8xf32>
    %19 = tpu.concatenate %0, %1, %2, %3 in 1 : vector<44x16xbf16>, vector<44x16xbf16>, vector<44x16xbf16>, vector<44x16xbf16> -> vector<44x64xbf16>
    %c0_14 = arith.constant 0 : index
    %c0_15 = arith.constant 0 : index
    %20 = vector.load %arg4[%c0_14, %c0_15] : memref<64x8xbf16, #tpu.memory_space<vmem>>, vector<64x8xbf16>
    %cst_16 = arith.constant dense<0.000000e+00> : vector<44x8xf32>
    %21 = tpu.matmul %19, %20, %cst_16 {dimension_numbers = #tpu.dot_dimension_numbers<[1], [0], [0], [1], [0, 0, 1, 1], [], []>} : vector<44x64xbf16>, vector<64x8xbf16>, vector<44x8xf32> -> vector<44x8xf32>
    %22 = vector.broadcast %4 : vector<1x8xf32> to vector<44x8xf32>
    %23 = arith.addf %21, %22 : vector<44x8xf32>
    %cst_17 = arith.constant 0.000000e+00 : f32
    %24 = vector.broadcast %cst_17 : f32 to vector<44x8xf32>
    %25 = arith.maximumf %8, %24 : vector<44x8xf32>
    %cst_18 = arith.constant 0.000000e+00 : f32
    %26 = vector.broadcast %cst_18 : f32 to vector<44x8xf32>
    %27 = arith.maximumf %13, %26 : vector<44x8xf32>
    %cst_19 = arith.constant 0.000000e+00 : f32
    %28 = vector.broadcast %cst_19 : f32 to vector<44x8xf32>
    %29 = arith.maximumf %18, %28 : vector<44x8xf32>
    %cst_20 = arith.constant 0.000000e+00 : f32
    %30 = vector.broadcast %cst_20 : f32 to vector<44x8xf32>
    %31 = arith.maximumf %23, %30 : vector<44x8xf32>
    %c0_21 = arith.constant 0 : index
    %c0_22 = arith.constant 0 : index
    %32 = vector.load %arg8[%c0_21, %c0_22] : memref<44x1xf32, #tpu.memory_space<vmem>>, vector<44x1xf32>
    %cst_23 = arith.constant 0.000000e+00 : f32
    %33 = vector.broadcast %cst_23 : f32 to vector<1x8xf32>
    %cst_24 = arith.constant 0.000000e+00 : f32
    %34 = vector.broadcast %cst_24 : f32 to vector<1x8xf32>
    %35 = vector.broadcast %32 : vector<44x1xf32> to vector<44x8xf32>
    %36 = arith.mulf %25, %35 : vector<44x8xf32>
    %cst_25 = arith.constant dense<0.000000e+00> : vector<8xf32>
    %37 = vector.multi_reduction <add>, %36, %cst_25 [0] : vector<44x8xf32> to vector<8xf32>
    %38 = vector.shape_cast %37 : vector<8xf32> to vector<1x8xf32>
    %39 = arith.addf %33, %38 : vector<1x8xf32>
    %40 = arith.mulf %36, %25 : vector<44x8xf32>
    %cst_26 = arith.constant dense<0.000000e+00> : vector<8xf32>
    %41 = vector.multi_reduction <add>, %40, %cst_26 [0] : vector<44x8xf32> to vector<8xf32>
    %42 = vector.shape_cast %41 : vector<8xf32> to vector<1x8xf32>
    %43 = arith.addf %34, %42 : vector<1x8xf32>
    %44 = vector.broadcast %32 : vector<44x1xf32> to vector<44x8xf32>
    %45 = arith.mulf %27, %44 : vector<44x8xf32>
    %cst_27 = arith.constant dense<0.000000e+00> : vector<8xf32>
    %46 = vector.multi_reduction <add>, %45, %cst_27 [0] : vector<44x8xf32> to vector<8xf32>
    %47 = vector.shape_cast %46 : vector<8xf32> to vector<1x8xf32>
    %48 = arith.addf %39, %47 : vector<1x8xf32>
    %49 = arith.mulf %45, %27 : vector<44x8xf32>
    %cst_28 = arith.constant dense<0.000000e+00> : vector<8xf32>
    %50 = vector.multi_reduction <add>, %49, %cst_28 [0] : vector<44x8xf32> to vector<8xf32>
    %51 = vector.shape_cast %50 : vector<8xf32> to vector<1x8xf32>
    %52 = arith.addf %43, %51 : vector<1x8xf32>
    %53 = vector.broadcast %32 : vector<44x1xf32> to vector<44x8xf32>
    %54 = arith.mulf %29, %53 : vector<44x8xf32>
    %cst_29 = arith.constant dense<0.000000e+00> : vector<8xf32>
    %55 = vector.multi_reduction <add>, %54, %cst_29 [0] : vector<44x8xf32> to vector<8xf32>
    %56 = vector.shape_cast %55 : vector<8xf32> to vector<1x8xf32>
    %57 = arith.addf %48, %56 : vector<1x8xf32>
    %58 = arith.mulf %54, %29 : vector<44x8xf32>
    %cst_30 = arith.constant dense<0.000000e+00> : vector<8xf32>
    %59 = vector.multi_reduction <add>, %58, %cst_30 [0] : vector<44x8xf32> to vector<8xf32>
    %60 = vector.shape_cast %59 : vector<8xf32> to vector<1x8xf32>
    %61 = arith.addf %52, %60 : vector<1x8xf32>
    %62 = vector.broadcast %32 : vector<44x1xf32> to vector<44x8xf32>
    %63 = arith.mulf %31, %62 : vector<44x8xf32>
    %cst_31 = arith.constant dense<0.000000e+00> : vector<8xf32>
    %64 = vector.multi_reduction <add>, %63, %cst_31 [0] : vector<44x8xf32> to vector<8xf32>
    %65 = vector.shape_cast %64 : vector<8xf32> to vector<1x8xf32>
    %66 = arith.addf %57, %65 : vector<1x8xf32>
    %67 = arith.mulf %63, %31 : vector<44x8xf32>
    %cst_32 = arith.constant dense<0.000000e+00> : vector<8xf32>
    %68 = vector.multi_reduction <add>, %67, %cst_32 [0] : vector<44x8xf32> to vector<8xf32>
    %69 = vector.shape_cast %68 : vector<8xf32> to vector<1x8xf32>
    %70 = arith.addf %61, %69 : vector<1x8xf32>
    %cst_33 = arith.constant 7.812500e-03 : f32
    %71 = vector.broadcast %cst_33 : f32 to vector<1x8xf32>
    %72 = arith.mulf %66, %71 : vector<1x8xf32>
    %cst_34 = arith.constant 7.812500e-03 : f32
    %73 = vector.broadcast %cst_34 : f32 to vector<1x8xf32>
    %74 = arith.mulf %70, %73 : vector<1x8xf32>
    %75 = arith.mulf %72, %72 : vector<1x8xf32>
    %76 = arith.subf %74, %75 : vector<1x8xf32>
    %cst_35 = arith.constant 0.000000e+00 : f32
    %77 = vector.broadcast %cst_35 : f32 to vector<1x8xf32>
    %78 = arith.maximumf %76, %77 : vector<1x8xf32>
    %cst_36 = arith.constant 9.99999974E-6 : f32
    %79 = vector.broadcast %cst_36 : f32 to vector<1x8xf32>
    %80 = arith.addf %78, %79 : vector<1x8xf32>
    %81 = math.rsqrt %80 : vector<1x8xf32>
    %c0_37 = arith.constant 0 : index
    %c0_38 = arith.constant 0 : index
    %82 = vector.load %arg6[%c0_37, %c0_38] : memref<1x8xf32, #tpu.memory_space<vmem>>, vector<1x8xf32>
    %c0_39 = arith.constant 0 : index
    %c0_40 = arith.constant 0 : index
    %83 = vector.load %arg7[%c0_39, %c0_40] : memref<1x8xf32, #tpu.memory_space<vmem>>, vector<1x8xf32>
    %84 = vector.broadcast %72 : vector<1x8xf32> to vector<44x8xf32>
    %85 = arith.subf %25, %84 : vector<44x8xf32>
    %86 = vector.broadcast %82 : vector<1x8xf32> to vector<44x8xf32>
    %87 = arith.mulf %86, %85 : vector<44x8xf32>
    %88 = vector.broadcast %81 : vector<1x8xf32> to vector<44x8xf32>
    %89 = arith.mulf %87, %88 : vector<44x8xf32>
    %90 = vector.broadcast %83 : vector<1x8xf32> to vector<44x8xf32>
    %91 = arith.addf %89, %90 : vector<44x8xf32>
    %92 = vector.broadcast %72 : vector<1x8xf32> to vector<44x8xf32>
    %93 = arith.subf %27, %92 : vector<44x8xf32>
    %94 = vector.broadcast %82 : vector<1x8xf32> to vector<44x8xf32>
    %95 = arith.mulf %94, %93 : vector<44x8xf32>
    %96 = vector.broadcast %81 : vector<1x8xf32> to vector<44x8xf32>
    %97 = arith.mulf %95, %96 : vector<44x8xf32>
    %98 = vector.broadcast %83 : vector<1x8xf32> to vector<44x8xf32>
    %99 = arith.addf %97, %98 : vector<44x8xf32>
    %100 = vector.broadcast %72 : vector<1x8xf32> to vector<44x8xf32>
    %101 = arith.subf %29, %100 : vector<44x8xf32>
    %102 = vector.broadcast %82 : vector<1x8xf32> to vector<44x8xf32>
    %103 = arith.mulf %102, %101 : vector<44x8xf32>
    %104 = vector.broadcast %81 : vector<1x8xf32> to vector<44x8xf32>
    %105 = arith.mulf %103, %104 : vector<44x8xf32>
    %106 = vector.broadcast %83 : vector<1x8xf32> to vector<44x8xf32>
    %107 = arith.addf %105, %106 : vector<44x8xf32>
    %108 = vector.broadcast %72 : vector<1x8xf32> to vector<44x8xf32>
    %109 = arith.subf %31, %108 : vector<44x8xf32>
    %110 = vector.broadcast %82 : vector<1x8xf32> to vector<44x8xf32>
    %111 = arith.mulf %110, %109 : vector<44x8xf32>
    %112 = vector.broadcast %81 : vector<1x8xf32> to vector<44x8xf32>
    %113 = arith.mulf %111, %112 : vector<44x8xf32>
    %114 = vector.broadcast %83 : vector<1x8xf32> to vector<44x8xf32>
    %115 = arith.addf %113, %114 : vector<44x8xf32>
    %116 = tpu.concatenate %91, %99, %107, %115 in 1 : vector<44x8xf32>, vector<44x8xf32>, vector<44x8xf32>, vector<44x8xf32> -> vector<44x32xf32>
    %117 = arith.truncf %116 : vector<44x32xf32> to vector<44x32xbf16>
    %c0_41 = arith.constant 0 : index
    %c0_42 = arith.constant 0 : index
    %118 = vector.load %arg9[%c0_41, %c0_42] : memref<44x32xbf16, #tpu.memory_space<vmem>>, vector<44x32xbf16>
    tpu.vector_store %arg9[%c0_41, %c0_42], %117 {strides = array<i32>} : memref<44x32xbf16, #tpu.memory_space<vmem>>, vector<44x32xbf16>,
    return
  }
}

module attributes {stable_mosaic.version = 11 : i64} {
  func.func @_dec_stage_kernel(%arg0: memref<162x8xbf16, #tpu.memory_space<vmem>>, %arg1: memref<8x1xbf16, #tpu.memory_space<vmem>>, %arg2: memref<16x1xbf16, #tpu.memory_space<vmem>>, %arg3: memref<16x1xbf16, #tpu.memory_space<vmem>>, %arg4: memref<32x1xbf16, #tpu.memory_space<vmem>>, %arg5: memref<1x1xf32, #tpu.memory_space<vmem>>, %arg6: memref<152x4xf32, #tpu.memory_space<vmem>>) attributes {dimension_semantics = [], scalar_prefetch = 0 : i64, scratch_operands = 0 : i64, tpu.core_type = #tpu.core_type<tc>} {
    %c0 = arith.constant 0 : index
    %c0_0 = arith.constant 0 : index
    %0 = vector.load %arg0[%c0, %c0_0] : memref<162x8xbf16, #tpu.memory_space<vmem>>, vector<152x8xbf16>
    %c1 = arith.constant 1 : index
    %c0_1 = arith.constant 0 : index
    %1 = vector.load %arg0[%c1, %c0_1] : memref<162x8xbf16, #tpu.memory_space<vmem>>, vector<152x8xbf16>
    %c9 = arith.constant 9 : index
    %c0_2 = arith.constant 0 : index
    %2 = vector.load %arg0[%c9, %c0_2] : memref<162x8xbf16, #tpu.memory_space<vmem>>, vector<152x8xbf16>
    %c10 = arith.constant 10 : index
    %c0_3 = arith.constant 0 : index
    %3 = vector.load %arg0[%c10, %c0_3] : memref<162x8xbf16, #tpu.memory_space<vmem>>, vector<152x8xbf16>
    %c0_4 = arith.constant 0 : index
    %c0_5 = arith.constant 0 : index
    %4 = vector.load %arg5[%c0_4, %c0_5] : memref<1x1xf32, #tpu.memory_space<vmem>>, vector<1x1xf32>
    %c0_6 = arith.constant 0 : index
    %c0_7 = arith.constant 0 : index
    %5 = vector.load %arg1[%c0_6, %c0_7] : memref<8x1xbf16, #tpu.memory_space<vmem>>, vector<8x1xbf16>
    %cst = arith.constant dense<0.000000e+00> : vector<152x1xf32>
    %6 = tpu.matmul %0, %5, %cst {dimension_numbers = #tpu.dot_dimension_numbers<[1], [0], [0], [1], [0, 0, 1, 1], [], []>} : vector<152x8xbf16>, vector<8x1xbf16>, vector<152x1xf32> -> vector<152x1xf32>
    %7 = vector.broadcast %4 : vector<1x1xf32> to vector<152x1xf32>
    %8 = arith.addf %6, %7 : vector<152x1xf32>
    %9 = tpu.concatenate %0, %1 in 1 : vector<152x8xbf16>, vector<152x8xbf16> -> vector<152x16xbf16>
    %c0_8 = arith.constant 0 : index
    %c0_9 = arith.constant 0 : index
    %10 = vector.load %arg2[%c0_8, %c0_9] : memref<16x1xbf16, #tpu.memory_space<vmem>>, vector<16x1xbf16>
    %cst_10 = arith.constant dense<0.000000e+00> : vector<152x1xf32>
    %11 = tpu.matmul %9, %10, %cst_10 {dimension_numbers = #tpu.dot_dimension_numbers<[1], [0], [0], [1], [0, 0, 1, 1], [], []>} : vector<152x16xbf16>, vector<16x1xbf16>, vector<152x1xf32> -> vector<152x1xf32>
    %12 = vector.broadcast %4 : vector<1x1xf32> to vector<152x1xf32>
    %13 = arith.addf %11, %12 : vector<152x1xf32>
    %14 = tpu.concatenate %0, %2 in 1 : vector<152x8xbf16>, vector<152x8xbf16> -> vector<152x16xbf16>
    %c0_11 = arith.constant 0 : index
    %c0_12 = arith.constant 0 : index
    %15 = vector.load %arg3[%c0_11, %c0_12] : memref<16x1xbf16, #tpu.memory_space<vmem>>, vector<16x1xbf16>
    %cst_13 = arith.constant dense<0.000000e+00> : vector<152x1xf32>
    %16 = tpu.matmul %14, %15, %cst_13 {dimension_numbers = #tpu.dot_dimension_numbers<[1], [0], [0], [1], [0, 0, 1, 1], [], []>} : vector<152x16xbf16>, vector<16x1xbf16>, vector<152x1xf32> -> vector<152x1xf32>
    %17 = vector.broadcast %4 : vector<1x1xf32> to vector<152x1xf32>
    %18 = arith.addf %16, %17 : vector<152x1xf32>
    %19 = tpu.concatenate %0, %1, %2, %3 in 1 : vector<152x8xbf16>, vector<152x8xbf16>, vector<152x8xbf16>, vector<152x8xbf16> -> vector<152x32xbf16>
    %c0_14 = arith.constant 0 : index
    %c0_15 = arith.constant 0 : index
    %20 = vector.load %arg4[%c0_14, %c0_15] : memref<32x1xbf16, #tpu.memory_space<vmem>>, vector<32x1xbf16>
    %cst_16 = arith.constant dense<0.000000e+00> : vector<152x1xf32>
    %21 = tpu.matmul %19, %20, %cst_16 {dimension_numbers = #tpu.dot_dimension_numbers<[1], [0], [0], [1], [0, 0, 1, 1], [], []>} : vector<152x32xbf16>, vector<32x1xbf16>, vector<152x1xf32> -> vector<152x1xf32>
    %22 = vector.broadcast %4 : vector<1x1xf32> to vector<152x1xf32>
    %23 = arith.addf %21, %22 : vector<152x1xf32>
    %cst_17 = arith.constant 0.000000e+00 : f32
    %24 = vector.broadcast %cst_17 : f32 to vector<152x1xf32>
    %25 = arith.subf %24, %8 : vector<152x1xf32>
    %26 = math.exp %25 : vector<152x1xf32>
    %cst_18 = arith.constant 1.000000e+00 : f32
    %27 = vector.broadcast %cst_18 : f32 to vector<152x1xf32>
    %28 = arith.addf %27, %26 : vector<152x1xf32>
    %29 = tpu.reciprocal %28 {approx = true} : vector<152x1xf32> -> vector<152x1xf32>
    %cst_19 = arith.constant 0.000000e+00 : f32
    %30 = vector.broadcast %cst_19 : f32 to vector<152x1xf32>
    %31 = arith.subf %30, %13 : vector<152x1xf32>
    %32 = math.exp %31 : vector<152x1xf32>
    %cst_20 = arith.constant 1.000000e+00 : f32
    %33 = vector.broadcast %cst_20 : f32 to vector<152x1xf32>
    %34 = arith.addf %33, %32 : vector<152x1xf32>
    %35 = tpu.reciprocal %34 {approx = true} : vector<152x1xf32> -> vector<152x1xf32>
    %cst_21 = arith.constant 0.000000e+00 : f32
    %36 = vector.broadcast %cst_21 : f32 to vector<152x1xf32>
    %37 = arith.subf %36, %18 : vector<152x1xf32>
    %38 = math.exp %37 : vector<152x1xf32>
    %cst_22 = arith.constant 1.000000e+00 : f32
    %39 = vector.broadcast %cst_22 : f32 to vector<152x1xf32>
    %40 = arith.addf %39, %38 : vector<152x1xf32>
    %41 = tpu.reciprocal %40 {approx = true} : vector<152x1xf32> -> vector<152x1xf32>
    %cst_23 = arith.constant 0.000000e+00 : f32
    %42 = vector.broadcast %cst_23 : f32 to vector<152x1xf32>
    %43 = arith.subf %42, %23 : vector<152x1xf32>
    %44 = math.exp %43 : vector<152x1xf32>
    %cst_24 = arith.constant 1.000000e+00 : f32
    %45 = vector.broadcast %cst_24 : f32 to vector<152x1xf32>
    %46 = arith.addf %45, %44 : vector<152x1xf32>
    %47 = tpu.reciprocal %46 {approx = true} : vector<152x1xf32> -> vector<152x1xf32>
    %48 = tpu.concatenate %29, %35, %41, %47 in 1 : vector<152x1xf32>, vector<152x1xf32>, vector<152x1xf32>, vector<152x1xf32> -> vector<152x4xf32>
    %c0_25 = arith.constant 0 : index
    %c0_26 = arith.constant 0 : index
    %49 = vector.load %arg6[%c0_25, %c0_26] : memref<152x4xf32, #tpu.memory_space<vmem>>, vector<152x4xf32>
    tpu.vector_store %arg6[%c0_25, %c0_26], %48 {strides = array<i32>} : memref<152x4xf32, #tpu.memory_space<vmem>>, vector<152x4xf32>,
    return
  }
}

</mosaic_0001>

<bundles_post_ra>
// kernel: rotvae_forward.7
= control target key start
LH: loop header
LB: loop body
LE: loop exit
PB: predicated region body
PF: predicated region fallthrough
CT: control target
= control target key end

     0   :  { %s1897_s27 = smov 1   ;;  %vm229_vm0 = vsmask.f32 7424  ;;  %s1898_s11 = smov 2   ;;  %vm796_vm1 = vcmask 1046528   ;;  %vm836_vm2 = vcmask 7168   ;;  %s3074_s0 = inlined_call_operand.vmem [shape: bf16[4,162,1], index: 0, kind: input, shape index: {}]   ;;  %s3075_s1 = inlined_call_operand.vmem [shape: bf16[9,8], index: 1, kind: input, shape index: {}]   ;;  %s3076_s2 = inlined_call_operand.vmem [shape: f32[1,8], index: 2, kind: input, shape index: {}]   ;;  %s3077_s5 = inlined_call_operand.vmem [shape: f32[152,1], index: 5, kind: input, shape index: {}]   ;;  %s3078_s3 = inlined_call_operand.vmem [shape: f32[1,8], index: 3, kind: input, shape index: {}]   ;;  %s3079_s4 = inlined_call_operand.vmem [shape: f32[1,8], index: 4, kind: input, shape index: {}]   ;;  %s3080_s6 = inlined_call_operand.vmem [shape: bf16[152,8], index: 6, kind: output, shape index: {}]  }
   0x1   :  { %v1871_v0 = vld [vmem:[%s3074_s0 + $0x74] sm:$0xff]   ;;  %v1867_v1 = vld [vmem:[%s3074_s0 + $0x64] sm:$0xff]   ;;  %v1873_v3 = vld [vmem:[%s3074_s0 + $0x7c] sm:$0xff]   ;;  %s1899_s28 = smov 3   ;;  %s1900_s13 = smov 5   ;;  %vm858_vm3 = vcmask 15360  }
   0x2   :  { %v1863_v2 = vld [vmem:[%s3074_s0 + $0x54] sm:$0xff]   ;;  %214 = vrot.lane.b32.xlu2 %v1871_v0, %s1897_s27  ;;  %210 = vrot.lane.b32.xlu1 %v1867_v1, %s1897_s27  ;;  %v1869_v4 = vld [vmem:[%s3074_s0 + $0x6c] sm:$0xff]   ;;  %s1901_s14 = smov 6   ;;  %s1902_s15 = smov 4   ;;  %vm1037_vm4 = vcmask 1043456   ;;  %vm1038_vm5 = vcmask 1044480  }
   0x3   :  { %206 = vrot.lane.b32.xlu0 %v1863_v2, %s1897_s27  ;;  %v1865_v5 = vld [vmem:[%s3074_s0 + $0x5c] sm:$0xff]   ;;  %v1966_v6 = vld [vmem:[%s3074_s0 + $0x8] sm:$0xff]   ;;  %v1981_v10 = vld [vmem:[%s3074_s0 + $0x10] sm:$0xff]   ;;  %s1903_s21 = smov 8   ;;  %s1904_s22 = smov 7   ;;  %vm879_vm6 = vcmask 23552  }
   0x4   :  { %v1971_v7 = vld [vmem:[%s3074_s0] sm:$0xff]   ;;  %v238_v8 = vshll.u32 %v1966_v6, 16  ;;  %v1878_v11 = vld [vmem:[%s3074_s0 + $0x94] sm:$0xff]   ;;  %v1877_v12 = vld [vmem:[%s3074_s0 + $0x8c] sm:$0xff]   ;;  %v242_v13 = vshrl.u32 %v1966_v6, 16  ;;  %v246_v18 = vshll.u32 %v1981_v10, 16  ;;  %v1683_v1 = vunpack.c.l.b16 %v1966_v6 }
   0x5   :  { %v233_v9 = vshll.u32 %v1971_v7, 16  ;;  %v1993_v14 = vld [vmem:[%s3074_s0 + $0x20] sm:$0xff]   ;;  %v2001_v16 = vld [vmem:[%s3074_s0 + $0x98] sm:$0xff]   ;;  %v231_v19 = vshrl.u32 %v1971_v7, 16  ;;  %v2017_v24 = vld [vmem:[%s3074_s0 + $0x28] sm:$0xff]   ;;  %v250_v38 = vshrl.u32 %v1981_v10, 16  ;;  %v1680_v0 = vunpack.c.h.b16 %v1971_v7 }
   0x6   :  { %v1875_v15 = vld [vmem:[%s3074_s0 + $0x84] sm:$0xff]   ;;  %v240_v17 = vrot.slane %v238_v8, 1  ;;  %v2008_v21 = vld [vmem:[%s3074_s0 + $0x18] sm:$0xff]   ;;  %v262_v22 = vshll.u32 %v1993_v14, 16  ;;  %v1748_v23 = vunpack.c.h.b16 %v2001_v16  ;;  %v248_v26 = vrot.slane %v246_v18, 1  ;;  %v2035_v39 = vld [vmem:[%s3074_s0 + $0x30] sm:$0xff]  }
   0x7   :  { %v235_v20 = vrot.slane %v233_v9, 1  ;;  %v254_v28 = vshll.u32 %v2008_v21, 16  ;;  %v266_v30 = vshrl.u32 %v1993_v14, 16  ;;  %v270_v31 = vshll.u32 %v2017_v24, 16  ;;  %v2029_v37 = vld [vmem:[%s3074_s0 + $0x38] sm:$0xff]   ;;  %v2051_v48 = vld [vmem:[%s3074_s0 + $0x40] sm:$0xff]  }
   0x8   :  { %v244_v25 = vor.u32 %v242_v13, %v240_v17  ;;  %v264_v29 = vrot.slane %v262_v22, 1  ;;  %v205_v32 = vpack.c.b16 %v1748_v23, %v1748_v23  ;;  %v258_v36 = vshrl.u32 %v2008_v21, 16  ;;  %v42_v45 = vld [vmem:[%s3074_s0 + $0x48] sm:$0xf]  ;;  %v63_v46 = vld [vmem:[%s3074_s0 + $0x4c] sm:$0x1] }
   0x9   :  { %v236_v27 = vor.u32 %v235_v20, %v231_v19  ;;  %v256_v35 = vrot.slane %v254_v28, 1  ;;  %v272_v41 = vrot.slane %v270_v31, 1  ;;  %v286_v42 = vshll.u32 %v2029_v37, 16  ;;  %v2081_v18 = vld [vmem:[%s3074_s0 + $0xb0] sm:$0xff]  ;;  %v109_v31 = vld [vmem:[%s3074_s0 + $0x4] sm:$0xe] }
   0xa   :  { %216 = vrot.lane.b32.xlu2 %v1873_v3, %s1897_s27  ;;  %212 = vrot.lane.b32.xlu1 %v1869_v4, %s1897_s27  ;;  %v249_v33 = vsel %vm229_vm0, %v244_v25, %v248_v26  ;;  %v268_v40 = vor.u32 %v266_v30, %v264_v29  ;;  %v278_v44 = vshll.u32 %v2035_v39, 16  ;;  %v252_v47 = vor.u32 %v250_v38, %v248_v26  ;;  %v1656_v4 = vld [vmem:[%s3074_s0 + $0xa8] sm:$0xff] }
   0xb   :  { %208 = vrot.lane.b32.xlu0 %v1865_v5, %s1897_s27  ;;  %v241_v34 = vsel %vm229_vm0, %v236_v27, %v240_v17  ;;  %v260_v43 = vor.u32 %v258_v36, %v256_v35  ;;  %v288_v50 = vrot.slane %v286_v42, 1  ;;  %v290_v51 = vshrl.u32 %v2029_v37, 16  ;;  %v2086_v19 = vld [vmem:[%s3074_s0 + $0xc] sm:$0xff]   ;;  %v2107_v42 = vld [vmem:[%s3074_s0 + $0x60] sm:$0xff]  }
   0xc   :  { %v273_v49 = vsel %vm229_vm0, %v268_v40, %v272_v41  ;;  %v2055_v52 = vunpack.c.l.b16 %v42_v45  ;;  %v227_v53 = vunpack.c.l.b16 %v63_v46  ;;  %v280_v55 = vrot.slane %v278_v44, 1  ;;  %v1659_v44 = vld [vmem:[%s3074_s0 + $0xc0] sm:$0xff] }
   0xd   :  { %v265_v54 = vsel %vm229_vm0, %v260_v43, %v264_v29  ;;  %v294_v56 = vshll.u32 %v2051_v48, 16  ;;  %v282_v57 = vshrl.u32 %v2035_v39, 16  ;;  %v257_v58 = vsel %vm229_vm0, %v252_v47, %v256_v35  ;;  %v1665_v45 = vld [vmem:[%s3074_s0 + $0xfc] sm:$0xff] }
   0xe   :  { %v274_v59 = vshrl.u32 %v2017_v24, 16  ;;  %v292_v60 = vor.u32 %v290_v51, %v288_v50  ;;  %v228_v61 = vpack.c.b16 %v227_v53, %v2055_v52  ;;  %v571_v9 = vpack.c.b16 %v1683_v1, %v1680_v0 }
   0xf   :  { %v296_v62 = vrot.slane %v294_v56, 1  ;;  %v284_v63 = vor.u32 %v282_v57, %v280_v55  ;;  %v469_v25 = vshrl.u32 %v1656_v4, 16  ;;  %v476_v27 = vshll.u32 %v2081_v18, 16  ;;  %v2132_v57 = vld [vmem:[%s3074_s0 + $0xc8] sm:$0xff] }
  0x10   :  { %v276_v2 = vor.u32 %v274_v59, %v272_v41  ;;  %v302_v3 = vshll.u32 %v228_v61, 16  ;;  %v306_v17 = vshrl.u32 %v228_v61, 16  ;;  %v584_v20 = vshll.u32 %v571_v9, 16 }
  0x11   :  { %v297_v5 = vsel %vm229_vm0, %v292_v60, %v296_v62  ;;  %v289_v8 = vsel %vm229_vm0, %v284_v63, %v288_v50  ;;  %v582_v28 = vshrl.u32 %v571_v9, 16  ;;  %v589_v30 = vshll.u32 %v2086_v19, 16 }
  0x12   :  { %222 = vrot.lane.b32.xlu2 %v1878_v11, %s1897_s27  ;;  %220 = vrot.lane.b32.xlu1 %v1877_v12, %s1897_s27  ;;  %v281_v11 = vsel %vm229_vm0, %v276_v2, %v280_v55  ;;  %v298_v12 = vshrl.u32 %v2051_v48, 16  ;;  %v304_v13 = vrot.slane %v302_v3, 1  ;;  %v586_v29 = vrot.slane %v584_v20, 1 }
  0x13   :  { %218 = vrot.lane.b32.xlu0 %v1875_v15, %s1897_s27  ;;  %v471_v15 = vshll.u32 %v1656_v4, 16  ;;  %v2100_v36 = vrot.slane %v476_v27, 1  ;;  %v2102_v40 = vrot.slane %v589_v30, 1  ;;  %v702_v53 = vshll.u32 %v2107_v42, 16  ;;  %v2187_v30 = vld [vmem:[%s3074_s0 + $0xb8] sm:$0xff] }
  0x14   :  { %v300_v22 = vor.u32 %v298_v12, %v296_v62  ;;  %v308_v23 = vor.u32 %v306_v17, %v304_v13  ;;  %v587_v38 = vor.u32 %v586_v29, %v582_v28  ;;  %v798_v55 = vrot.slane %v2086_v19, 1  ;;  %v2166_v17 = vld [vmem:[%s3074_s0 + $0x78] sm:$0xff]  }
  0x15   :  { %v473_v26 = vrot.slane %v471_v15, 1  ;;  %v492_v56 = vshll.u32 %v1659_v44, 16  ;;  %v704_v61 = vrot.slane %v702_v53, 1  ;;  %v496_v0 = vshrl.u32 %v1659_v44, 16 }
  0x16   :  { %v592_v47 = vsel %vm229_vm0, %v587_v38, %v2102_v40  ;;  %v593_v38 = vshrl.u32 %v2086_v19, 16  ;;  %v706_v53 = vshrl.u32 %v2107_v42, 16  ;;  %v2261_v19 = vld [vmem:[%s3074_s0 + $0x2c] sm:$0xff]   ;;  %vm900_vm7 = vcmask 31744  }
  0x17   :  { %v474_v35 = vor.u32 %v473_v26, %v469_v25  ;;  %v2143_v63 = vrot.slane %v492_v56, 1  ;;  %v1668_v25 = vld [vmem:[%s3074_s0 + $0x114] sm:$0xff]  ;;  %vm921_vm8 = vcmask 39936   ;;  %vm942_vm9 = vcmask 48128  }
  0x18   :  { %vm963_vm10 = vcmask 56320   ;;  %vm984_vm11 = vcmask 64512   ;;  %vm1016_vm12 = vcmask 72704  }
  0x19   :  { %v479_v46 = vsel %vm229_vm0, %v474_v35, %v2100_v36  ;;  %v484_v35 = vshll.u32 %v2187_v30, 16 }
  0x1a   :  { %311 = vrot.lane.b32.xlu2 %v249_v33, %s1898_s11  ;;  %309 = vrot.lane.b32.xlu1 %v241_v34, %s1898_s11  ;;  %v1757_v33 = vld [vmem:[%s3074_s0 + $0x58] sm:$0xff]   ;;  %v794_v34 = vunpack.c.l.b16 %v109_v31 }
  0x1b   :  { %224 = vrot.lane.b32.xlu0 %v205_v32, %s1897_s27  ;;  %v305_v32 = vsel %vm229_vm0, %v300_v22, %v304_v13  ;;  %v697_v41 = vshll.u32 %v1757_v33, 16  ;;  %v695_v50 = vshrl.u32 %v1757_v33, 16  ;;  %v2192_v31 = vld [vmem:[%s3074_s0 + $0x14] sm:$0xff]   ;;  %v1666_v33 = vld [vmem:[%s3074_s0 + $0x104] sm:$0xff] }
  0x1c   :  { %v795_v43 = vpack.c.b16 %v1683_v1, %v794_v34  ;;  %v500_v1 = vshll.u32 %v2132_v57, 16  ;;  %v480_v34 = vshrl.u32 %v2081_v18, 16  ;;  %v800_v56 = vrot.slane %v2192_v31, 1 }
  0x1d   :  { %v699_v51 = vrot.slane %v697_v41, 1  ;;  %v597_v41 = vshll.u32 %v2192_v31, 16 }
  0x1e   :  { %v2158_v12 = vrot.slane %v500_v1, 1  ;;  %v801_v42 = vsel %vm796_vm1, %v798_v55, %v800_v56 }
  0x1f   :  { %v700_v60 = vor.u32 %v699_v51, %v695_v50  ;;  %v2218_v51 = vld [vmem:[%s3074_s0 + $0x68] sm:$0xff]  }
  0x22   :  { %317 = vrot.lane.b32.xlu2 %v273_v49, %s1898_s11  ;;  %315 = vrot.lane.b32.xlu1 %v265_v54, %s1898_s11  ;;  %v2122_v49 = vld [vmem:[%s3074_s0 + $0x1c] sm:$0xff]   ;;  %v797_v54 = vrot.slane %v795_v43, 1  ;;  %v482_v43 = vor.u32 %v480_v34, %v2100_v36 }
  0x23   :  { %313 = vrot.lane.b32.xlu0 %v257_v58, %s1898_s11  ;;  %v2137_v58 = vld [vmem:[%s3074_s0 + $0x24] sm:$0xff]   ;;  %v605_v59 = vshll.u32 %v2122_v49, 16  ;;  %v609_v3 = vshrl.u32 %v2122_v49, 16 }
  0x24   :  { %v799_v62 = vsel %vm796_vm1, %v797_v54, %v798_v55  ;;  %v804_v50 = vrot.slane %v2137_v58, 1  ;;  %v710_v54 = vshll.u32 %v2218_v51, 16 }
  0x25   :  { %v2146_v2 = vrot.slane %v605_v59, 1 }
  0x27   :  { %v611_v13 = vor.u32 %v609_v3, %v2146_v2  ;;  %v2256_v3 = vld [vmem:[%s3074_s0 + $0xe8] sm:$0xff] }
  0x2a   :  { %323 = vrot.lane.b32.xlu2 %v297_v5, %s1898_s11  ;;  %321 = vrot.lane.b32.xlu1 %v289_v8, %s1898_s11  ;;  %v1760_v5 = vld [vmem:[%s3074_s0 + $0x70] sm:$0xff]   ;;  %v705_v8 = vsel %vm229_vm0, %v700_v60, %v704_v61  ;;  %v708_v60 = vor.u32 %v706_v53, %v704_v61 }
  0x2b   :  { %319 = vrot.lane.b32.xlu0 %v281_v11, %s1898_s11  ;;  %v718_v9 = vshll.u32 %v1760_v5, 16  ;;  %v498_v11 = vor.u32 %v496_v0, %v2143_v63  ;;  %v722_v22 = vshrl.u32 %v1760_v5, 16  ;;  %v1663_v0 = vld [vmem:[%s3074_s0 + $0xe0] sm:$0xff] }
  0x2c   :  { %v524_v61 = vshll.u32 %v1663_v0, 16 }
  0x2d   :  { %v2168_v20 = vrot.slane %v718_v9, 1  ;;  %v503_v26 = vsel %vm229_vm0, %v498_v11, %v2158_v12  ;;  %v1672_v9 = vld [vmem:[%s3074_s0 + $0x134] sm:$0xff] }
  0x2e   :  { %v2278_v11 = vrot.slane %v524_v61, 1 }
  0x2f   :  { %v724_v28 = vor.u32 %v722_v22, %v2168_v20  ;;  %v532_v22 = vshll.u32 %v2256_v3, 16 }
  0x32   :  { %377 = vrot.lane.b32.xlu2 %v1656_v4, %s1899_s28  ;;  %327 = vrot.lane.b32.xlu1 %v308_v23, %s1898_s11  ;;  %v613_v4 = vshll.u32 %v2137_v58, 16  ;;  %v726_v23 = vshll.u32 %v2166_v17, 16 }
  0x33   :  { %325 = vrot.lane.b32.xlu0 %v305_v32, %s1898_s11 }
  0x34   :  { %v2161_v15 = vrot.slane %v613_v4, 1  ;;  %v2181_v29 = vrot.slane %v726_v23, 1  ;;  %v2266_v4 = vld [vmem:[%s3074_s0 + $0xd0] sm:$0xff]  ;;  %v617_v23 = vshrl.u32 %v2137_v58, 16 }
  0x36   :  { %v616_v27 = vsel %vm229_vm0, %v611_v13, %v2161_v15  ;;  %v729_v32 = vsel %vm229_vm0, %v724_v28, %v2181_v29  ;;  %v528_v13 = vshrl.u32 %v1663_v0, 16  ;;  %v1712_v28 = vunpack.c.h.b16 %v2051_v48 }
  0x3a   :  { %547 = vrot.lane.b32.xlu1 %v479_v46, %s1900_s13  ;;  %660 = vrot.lane.b32.xlu2 %v592_v47, %s1901_s14  ;;  %v2211_v46 = vrot.slane %v597_v41, 1  ;;  %v802_v47 = vrot.slane %v2122_v49, 1 }
  0x3b   :  { %445 = vrot.lane.b32.xlu0 %v1665_v45, %s1902_s15  ;;  %v595_v45 = vor.u32 %v593_v38, %v2102_v40 }
  0x3c   :  { %v805_v40 = vsel %vm796_vm1, %v802_v47, %v804_v50 }
  0x3d   :  { %v600_v36 = vsel %vm229_vm0, %v595_v45, %v2211_v46 }
  0x42   :  { %816 = vrot.lane.b32.xlu1 %v799_v62, %s1903_s21  ;;  %383 = vrot.lane.b32.xlu2 %v1659_v44, %s1899_s28  ;;  %v2208_v44 = vrot.slane %v484_v35, 1  ;;  %v2237_v62 = vrot.slane %v710_v54, 1 }
  0x43   :  { %773 = vrot.lane.b32.xlu0 %v705_v8, %s1904_s22  ;;  %v1669_v8 = vld [vmem:[%s3074_s0 + $0x11c] sm:$0xff] }
  0x44   :  { %v713_v1 = vsel %vm229_vm0, %v708_v60, %v2237_v62 }
  0x4a   :  { %553 = vrot.lane.b32.xlu1 %v503_v26, %s1900_s13  ;;  %666 = vrot.lane.b32.xlu2 %v616_v27, %s1901_s14  ;;  %v508_v26 = vshll.u32 %v2266_v4, 16  ;;  %v2288_v27 = vld [vmem:[%s3074_s0 + $0x3c] sm:$0xff]  }
  0x4b   :  { %451 = vrot.lane.b32.xlu0 %v1668_v25, %s1902_s15  ;;  %v621_v25 = vshll.u32 %v2261_v19, 16  ;;  %v637_v45 = vshll.u32 %v2288_v27, 16 }
  0x4c   :  { %v2301_v41 = vrot.slane %v508_v26, 1 }
  0x4d   :  { %v2298_v34 = vrot.slane %v621_v25, 1  ;;  %v2324_v60 = vrot.slane %v637_v45, 1 }
  0x52   :  { %779 = vrot.lane.b32.xlu1 %v729_v32, %s1904_s22  ;;  %447 = vrot.lane.b32.xlu2 %v1666_v33, %s1902_s15  ;;  %v530_v32 = vor.u32 %v528_v13, %v2278_v11  ;;  %v2295_v33 = vrot.slane %v532_v22, 1 }
  0x53   :  { %379 = vrot.lane.b32.xlu0 %v2081_v18, %s1899_s28  ;;  %v487_v18 = vsel %vm229_vm0, %v482_v43, %v2208_v44  ;;  %v2304_v43 = vpack.c.b16 %v2055_v52, %v1712_v28  ;;  %v758_v28 = vshll.u32 %v2001_v16, 16 }
  0x55   :  { %v2364_v45 = vrot.slane %v758_v28, 1 }
  0x5a   :  { %549 = vrot.lane.b32.xlu1 %v487_v18, %s1900_s13  ;;  %662 = vrot.lane.b32.xlu2 %v600_v36, %s1901_s14  ;;  %v2310_v18 = vld [vmem:[%s3074_s0 + $0x80] sm:$0xff]   ;;  %v535_v36 = vsel %vm229_vm0, %v530_v32, %v2295_v33 }
  0x5b   :  { %822 = vrot.lane.b32.xlu0 %v805_v40, %s1903_s21  ;;  %v730_v40 = vshrl.u32 %v2166_v17, 16  ;;  %v734_v53 = vshll.u32 %v2310_v18, 16 }
  0x5c   :  { %v2235_v59 = vpop.permute.xlu2 %214 }
  0x5d   :  { %v732_v17 = vor.u32 %v730_v40, %v2181_v29  ;;  %v846_v32 = vsel %vm836_vm2, %v1993_v14, %v2235_v59 }
  0x62   :  { %818 = vrot.lane.b32.xlu1 %v801_v42, %s1903_s21  ;;  %385 = vrot.lane.b32.xlu2 %v2132_v57, %s1899_s28  ;;  %v1764_v42 = vld [vmem:[%s3074_s0 + $0x90] sm:$0xff]  }
  0x63   :  { %775 = vrot.lane.b32.xlu0 %v713_v1, %s1904_s22  ;;  %v2335_v1 = vrot.slane %v734_v53, 1  ;;  %v750_v13 = vshll.u32 %v1764_v42, 16  ;;  %v754_v26 = vshrl.u32 %v1764_v42, 16  ;;  %v488_v53 = vshrl.u32 %v2187_v30, 16 }
  0x64   :  { %v217_v55 = vpop.permute.xlu2 %216  ;;  %v810_v42 = vrot.slane %v2288_v27, 1 }
  0x65   :  { %v2270_v5 = vsel %vm836_vm2, %v2017_v24, %v217_v55  ;;  %v504_v24 = vshrl.u32 %v2132_v57, 16  ;;  %v619_v57 = vor.u32 %v617_v23, %v2161_v15  ;;  %v737_v25 = vsel %vm229_vm0, %v732_v17, %v2335_v1 }
  0x66   :  { %v490_v58 = vor.u32 %v488_v53, %v2208_v44  ;;  %v812_v17 = vrot.slane %v2304_v43, 1 }
  0x67   :  { %v506_v38 = vor.u32 %v504_v24, %v2158_v12  ;;  %v624_v12 = vsel %vm229_vm0, %v619_v57, %v2298_v34  ;;  %v2350_v24 = vrot.slane %v750_v13, 1 }
  0x68   :  { %v495_v44 = vsel %vm229_vm0, %v490_v58, %v2143_v63 }
  0x69   :  { %v511_v54 = vsel %vm229_vm0, %v506_v38, %v2301_v41  ;;  %v756_v38 = vor.u32 %v754_v26, %v2350_v24 }
  0x6a   :  { %453 = vrot.lane.b32.xlu1 %v1669_v8, %s1902_s15  ;;  %459 = vrot.lane.b32.xlu2 %v1672_v9, %s1902_s15 }
  0x6b   :  { %391 = vrot.lane.b32.xlu0 %v1663_v0, %s1899_s28  ;;  %v641_v0 = vshrl.u32 %v2288_v27, 16 }
  0x6c   :  { %v223_v35 = vpop.permute.xlu2 %222 }
  0x6d   :  { %v2314_v15 = vsel %vm836_vm2, %v2051_v48, %v223_v35  ;;  %v645_v48 = vshll.u32 %v2304_v43, 16  ;;  %v643_v8 = vor.u32 %v641_v0, %v2324_v60 }
  0x6f   :  { %v2338_v9 = vrot.slane %v645_v48, 1 }
  0x71   :  { %v648_v29 = vsel %vm229_vm0, %v643_v8, %v2338_v9 }
  0x72   :  { %561 = vrot.lane.b32.xlu1 %v535_v36, %s1900_s13  ;;  %668 = vrot.lane.b32.xlu2 %v624_v12, %s1901_s14  ;;  %v1667_v12 = vld [vmem:[%s3074_s0 + $0x10c] sm:$0xff] }
  0x73   :  { %555 = vrot.lane.b32.xlu0 %v511_v54, %s1900_s13  ;;  %v601_v54 = vshrl.u32 %v2192_v31, 16  ;;  %v1905_v31 = vmov 65535  }
  0x74   :  { %v211_v61 = vpop.permute.xlu1 %210  ;;  %v312_v55 = vpop.permute.xlu2 %311 }
  0x75   :  { %v2342_v22 = vsel %vm836_vm2, %v1981_v10, %v211_v61  ;;  %v2344_v23 = vpop.permute.xlu0 %206  ;;  %v806_v10 = vrot.slane %v2261_v19, 1 }
  0x77   :  { %v807_v40 = vsel %vm796_vm1, %v804_v50, %v806_v10  ;;  %v603_v50 = vor.u32 %v601_v54, %v2211_v46 }
  0x79   :  { %v608_v46 = vsel %vm229_vm0, %v603_v50, %v2146_v2 }
  0x7a   :  { %381 = vrot.lane.b32.xlu1 %v2187_v30, %s1899_s28  ;;  %781 = vrot.lane.b32.xlu2 %v737_v25, %s1904_s22  ;;  %v813_v25 = vsel %vm796_vm1, %v810_v42, %v812_v17 }
  0x7b   :  { %674 = vrot.lane.b32.xlu0 %v648_v29, %s1901_s14 }
  0x7c   :  { %v2361_v57 = vpop.permute.xlu1 %212  ;;  %v318_v35 = vpop.permute.xlu2 %317 }
  0x7d   :  { %v209_v36 = vpop.permute.xlu0 %208  ;;  %v2367_v14 = vsel %vm858_vm3, %v846_v32, %v318_v35  ;;  %v1676_v35 = vld [vmem:[%s3075_s1] sm:$0x10] }
  0x7e   :  { %v840_v59 = vsel %vm836_vm2, %v1966_v6, %v209_v36  ;;  %v761_v6 = vsel %vm229_vm0, %v756_v38, %v2364_v45 }
  0x7f   :  { %v2382_v0 = vsel %vm858_vm3, %v840_v59, %v312_v55  ;;  %v1539_v59 = vld [vmem:[%s3074_s0 + $0xf0] sm:$0xf] }
  0x80   :  { %v2459_v58 = vunpack.c.l.b16 %v1539_v59 }
  0x82   :  { %449 = vrot.lane.b32.xlu1 %v1667_v12, %s1902_s15  ;;  %824 = vrot.lane.b32.xlu2 %v807_v40, %s1903_s21  ;;  %v1559_v12 = vld [vmem:[%s3074_s0 + $0xf4] sm:$0x1] }
  0x83   :  { %787 = vrot.lane.b32.xlu0 %v761_v6, %s1904_s22  ;;  %v1671_v6 = vld [vmem:[%s3074_s0 + $0x12c] sm:$0xff]  ;;  %v466_v50 = vunpack.c.l.b16 %v1559_v12 }
  0x84   :  { %v221_v48 = vpop.permute.xlu1 %220  ;;  %v324_v30 = vpop.permute.xlu2 %323 }
  0x85   :  { %v852_v61 = vsel %vm836_vm2, %v2029_v37, %v221_v48  ;;  %v219_v55 = vpop.permute.xlu0 %218  ;;  %v714_v37 = vshrl.u32 %v2218_v51, 16  ;;  %v1662_v51 = vld [vmem:[%s3074_s0 + $0xd8] sm:$0xff] }
  0x86   :  { %v850_v8 = vsel %vm836_vm2, %v2035_v39, %v219_v55  ;;  %v2398_v13 = vsel %vm858_vm3, %v852_v61, %v324_v30  ;;  %v157_v39 = vpack.c.b16 %v2055_v52, %v2055_v52  ;;  %v803_v52 = vsel %vm796_vm1, %v800_v56, %v802_v47  ;;  %v2464_v61 = vld [vmem:[%s3074_s0 + $0x34] sm:$0xff]  }
  0x87   :  { %v716_v29 = vor.u32 %v714_v37, %v2237_v62  ;;  %v1644_v62 = vld [vmem:[%s3075_s1] sm:$0xf]  ;;  %v1039_v47 = vsel %vm1037_vm4, 4294967295, %v1905_v31  ;;  %v516_v56 = vshll.u32 %v1662_v51, 16  ;;  %v520_v30 = vshrl.u32 %v1662_v51, 16 }
  0x88   :  { %v1645_v49 = vor.u32 %v1676_v35, %v1644_v62  ;;  %v633_v31 = vshrl.u32 %v2464_v61, 16 }
  0x89   :  { %v721_v32 = vsel %vm229_vm0, %v716_v29, %v2168_v20  ;;  %v1040_v20 = vsel %vm1038_vm5, %v1039_v47, 0  ;;  %v518_v48 = vrot.slane %v516_v56, 1 }
  0x8a   :  { %551 = vrot.lane.b32.xlu1 %v495_v44, %s1900_s13  ;;  %664 = vrot.lane.b32.xlu2 %v608_v46, %s1901_s14  ;;  %v1042_v40 = vand.u32 %v1645_v49, %v1040_v20 }
  0x8b   :  { %830 = vrot.lane.b32.xlu0 %v813_v25, %s1903_s21  ;;  %v522_v46 = vor.u32 %v520_v30, %v518_v48  ;;  %v629_v25 = vshll.u32 %v2464_v61, 16 }
  0x8c   :  { %v2415_v63 = vpop.permute.xlu2 %377  ;;  %v2417_v2 = vpop.permute.xlu1 %309  ;;  %1051 = vmatpush.bf16.msra.mxu0 %v1042_v40  ;;  %1859 = vmatpush.bf16.msra.mxu1 %v1042_v40 }
  0x8d   :  { %v225_v26 = vpop.permute.xlu0 %224  ;;  %1861 = vmatpush.bf16.msra.mxu3 %v1042_v40  ;;  %1860 = vmatpush.bf16.msra.mxu2 %v1042_v40  ;;  %v527_v35 = vsel %vm229_vm0, %v522_v46, %v2278_v11  ;;  %v631_v49 = vrot.slane %v629_v25, 1 }
  0x8e   :  { %v2421_v28 = vsel %vm836_vm2, %v157_v39, %v225_v26  ;;  %v1670_v26 = vld [vmem:[%s3074_s0 + $0x124] sm:$0xff] }
  0x8f   :  { %v635_v12 = vor.u32 %v633_v31, %v631_v49  ;;  %v738_v31 = vshrl.u32 %v2310_v18, 16 }
  0x91   :  { %v640_v25 = vsel %vm229_vm0, %v635_v12, %v2324_v60  ;;  %v808_v12 = vrot.slane %v2464_v61, 1  ;;  %v1906_v61 = vmov 0  }
  0x92   :  { %820 = vrot.lane.b32.xlu1 %v803_v52, %s1903_s21  ;;  %389 = vrot.lane.b32.xlu2 %v1662_v51, %s1899_s28  ;;  %v1673_v51 = vld [vmem:[%s3074_s0 + $0x13c] sm:$0xff]  ;;  %v512_v52 = vshrl.u32 %v2266_v4, 16 }
  0x93   :  { %777 = vrot.lane.b32.xlu0 %v721_v32, %s1904_s22  ;;  %v536_v32 = vshrl.u32 %v2256_v3, 16  ;;  %1891 = vset.pattern.permute.xlu1 %v1906_v61 }
  0x94   :  { %v2442_v38 = vpop.permute.xlu1 %315  ;;  %v2444_v36 = vpop.permute.xlu2 %660  ;;  %v514_v47 = vor.u32 %v512_v52, %v2301_v41  ;;  %v625_v41 = vshrl.u32 %v2261_v19, 16  ;;  %1890 = vset.pattern.permute.xlu0 %v1906_v61  ;;  %1889 = vset.pattern.permute.xlu2 %v1906_v61  ;;  %v1130_v61 = vld [vmem:[%s3077_s5 + $0x48] sm:$0xff] }
  0x95   :  { %v314_v53 = vpop.permute.xlu0 %313  ;;  %v538_v20 = vor.u32 %v536_v32, %v2295_v33  ;;  %v649_v33 = vshrl.u32 %v2304_v43, 16  ;;  %v844_v43 = vsel %vm836_vm2, %v2008_v21, %v2361_v57 }
  0x96   :  { %v2454_v54 = vsel %vm858_vm3, %v2342_v22, %v314_v53  ;;  %v2472_v22 = vpack.c.b16 %v466_v50, %v2459_v58  ;;  %v627_v60 = vor.u32 %v625_v41, %v2298_v34 }
  0x98   :  { %v540_v62 = vshll.u32 %v2472_v22, 16 }
  0x9a   :  { %387 = vrot.lane.b32.xlu1 %v2266_v4, %s1899_s28  ;;  %393 = vrot.lane.b32.xlu2 %v2256_v3, %s1899_s28  ;;  %v1763_v3 = vld [vmem:[%s3074_s0 + $0x88] sm:$0xff]   ;;  %v2512_v11 = vrot.slane %v540_v62, 1 }
  0x9b   :  { %457 = vrot.lane.b32.xlu0 %v1671_v6, %s1902_s15  ;;  %v742_v40 = vshll.u32 %v1763_v3, 16 }
  0x9c   :  { %v322_v55 = vpop.permute.xlu1 %321  ;;  %v2474_v44 = vpop.permute.xlu2 %383  ;;  %v543_v46 = vsel %vm229_vm0, %v538_v20, %v2512_v11 }
  0x9d   :  { %v320_v37 = vpop.permute.xlu0 %319  ;;  %v2478_v39 = vsel %vm858_vm3, %v850_v8, %v322_v55  ;;  %v1636_v8 = vld [vmem:[%s3074_s0 + $0x4c] sm:$0xf]  ;;  %v519_v55 = vsel %vm229_vm0, %v514_v47, %v518_v48  ;;  %v838_v48 = vsel %vm836_vm2, %v1971_v7, %v2344_v23 }
  0x9e   :  { %v2482_v29 = vsel %vm858_vm3, %v2270_v5, %v320_v37  ;;  %v1674_v5 = vld [vmem:[%s3074_s0 + $0x4c] sm:$0x10]  ;;  %v746_v37 = vshrl.u32 %v1763_v3, 16  ;;  %v860_v32 = vsel %vm858_vm3, %v838_v48, %v2417_v2  ;;  %v762_v3 = vshrl.u32 %v2001_v16, 16 }
  0x9f   :  { %v2507_v4 = vor.u32 %v1674_v5, %v1636_v8  ;;  %v881_v34 = vsel %vm879_vm6, %v860_v32, %v2415_v63  ;;  %v740_v63 = vor.u32 %v738_v31, %v2335_v1 }
  0xa0   :  { %v764_v18 = vor.u32 %v762_v3, %v2364_v45  ;;  %v811_v45 = vsel %vm796_vm1, %v808_v12, %v810_v42 }
  0xa1   :  { %v653_v30 = vshll.u32 %v2507_v4, 16 }
  0xa2   :  { %455 = vrot.lane.b32.xlu1 %v1670_v26, %s1902_s15  ;;  %461 = vrot.lane.b32.xlu2 %v1673_v51, %s1902_s15  ;;  %v1675_v26 = vld [vmem:[%s3074_s0 + $0xa0] sm:$0x10]  ;;  %v651_v51 = vor.u32 %v649_v33, %v2338_v9  ;;  %v632_v9 = vsel %vm229_vm0, %v627_v60, %v631_v49 }
  0xa3   :  { %559 = vrot.lane.b32.xlu0 %v527_v35, %s1900_s13  ;;  %v2545_v52 = vrot.slane %v653_v30, 1 }
  0xa4   :  { %v328_v56 = vpop.permute.xlu1 %327  ;;  %v2514_v59 = vpop.permute.xlu2 %666 }
  0xa5   :  { %v326_v53 = vpop.permute.xlu0 %325  ;;  %v2518_v6 = vsel %vm858_vm3, %v2421_v28, %v328_v56  ;;  %v744_v28 = vrot.slane %v742_v40, 1  ;;  %v656_v2 = vsel %vm229_vm0, %v651_v51, %v2545_v52 }
  0xa6   :  { %v2522_v50 = vsel %vm858_vm3, %v2314_v15, %v326_v53  ;;  %v1640_v15 = vld [vmem:[%s3074_s0 + $0xa0] sm:$0xf] }
  0xa7   :  { %v2550_v62 = vor.u32 %v1675_v26, %v1640_v15  ;;  %v748_v8 = vor.u32 %v746_v37, %v744_v28  ;;  %v745_v30 = vsel %vm229_vm0, %v740_v63, %v744_v28  ;;  %v809_v28 = vsel %vm796_vm1, %v806_v10, %v808_v12  ;;  %v1558_v37 = vld [vmem:[%s3074_s0 + $0x144] sm:$0xf] }
  0xa8   :  { %v544_v15 = vshrl.u32 %v2472_v22, 16  ;;  %v434_v19 = vunpack.c.l.b16 %v1558_v37  ;;  %v866_v10 = vsel %vm858_vm3, %v844_v43, %v2442_v38 }
  0xa9   :  { %v766_v47 = vshll.u32 %v2550_v62, 16  ;;  %v753_v20 = vsel %vm229_vm0, %v748_v8, %v2350_v24  ;;  %v887_v26 = vsel %vm879_vm6, %v866_v10, %v2474_v44  ;;  %v770_v38 = vshrl.u32 %v2550_v62, 16 }
  0xaa   :  { %557 = vrot.lane.b32.xlu1 %v519_v55, %s1900_s13  ;;  %563 = vrot.lane.b32.xlu2 %v543_v46, %s1900_s13  ;;  %v546_v22 = vor.u32 %v544_v15, %v2512_v11  ;;  %v444_v51 = vpack.c.b16 %v434_v19, %v434_v19 }
  0xab   :  { %672 = vrot.lane.b32.xlu0 %v640_v25, %s1901_s14  ;;  %v768_v16 = vrot.slane %v766_v47, 1  ;;  %v376_v25 = vpack.c.b16 %v2459_v58, %v2459_v58  ;;  %v657_v58 = vshrl.u32 %v2507_v4, 16  ;;  %v1122_v47 = vld [vmem:[%s3077_s5 + $0x8] sm:$0xff] }
  0xac   :  { %v548_v7 = vpop.permute.xlu1 %547  ;;  %v2552_v23 = vpop.permute.xlu2 %447 }
  0xad   :  { %v446_v5 = vpop.permute.xlu0 %445  ;;  %v769_v1 = vsel %vm229_vm0, %v764_v18, %v768_v16  ;;  %v1125_v18 = vld [vmem:[%s3077_s5 + $0x20] sm:$0xff]  ;;  %vm1478_vm0 = vcmask 60416  }
  0xae   :  { %v902_v35 = vsel %vm900_vm7, %v881_v34, %v446_v5  ;;  %v772_v5 = vor.u32 %v770_v38, %v768_v16  ;;  %v1121_v34 = vld [vmem:[%s3077_s5] sm:$0xff]  ;;  %v1124_v16 = vld [vmem:[%s3077_s5 + $0x18] sm:$0xff] }
  0xaf   :  { %v923_v56 = vsel %vm921_vm8, %v902_v35, %v548_v7 }
  0xb0   :  { %v944_v40 = vsel %vm942_vm9, %v923_v56, %v2444_v36  ;;  %v814_v36 = vrot.slane %v2507_v4, 1  ;;  %v659_v4 = vor.u32 %v657_v58, %v2545_v52  ;;  %v1136_v58 = vld [vmem:[%s3077_s5 + $0x78] sm:$0xff] }
  0xb2   :  { %670 = vrot.lane.b32.xlu1 %v632_v9, %s1901_s14  ;;  %676 = vrot.lane.b32.xlu2 %v656_v2, %s1901_s14  ;;  %v815_v27 = vsel %vm796_vm1, %v812_v17, %v814_v36 }
  0xb3   :  { %785 = vrot.lane.b32.xlu0 %v753_v20, %s1904_s22 }
  0xb4   :  { %v817_v49 = vpop.permute.xlu1 %816  ;;  %v663_v41 = vpop.permute.xlu2 %662 }
  0xb5   :  { %v774_v24 = vpop.permute.xlu0 %773 }
  0xb6   :  { %v965_v53 = vsel %vm963_vm10, %v944_v40, %v774_v24 }
  0xb7   :  { %v986_v33 = vsel %vm984_vm11, %v965_v53, %v817_v49  ;;  %v1127_v49 = vld [vmem:[%s3077_s5 + $0x30] sm:$0xff] }
  0xb8   :  { %1646 = vmatmul.msk.bf16.vlgmr.msra.gmra.mxu0 %vm1016_vm12, %v986_v33 }
  0xba   :  { %783 = vrot.lane.b32.xlu1 %v745_v30, %s1904_s22  ;;  %789 = vrot.lane.b32.xlu2 %v769_v1, %s1904_s22  ;;  %v1128_v30 = vld [vmem:[%s3077_s5 + $0x38] sm:$0xff] }
  0xbb   :  { %828 = vrot.lane.b32.xlu0 %v811_v45, %s1903_s21 }
  0xbc   :  { %v554_v55 = vpop.permute.xlu1 %553  ;;  %v386_v42 = vpop.permute.xlu2 %385 }
  0xbd   :  { %v452_v46 = vpop.permute.xlu0 %451  ;;  %v889_v12 = vsel %vm879_vm6, %v2367_v14, %v386_v42  ;;  %v1126_v14 = vld [vmem:[%s3077_s5 + $0x28] sm:$0xff] }
  0xbe   :  { %v908_v60 = vsel %vm900_vm7, %v887_v26, %v452_v46 }
  0xbf   :  { %v929_v21 = vsel %vm921_vm8, %v908_v60, %v554_v55 }
  0xc0   :  { %v950_v44 = vsel %vm942_vm9, %v929_v21, %v2514_v59 }
  0xc2   :  { %832 = vrot.lane.b32.xlu1 %v815_v27, %s1903_s21  ;;  %395 = vrot.lane.b32.xlu2 %v376_v25, %s1899_s28  ;;  %v1129_v25 = vld [vmem:[%s3077_s5 + $0x40] sm:$0xff] }
  0xc3   :  { %826 = vrot.lane.b32.xlu0 %v809_v28, %s1903_s21  ;;  %v1133_v27 = vld [vmem:[%s3077_s5 + $0x60] sm:$0xff] }
  0xc4   :  { %v780_v17 = vpop.permute.xlu1 %779  ;;  %v2613_v57 = vpop.permute.xlu2 %459 }
  0xc5   :  { %v380_v48 = vpop.permute.xlu0 %379  ;;  %v971_v11 = vsel %vm963_vm10, %v950_v44, %v780_v17 }
  0xc6   :  { %v883_v7 = vsel %vm879_vm6, %v2382_v0, %v380_v48 }
  0xc7   :  { %v904_v62 = vsel %vm900_vm7, %v883_v7, %v2552_v23  ;;  %v1123_v23 = vld [vmem:[%s3077_s5 + $0x10] sm:$0xff] }
  0xc8   :  { %v1135_v7 = vld [vmem:[%s3077_s5 + $0x70] sm:$0xff] }
  0xca   :  { %565 = vrot.lane.b32.xlu1 %v546_v22, %s1900_s13  ;;  %678 = vrot.lane.b32.xlu2 %v659_v4, %s1901_s14  ;;  %v1132_v22 = vld [vmem:[%s3077_s5 + $0x58] sm:$0xff] }
  0xcb   :  { %463 = vrot.lane.b32.xlu0 %v444_v51, %s1902_s15 }
  0xcc   :  { %v550_v32 = vpop.permute.xlu1 %549  ;;  %v669_v0 = vpop.permute.xlu2 %668 }
  0xcd   :  { %v823_v52 = vpop.permute.xlu0 %822  ;;  %v925_v59 = vsel %vm921_vm8, %v904_v62, %v550_v32  ;;  %v1137_v62 = vld [vmem:[%s3077_s5 + $0x80] sm:$0xff] }
  0xce   :  { %v992_v8 = vsel %vm984_vm11, %v971_v11, %v823_v52  ;;  %v946_v35 = vsel %vm942_vm9, %v925_v59, %v663_v41  ;;  %v1134_v52 = vld [vmem:[%s3077_s5 + $0x68] sm:$0xff]  ;;  %v1139_v59 = vld [vmem:[%s3077_s5 + $0x90] sm:$0xff] }
  0xcf   :  { %1649 = vmatmul.msk.bf16.vlgmr.msra.gmra.mxu1 %vm1016_vm12, %v992_v8 }
  0xd2   :  { %834 = vrot.lane.b32.xlu1 %v814_v36, %s1903_s21  ;;  %1142 = vperm.xlu2 %1889, %v1121_v34  }
  0xd3   :  { %791 = vrot.lane.b32.xlu0 %v772_v5, %s1904_s22 }
  0xd4   :  { %v819_v9 = vpop.permute.xlu1 %818  ;;  %v782_v63 = vpop.permute.xlu2 %781 }
  0xd5   :  { %v776_v2 = vpop.permute.xlu0 %775 }
  0xd6   :  { %v967_v31 = vsel %vm963_vm10, %v946_v35, %v776_v2 }
  0xd7   :  { %v988_v3 = vsel %vm984_vm11, %v967_v31, %v819_v9 }
  0xd8   :  { %1647 = vmatmul.msk.bf16.gmra.mxu0 %vm1016_vm12, %v988_v3 }
  0xda   :  { %1152 = vperm.xlu1 %1891, %v1123_v23   ;;  %1157 = vperm.xlu2 %1889, %v1124_v16   ;;  %v1138_v23 = vld [vmem:[%s3077_s5 + $0x88] sm:$0xff] }
  0xdb   :  { %1147 = vperm.xlu0 %1890, %v1122_v47  }
  0xdc   :  { %v454_v20 = vpop.permute.xlu1 %453  ;;  %v825_v1 = vpop.permute.xlu2 %824 }
  0xdd   :  { %v392_v56 = vpop.permute.xlu0 %391  ;;  %v910_v40 = vsel %vm900_vm7, %v889_v12, %v454_v20 }
  0xde   :  { %v895_v15 = vsel %vm879_vm6, %v2398_v13, %v392_v56  ;;  %v1131_v13 = vld [vmem:[%s3077_s5 + $0x50] sm:$0xff] }
  0xdf   :  { %v916_v43 = vsel %vm900_vm7, %v895_v15, %v2613_v57 }
  0xe2   :  { %1162 = vperm.xlu1 %1891, %v1125_v18   ;;  %1167 = vperm.xlu2 %1889, %v1126_v14  }
  0xe3   :  { %1172 = vperm.xlu0 %1890, %v1127_v49  }
  0xe4   :  { %v562_v24 = vpop.permute.xlu1 %561  ;;  %v665_v28 = vpop.permute.xlu2 %664 }
  0xe5   :  { %v556_v53 = vpop.permute.xlu0 %555  ;;  %v937_v19 = vsel %vm921_vm8, %v916_v43, %v562_v24 }
  0xe6   :  { %v931_v41 = vsel %vm921_vm8, %v910_v40, %v556_v53 }
  0xe7   :  { %v952_v33 = vsel %vm942_vm9, %v931_v41, %v669_v0 }
  0xe8   :  { %v973_v45 = vsel %vm963_vm10, %v952_v33, %v782_v63 }
  0xe9   :  { %v994_v36 = vsel %vm984_vm11, %v973_v45, %v825_v1 }
  0xea   :  { %1650 = vmatmul.msk.bf16.gmra.mxu1 %vm1016_vm12, %v994_v36  ;;  %1177 = vperm.xlu1 %1891, %v1128_v30  }
  0xeb   :  { %1187 = vperm.xlu0 %1890, %v1130_v61   ;;  %1182 = vperm.xlu2 %1889, %v1129_v25  }
  0xec   :  { %v382_v55 = vpop.permute.xlu1 %381  ;;  %v390_v4 = vpop.permute.xlu2 %389 }
  0xed   :  { %v675_v46 = vpop.permute.xlu0 %674  ;;  %v885_v51 = vsel %vm879_vm6, %v2454_v54, %v382_v55  ;;  %v893_v63 = vsel %vm879_vm6, %v2478_v39, %v390_v4 }
  0xee   :  { %v958_v10 = vsel %vm942_vm9, %v937_v19, %v675_v46 }
  0xf2   :  { %1192 = vperm.xlu1 %1891, %v1131_v13  }
  0xf3   :  { %1202 = vperm.xlu0 %1890, %v1133_v27   ;;  %1197 = vperm.xlu2 %1889, %v1132_v22  }
  0xf4   :  { %v450_v42 = vpop.permute.xlu1 %449  ;;  %v394_v8 = vpop.permute.xlu2 %393 }
  0xf5   :  { %v788_v37 = vpop.permute.xlu0 %787  ;;  %v906_v21 = vsel %vm900_vm7, %v885_v51, %v450_v42  ;;  %v897_v41 = vsel %vm879_vm6, %v2522_v50, %v394_v8 }
  0xf6   :  { %v979_v26 = vsel %vm963_vm10, %v958_v10, %v788_v37 }
  0xfa   :  { %1207 = vperm.xlu1 %1891, %v1134_v52  }
  0xfb   :  { %1217 = vperm.xlu0 %1890, %v1136_v58   ;;  %1212 = vperm.xlu2 %1889, %v1135_v7  }
  0xfc   :  { %v552_v17 = vpop.permute.xlu1 %551  ;;  %v462_v0 = vpop.permute.xlu2 %461 }
  0xfd   :  { %v831_v48 = vpop.permute.xlu0 %830  ;;  %v927_v57 = vsel %vm921_vm8, %v906_v21, %v552_v17  ;;  %v918_v33 = vsel %vm900_vm7, %v897_v41, %v462_v0 }
  0xfe   :  { %v1000_v60 = vsel %vm984_vm11, %v979_v26, %v831_v48  ;;  %v948_v32 = vsel %vm942_vm9, %v927_v57, %v665_v28 }
  0xff   :  { %1653 = vmatmul.msk.bf16.vlgmr.msra.gmra.mxu3 %vm1016_vm12, %v1000_v60 }
 0x102   :  { %1222 = vperm.xlu1 %1891, %v1137_v62  }
 0x103   :  { %1232 = vperm.xlu0 %1890, %v1139_v59   ;;  %1227 = vperm.xlu2 %1889, %v1138_v23  }
 0x104   :  { %v821_v38 = vpop.permute.xlu1 %820  ;;  %v564_v31 = vpop.permute.xlu2 %563 }
 0x105   :  { %v778_v44 = vpop.permute.xlu0 %777  ;;  %v939_v1 = vsel %vm921_vm8, %v918_v33, %v564_v31 }
 0x106   :  { %v969_v11 = vsel %vm963_vm10, %v948_v32, %v778_v44 }
 0x107   :  { %v990_v54 = vsel %vm984_vm11, %v969_v11, %v821_v38  ;;  %v2752_v38 = vld [vmem:[%s3076_s2] ss:$0 sm:$0xff] }
 0x108   :  { %1648 = vmatmul.msk.bf16.gmra.mxu0 %vm1016_vm12, %v990_v54 }
 0x10c   :  { %v388_v5 = vpop.permute.xlu1 %387  ;;  %v677_v56 = vpop.permute.xlu2 %676 }
 0x10d   :  { %v458_v34 = vpop.permute.xlu0 %457  ;;  %v891_v39 = vsel %vm879_vm6, %v2482_v29, %v388_v5  ;;  %v960_v61 = vsel %vm942_vm9, %v939_v1, %v677_v56 }
 0x10e   :  { %v914_v18 = vsel %vm900_vm7, %v893_v63, %v458_v34 }
 0x114   :  { %v456_v9 = vpop.permute.xlu1 %455  ;;  %v790_v30 = vpop.permute.xlu2 %789 }
 0x115   :  { %v560_v2 = vpop.permute.xlu0 %559  ;;  %v912_v45 = vsel %vm900_vm7, %v891_v39, %v456_v9  ;;  %v981_v36 = vsel %vm963_vm10, %v960_v61, %v790_v30 }
 0x116   :  { %v935_v16 = vsel %vm921_vm8, %v914_v18, %v560_v2 }
 0x11c   :  { %v558_v35 = vpop.permute.xlu1 %557  ;;  %v396_v42 = vpop.permute.xlu2 %395 }
 0x11d   :  { %v673_v3 = vpop.permute.xlu0 %672  ;;  %v933_v14 = vsel %vm921_vm8, %v912_v45, %v558_v35  ;;  %v899_v15 = vsel %vm879_vm6, %v2518_v6, %v396_v42 }
 0x11e   :  { %v956_v49 = vsel %vm942_vm9, %v935_v16, %v673_v3 }
 0x124   :  { %v671_v47 = vpop.permute.xlu1 %670  ;;  %v679_v19 = vpop.permute.xlu2 %678 }
 0x125   :  { %v786_v20 = vpop.permute.xlu0 %785  ;;  %v954_v55 = vsel %vm942_vm9, %v933_v14, %v671_v47 }
 0x126   :  { %v977_v24 = vsel %vm963_vm10, %v956_v49, %v786_v20 }
 0x12c   :  { %v784_v12 = vpop.permute.xlu1 %783  ;;  %v1143_v21 = vpop.permute.xlu2 %1142 }
 0x12d   :  { %v829_v40 = vpop.permute.xlu0 %828  ;;  %v975_v50 = vsel %vm963_vm10, %v954_v55, %v784_v12 }
 0x12e   :  { %v998_v53 = vsel %vm984_vm11, %v977_v24, %v829_v40 }
 0x12f   :  { %1652 = vmatmul.msk.bf16.vlgmr.msra.gmra.mxu2 %vm1016_vm12, %v998_v53 }
 0x134   :  { %v833_v46 = vpop.permute.xlu1 %832  ;;  %v1158_v7 = vpop.permute.xlu2 %1157 }
 0x135   :  { %v827_v25 = vpop.permute.xlu0 %826  ;;  %v1002_v27 = vsel %vm984_vm11, %v981_v36, %v833_v46  ;;  %v1053_v13 = vpop.f32.mrf.mxu0 }
 0x136   :  { %v996_v29 = vsel %vm984_vm11, %v975_v50, %v827_v25  ;;  %1654 = vmatmul.msk.bf16.gmra.mxu3 %vm1016_vm12, %v1002_v27  ;;  %v1054_v32 = vadd.f32 %v2752_v38, %v1053_v13 }
 0x137   :  { %1651 = vmatmul.msk.bf16.gmra.mxu1 %vm1016_vm12, %v996_v29 }
 0x138   :  { %v2758_v62 = vmax.f32 %v1054_v32, 0.0 }
 0x13a   :  { %v1235_v23 = vmul.f32 %v1143_v21, %v2758_v62 }
 0x13c   :  { %v566_v28 = vpop.permute.xlu1 %565  ;;  %v1168_v16 = vpop.permute.xlu2 %1167  ;;  %v1298_v12 = vmul.f32 %v1235_v23, %v2758_v62  ;;  %v1254_v41 = vsel %vm984_vm11, %v1235_v23, 0.0 }
 0x13d   :  { %v464_v37 = vpop.permute.xlu0 %463  ;;  %v1055_v22 = vpop.f32.mrf.mxu0 }
 0x13e   :  { %v920_v58 = vsel %vm900_vm7, %v899_v15, %v464_v37  ;;  %v1056_v11 = vadd.f32 %v2752_v38, %v1055_v22  ;;  %v1317_v55 = vsel %vm984_vm11, %v1298_v12, 0.0 }
 0x13f   :  { %v941_v43 = vsel %vm921_vm8, %v920_v58, %v566_v28 }
 0x140   :  { %v962_v26 = vsel %vm942_vm9, %v941_v43, %v679_v19  ;;  %v2760_v59 = vmax.f32 %v1056_v11, 0.0 }
 0x144   :  { %v835_v10 = vpop.permute.xlu1 %834 }
 0x145   :  { %v792_v17 = vpop.permute.xlu0 %791 }
 0x146   :  { %v983_v48 = vsel %vm963_vm10, %v962_v26, %v792_v17 }
 0x147   :  { %v1004_v60 = vsel %vm984_vm11, %v983_v48, %v835_v10 }
 0x148   :  { %1655 = vmatmul.msk.bf16.gmra.mxu3 %vm1016_vm12, %v1004_v60  ;;  %v1183_v60 = vpop.permute.xlu2 %1182 }
 0x14c   :  { %v1068_v6 = vpop.f32.mrf.mxu1  ;;  %v1153_v44 = vpop.permute.xlu1 %1152 }
 0x14d   :  { %v1148_v5 = vpop.permute.xlu0 %1147  ;;  %v1069_v33 = vadd.f32 %v2752_v38, %v1068_v6 }
 0x14e   :  { %v1236_v2 = vmul.f32 %v1148_v5, %v2760_v59 }
 0x14f   :  { %v2791_v27 = vmax.f32 %v1069_v33, 0.0 }
 0x150   :  { %v1299_v63 = vmul.f32 %v1236_v2, %v2760_v59  ;;  %v1255_v24 = vsel %vm984_vm11, %v1236_v2, 0.0 }
 0x151   :  { %v1256_v36 = vadd.f32 %v1255_v24, %v1254_v41 }
 0x152   :  { %v1318_v39 = vsel %vm984_vm11, %v1299_v63, 0.0 }
 0x153   :  { %v1319_v29 = vadd.f32 %v1318_v39, %v1317_v55 }
 0x154   :  { %v1070_v54 = vpop.f32.mrf.mxu1  ;;  %v1163_v3 = vpop.permute.xlu1 %1162 }
 0x155   :  { %v1058_v4 = vpop.f32.mrf.mxu0  ;;  %v1173_v30 = vpop.permute.xlu0 %1172  ;;  %v1071_v37 = vadd.f32 %v2752_v38, %v1070_v54 }
 0x156   :  { %v1059_v52 = vadd.f32 %v2752_v38, %v1058_v4  ;;  %v1241_v48 = vmul.f32 %v1173_v30, %v2791_v27 }
 0x157   :  { %v2801_v6 = vmax.f32 %v1071_v37, 0.0 }
 0x158   :  { %v2762_v0 = vmax.f32 %v1059_v52, 0.0  ;;  %v1304_v52 = vmul.f32 %v1241_v48, %v2791_v27  ;;  %v1265_v2 = vsel %vm984_vm11, %v1241_v48, 0.0 }
 0x15a   :  { %v1237_v47 = vmul.f32 %v1153_v44, %v2762_v0 }
 0x15c   :  { %v1300_v40 = vmul.f32 %v1237_v47, %v2762_v0  ;;  %v1257_v1 = vsel %vm984_vm11, %v1237_v47, 0.0  ;;  %v1178_v28 = vpop.permute.xlu1 %1177  ;;  %v1328_v47 = vsel %vm984_vm11, %v1304_v52, 0.0 }
 0x15d   :  { %v1060_v51 = vpop.f32.mrf.mxu0  ;;  %v1258_v42 = vadd.f32 %v1257_v1, %v1256_v36  ;;  %v1188_v21 = vpop.permute.xlu0 %1187 }
 0x15e   :  { %v1061_v8 = vadd.f32 %v2752_v38, %v1060_v51  ;;  %v1320_v46 = vsel %vm984_vm11, %v1300_v40, 0.0 }
 0x15f   :  { %v1321_v19 = vadd.f32 %v1320_v46, %v1319_v29 }
 0x160   :  { %v2766_v35 = vmax.f32 %v1061_v8, 0.0 }
 0x162   :  { %v1238_v18 = vmul.f32 %v1158_v7, %v2766_v35  ;;  %v1242_v7 = vmul.f32 %v1178_v28, %v2801_v6 }
 0x164   :  { %v1301_v45 = vmul.f32 %v1238_v18, %v2766_v35  ;;  %v1259_v50 = vsel %vm984_vm11, %v1238_v18, 0.0  ;;  %v1198_v18 = vpop.permute.xlu2 %1197  ;;  %v1267_v24 = vsel %vm984_vm11, %v1242_v7, 0.0 }
 0x165   :  { %v1260_v10 = vadd.f32 %v1259_v50, %v1258_v42  ;;  %v1203_v40 = vpop.permute.xlu0 %1202 }
 0x166   :  { %v1322_v15 = vsel %vm984_vm11, %v1301_v45, 0.0 }
 0x167   :  { %v1073_v56 = vpop.f32.mrf.mxu1  ;;  %v1323_v4 = vadd.f32 %v1322_v15, %v1321_v19 }
 0x168   :  { %v1074_v17 = vadd.f32 %v2752_v38, %v1073_v56  ;;  %v1305_v56 = vmul.f32 %v1242_v7, %v2801_v6 }
 0x16a   :  { %v2804_v44 = vmax.f32 %v1074_v17, 0.0  ;;  %v1330_v30 = vsel %vm984_vm11, %v1305_v56, 0.0 }
 0x16f   :  { %v1075_v26 = vpop.f32.mrf.mxu1 }
 0x170   :  { %v1076_v54 = vadd.f32 %v2752_v38, %v1075_v26 }
 0x172   :  { %v2813_v63 = vmax.f32 %v1076_v54, 0.0 }
 0x174   :  { %v1244_v1 = vmul.f32 %v1188_v21, %v2813_v63 }
 0x176   :  { %v1271_v17 = vsel %vm984_vm11, %v1244_v1, 0.0 }
 0x182   :  { %v1088_v61 = vpop.f32.mrf.mxu3 }
 0x183   :  { %v1089_v36 = vadd.f32 %v2752_v38, %v1088_v61 }
 0x185   :  { %v1063_v57 = vpop.f32.mrf.mxu0  ;;  %v2837_v26 = vmax.f32 %v1089_v36, 0.0 }
 0x186   :  { %v1064_v9 = vadd.f32 %v2752_v38, %v1063_v57 }
 0x188   :  { %v2771_v20 = vmax.f32 %v1064_v9, 0.0 }
 0x18a   :  { %v1239_v53 = vmul.f32 %v1163_v3, %v2771_v20  ;;  %v1090_v8 = vpop.f32.mrf.mxu3 }
 0x18b   :  { %v1091_v28 = vadd.f32 %v2752_v38, %v1090_v8 }
 0x18c   :  { %v1302_v25 = vmul.f32 %v1239_v53, %v2771_v20  ;;  %v1261_v58 = vsel %vm984_vm11, %v1239_v53, 0.0 }
 0x18d   :  { %v1065_v34 = vpop.f32.mrf.mxu0  ;;  %v1262_v51 = vadd.f32 %v1261_v58, %v1260_v10  ;;  %v2844_v21 = vmax.f32 %v1091_v28, 0.0 }
 0x18e   :  { %v1066_v31 = vadd.f32 %v2752_v38, %v1065_v34  ;;  %v1324_v13 = vsel %vm984_vm11, %v1302_v25, 0.0  ;;  %v1193_v34 = vpop.permute.xlu1 %1192 }
 0x18f   :  { %v1325_v32 = vadd.f32 %v1324_v13, %v1323_v4 }
 0x190   :  { %v2775_v49 = vmax.f32 %v1066_v31, 0.0  ;;  %v1243_v31 = vmul.f32 %v1183_v60, %v2804_v44  ;;  %v1213_v60 = vpop.permute.xlu2 %1212 }
 0x192   :  { %v1240_v14 = vmul.f32 %v1168_v16, %v2775_v49  ;;  %v1306_v33 = vmul.f32 %v1243_v31, %v2804_v44  ;;  %v1269_v50 = vsel %vm984_vm11, %v1243_v31, 0.0 }
 0x194   :  { %v1303_v43 = vmul.f32 %v1240_v14, %v2775_v49  ;;  %v1263_v22 = vsel %vm984_vm11, %v1240_v14, 0.0  ;;  %v1332_v42 = vsel %vm984_vm11, %v1306_v33, 0.0 }
 0x195   :  { %v1264_v11 = vadd.f32 %v1263_v22, %v1262_v51 }
 0x196   :  { %v1326_v57 = vsel %vm984_vm11, %v1303_v43, 0.0  ;;  %v1208_v37 = vpop.permute.xlu1 %1207  ;;  %v1307_v43 = vmul.f32 %v1244_v1, %v2813_v63 }
 0x197   :  { %v1327_v5 = vadd.f32 %v1326_v57, %v1325_v32  ;;  %v1266_v3 = vadd.f32 %v1265_v2, %v1264_v11  ;;  %v1218_v11 = vpop.permute.xlu0 %1217 }
 0x198   :  { %v1334_v32 = vsel %vm984_vm11, %v1307_v43, 0.0  ;;  %v1250_v56 = vmul.f32 %v1218_v11, %v2844_v21 }
 0x199   :  { %v1329_v12 = vadd.f32 %v1328_v47, %v1327_v5  ;;  %v1268_v39 = vadd.f32 %v1267_v24, %v1266_v3  ;;  %v1249_v5 = vmul.f32 %v1213_v60, %v2837_v26 }
 0x19b   :  { %v1331_v55 = vadd.f32 %v1330_v30, %v1329_v12  ;;  %v1270_v15 = vadd.f32 %v1269_v50, %v1268_v39  ;;  %v1312_v1 = vmul.f32 %v1249_v5, %v2837_v26 }
 0x19d   :  { %v1333_v48 = vadd.f32 %v1332_v42, %v1331_v55  ;;  %v1272_v57 = vadd.f32 %v1271_v17, %v1270_v15  ;;  %v1228_v55 = vpop.permute.xlu2 %1227  ;;  %v1313_v42 = vmul.f32 %v1250_v56, %v2844_v21  ;;  %v1344_v43 = vsel %vm984_vm11, %v1312_v1, 0.0 }
 0x19e   :  { %v1223_v33 = vpop.permute.xlu1 %1222 }
 0x1b2   :  { %v1083_v9 = vpop.f32.mrf.mxu2 }
 0x1b3   :  { %v1084_v53 = vadd.f32 %v2752_v38, %v1083_v9  ;;  %v1335_v9 = vadd.f32 %v1334_v32, %v1333_v48 }
 0x1b4   :  { %v1078_v23 = vpop.f32.mrf.mxu1 }
 0x1b5   :  { %v1079_v16 = vadd.f32 %v2752_v38, %v1078_v23  ;;  %v2826_v25 = vmax.f32 %v1084_v53, 0.0 }
 0x1b7   :  { %v2818_v41 = vmax.f32 %v1079_v16, 0.0  ;;  %v1247_v13 = vmul.f32 %v1203_v40, %v2826_v25 }
 0x1b9   :  { %v1245_v45 = vmul.f32 %v1193_v34, %v2818_v41  ;;  %v1093_v14 = vpop.f32.mrf.mxu3  ;;  %v1310_v31 = vmul.f32 %v1247_v13, %v2826_v25 }
 0x1ba   :  { %v1085_v46 = vpop.f32.mrf.mxu2  ;;  %v1094_v4 = vadd.f32 %v2752_v38, %v1093_v14 }
 0x1bb   :  { %v1086_v29 = vadd.f32 %v2752_v38, %v1085_v46  ;;  %v1308_v19 = vmul.f32 %v1245_v45, %v2818_v41  ;;  %v1273_v22 = vsel %vm984_vm11, %v1245_v45, 0.0  ;;  %v1340_v45 = vsel %vm984_vm11, %v1310_v31, 0.0 }
 0x1bc   :  { %v1080_v58 = vpop.f32.mrf.mxu1  ;;  %v1274_v34 = vadd.f32 %v1273_v22, %v1272_v57  ;;  %v2853_v3 = vmax.f32 %v1094_v4, 0.0  ;;  %v1346_v22 = vsel %vm984_vm11, %v1313_v42, 0.0 }
 0x1bd   :  { %v2833_v61 = vmax.f32 %v1086_v29, 0.0  ;;  %v1081_v10 = vadd.f32 %v2752_v38, %v1080_v58  ;;  %v1336_v52 = vsel %vm984_vm11, %v1308_v19, 0.0  ;;  %v1281_v29 = vsel %vm984_vm11, %v1249_v5, 0.0 }
 0x1be   :  { %v1337_v16 = vadd.f32 %v1336_v52, %v1335_v9  ;;  %v1251_v36 = vmul.f32 %v1223_v33, %v2853_v3  ;;  %v1283_v19 = vsel %vm984_vm11, %v1250_v56, 0.0 }
 0x1bf   :  { %v2842_v51 = vmax.f32 %v1081_v10, 0.0  ;;  %v1248_v7 = vmul.f32 %v1208_v37, %v2833_v61 }
 0x1c0   :  { %v1314_v10 = vmul.f32 %v1251_v36, %v2853_v3  ;;  %v1285_v4 = vsel %vm984_vm11, %v1251_v36, 0.0 }
 0x1c1   :  { %v1246_v54 = vmul.f32 %v1198_v18, %v2842_v51  ;;  %v1095_v8 = vpop.f32.mrf.mxu3  ;;  %v1277_v18 = vsel %vm984_vm11, %v1247_v13, 0.0  ;;  %v1311_v24 = vmul.f32 %v1248_v7, %v2833_v61  ;;  %v1279_v14 = vsel %vm984_vm11, %v1248_v7, 0.0  ;;  %v1233_v7 = vpop.permute.xlu0 %1232 }
 0x1c2   :  { %v1096_v2 = vadd.f32 %v2752_v38, %v1095_v8 }
 0x1c3   :  { %v1275_v23 = vsel %vm984_vm11, %v1246_v54, 0.0  ;;  %v1309_v47 = vmul.f32 %v1246_v54, %v2842_v51  ;;  %v1342_v28 = vsel %vm984_vm11, %v1311_v24, 0.0  ;;  %v1348_v54 = vsel %vm984_vm11, %v1314_v10, 0.0 }
 0x1c4   :  { %v1276_v12 = vadd.f32 %v1275_v23, %v1274_v34  ;;  %v2861_v53 = vmax.f32 %v1096_v2, 0.0 }
 0x1c5   :  { %v1338_v40 = vsel %vm984_vm11, %v1309_v47, 0.0 }
 0x1c6   :  { %v1278_v39 = vadd.f32 %v1277_v18, %v1276_v12  ;;  %v1339_v30 = vadd.f32 %v1338_v40, %v1337_v16  ;;  %v1252_v37 = vmul.f32 %v1228_v55, %v2861_v53 }
 0x1c8   :  { %v1280_v46 = vadd.f32 %v1279_v14, %v1278_v39  ;;  %v1341_v50 = vadd.f32 %v1340_v45, %v1339_v30  ;;  %v1315_v57 = vmul.f32 %v1252_v37, %v2861_v53  ;;  %v1287_v8 = vsel %vm984_vm11, %v1252_v37, 0.0 }
 0x1ca   :  { %v1343_v15 = vadd.f32 %v1342_v28, %v1341_v50  ;;  %v1282_v58 = vadd.f32 %v1281_v29, %v1280_v46 }
 0x1cb   :  { %v1098_v17 = vpop.f32.mrf.mxu3 }
 0x1cc   :  { %v1284_v48 = vadd.f32 %v1283_v19, %v1282_v58  ;;  %v1345_v60 = vadd.f32 %v1344_v43, %v1343_v15  ;;  %v1099_v13 = vadd.f32 %v2752_v38, %v1098_v17  ;;  %v1350_v38 = vsel %vm984_vm11, %v1315_v57, 0.0 }
 0x1ce   :  { %v1286_v32 = vadd.f32 %v1285_v4, %v1284_v48  ;;  %v1347_v11 = vadd.f32 %v1346_v22, %v1345_v60  ;;  %v2878_v52 = vmax.f32 %v1099_v13, 0.0  ;;  %v2898_v60 = vld [vmem:[%s3078_s3] ss:$0 sm:$0xff] }
 0x1d0   :  { %v1288_v5 = vadd.f32 %v1287_v8, %v1286_v32  ;;  %v1349_v34 = vadd.f32 %v1348_v54, %v1347_v11  ;;  %v1253_v9 = vmul.f32 %v1233_v7, %v2878_v52 }
 0x1d2   :  { %v1351_v2 = vadd.f32 %v1350_v38, %v1349_v34  ;;  %v1289_v31 = vsel %vm984_vm11, %v1253_v9, 0.0  ;;  %v1316_v23 = vmul.f32 %v1253_v9, %v2878_v52 }
 0x1d3   :  { %v1290_v47 = vadd.f32 %v1289_v31, %v1288_v5  ;;  %v1100_v56 = vpop.f32.mrf.mxu3 }
 0x1d4   :  { %v1352_v16 = vsel %vm984_vm11, %v1316_v23, 0.0 }
 0x1d5   :  { %v1291_v12 = vrot.slane %v1290_v47, 4  ;;  %v1353_v18 = vadd.f32 %v1352_v16, %v1351_v2 }
 0x1d7   :  { %v1292_v24 = vadd.f32 %v1291_v12, %v1290_v47  ;;  %v1354_v40 = vrot.slane %v1353_v18, 4 }
 0x1d9   :  { %v1293_v33 = vrot.slane %v1292_v24, 2  ;;  %v1355_v39 = vadd.f32 %v1354_v40, %v1353_v18 }
 0x1db   :  { %v1294_v30 = vadd.f32 %v1293_v33, %v1292_v24  ;;  %v1356_v1 = vrot.slane %v1355_v39, 2 }
 0x1dd   :  { %v1295_v45 = vrot.slane %v1294_v30, 1  ;;  %v1357_v14 = vadd.f32 %v1356_v1, %v1355_v39 }
 0x1df   :  { %v1296_v36 = vadd.f32 %v1295_v45, %v1294_v30  ;;  %v1358_v55 = vrot.slane %v1357_v14, 1 }
 0x1e1   :  { %v2887_v46 = vmul.f32 0.0078125, %v1296_v36  ;;  %v1359_v50 = vadd.f32 %v1358_v55, %v1357_v14 }
 0x1e3   :  { %v1360_v29 = vmul.f32 0.0078125, %v1359_v50  ;;  %v1361_v42 = vmul.f32 %v2887_v46, %v2887_v46  ;;  %v1365_v17 = vsub.f32 %v2758_v62, %v2887_v46  ;;  %v1366_v48 = vsub.f32 %v2760_v59, %v2887_v46 }
 0x1e4   :  { %v1367_v22 = vsub.f32 %v2762_v0, %v2887_v46  ;;  %v1368_v4 = vsub.f32 %v2766_v35, %v2887_v46  ;;  %v1369_v57 = vsub.f32 %v2771_v20, %v2887_v46  ;;  %v1370_v62 = vsub.f32 %v2775_v49, %v2887_v46 }
 0x1e5   :  { %v1362_v28 = vsub.f32 %v1360_v29, %v1361_v42  ;;  %v1371_v59 = vsub.f32 %v2791_v27, %v2887_v46  ;;  %v1372_v11 = vsub.f32 %v2801_v6, %v2887_v46  ;;  %v1373_v0 = vsub.f32 %v2804_v44, %v2887_v46 }
 0x1e6   :  { %v1374_v35 = vsub.f32 %v2813_v63, %v2887_v46  ;;  %v1375_v20 = vsub.f32 %v2818_v41, %v2887_v46  ;;  %v1376_v49 = vsub.f32 %v2842_v51, %v2887_v46  ;;  %v1387_v27 = vmul.f32 %v2898_v60, %v1365_v17 }
 0x1e7   :  { %v1363_v37 = vmax.f32 %v1362_v28, 0.0  ;;  %v1388_v7 = vmul.f32 %v2898_v60, %v1366_v48  ;;  %v1377_v6 = vsub.f32 %v2826_v25, %v2887_v46  ;;  %v1378_v44 = vsub.f32 %v2833_v61, %v2887_v46  ;;  %v2938_v25 = vld [vmem:[%s3079_s4] ss:$0 sm:$0xff] }
 0x1e8   :  { %v1389_v63 = vmul.f32 %v2898_v60, %v1367_v22  ;;  %v1390_v41 = vmul.f32 %v2898_v60, %v1368_v4  ;;  %v1379_v8 = vsub.f32 %v2837_v26, %v2887_v46  ;;  %v1391_v51 = vmul.f32 %v2898_v60, %v1369_v57 }
 0x1e9   :  { %v1406_v15 = vadd.f32 1e-05, %v1363_v37  ;;  %v1380_v61 = vsub.f32 %v2844_v21, %v2887_v46  ;;  %v1392_v9 = vmul.f32 %v2898_v60, %v1370_v62  ;;  %v1381_v2 = vsub.f32 %v2853_v3, %v2887_v46 }
 0x1ea   :  { %v1382_v31 = vsub.f32 %v2861_v53, %v2887_v46  ;;  %v1393_v23 = vmul.f32 %v2898_v60, %v1371_v59  ;;  %v1383_v56 = vsub.f32 %v2878_v52, %v2887_v46  ;;  %v1394_v21 = vmul.f32 %v2898_v60, %v1372_v11 }
 0x1eb   :  { %1895 = vrsqrt.f32 %v1406_v15  ;;  %vm1413_vm14 = vweird.f32 %v1406_v15  ;;  %v1395_v16 = vmul.f32 %v2898_v60, %v1373_v0  ;;  %v1396_v18 = vmul.f32 %v2898_v60, %v1374_v35 }
 0x1ec   :  { %v1397_v40 = vmul.f32 %v2898_v60, %v1375_v20  ;;  %v1398_v30 = vmul.f32 %v2898_v60, %v1376_v49  ;;  %v1399_v1 = vmul.f32 %v2898_v60, %v1377_v6  ;;  %v1400_v36 = vmul.f32 %v2898_v60, %v1378_v44 }
 0x1ed   :  { %v1403_v62 = vmul.f32 %v2898_v60, %v1381_v2  ;;  %v1404_v0 = vmul.f32 %v2898_v60, %v1382_v31 }
 0x1f1   :  { %v1896_v58 = vpop.eup %1895 }
 0x1f2   :  { %v1408_v43 = vmul.f32 %v1896_v58, %v1406_v15  ;;  %vm1414_vm13 = vweird.f32 %v1896_v58 }
 0x1f3   :  { %vm1415_vm15 = vmor %vm1413_vm14, %vm1414_vm13 }
 0x1f4   :  { %v1409_v19 = vmul.f32 %v1896_v58, %v1408_v43 }
 0x1f6   :  { %v1410_v10 = vmul.f32 0.5, %v1409_v19  ;;  %v1401_v19 = vmul.f32 %v2898_v60, %v1379_v8 }
 0x1f8   :  { %v1411_v13 = vsub.f32 1.5, %v1410_v10 }
 0x1fa   :  { %v1412_v32 = vmul.f32 %v1896_v58, %v1411_v13  ;;  %v1402_v13 = vmul.f32 %v2898_v60, %v1380_v61 }
 0x1fc   :  { %v2922_v54 = vsel %vm1415_vm15, %v1896_v58, %v1412_v32 }
 0x1fd   :  { %v1417_v5 = vmul.f32 %v2922_v54, %v1387_v27  ;;  %v1418_v34 = vmul.f32 %v2922_v54, %v1388_v7  ;;  %v1419_v38 = vmul.f32 %v2922_v54, %v1389_v63  ;;  %v1420_v26 = vmul.f32 %v2922_v54, %v1390_v41 }
 0x1fe   :  { %v1421_v47 = vmul.f32 %v2922_v54, %v1391_v51  ;;  %v1422_v12 = vmul.f32 %v2922_v54, %v1392_v9  ;;  %v1423_v3 = vmul.f32 %v2922_v54, %v1393_v23  ;;  %v1424_v33 = vmul.f32 %v2922_v54, %v1394_v21 }
 0x1ff   :  { %v1440_v24 = vadd.f32 %v2938_v25, %v1417_v5  ;;  %v1441_v53 = vadd.f32 %v2938_v25, %v1418_v34  ;;  %v1442_v52 = vadd.f32 %v2938_v25, %v1419_v38  ;;  %v1443_v39 = vadd.f32 %v2938_v25, %v1420_v26 }
 0x200   :  { %v1425_v45 = vmul.f32 %v2922_v54, %v1395_v16  ;;  %v1444_v14 = vadd.f32 %v2938_v25, %v1421_v47  ;;  %v1426_v55 = vmul.f32 %v2922_v54, %v1396_v18  ;;  %v1445_v46 = vadd.f32 %v2938_v25, %v1422_v12 }
 0x201   :  { %v1427_v50 = vmul.f32 %v2922_v54, %v1397_v40  ;;  %v1446_v29 = vadd.f32 %v2938_v25, %v1423_v3  ;;  %v1459_v42 = vpack.c.bf16 %v1440_v24, %v1440_v24  ;;  %v1460_v28 = vpack.c.bf16 %v1441_v53, %v1441_v53 }
 0x202   :  { %v1428_v37 = vmul.f32 %v2922_v54, %v1398_v30  ;;  %v1447_v15 = vadd.f32 %v2938_v25, %v1424_v33  ;;  %v1461_v58 = vpack.c.bf16 %v1442_v52, %v1442_v52  ;;  %v1462_v43 = vpack.c.bf16 %v1443_v39, %v1443_v39 }
 0x203   :  { %v1429_v10 = vmul.f32 %v2922_v54, %v1399_v1  ;;  %v1448_v17 = vadd.f32 %v2938_v25, %v1425_v45  ;;  %v1463_v48 = vpack.c.bf16 %v1444_v14, %v1444_v14  ;;  %1479 = vst.msk [vmem:[%s3080_s6] sm:$0xf] %vm1478_vm0, %v1459_v42  ;;  %v1430_v22 = vmul.f32 %v2922_v54, %v1400_v36 }
 0x204   :  { %v1449_v4 = vadd.f32 %v2938_v25, %v1426_v55  ;;  %v1464_v57 = vpack.c.bf16 %v1445_v46, %v1445_v46  ;;  %1480 = vst.msk [vmem:[%s3080_s6 + $0x4] sm:$0xf] %vm1478_vm0, %v1460_v28  ;;  %v1431_v59 = vmul.f32 %v2922_v54, %v1401_v19  ;;  %v1450_v32 = vadd.f32 %v2938_v25, %v1427_v50 }
 0x205   :  { %v1465_v11 = vpack.c.bf16 %v1446_v29, %v1446_v29  ;;  %1481 = vst.msk [vmem:[%s3080_s6 + $0x8] sm:$0xf] %vm1478_vm0, %v1461_v58  ;;  %v1432_v35 = vmul.f32 %v2922_v54, %v1402_v13  ;;  %v1451_v20 = vadd.f32 %v2938_v25, %v1428_v37  ;;  %v1466_v49 = vpack.c.bf16 %v1447_v15, %v1447_v15 }
 0x206   :  { %1482 = vst.msk [vmem:[%s3080_s6 + $0xc] sm:$0xf] %vm1478_vm0, %v1462_v43  ;;  %v1405_v27 = vmul.f32 %v2898_v60, %v1383_v56  ;;  %v1433_v7 = vmul.f32 %v2922_v54, %v1403_v62  ;;  %v1452_v6 = vadd.f32 %v2938_v25, %v1429_v10  ;;  %v1467_v44 = vpack.c.bf16 %v1448_v17, %v1448_v17 }
 0x207   :  { %1483 = vst.msk [vmem:[%s3080_s6 + $0x10] sm:$0xf] %vm1478_vm0, %v1463_v48  ;;  %v1434_v63 = vmul.f32 %v2922_v54, %v1404_v0  ;;  %v1453_v41 = vadd.f32 %v2938_v25, %v1430_v22  ;;  %v1468_v8 = vpack.c.bf16 %v1449_v4, %v1449_v4  ;;  %v1454_v51 = vadd.f32 %v2938_v25, %v1431_v59 }
 0x208   :  { %1484 = vst.msk [vmem:[%s3080_s6 + $0x14] sm:$0xf] %vm1478_vm0, %v1464_v57  ;;  %v1435_v60 = vmul.f32 %v2922_v54, %v1405_v27  ;;  %v1469_v5 = vpack.c.bf16 %v1450_v32, %v1450_v32  ;;  %v1455_v34 = vadd.f32 %v2938_v25, %v1432_v35  ;;  %v1470_v61 = vpack.c.bf16 %v1451_v20, %v1451_v20 }
 0x209   :  { %1485 = vst.msk [vmem:[%s3080_s6 + $0x18] sm:$0xf] %vm1478_vm0, %v1465_v11  ;;  %v1456_v9 = vadd.f32 %v2938_v25, %v1433_v7  ;;  %v1471_v38 = vpack.c.bf16 %v1452_v6, %v1452_v6  ;;  %v1457_v54 = vadd.f32 %v2938_v25, %v1434_v63  ;;  %v1472_v26 = vpack.c.bf16 %v1453_v41, %v1453_v41 }
 0x20a   :  { %1486 = vst.msk [vmem:[%s3080_s6 + $0x1c] sm:$0xf] %vm1478_vm0, %v1466_v49  ;;  %v1458_v2 = vadd.f32 %v2938_v25, %v1435_v60  ;;  %v1473_v31 = vpack.c.bf16 %v1454_v51, %v1454_v51  ;;  %v1474_v23 = vpack.c.bf16 %v1455_v34, %v1455_v34 }
 0x20b   :  { %1487 = vst.msk [vmem:[%s3080_s6 + $0x20] sm:$0xf] %vm1478_vm0, %v1467_v44  ;;  %v1475_v47 = vpack.c.bf16 %v1456_v9, %v1456_v9  ;;  %v1476_v56 = vpack.c.bf16 %v1457_v54, %v1457_v54 }
 0x20c   :  { %1488 = vst.msk [vmem:[%s3080_s6 + $0x24] sm:$0xf] %vm1478_vm0, %v1468_v8  ;;  %v1477_v25 = vpack.c.bf16 %v1458_v2, %v1458_v2 }
 0x20d   :  { %1489 = vst.msk [vmem:[%s3080_s6 + $0x28] sm:$0xf] %vm1478_vm0, %v1469_v5 }
 0x20e   :  { %1490 = vst.msk [vmem:[%s3080_s6 + $0x2c] sm:$0xf] %vm1478_vm0, %v1470_v61 }
 0x20f   :  { %1491 = vst.msk [vmem:[%s3080_s6 + $0x30] sm:$0xf] %vm1478_vm0, %v1471_v38 }
 0x210   :  { %1492 = vst.msk [vmem:[%s3080_s6 + $0x34] sm:$0xf] %vm1478_vm0, %v1472_v26 }
 0x211   :  { %1493 = vst.msk [vmem:[%s3080_s6 + $0x38] sm:$0xf] %vm1478_vm0, %v1473_v31 }
 0x212   :  { %1494 = vst.msk [vmem:[%s3080_s6 + $0x3c] sm:$0xf] %vm1478_vm0, %v1474_v23 }
 0x213   :  { %1495 = vst.msk [vmem:[%s3080_s6 + $0x40] sm:$0xf] %vm1478_vm0, %v1475_v47 }
 0x214   :  { %1496 = vst.msk [vmem:[%s3080_s6 + $0x44] sm:$0xf] %vm1478_vm0, %v1476_v56 }
 0x215   :  { %1497 = vst.msk [vmem:[%s3080_s6 + $0x48] sm:$0xf] %vm1478_vm0, %v1477_v25 }

// kernel: rotvae_forward.8
= control target key start
LH: loop header
LB: loop body
LE: loop exit
PB: predicated region body
PF: predicated region fallthrough
CT: control target
= control target key end

     0   :  { %s713_s11 = smov 32   ;;  %s714_s20 = smov 8   ;;  %vm99_vm0 = vsmask.f32 7424  ;;  %vm212_vm1 = vsmask.f32 5376  ;;  %s1041_s0 = inlined_call_operand.vmem [shape: bf16[4,50,8], index: 0, kind: input, shape index: {}]   ;;  %s1042_s2 = inlined_call_operand.vmem [shape: f32[1,16], index: 2, kind: input, shape index: {}]   ;;  %s1043_s1 = inlined_call_operand.vmem [shape: bf16[72,16], index: 1, kind: input, shape index: {}]   ;;  %s1044_s5 = inlined_call_operand.vmem [shape: f32[44,1], index: 5, kind: input, shape index: {}]   ;;  %s1045_s3 = inlined_call_operand.vmem [shape: f32[1,16], index: 3, kind: input, shape index: {}]   ;;  %s1046_s4 = inlined_call_operand.vmem [shape: f32[1,16], index: 4, kind: input, shape index: {}]   ;;  %s1047_s6 = inlined_call_operand.vmem [shape: bf16[44,16], index: 6, kind: output, shape index: {}]  }
   0x1   :  { %v667_v0 = vld [vmem:[%s1041_s0 + $0x54] sm:$0xff]  ;;  %v763_v1 = vld [vmem:[%s1041_s0 + $0x2c] sm:$0xff]   ;;  %v594_v4 = vld [vmem:[%s1041_s0 + $0x1c] sm:$0xff]   ;;  %s715_s7 = smov 16   ;;  %s716_s8 = smov 24   ;;  %vm294_vm2 = vcmask 1044480  }
   0x2   :  { %v710_v2 = vld [vmem:[%s1041_s0 + $0x2c] sm:$0xf]   ;;  %v712_v3 = vld [vmem:[%s1041_s0 + $0x2c] sm:$0x30]  ;;  %v705_v5 = vld [vmem:[%s1041_s0 + $0x1c] sm:$0xf0]  ;;  %165 = vrot.lane.b32.xlu2 %v667_v0, %s713_s11 }
   0x3   :  { %v780_v6 = vld [vmem:[%s1041_s0 + $0x10] sm:$0xff]   ;;  %v665_v9 = vld [vmem:[%s1041_s0 + $0x38] sm:$0xff]  ;;  %v793_v10 = vld [vmem:[%s1041_s0] sm:$0xff]   ;;  %v711_v11 = vor.u32 %v712_v3, %v710_v2  ;;  %90 = vrot.lane.b32.xlu0 %v594_v4, %s714_s20  ;;  %s717_s14 = smov 40   ;;  %s718_s23 = smov 48   ;;  %vm412_vm3 = vcmask 1043456  }
   0x4   :  { %v37_v7 = vld [vmem:[%s1041_s0 + $0x14] sm:$0x7]  ;;  %v70_v8 = vunpack.c.l.b16 %v780_v6  ;;  %v798_v13 = vld [vmem:[%s1041_s0 + $0x8] sm:$0xff]  ;;  %v101_v14 = vshrl.u32 %v793_v10, 16  ;;  %v103_v15 = vshll.u32 %v793_v10, 16  ;;  %v177_v18 = vshll.u32 %v665_v9, 16 }
   0x5   :  { %v97_v12 = vunpack.c.l.b16 %v37_v7  ;;  %94 = vrot.lane.b32.xlu1 %v711_v11, %s714_s20  ;;  %v108_v17 = vshll.u32 %v798_v13, 16  ;;  %v810_v20 = vld [vmem:[%s1041_s0 + $0x40] sm:$0xff]  ;;  %v706_v23 = vld [vmem:[%s1041_s0 + $0x1c] sm:$0xc]  ;;  %v604_v27 = vld [vmem:[%s1041_s0 + $0x48] sm:$0xf]  ;;  %v677_v35 = vunpack.c.h.b16 %v793_v10 }
   0x6   :  { %v105_v19 = vrot.slane %v103_v15, 1  ;;  %v53_v28 = vld [vmem:[%s1041_s0] sm:$0xc]  ;;  %v175_v29 = vshrl.u32 %v665_v9, 16  ;;  %v179_v30 = vrot.slane %v177_v18, 1  ;;  %v182_v31 = vshll.u32 %v810_v20, 16 }
   0x7   :  { %v98_v16 = vpack.c.b16 %v97_v12, %v70_v8  ;;  %v110_v25 = vrot.slane %v108_v17, 1  ;;  %v605_v32 = vld [vmem:[%s1041_s0 + $0x4c] sm:$0x3]  ;;  %v206_v36 = vunpack.c.l.b16 %v53_v28  ;;  %v139_v37 = vunpack.c.l.b16 %v604_v27  ;;  %v664_v51 = vld [vmem:[%s1041_s0 + $0x24] sm:$0xff]  ;;  %v55_v2 = vld [vmem:[%s1041_s0 + $0x18] sm:$0x1] }
   0x8   :  { %v106_v24 = vor.u32 %v105_v19, %v101_v14  ;;  %v140_v38 = vunpack.c.l.b16 %v605_v32  ;;  %v180_v39 = vor.u32 %v179_v30, %v175_v29  ;;  %v830_v40 = vrot.slane %v182_v31, 1  ;;  %v612_v43 = vld [vmem:[%s1041_s0 + $0x4c] sm:$0x7]  ;;  %v642_v62 = vld [vmem:[%s1041_s0 + $0x64] sm:$0xf]  ;;  %s719_s26 = smov 56  }
   0x9   :  { %v116_v21 = vshll.u32 %v98_v16, 16  ;;  %v120_v22 = vshrl.u32 %v98_v16, 16  ;;  %v112_v41 = vshrl.u32 %v798_v13, 16  ;;  %v209_v42 = vpack.c.b16 %v677_v35, %v206_v36  ;;  %v669_v63 = vld [vmem:[%s1041_s0 + $0x64] sm:$0x30]  ;;  %s720_s29 = smov 64  }
   0xa   :  { %v111_v34 = vsel %vm99_vm0, %v106_v24, %v110_v25  ;;  %v707_v44 = vor.u32 %v706_v23, %v705_v5  ;;  %v143_v47 = vpack.c.b16 %v140_v38, %v139_v37  ;;  %v222_v48 = vrot.slane %v108_v17, 3  ;;  %v59_v14 = vld [vmem:[%s1041_s0] sm:$0x8] }
   0xb   :  { %v118_v26 = vrot.slane %v116_v21, 1  ;;  %123 = vrot.lane.b32.xlu0 %v111_v34, %s715_s7  ;;  %v214_v45 = vshrl.u32 %v209_v42, 16  ;;  %v217_v46 = vshll.u32 %v209_v42, 16  ;;  %v172_v49 = vunpack.c.l.b16 %v612_v43 }
   0xc   :  { %v185_v50 = vsel %vm99_vm0, %v180_v39, %v830_v40  ;;  %v221_v54 = vrot.slane %v112_v41, 2  ;;  %v255_v55 = vshrl.u32 %v707_v44, 16  ;;  %v258_v56 = vshll.u32 %v707_v44, 16 }
   0xd   :  { %v122_v33 = vor.u32 %v120_v22, %v118_v26  ;;  %144 = vrot.lane.b32.xlu1 %v665_v9, %s716_s8  ;;  %v216_v52 = vrot.slane %v214_v45, 2  ;;  %v219_v53 = vrot.slane %v217_v46, 3  ;;  %v263_v57 = vshrl.u32 %v664_v51, 16  ;;  %v668_v45 = vld [vmem:[%s1041_s0 + $0x5c] sm:$0xff] }
   0xe   :  { %v173_v58 = vpack.c.b16 %v172_v49, %v139_v37  ;;  %v266_v59 = vshll.u32 %v664_v51, 16  ;;  %v846_v61 = vor.u32 %v222_v48, %v221_v54  ;;  %v114_v0 = vor.u32 %v112_v41, %v110_v25 }
   0xf   :  { %127 = vrot.lane.b32.xlu2 %v122_v33, %s715_s7  ;;  %v220_v60 = vor.u32 %v219_v53, %v216_v52  ;;  %v257_v3 = vrot.slane %v255_v55, 2  ;;  %v260_v4 = vrot.slane %v258_v56, 3  ;;  %v643_v5 = vor.u32 %v669_v63, %v642_v62  ;;  %v672_v62 = vld [vmem:[%s1043_s1 + $0x10] sm:$0xff] }
  0x10   :  { %v265_v7 = vrot.slane %v263_v57, 2  ;;  %v190_v9 = vshll.u32 %v173_v58, 16  ;;  %v268_v12 = vrot.slane %v266_v59, 3  ;;  %v208_v15 = vunpack.c.l.b16 %v55_v2  ;;  %v373_v57 = vld [vmem:[%s1043_s1 + $0x20] sm:$0xf] }
  0x11   :  { %v224_v11 = vsel %vm212_vm1, %v220_v60, %v846_v61  ;;  %v119_v16 = vsel %vm99_vm0, %v114_v0, %v118_v26  ;;  %v261_v17 = vor.u32 %v260_v4, %v257_v3  ;;  %v194_v19 = vshrl.u32 %v173_v58, 16  ;;  %v615_v26 = vld [vmem:[%s1041_s0 + $0x34] sm:$0x1]  ;;  %v671_v0 = vld [vmem:[%s1043_s1 + $0x8] sm:$0xff]  ;;  %v670_v2 = vld [vmem:[%s1043_s1] sm:$0xff] }
  0x12   :  { %v192_v18 = vrot.slane %v190_v9, 1  ;;  %v292_v21 = vunpack.c.l.b16 %v59_v14  ;;  %v269_v22 = vor.u32 %v268_v12, %v265_v7  ;;  %v211_v23 = vpack.c.b16 %v208_v15, %v208_v15  ;;  %v447_v14 = vld [vmem:[%s1044_s5 + $0x8] sm:$0xff] }
  0x13   :  { %92 = vrot.lane.b32.xlu0 %v664_v51, %s714_s20  ;;  %v226_v24 = vshrl.u32 %v780_v6, 16  ;;  %v229_v25 = vshll.u32 %v780_v6, 16  ;;  %v250_v29 = vunpack.c.l.b16 %v615_v26  ;;  %v272_v34 = vshrl.u32 %v763_v1, 16 }
  0x14   :  { %v196_v27 = vor.u32 %v194_v19, %v192_v18  ;;  %v293_v28 = vpack.c.b16 %v677_v35, %v292_v21  ;;  %v270_v30 = vsel %vm212_vm1, %v261_v17, %v269_v22  ;;  %v235_v33 = vshll.u32 %v211_v23, 16 }
  0x15   :  { %148 = vrot.lane.b32.xlu1 %v143_v47, %s716_s8  ;;  %v228_v31 = vrot.slane %v226_v24, 2  ;;  %v231_v32 = vrot.slane %v229_v25, 3  ;;  %v275_v36 = vshll.u32 %v763_v1, 16  ;;  %v296_v37 = vrot.slane %v798_v13, 3 }
  0x16   :  { %v295_v35 = vrot.slane %v293_v28, 3  ;;  %v237_v39 = vrot.slane %v235_v33, 3  ;;  %v253_v41 = vpack.c.b16 %v250_v29, %v250_v29  ;;  %v274_v42 = vrot.slane %v272_v34, 2  ;;  %v448_v33 = vld [vmem:[%s1044_s5 + $0x10] sm:$0xff] }
  0x17   :  { %197 = vrot.lane.b32.xlu2 %v185_v50, %s717_s14  ;;  %v232_v38 = vor.u32 %v231_v32, %v228_v31  ;;  %v277_v43 = vrot.slane %v275_v36, 3  ;;  %v186_v47 = vshrl.u32 %v810_v20, 16  ;;  %v300_v54 = vrot.slane %v211_v23, 3  ;;  %v449_v31 = vld [vmem:[%s1044_s5 + $0x18] sm:$0xff]  ;;  %v451_v32 = vld [vmem:[%s1044_s5 + $0x28] sm:$0xf] }
  0x18   :  { %v297_v44 = vsel %vm294_vm2, %v295_v35, %v296_v37  ;;  %v281_v46 = vshll.u32 %v253_v41, 16  ;;  %v395_v58 = vunpack.c.l.b16 %v373_v57  ;;  %v721_v7 = vmov 0   ;;  %v29_v35 = vld [vmem:[%s1041_s0 + $0x14] sm:$0x3] }
  0x19   :  { %v238_v1 = vsel %vm212_vm1, %v232_v38, %v237_v39  ;;  %v278_v48 = vor.u32 %v277_v43, %v274_v42  ;;  %v188_v50 = vor.u32 %v186_v47, %v830_v40  ;;  %v233_v52 = vsel %vm212_vm1, %v846_v61, %v232_v38  ;;  %v673_v61 = vld [vmem:[%s1043_s1 + $0x18] sm:$0xff]  ;;  %697 = vset.pattern.permute.xlu0 %v721_v7 }
  0x1a   :  { %v283_v49 = vrot.slane %v281_v46, 3  ;;  %v400_v59 = vpack.c.b16 %v395_v58, %v395_v58  ;;  %698 = vset.pattern.permute.xlu1 %v721_v7  ;;  %699 = vset.pattern.permute.xlu2 %v721_v7  ;;  %vm308_vm4 = vcmask 64512   ;;  %vm323_vm5 = vcmask 195584  }
  0x1b   :  { %125 = vrot.lane.b32.xlu0 %v119_v16, %s715_s7  ;;  %v193_v53 = vsel %vm99_vm0, %v188_v50, %v192_v18  ;;  %v279_v55 = vsel %vm212_vm1, %v269_v22, %v278_v48  ;;  %vm316_vm6 = vcmask 130048   ;;  %vm330_vm7 = vcmask 261120  }
  0x1c   :  { %v284_v51 = vsel %vm212_vm1, %v278_v48, %v283_v49  ;;  %v414_v60 = vsel %vm412_vm3, %v400_v59, 0  ;;  %vm337_vm8 = vcmask 326656   ;;  %vm344_vm9 = vcmask 392192  }
  0x1d   :  { %169 = vrot.lane.b32.xlu1 %v643_v5, %s713_s11  ;;  %419 = vmatpush.bf16.msra.mxu0 %v414_v60  ;;  %v446_v5 = vld [vmem:[%s1044_s5] sm:$0xff]  ;;  %vm351_vm10 = vcmask 457728   ;;  %vm358_vm11 = vcmask 523264   ;;  %vm405_vm12 = vcmask 588800   ;;  %v71_v39 = vunpack.c.l.b16 %v29_v35 }
  0x1e   :  { %679 = vmatpush.bf16.msra.mxu2 %v414_v60  ;;  %678 = vmatpush.bf16.msra.mxu1 %v414_v60  ;;  %v700_v60 = vld [vmem:[%s1042_s2] ss:$0 sm:$0xff]  ;;  %vm497_vm13 = vcmask 125952   ;;  %vm588_vm1 = vcmask 123904  }
  0x1f   :  { %239 = vrot.lane.b32.xlu2 %v224_v11, %s718_s23  ;;  %v74_v42 = vpack.c.b16 %v71_v39, %v70_v8 }
  0x21   :  { %420 = vmatpush.bf16.msra.mxu0 %v673_v61 }
  0x22   :  { %681 = vmatpush.bf16.msra.mxu2 %v673_v61  ;;  %680 = vmatpush.bf16.msra.mxu1 %v673_v61 }
  0x23   :  { %146 = vrot.lane.b32.xlu0 %v810_v20, %s716_s8  ;;  %v298_v20 = vrot.slane %v780_v6, 3 }
  0x25   :  { %201 = vrot.lane.b32.xlu1 %v196_v27, %s717_s14  ;;  %v299_v40 = vsel %vm294_vm2, %v296_v37, %v298_v20  ;;  %v301_v56 = vsel %vm294_vm2, %v298_v20, %v300_v54  ;;  %421 = vmatpush.bf16.msra.mxu0 %v672_v62  ;;  %v450_v37 = vld [vmem:[%s1044_s5 + $0x20] sm:$0xff] }
  0x26   :  { %683 = vmatpush.bf16.msra.mxu2 %v672_v62  ;;  %682 = vmatpush.bf16.msra.mxu1 %v672_v62 }
  0x27   :  { %285 = vrot.lane.b32.xlu2 %v270_v30, %s719_s26 }
  0x29   :  { %422 = vmatpush.bf16.msra.mxu0 %v671_v0 }
  0x2a   :  { %685 = vmatpush.bf16.msra.mxu2 %v671_v0  ;;  %684 = vmatpush.bf16.msra.mxu1 %v671_v0 }
  0x2b   :  { %167 = vrot.lane.b32.xlu0 %v668_v45, %s713_s11 }
  0x2d   :  { %243 = vrot.lane.b32.xlu1 %v238_v1, %s718_s23  ;;  %423 = vmatpush.bf16.msra.mxu0 %v670_v2 }
  0x2e   :  { %687 = vmatpush.bf16.msra.mxu2 %v670_v2  ;;  %686 = vmatpush.bf16.msra.mxu1 %v670_v2 }
  0x2f   :  { %302 = vrot.lane.b32.xlu2 %v297_v44, %s720_s29 }
  0x33   :  { %199 = vrot.lane.b32.xlu0 %v193_v53, %s717_s14 }
  0x35   :  { %289 = vrot.lane.b32.xlu1 %v284_v51, %s719_s26 }
  0x37   :  { %241 = vrot.lane.b32.xlu2 %v233_v52, %s718_s23 }
  0x3b   :  { %306 = vrot.lane.b32.xlu0 %v301_v56, %s720_s29 }
  0x3d   :  { %287 = vrot.lane.b32.xlu1 %v279_v55, %s719_s26 }
  0x3f   :  { %304 = vrot.lane.b32.xlu2 %v299_v40, %s720_s29 }
  0x43   :  { %454 = vperm.xlu0 %697, %v446_v5  }
  0x45   :  { %459 = vperm.xlu1 %698, %v447_v14  }
  0x47   :  { %464 = vperm.xlu2 %699, %v448_v33  }
  0x4b   :  { %479 = vperm.xlu0 %697, %v451_v32  }
  0x4d   :  { %469 = vperm.xlu1 %698, %v449_v31  }
  0x4f   :  { %474 = vperm.xlu2 %699, %v450_v37  }
  0x5c   :  { %v166_v63 = vpop.permute.xlu2 %165 }
  0x69   :  { %v917_v3 = vpop.permute.xlu2 %127 }
  0x71   :  { %v198_v4 = vpop.permute.xlu2 %197 }
  0x75   :  { %v91_v12 = vpop.permute.xlu0 %90 }
  0x76   :  { %v310_v17 = vsel %vm308_vm4, %v793_v10, %v91_v12 }
  0x77   :  { %v95_v11 = vpop.permute.xlu1 %94 }
  0x78   :  { %v315_v1 = vsel %vm308_vm4, %v74_v42, %v95_v11 }
  0x79   :  { %v240_v9 = vpop.permute.xlu2 %239  ;;  %v322_v49 = vsel %vm316_vm6, %v315_v1, %v917_v3 }
  0x7d   :  { %v124_v18 = vpop.permute.xlu0 %123 }
  0x7e   :  { %v318_v19 = vsel %vm316_vm6, %v310_v17, %v124_v18 }
  0x7f   :  { %v145_v16 = vpop.permute.xlu1 %144 }
  0x80   :  { %v325_v21 = vsel %vm323_vm5, %v318_v19, %v145_v16 }
  0x81   :  { %v286_v15 = vpop.permute.xlu2 %285  ;;  %v332_v22 = vsel %vm330_vm7, %v325_v21, %v166_v63 }
  0x82   :  { %v339_v23 = vsel %vm337_vm8, %v332_v22, %v198_v4 }
  0x83   :  { %v346_v24 = vsel %vm344_vm9, %v339_v23, %v240_v9 }
  0x84   :  { %v353_v25 = vsel %vm351_vm10, %v346_v24, %v286_v15 }
  0x85   :  { %v93_v27 = vpop.permute.xlu0 %92 }
  0x86   :  { %v312_v45 = vsel %vm308_vm4, %v798_v13, %v93_v27 }
  0x87   :  { %v149_v26 = vpop.permute.xlu1 %148 }
  0x88   :  { %v329_v6 = vsel %vm323_vm5, %v322_v49, %v149_v26 }
  0x89   :  { %v303_v10 = vpop.permute.xlu2 %302 }
  0x8a   :  { %v360_v28 = vsel %vm358_vm11, %v353_v25, %v303_v10 }
  0x8b   :  { %660 = vmatmul.msk.bf16.vlgmr.msra.gmra.mxu0 %vm405_vm12, %v360_v28 }
  0x8d   :  { %v126_v30 = vpop.permute.xlu0 %125 }
  0x8e   :  { %v320_v47 = vsel %vm316_vm6, %v312_v45, %v126_v30 }
  0x8f   :  { %v170_v29 = vpop.permute.xlu1 %169 }
  0x90   :  { %v336_v51 = vsel %vm330_vm7, %v329_v6, %v170_v29 }
  0x91   :  { %v242_v43 = vpop.permute.xlu2 %241 }
  0x95   :  { %v147_v36 = vpop.permute.xlu0 %146 }
  0x96   :  { %v327_v48 = vsel %vm323_vm5, %v320_v47, %v147_v36 }
  0x97   :  { %v202_v34 = vpop.permute.xlu1 %201 }
  0x98   :  { %v343_v52 = vsel %vm337_vm8, %v336_v51, %v202_v34 }
  0x99   :  { %v305_v53 = vpop.permute.xlu2 %304 }
  0x9d   :  { %v168_v41 = vpop.permute.xlu0 %167 }
  0x9e   :  { %v334_v50 = vsel %vm330_vm7, %v327_v48, %v168_v41 }
  0x9f   :  { %v244_v38 = vpop.permute.xlu1 %243 }
  0xa0   :  { %v350_v13 = vsel %vm344_vm9, %v343_v52, %v244_v38 }
  0xa1   :  { %v465_v4 = vpop.permute.xlu2 %464 }
  0xa5   :  { %v200_v46 = vpop.permute.xlu0 %199 }
  0xa6   :  { %v341_v8 = vsel %vm337_vm8, %v334_v50, %v200_v46 }
  0xa7   :  { %v290_v44 = vpop.permute.xlu1 %289  ;;  %v348_v20 = vsel %vm344_vm9, %v341_v8, %v242_v43 }
  0xa8   :  { %v357_v55 = vsel %vm351_vm10, %v350_v13, %v290_v44 }
  0xa9   :  { %v475_v26 = vpop.permute.xlu2 %474 }
  0xad   :  { %v307_v56 = vpop.permute.xlu0 %306 }
  0xae   :  { %v364_v57 = vsel %vm358_vm11, %v357_v55, %v307_v56 }
  0xaf   :  { %v288_v54 = vpop.permute.xlu1 %287  ;;  %662 = vmatmul.msk.bf16.vlgmr.msra.gmra.mxu2 %vm405_vm12, %v364_v57 }
  0xb0   :  { %v355_v40 = vsel %vm351_vm10, %v348_v20, %v288_v54 }
  0xb1   :  { %v362_v58 = vsel %vm358_vm11, %v355_v40, %v305_v53 }
  0xb2   :  { %661 = vmatmul.msk.bf16.vlgmr.msra.gmra.mxu1 %vm405_vm12, %v362_v58 }
  0xb5   :  { %v455_v7 = vpop.permute.xlu0 %454 }
  0xb7   :  { %v460_v2 = vpop.permute.xlu1 %459 }
  0xbd   :  { %v480_v49 = vpop.permute.xlu0 %479 }
  0xbf   :  { %v470_v32 = vpop.permute.xlu1 %469 }
 0x108   :  { %v425_v59 = vpop.f32.mrf.mxu0 }
 0x109   :  { %v426_v63 = vadd.f32 %v700_v60, %v425_v59 }
 0x10b   :  { %v977_v3 = vmax.f32 %v426_v63, 0.0 }
 0x10d   :  { %v482_v14 = vmul.f32 %v455_v7, %v977_v3 }
 0x10f   :  { %v507_v19 = vmul.f32 %v482_v14, %v977_v3  ;;  %v488_v10 = vsel %vm316_vm6, %v482_v14, 0.0 }
 0x110   :  { %v427_v61 = vpop.f32.mrf.mxu0 }
 0x111   :  { %v428_v62 = vadd.f32 %v700_v60, %v427_v61  ;;  %v513_v33 = vsel %vm316_vm6, %v507_v19, 0.0 }
 0x113   :  { %v975_v0 = vmax.f32 %v428_v62, 0.0 }
 0x115   :  { %v483_v11 = vmul.f32 %v460_v2, %v975_v0 }
 0x117   :  { %v508_v17 = vmul.f32 %v483_v11, %v975_v0  ;;  %v489_v22 = vsel %vm316_vm6, %v483_v11, 0.0 }
 0x118   :  { %v490_v31 = vadd.f32 %v489_v22, %v488_v10  ;;  %v701_v10 = vld [vmem:[%s1045_s3] ss:$0 sm:$0xff] }
 0x119   :  { %v514_v27 = vsel %vm316_vm6, %v508_v17, 0.0 }
 0x11a   :  { %v515_v37 = vadd.f32 %v514_v27, %v513_v33 }
 0x12f   :  { %v430_v5 = vpop.f32.mrf.mxu1 }
 0x130   :  { %v431_v9 = vadd.f32 %v700_v60, %v430_v5 }
 0x132   :  { %v980_v12 = vmax.f32 %v431_v9, 0.0  ;;  %v435_v16 = vpop.f32.mrf.mxu2 }
 0x133   :  { %v436_v18 = vadd.f32 %v700_v60, %v435_v16 }
 0x134   :  { %v484_v15 = vmul.f32 %v465_v4, %v980_v12 }
 0x135   :  { %v988_v24 = vmax.f32 %v436_v18, 0.0 }
 0x136   :  { %v509_v23 = vmul.f32 %v484_v15, %v980_v12  ;;  %v491_v28 = vsel %vm316_vm6, %v484_v15, 0.0 }
 0x137   :  { %v432_v21 = vpop.f32.mrf.mxu1  ;;  %v486_v29 = vmul.f32 %v475_v26, %v988_v24  ;;  %v492_v35 = vadd.f32 %v491_v28, %v490_v31 }
 0x138   :  { %v433_v25 = vadd.f32 %v700_v60, %v432_v21  ;;  %v516_v34 = vsel %vm316_vm6, %v509_v23, 0.0 }
 0x139   :  { %v511_v39 = vmul.f32 %v486_v29, %v988_v24  ;;  %v517_v44 = vadd.f32 %v516_v34, %v515_v37  ;;  %v495_v45 = vsel %vm316_vm6, %v486_v29, 0.0 }
 0x13a   :  { %v994_v30 = vmax.f32 %v433_v25, 0.0  ;;  %v437_v38 = vpop.f32.mrf.mxu2 }
 0x13b   :  { %v438_v43 = vadd.f32 %v700_v60, %v437_v38  ;;  %v520_v6 = vsel %vm316_vm6, %v511_v39, 0.0 }
 0x13c   :  { %v485_v36 = vmul.f32 %v470_v32, %v994_v30 }
 0x13d   :  { %v445_v47 = vmax.f32 %v438_v43, 0.0 }
 0x13e   :  { %v493_v41 = vsel %vm316_vm6, %v485_v36, 0.0  ;;  %v510_v42 = vmul.f32 %v485_v36, %v994_v30 }
 0x13f   :  { %v494_v1 = vadd.f32 %v493_v41, %v492_v35  ;;  %v487_v8 = vmul.f32 %v480_v49, %v445_v47 }
 0x140   :  { %v518_v46 = vsel %vm316_vm6, %v510_v42, 0.0 }
 0x141   :  { %v519_v48 = vadd.f32 %v518_v46, %v517_v44  ;;  %v496_v50 = vadd.f32 %v495_v45, %v494_v1  ;;  %v498_v52 = vsel %vm497_vm13, %v487_v8, 0.0  ;;  %v512_v53 = vmul.f32 %v487_v8, %v445_v47 }
 0x143   :  { %v521_v51 = vadd.f32 %v520_v6, %v519_v48  ;;  %v499_v13 = vadd.f32 %v498_v52, %v496_v50  ;;  %v522_v20 = vsel %vm497_vm13, %v512_v53, 0.0 }
 0x145   :  { %v500_v54 = vrot.slane %v499_v13, 4  ;;  %v523_v55 = vadd.f32 %v522_v20, %v521_v51 }
 0x147   :  { %v501_v40 = vadd.f32 %v500_v54, %v499_v13  ;;  %v524_v56 = vrot.slane %v523_v55, 4 }
 0x149   :  { %v502_v57 = vrot.slane %v501_v40, 2  ;;  %v525_v58 = vadd.f32 %v524_v56, %v523_v55 }
 0x14b   :  { %v503_v59 = vadd.f32 %v502_v57, %v501_v40  ;;  %v526_v60 = vrot.slane %v525_v58, 2 }
 0x14d   :  { %v504_v61 = vrot.slane %v503_v59, 1  ;;  %v527_v62 = vadd.f32 %v526_v60, %v525_v58 }
 0x14f   :  { %v505_v63 = vadd.f32 %v504_v61, %v503_v59  ;;  %v528_v2 = vrot.slane %v527_v62, 1 }
 0x151   :  { %v506_v4 = vmul.f32 0.03125, %v505_v63  ;;  %v529_v5 = vadd.f32 %v528_v2, %v527_v62 }
 0x153   :  { %v530_v7 = vmul.f32 0.03125, %v529_v5  ;;  %v531_v9 = vmul.f32 %v506_v4, %v506_v4  ;;  %v535_v21 = vsub.f32 %v977_v3, %v506_v4  ;;  %v536_v22 = vsub.f32 %v975_v0, %v506_v4  ;;  %v702_v0 = vld [vmem:[%s1046_s4] ss:$0 sm:$0xff] }
 0x154   :  { %v537_v23 = vsub.f32 %v980_v12, %v506_v4  ;;  %v538_v25 = vsub.f32 %v994_v30, %v506_v4  ;;  %v539_v26 = vsub.f32 %v988_v24, %v506_v4  ;;  %v540_v27 = vsub.f32 %v445_v47, %v506_v4 }
 0x155   :  { %v532_v11 = vsub.f32 %v530_v7, %v531_v9  ;;  %v544_v31 = vmul.f32 %v701_v10, %v535_v21  ;;  %v545_v32 = vmul.f32 %v701_v10, %v536_v22 }
 0x156   :  { %v546_v3 = vmul.f32 %v701_v10, %v537_v23  ;;  %v547_v33 = vmul.f32 %v701_v10, %v538_v25  ;;  %v548_v12 = vmul.f32 %v701_v10, %v539_v26  ;;  %v549_v30 = vmul.f32 %v701_v10, %v540_v27 }
 0x157   :  { %v533_v14 = vmax.f32 %v532_v11, 0.0 }
 0x159   :  { %v550_v15 = vadd.f32 1e-05, %v533_v14 }
 0x15b   :  { %703 = vrsqrt.f32 %v550_v15  ;;  %vm557_vm15 = vweird.f32 %v550_v15 }
 0x161   :  { %v704_v16 = vpop.eup %703 }
 0x162   :  { %v552_v17 = vmul.f32 %v704_v16, %v550_v15  ;;  %vm558_vm14 = vweird.f32 %v704_v16 }
 0x163   :  { %vm559_vm0 = vmor %vm557_vm15, %vm558_vm14 }
 0x164   :  { %v553_v18 = vmul.f32 %v704_v16, %v552_v17 }
 0x166   :  { %v554_v19 = vmul.f32 0.5, %v553_v18 }
 0x168   :  { %v555_v28 = vsub.f32 1.5, %v554_v19 }
 0x16a   :  { %v556_v29 = vmul.f32 %v704_v16, %v555_v28 }
 0x16c   :  { %v560_v34 = vsel %vm559_vm0, %v704_v16, %v556_v29 }
 0x16d   :  { %v561_v36 = vmul.f32 %v560_v34, %v544_v31  ;;  %v562_v37 = vmul.f32 %v560_v34, %v545_v32  ;;  %v563_v24 = vmul.f32 %v560_v34, %v546_v3  ;;  %v564_v35 = vmul.f32 %v560_v34, %v547_v33 }
 0x16e   :  { %v565_v38 = vmul.f32 %v560_v34, %v548_v12  ;;  %v566_v39 = vmul.f32 %v560_v34, %v549_v30 }
 0x16f   :  { %v571_v41 = vadd.f32 %v702_v0, %v561_v36  ;;  %v572_v42 = vadd.f32 %v702_v0, %v562_v37  ;;  %v573_v43 = vadd.f32 %v702_v0, %v563_v24  ;;  %v574_v44 = vadd.f32 %v702_v0, %v564_v35 }
 0x170   :  { %v575_v1 = vadd.f32 %v702_v0, %v565_v38  ;;  %v576_v45 = vadd.f32 %v702_v0, %v566_v39 }
 0x171   :  { %v577_v46 = vpack.c.bf16 %v571_v41, %v571_v41  ;;  %v578_v47 = vpack.c.bf16 %v572_v42, %v572_v42  ;;  %v579_v48 = vpack.c.bf16 %v573_v43, %v573_v43  ;;  %v580_v49 = vpack.c.bf16 %v574_v44, %v574_v44 }
 0x172   :  { %v581_v50 = vpack.c.bf16 %v575_v1, %v575_v1  ;;  %v582_v6 = vpack.c.bf16 %v576_v45, %v576_v45 }
 0x173   :  { %583 = vst.msk [vmem:[%s1047_s6] sm:$0xf] %vm497_vm13, %v577_v46 }
 0x174   :  { %584 = vst.msk [vmem:[%s1047_s6 + $0x4] sm:$0xf] %vm497_vm13, %v578_v47 }
 0x175   :  { %585 = vst.msk [vmem:[%s1047_s6 + $0x8] sm:$0xf] %vm497_vm13, %v579_v48 }
 0x176   :  { %586 = vst.msk [vmem:[%s1047_s6 + $0xc] sm:$0xf] %vm497_vm13, %v580_v49 }
 0x177   :  { %587 = vst.msk [vmem:[%s1047_s6 + $0x10] sm:$0xf] %vm497_vm13, %v581_v50 }
 0x178   :  { %589 = vst.msk [vmem:[%s1047_s6 + $0x14] sm:$0x3] %vm588_vm1, %v582_v6 }

// kernel: rotvae_forward.9
= control target key start
LH: loop header
LB: loop body
LE: loop exit
PB: predicated region body
PF: predicated region fallthrough
CT: control target
= control target key end

     0   :  { %s456_s7 = smov 16   ;;  %s457_s16 = smov 48   ;;  %vm99_vm0 = vsmask.f32 6400  ;;  %vm141_vm1 = vcmask 1045504   ;;  %vm145_vm2 = vcmask 130048   ;;  %s613_s0 = inlined_call_operand.vmem [shape: bf16[4,18,16], index: 0, kind: input, shape index: {}]   ;;  %s614_s1 = inlined_call_operand.vmem [shape: bf16[144,32], index: 1, kind: input, shape index: {}]   ;;  %s615_s2 = inlined_call_operand.vmem [shape: f32[1,32], index: 2, kind: input, shape index: {}]   ;;  %s616_s5 = inlined_call_operand.vmem [shape: f32[14,1], index: 5, kind: input, shape index: {}]   ;;  %s617_s3 = inlined_call_operand.vmem [shape: f32[1,32], index: 3, kind: input, shape index: {}]   ;;  %s618_s4 = inlined_call_operand.vmem [shape: f32[1,32], index: 4, kind: input, shape index: {}]   ;;  %s619_s6 = inlined_call_operand.vmem [shape: f32[14,32], index: 6, kind: output, shape index: {}]  }
   0x1   :  { %v362_v0 = vld [vmem:[%s613_s0 + $0xc] sm:$0xf]  ;;  %v409_v1 = vld [vmem:[%s613_s0 + $0xc] sm:$0x70]  ;;  %v436_v2 = vld [vmem:[%s613_s0 + $0x18] sm:$0xf]  }
   0x2   :  { %v363_v3 = vor.u32 %v409_v1, %v362_v0  ;;  %v439_v4 = vld [vmem:[%s613_s0 + $0x18] sm:$0x70]  ;;  %v514_v5 = vld [vmem:[%s613_s0] sm:$0xff]   ;;  %v370_v11 = vld [vmem:[%s613_s0 + $0xc] sm:$0xe]  ;;  %s458_s29 = smov 32  }
   0x3   :  { %v437_v6 = vor.u32 %v439_v4, %v436_v2  ;;  %v59_v7 = vshrl.u32 %v514_v5, 16  ;;  %v61_v8 = vshll.u32 %v514_v5, 16  ;;  %v424_v9 = vunpack.c.h.b16 %v514_v5  ;;  %v366_v10 = vld [vmem:[%s613_s0 + $0x24] sm:$0xf]  ;;  %v411_v12 = vld [vmem:[%s613_s0 + $0xc] sm:$0xf0] }
   0x4   :  { %53 = vrot.lane.b32.xlu0 %v363_v3, %s456_s7  ;;  %v359_v13 = vld [vmem:[%s613_s0 + $0x14] sm:$0x1]  ;;  %v410_v15 = vld [vmem:[%s613_s0 + $0x24] sm:$0x70]  ;;  %v371_v17 = vor.u32 %v411_v12, %v370_v11  ;;  %v429_v18 = vld [vmem:[%s613_s0 + $0x18] sm:$0xff]   ;;  %s459_s30 = smov 80  }
   0x5   :  { %72 = vrot.lane.b32.xlu1 %v437_v6, %s457_s16  ;;  %v63_v14 = vrot.slane %v61_v8, 1  ;;  %v120_v16 = vunpack.c.l.b16 %v359_v13  ;;  %v37_v19 = vld [vmem:[%s613_s0] sm:$0xe]  ;;  %v85_v20 = vshrl.u32 %v429_v18, 16  ;;  %v87_v21 = vshll.u32 %v429_v18, 16  ;;  %v419_v24 = vld [vmem:[%s614_s1 + $0x38] sm:$0xff] }
   0x6   :  { %v38_v22 = vld [vmem:[%s613_s0 + $0x8] sm:$0x1]  ;;  %v95_v23 = vunpack.c.l.b16 %v37_v19  ;;  %v124_v26 = vshrl.u32 %v371_v17, 16  ;;  %v127_v27 = vshll.u32 %v371_v17, 16  ;;  %247 = vmatpush.bf16.msra.mxu0 %v419_v24  ;;  %v367_v32 = vor.u32 %v410_v15, %v366_v10  ;;  %v418_v36 = vld [vmem:[%s614_s1 + $0x30] sm:$0xff]  ;;  %s460_s7 = smov 64  }
   0x7   :  { %v122_v25 = vpack.c.b16 %v120_v16, %v120_v16  ;;  %v64_v28 = vor.u32 %v63_v14, %v59_v7  ;;  %v89_v29 = vrot.slane %v87_v21, 1  ;;  %v96_v30 = vunpack.c.l.b16 %v38_v22  ;;  %v417_v46 = vld [vmem:[%s614_s1 + $0x28] sm:$0xff]  ;;  %v416_v51 = vld [vmem:[%s614_s1 + $0x20] sm:$0xff]  ;;  %s461_s12 = smov 112   ;;  %s462_s13 = smov 96   ;;  %v415_v52 = vld [vmem:[%s614_s1 + $0x18] sm:$0xff] }
   0x8   :  { %v97_v31 = vpack.c.b16 %v424_v9, %v95_v23  ;;  %v126_v33 = vrot.slane %v124_v26, 1  ;;  %v129_v34 = vrot.slane %v127_v27, 2  ;;  %v414_v53 = vld [vmem:[%s614_s1 + $0x10] sm:$0xff]  ;;  %v42_v54 = vld [vmem:[%s613_s0] sm:$0xc]  ;;  %v413_v58 = vld [vmem:[%s614_s1 + $0x8] sm:$0xff] }
   0x9   :  { %v132_v35 = vshll.u32 %v122_v25, 16  ;;  %v90_v37 = vor.u32 %v89_v29, %v85_v20  ;;  %v98_v38 = vpack.c.b16 %v96_v30, %v96_v30  ;;  %v139_v55 = vunpack.c.l.b16 %v42_v54  ;;  %v420_v56 = vld [vmem:[%s614_s1 + $0x40] sm:$0xff]  ;;  %v278_v0 = vld [vmem:[%s616_s5 + $0x8] sm:$0x3f] }
   0xa   :  { %v101_v39 = vshrl.u32 %v97_v31, 16  ;;  %v104_v40 = vshll.u32 %v97_v31, 16  ;;  %v130_v44 = vor.u32 %v129_v34, %v126_v33  ;;  %248 = vmatpush.bf16.msra.mxu0 %v418_v36  ;;  %268 = vmatpush.bf16.msra.mxu1 %v420_v56  ;;  %v412_v62 = vld [vmem:[%s614_s1] sm:$0xff]  ;;  %v463_v1 = vmov 0  }
   0xb   :  { %91 = vrot.lane.b32.xlu2 %v90_v37, %s459_s30  ;;  %v109_v43 = vshll.u32 %v98_v38, 16  ;;  %v134_v45 = vrot.slane %v132_v35, 2  ;;  %v140_v57 = vpack.c.b16 %v424_v9, %v139_v55  ;;  %v143_v60 = vrot.slane %v98_v38, 2  ;;  %v277_v63 = vld [vmem:[%s616_s5] sm:$0xff]  ;;  %448 = vset.pattern.permute.xlu1 %v463_v1 }
   0xc   :  { %65 = vrot.lane.b32.xlu0 %v64_v28, %s458_s29  ;;  %v103_v41 = vrot.slane %v101_v39, 1  ;;  %v106_v42 = vrot.slane %v104_v40, 2  ;;  %449 = vset.pattern.permute.xlu2 %v463_v1  ;;  %v432_v3 = vld [vmem:[%s613_s0] sm:$0xf]   ;;  %v438_v4 = vld [vmem:[%s613_s0] sm:$0x70] }
   0xd   :  { %79 = vrot.lane.b32.xlu1 %v367_v32, %s460_s7  ;;  %v111_v48 = vrot.slane %v109_v43, 2  ;;  %v135_v49 = vsel %vm99_vm0, %v130_v44, %v134_v45  ;;  %v142_v59 = vrot.slane %v140_v57, 2  ;;  %450 = vset.pattern.permute.xlu0 %v463_v1  ;;  %v433_v7 = vor.u32 %v438_v4, %v432_v3  ;;  %v451_v19 = vld [vmem:[%s615_s2] ss:$0 sm:$0xff] }
   0xe   :  { %v107_v47 = vor.u32 %v106_v42, %v103_v41  ;;  %249 = vmatpush.bf16.msra.mxu0 %v417_v46  ;;  %vm149_vm3 = vcmask 261120   ;;  %vm152_vm4 = vcmask 392192   ;;  %vm155_vm5 = vcmask 523264  }
   0xf   :  { %v144_v61 = vsel %vm141_vm1, %v142_v59, %v143_v60  ;;  %vm158_vm6 = vcmask 654336   ;;  %vm161_vm7 = vcmask 785408   ;;  %vm164_vm8 = vcmask 916480  }
  0x10   :  { %v112_v50 = vsel %vm99_vm0, %v107_v47, %v111_v48  ;;  %408 = vmatmul.msk.bf16.vlgmr.msra.gmra.mxu1 %vm145_vm2, %v144_v61  ;;  %vm292_vm9 = vcmask 259072  }
  0x12   :  { %250 = vmatpush.bf16.msra.mxu0 %v416_v51 }
  0x13   :  { %113 = vrot.lane.b32.xlu2 %v112_v50, %s462_s13 }
  0x14   :  { %136 = vrot.lane.b32.xlu0 %v135_v49, %s461_s12 }
  0x15   :  { %281 = vperm.xlu1 %448, %v277_v63  }
  0x16   :  { %251 = vmatpush.bf16.msra.mxu0 %v415_v52 }
  0x1a   :  { %252 = vmatpush.bf16.msra.mxu0 %v414_v53 }
  0x1b   :  { %286 = vperm.xlu2 %449, %v278_v0   ;;  %v452_v0 = vld [vmem:[%s617_s3] ss:$0 sm:$0xff] }
  0x1e   :  { %253 = vmatpush.bf16.msra.mxu0 %v413_v58 }
  0x22   :  { %254 = vmatpush.bf16.msra.mxu0 %v412_v62 }
  0x65   :  { %v92_v6 = vpop.permute.xlu2 %91 }
  0x6d   :  { %v114_v15 = vpop.permute.xlu2 %113 }
  0x75   :  { %v287_v31 = vpop.permute.xlu2 %286 }
  0x76   :  { %v54_v2 = vpop.permute.xlu0 %53 }
  0x77   :  { %v73_v5 = vpop.permute.xlu1 %72  ;;  %v148_v8 = vsel %vm145_vm2, %v433_v7, %v54_v2 }
  0x7e   :  { %v66_v9 = vpop.permute.xlu0 %65 }
  0x7f   :  { %v151_v10 = vsel %vm149_vm3, %v148_v8, %v66_v9  ;;  %v80_v11 = vpop.permute.xlu1 %79 }
  0x80   :  { %v154_v12 = vsel %vm152_vm4, %v151_v10, %v73_v5  ;;  %v453_v5 = vld [vmem:[%s618_s4] ss:$0 sm:$0xff] }
  0x81   :  { %v157_v13 = vsel %vm155_vm5, %v154_v12, %v80_v11 }
  0x82   :  { %v160_v14 = vsel %vm158_vm6, %v157_v13, %v92_v6 }
  0x83   :  { %v163_v16 = vsel %vm161_vm7, %v160_v14, %v114_v15 }
  0x86   :  { %v137_v17 = vpop.permute.xlu0 %136 }
  0x87   :  { %v166_v18 = vsel %vm164_vm8, %v163_v16, %v137_v17  ;;  %v282_v25 = vpop.permute.xlu1 %281 }
  0x88   :  { %255 = vmatmul.bf16.vlgmr.msra.gmra.mxu0 %v166_v18 }
  0x8d   :  { %v270_v20 = vpop.f32.mrf.mxu1 }
  0x95   :  { %v272_v28 = vpop.f32.mrf.mxu1 }
 0x105   :  { %v256_v21 = vpop.f32.mrf.mxu0 }
 0x106   :  { %v257_v22 = vadd.f32 %v451_v19, %v256_v21 }
 0x108   :  { %v271_v23 = vadd.f32 %v270_v20, %v257_v22 }
 0x10a   :  { %v275_v24 = vmax.f32 %v271_v23, 0.0 }
 0x10c   :  { %v289_v29 = vmul.f32 %v282_v25, %v275_v24 }
 0x10d   :  { %v258_v26 = vpop.f32.mrf.mxu0 }
 0x10e   :  { %v259_v27 = vadd.f32 %v451_v19, %v258_v26  ;;  %v302_v33 = vmul.f32 %v289_v29, %v275_v24  ;;  %v291_v35 = vsel %vm149_vm3, %v289_v29, 0.0 }
 0x110   :  { %v273_v30 = vadd.f32 %v272_v28, %v259_v27  ;;  %v304_v39 = vsel %vm149_vm3, %v302_v33, 0.0 }
 0x112   :  { %v276_v32 = vmax.f32 %v273_v30, 0.0 }
 0x114   :  { %v290_v34 = vmul.f32 %v287_v31, %v276_v32 }
 0x116   :  { %v293_v36 = vsel %vm292_vm9, %v290_v34, 0.0  ;;  %v303_v37 = vmul.f32 %v290_v34, %v276_v32 }
 0x117   :  { %v294_v38 = vadd.f32 %v293_v36, %v291_v35 }
 0x118   :  { %v305_v40 = vsel %vm292_vm9, %v303_v37, 0.0 }
 0x119   :  { %v295_v41 = vrot.slane %v294_v38, 4  ;;  %v306_v42 = vadd.f32 %v305_v40, %v304_v39 }
 0x11b   :  { %v296_v43 = vadd.f32 %v295_v41, %v294_v38  ;;  %v307_v44 = vrot.slane %v306_v42, 4 }
 0x11d   :  { %v297_v45 = vrot.slane %v296_v43, 2  ;;  %v308_v46 = vadd.f32 %v307_v44, %v306_v42 }
 0x11f   :  { %v298_v47 = vadd.f32 %v297_v45, %v296_v43  ;;  %v309_v48 = vrot.slane %v308_v46, 2 }
 0x121   :  { %v299_v49 = vrot.slane %v298_v47, 1  ;;  %v310_v50 = vadd.f32 %v309_v48, %v308_v46 }
 0x123   :  { %v300_v51 = vadd.f32 %v299_v49, %v298_v47  ;;  %v311_v52 = vrot.slane %v310_v50, 1 }
 0x125   :  { %v301_v53 = vmul.f32 0.125, %v300_v51  ;;  %v312_v54 = vadd.f32 %v311_v52, %v310_v50 }
 0x127   :  { %v313_v55 = vmul.f32 0.125, %v312_v54  ;;  %v314_v56 = vmul.f32 %v301_v53, %v301_v53  ;;  %v318_v1 = vsub.f32 %v275_v24, %v301_v53  ;;  %v319_v2 = vsub.f32 %v276_v32, %v301_v53 }
 0x129   :  { %v315_v57 = vsub.f32 %v313_v55, %v314_v56  ;;  %v323_v6 = vmul.f32 %v452_v0, %v318_v1  ;;  %v324_v7 = vmul.f32 %v452_v0, %v319_v2 }
 0x12b   :  { %v316_v58 = vmax.f32 %v315_v57, 0.0 }
 0x12d   :  { %v325_v59 = vadd.f32 1e-05, %v316_v58 }
 0x12f   :  { %454 = vrsqrt.f32 %v325_v59  ;;  %vm332_vm11 = vweird.f32 %v325_v59 }
 0x135   :  { %v455_v60 = vpop.eup %454 }
 0x136   :  { %v327_v61 = vmul.f32 %v455_v60, %v325_v59  ;;  %vm333_vm10 = vweird.f32 %v455_v60 }
 0x137   :  { %vm334_vm12 = vmor %vm332_vm11, %vm333_vm10 }
 0x138   :  { %v328_v62 = vmul.f32 %v455_v60, %v327_v61 }
 0x13a   :  { %v329_v63 = vmul.f32 0.5, %v328_v62 }
 0x13c   :  { %v330_v3 = vsub.f32 1.5, %v329_v63 }
 0x13e   :  { %v331_v4 = vmul.f32 %v455_v60, %v330_v3 }
 0x140   :  { %v335_v8 = vsel %vm334_vm12, %v455_v60, %v331_v4 }
 0x141   :  { %v336_v9 = vmul.f32 %v335_v8, %v323_v6  ;;  %v337_v10 = vmul.f32 %v335_v8, %v324_v7 }
 0x143   :  { %v342_v11 = vadd.f32 %v453_v5, %v336_v9  ;;  %v343_v12 = vadd.f32 %v453_v5, %v337_v10 }
 0x145   :  { %344 = vst.msk [vmem:[%s619_s6] sm:$0xff] %vm149_vm3, %v342_v11 }
 0x146   :  { %345 = vst.msk [vmem:[%s619_s6 + $0x8] sm:$0x3f] %vm292_vm9, %v343_v12 }

// kernel: rotvae_forward.10
= control target key start
LH: loop header
LB: loop body
LE: loop exit
PB: predicated region body
PF: predicated region fallthrough
CT: control target
= control target key end

     0   :  { %vm78_vm0 = vcmask 130048   ;;  %vm146_vm1 = vcmask 58368   ;;  %vm121_vm2 = vcmask 1042432   ;;  %vm117_vm3 = vcmask 23552   ;;  %s295_s2 = inlined_call_operand.vmem [shape: f32[128,16], index: 2, kind: input, shape index: {}]   ;;  %s296_s3 = inlined_call_operand.vmem [shape: f32[1,16], index: 3, kind: input, shape index: {}]   ;;  %s297_s0 = inlined_call_operand.vmem [shape: f32[2,128], index: 0, kind: input, shape index: {}]   ;;  %s298_s5 = inlined_call_operand.vmem [shape: f32[1,8], index: 5, kind: input, shape index: {}]   ;;  %s299_s4 = inlined_call_operand.vmem [shape: f32[16,8], index: 4, kind: input, shape index: {}]   ;;  %s300_s8 = inlined_call_operand.vmem [shape: f32[2,8], index: 8, kind: output, shape index: {0}]   ;;  %s301_s7 = inlined_call_operand.vmem [shape: f32[1,128], index: 7, kind: input, shape index: {}]   ;;  %s302_s6 = inlined_call_operand.vmem [shape: f32[3,128], index: 6, kind: input, shape index: {}]   ;;  %s303_s1 = inlined_call_operand.vmem [shape: f32[2,4], index: 1, kind: input, shape index: {}]   ;;  %s304_s9 = inlined_call_operand.vmem [shape: f32[2,128], index: 9, kind: output, shape index: {1}]  }
   0x1   :  { %v47_v0 = vld [vmem:[%s295_s2 + $0x78] sm:$0xff]  ;;  %v46_v1 = vld [vmem:[%s295_s2 + $0x70] sm:$0xff]  ;;  %v45_v2 = vld [vmem:[%s295_s2 + $0x68] sm:$0xff] }
   0x2   :  { %52 = vmatpush.msra.mxu0 %v47_v0  ;;  %v44_v3 = vld [vmem:[%s295_s2 + $0x60] sm:$0xff]  ;;  %v43_v4 = vld [vmem:[%s295_s2 + $0x58] sm:$0xff]  ;;  %v42_v5 = vld [vmem:[%s295_s2 + $0x50] sm:$0xff] }
   0x3   :  { %v41_v6 = vld [vmem:[%s295_s2 + $0x48] sm:$0xff]  ;;  %v40_v7 = vld [vmem:[%s295_s2 + $0x40] sm:$0xff]  ;;  %v39_v8 = vld [vmem:[%s295_s2 + $0x38] sm:$0xff] }
   0x4   :  { %53 = vmatpush.msra.mxu0 %v46_v1  ;;  %v38_v9 = vld [vmem:[%s295_s2 + $0x30] sm:$0xff]  ;;  %v37_v10 = vld [vmem:[%s295_s2 + $0x28] sm:$0xff]  ;;  %v36_v11 = vld [vmem:[%s295_s2 + $0x20] sm:$0xff] }
   0x5   :  { %v35_v12 = vld [vmem:[%s295_s2 + $0x18] sm:$0xff]  ;;  %v34_v13 = vld [vmem:[%s295_s2 + $0x10] sm:$0xff]  ;;  %v33_v14 = vld [vmem:[%s295_s2 + $0x8] sm:$0xff] }
   0x6   :  { %54 = vmatpush.msra.mxu0 %v45_v2  ;;  %v32_v15 = vld [vmem:[%s295_s2] sm:$0xff]  ;;  %v73_v17 = vld [vmem:[%s299_s4 + $0x8] sm:$0xff] }
   0x7   :  { %v31_v16 = vld [vmem:[%s297_s0] sm:$0x3]  ;;  %96 = vmatpush.msra.mxu1 %v73_v17 }
   0x8   :  { %55 = vmatpush.msra.mxu0 %v44_v3  ;;  %v72_v18 = vld [vmem:[%s299_s4] sm:$0xff] }
   0x9   :  { %97 = vmatpush.msra.mxu1 %v72_v18  ;;  %v161_v19 = vld [vmem:[%s296_s3] ss:$0 sm:$0xff]  ;;  %s166_s3 = smov 124  }
   0xa   :  { %56 = vmatpush.msra.mxu0 %v43_v4  ;;  %v162_v22 = vld [vmem:[%s298_s5] ss:$0 sm:$0xff] }
   0xb   :  { %v112_v28 = vld [vmem:[%s302_s6] sm:$0x7] }
   0xc   :  { %57 = vmatpush.msra.mxu0 %v42_v5  ;;  %158 = vmatpush.msk.msra.mxu2 %vm121_vm2, %v112_v28  ;;  %v102_v29 = vld [vmem:[%s303_s1] sm:$0x3] }
   0xd   :  { %v163_v33 = vld [vmem:[%s301_s7] ss:$0 sm:$0xff] }
   0xe   :  { %58 = vmatpush.msra.mxu0 %v41_v6 }
  0x10   :  { %59 = vmatpush.msra.mxu0 %v40_v7 }
  0x12   :  { %60 = vmatpush.msra.mxu0 %v39_v8 }
  0x14   :  { %61 = vmatpush.msra.mxu0 %v38_v9 }
  0x16   :  { %62 = vmatpush.msra.mxu0 %v37_v10 }
  0x18   :  { %63 = vmatpush.msra.mxu0 %v36_v11 }
  0x1a   :  { %64 = vmatpush.msra.mxu0 %v35_v12 }
  0x1c   :  { %65 = vmatpush.msra.mxu0 %v34_v13 }
  0x1e   :  { %66 = vmatpush.msra.mxu0 %v33_v14 }
  0x20   :  { %67 = vmatpush.msra.mxu0 %v32_v15 }
  0x21   :  { %68 = vmatmul.f32.vlgmr.msra.gmra.mxu0 %v31_v16 }
  0x9e   :  { %v69_v20 = vpop.f32.mrf.mxu0 }
  0x9f   :  { %v70_v21 = vadd.f32 %v161_v19, %v69_v20 }
  0xa1   :  { %157 = vmatmul.msk.f32.vlgmr.msra.gmra.mxu1 %vm78_vm0, %v70_v21 }
 0x11e   :  { %v99_v23 = vpop.f32.mrf.mxu1 }
 0x11f   :  { %v100_v24 = vadd.f32 %v162_v22, %v99_v23 }
 0x121   :  { %v103_v25 = vmul.f32 0.5, %v100_v24  ;;  %147 = vst.msk [vmem:[%s300_s8] sm:$0x3] %vm146_vm1, %v100_v24 }
 0x123   :  { %v104_v26 = vmul.f32 1.442695, %v103_v25 }
 0x125   :  { %164 = vpow2.f32 %v104_v26 }
 0x12b   :  { %v165_v27 = vpop.eup %164 }
 0x12c   :  { %107 = vrot.lane.b32.xlu0 %v165_v27, %s166_s3 }
 0x19e   :  { %v108_v30 = vpop.permute.xlu0 %107 }
 0x19f   :  { %v110_v31 = vmul.f32 %v108_v30, %v102_v29 }
 0x1a1   :  { %v111_v32 = vadd.f32 %v110_v31, %v100_v24 }
 0x1a3   :  { %159 = vmatmul.msk.f32.vlgmr.msra.gmra.mxu2 %vm117_vm3, %v111_v32 }
 0x226   :  { %v142_v34 = vpop.f32.mrf.mxu2 }
 0x227   :  { %v143_v35 = vadd.f32 %v163_v33, %v142_v34 }
 0x229   :  { %v145_v36 = vmax.f32 %v143_v35, 0.0 }
 0x22b   :  { %148 = vst [vmem:[%s304_s9] sm:$0x3] %v145_v36 }

// kernel: rotvae_forward.11
= control target key start
LH: loop header
LB: loop body
LE: loop exit
PB: predicated region body
PF: predicated region fallthrough
CT: control target
= control target key end

     0   :  { %s657_s12 = smov 32   ;;  %vm151_vm0 = vsmask.f32 6400  ;;  %s658_s18 = smov 64   ;;  %vm222_vm1 = vcmask 1045504   ;;  %vm64_vm2 = vcmask 261120   ;;  %s878_s0 = inlined_call_operand.vmem [shape: bf16[18,32], index: 0, kind: input, shape index: {}]   ;;  %s879_s4 = inlined_call_operand.vmem [shape: bf16[128,16], index: 4, kind: input, shape index: {}]   ;;  %s880_s2 = inlined_call_operand.vmem [shape: bf16[64,16], index: 2, kind: input, shape index: {}]   ;;  %s881_s1 = inlined_call_operand.vmem [shape: bf16[32,16], index: 1, kind: input, shape index: {}]   ;;  %s882_s3 = inlined_call_operand.vmem [shape: bf16[64,16], index: 3, kind: input, shape index: {}]   ;;  %s883_s5 = inlined_call_operand.vmem [shape: f32[1,16], index: 5, kind: input, shape index: {}]   ;;  %s884_s8 = inlined_call_operand.vmem [shape: f32[14,1], index: 8, kind: input, shape index: {}]   ;;  %s885_s6 = inlined_call_operand.vmem [shape: f32[1,16], index: 6, kind: input, shape index: {}]   ;;  %s886_s7 = inlined_call_operand.vmem [shape: f32[1,16], index: 7, kind: input, shape index: {}]   ;;  %s887_s9 = inlined_call_operand.vmem [shape: bf16[14,64], index: 9, kind: output, shape index: {}]  }
   0x1   :  { %v621_v0 = vld [vmem:[%s878_s0] sm:$0xff]   ;;  %v37_v2 = vld [vmem:[%s878_s0 + $0x8] sm:$0x1]  ;;  %v619_v7 = vld [vmem:[%s879_s4 + $0x38] sm:$0xff]  ;;  %s659_s23 = smov 96   ;;  %v660_v48 = vmov 0  }
   0x2   :  { %v36_v1 = vld [vmem:[%s878_s0] sm:$0xe]  ;;  %v86_v3 = vshrl.u32 %v621_v0, 16  ;;  %v88_v4 = vshll.u32 %v621_v0, 16  ;;  %v623_v5 = vunpack.c.h.b16 %v621_v0  ;;  %v607_v8 = vld [vmem:[%s880_s2 + $0x18] sm:$0xff]  ;;  %v148_v9 = vunpack.c.l.b16 %v37_v2  ;;  %298 = vmatpush.bf16.msra.mxu3 %v619_v7  ;;  %v618_v13 = vld [vmem:[%s879_s4 + $0x30] sm:$0xff]  ;;  %635 = vset.pattern.permute.xlu2 %v660_v48 }
   0x3   :  { %v147_v6 = vunpack.c.l.b16 %v36_v1  ;;  %v38_v10 = vld [vmem:[%s878_s0] sm:$0xc]  ;;  %135 = vmatpush.bf16.msra.mxu1 %v607_v8  ;;  %v603_v14 = vld [vmem:[%s881_s1 + $0x8] sm:$0xff]  ;;  %v611_v15 = vld [vmem:[%s882_s3 + $0x18] sm:$0xff]  ;;  %651 = vset.pattern.permute.xlu0 %v660_v48  ;;  %vm128_vm3 = vcmask 523264   ;;  %vm230_vm4 = vcmask 785408  }
   0x4   :  { %v90_v11 = vrot.slane %v88_v4, 1  ;;  %v150_v16 = vpack.c.b16 %v148_v9, %v148_v9  ;;  %v606_v17 = vld [vmem:[%s880_s2 + $0x10] sm:$0xff]  ;;  %v220_v21 = vunpack.c.l.b16 %v38_v10  ;;  %74 = vmatpush.bf16.msra.mxu0 %v603_v14  ;;  %207 = vmatpush.bf16.msra.mxu2 %v611_v15  ;;  %v602_v22 = vld [vmem:[%s881_s1] sm:$0xff]  ;;  %v617_v27 = vld [vmem:[%s879_s4 + $0x28] sm:$0xff]  ;;  %vm336_vm5 = vcmask 128000   ;;  %s662_s20 = smov 16  }
   0x5   :  { %v149_v12 = vpack.c.b16 %v623_v5, %v147_v6  ;;  %v610_v23 = vld [vmem:[%s882_s3 + $0x10] sm:$0xff]  ;;  %v605_v29 = vld [vmem:[%s880_s2 + $0x8] sm:$0xff]  ;;  %v616_v33 = vld [vmem:[%s879_s4 + $0x20] sm:$0xff]  ;;  %vm334_vm6 = vcmask 130048   ;;  %vm514_vm10 = vcmask 392192   ;;  %vm519_vm11 = vcmask 519168  }
   0x6   :  { %v91_v18 = vor.u32 %v90_v11, %v86_v3  ;;  %v161_v24 = vshll.u32 %v150_v16, 16  ;;  %299 = vmatpush.bf16.msra.mxu3 %v618_v13  ;;  %v221_v31 = vpack.c.b16 %v623_v5, %v220_v21  ;;  %v604_v34 = vld [vmem:[%s880_s2] sm:$0xff]  ;;  %v224_v36 = vrot.slane %v150_v16, 2  ;;  %v615_v37 = vld [vmem:[%s879_s4 + $0x18] sm:$0xff]  ;;  %v609_v42 = vld [vmem:[%s882_s3 + $0x8] sm:$0xff] }
   0x7   :  { %v153_v19 = vshrl.u32 %v149_v12, 16  ;;  %v156_v20 = vshll.u32 %v149_v12, 16  ;;  %136 = vmatpush.bf16.msra.mxu1 %v606_v17  ;;  %v626_v39 = vld [vmem:[%s878_s0] sm:$0xf]   ;;  %v628_v40 = vld [vmem:[%s878_s0] sm:$0x70] }
   0x8   :  { %92 = vrot.lane.b32.xlu0 %v91_v18, %s657_s12  ;;  %v163_v28 = vrot.slane %v161_v24, 2  ;;  %75 = vmatpush.bf16.msra.mxu0 %v602_v22  ;;  %v223_v35 = vrot.slane %v221_v31, 2  ;;  %v627_v41 = vor.u32 %v628_v40, %v626_v39  ;;  %v614_v43 = vld [vmem:[%s879_s4 + $0x10] sm:$0xff]  ;;  %v608_v44 = vld [vmem:[%s882_s3] sm:$0xff]  ;;  %v613_v45 = vld [vmem:[%s879_s4 + $0x8] sm:$0xff]  ;;  %vm521_vm12 = vcmask 518144  }
   0x9   :  { %v155_v25 = vrot.slane %v153_v19, 1  ;;  %v158_v26 = vrot.slane %v156_v20, 2  ;;  %208 = vmatpush.bf16.msra.mxu2 %v610_v23  ;;  %v612_v46 = vld [vmem:[%s879_s4] sm:$0xff]  ;;  %v321_v49 = vld [vmem:[%s884_s8 + $0x8] sm:$0x3f] }
   0xa   :  { %300 = vmatpush.bf16.msra.mxu3 %v617_v27  ;;  %v225_v38 = vsel %vm222_vm1, %v223_v35, %v224_v36  ;;  %v320_v47 = vld [vmem:[%s884_s8] sm:$0xff] }
   0xb   :  { %v159_v30 = vor.u32 %v158_v26, %v155_v25  ;;  %137 = vmatpush.bf16.msra.mxu1 %v605_v29  ;;  %535 = vmatmul.msk.bf16.vlgmr.msra.gmra.mxu0 %vm64_vm2, %v627_v41  ;;  %v652_v61 = vld [vmem:[%s883_s5] ss:$0 sm:$0xff] }
   0xc   :  { %324 = vperm.xlu2 %635, %v320_v47  }
   0xd   :  { %v164_v32 = vsel %vm151_vm0, %v159_v30, %v163_v28  ;;  %209 = vmatpush.bf16.msra.mxu2 %v609_v42 }
   0xe   :  { %217 = vrot.lane.b32.xlu1 %v164_v32, %s658_s18  ;;  %301 = vmatpush.bf16.msra.mxu3 %v616_v33 }
   0xf   :  { %138 = vmatpush.bf16.msra.mxu1 %v604_v34 }
  0x10   :  { %165 = vrot.lane.b32.xlu0 %v164_v32, %s657_s12 }
  0x11   :  { %210 = vmatpush.bf16.msra.mxu2 %v608_v44 }
  0x12   :  { %302 = vmatpush.bf16.msra.mxu3 %v615_v37 }
  0x14   :  { %329 = vperm.xlu2 %635, %v321_v49  }
  0x16   :  { %226 = vrot.lane.b32.xlu1 %v225_v38, %s659_s23  ;;  %303 = vmatpush.bf16.msra.mxu3 %v614_v43 }
  0x1a   :  { %304 = vmatpush.bf16.msra.mxu3 %v613_v45 }
  0x1e   :  { %305 = vmatpush.bf16.msra.mxu3 %v612_v46 }
  0x66   :  { %v325_v59 = vpop.permute.xlu2 %324 }
  0x6e   :  { %v803_v4 = vpop.permute.xlu2 %329 }
  0x7a   :  { %v93_v50 = vpop.permute.xlu0 %92 }
  0x7b   :  { %v95_v51 = vsel %vm64_vm2, %v627_v41, %v93_v50 }
  0x7c   :  { %552 = vmatmul.msk.bf16.vlgmr.msra.gmra.mxu1 %vm128_vm3, %v95_v51 }
  0x80   :  { %v218_v52 = vpop.permute.xlu1 %217 }
  0x81   :  { %v229_v55 = vsel %vm128_vm3, %v95_v51, %v218_v52 }
  0x82   :  { %v166_v53 = vpop.permute.xlu0 %165 }
  0x83   :  { %v168_v54 = vsel %vm64_vm2, %v627_v41, %v166_v53 }
  0x84   :  { %569 = vmatmul.msk.bf16.vlgmr.msra.gmra.mxu2 %vm128_vm3, %v168_v54 }
  0x88   :  { %v227_v56 = vpop.permute.xlu1 %226  ;;  %v77_v58 = vpop.f32.mrf.mxu0 }
  0x89   :  { %v232_v57 = vsel %vm230_vm4, %v229_v55, %v227_v56  ;;  %v78_v62 = vadd.f32 %v652_v61, %v77_v58 }
  0x8a   :  { %306 = vmatmul.bf16.vlgmr.msra.gmra.mxu3 %v232_v57 }
  0x8b   :  { %v799_v1 = vmax.f32 %v78_v62, 0.0 }
  0x8d   :  { %v332_v5 = vmul.f32 %v325_v59, %v799_v1 }
  0x8f   :  { %v346_v9 = vmul.f32 %v332_v5, %v799_v1  ;;  %v335_v14 = vsel %vm334_vm6, %v332_v5, 0.0 }
  0x90   :  { %v79_v60 = vpop.f32.mrf.mxu0 }
  0x91   :  { %v80_v63 = vadd.f32 %v652_v61, %v79_v60  ;;  %v348_v15 = vsel %vm334_vm6, %v346_v9, 0.0 }
  0x93   :  { %v801_v2 = vmax.f32 %v80_v63, 0.0 }
  0x95   :  { %v333_v6 = vmul.f32 %v803_v4, %v801_v2 }
  0x97   :  { %v347_v11 = vmul.f32 %v333_v6, %v801_v2  ;;  %v337_v16 = vsel %vm336_vm5, %v333_v6, 0.0 }
  0x98   :  { %v338_v25 = vadd.f32 %v337_v16, %v335_v14 }
  0x99   :  { %v349_v17 = vsel %vm336_vm5, %v347_v11, 0.0 }
  0x9a   :  { %v350_v26 = vadd.f32 %v349_v17, %v348_v15  ;;  %v339_v33 = vrot.slane %v338_v25, 4 }
  0x9c   :  { %v351_v34 = vrot.slane %v350_v26, 4  ;;  %v340_v41 = vadd.f32 %v339_v33, %v338_v25 }
  0x9e   :  { %v352_v42 = vadd.f32 %v351_v34, %v350_v26  ;;  %v341_v50 = vrot.slane %v340_v41, 2 }
  0xa0   :  { %v353_v51 = vrot.slane %v352_v42, 2  ;;  %v342_v6 = vadd.f32 %v341_v50, %v340_v41 }
  0xf9   :  { %v140_v0 = vpop.f32.mrf.mxu1 }
  0xfa   :  { %v141_v3 = vadd.f32 %v652_v61, %v140_v0 }
  0xfc   :  { %v808_v7 = vmax.f32 %v141_v3, 0.0 }
  0xfe   :  { %v358_v12 = vmul.f32 %v325_v59, %v808_v7 }
 0x100   :  { %v370_v19 = vmul.f32 %v358_v12, %v808_v7  ;;  %v360_v24 = vsel %vm334_vm6, %v358_v12, 0.0 }
 0x101   :  { %v142_v8 = vpop.f32.mrf.mxu1 }
 0x102   :  { %v143_v10 = vadd.f32 %v652_v61, %v142_v8  ;;  %v372_v29 = vsel %vm334_vm6, %v370_v19, 0.0  ;;  %v354_v8 = vadd.f32 %v353_v51, %v352_v42 }
 0x104   :  { %v813_v13 = vmax.f32 %v143_v10, 0.0  ;;  %v355_v25 = vrot.slane %v354_v8, 1 }
 0x106   :  { %v359_v18 = vmul.f32 %v803_v4, %v813_v13 }
 0x107   :  { %v212_v20 = vpop.f32.mrf.mxu2 }
 0x108   :  { %v361_v21 = vsel %vm336_vm5, %v359_v18, 0.0  ;;  %v371_v22 = vmul.f32 %v359_v18, %v813_v13  ;;  %v213_v23 = vadd.f32 %v652_v61, %v212_v20 }
 0x109   :  { %v362_v27 = vadd.f32 %v361_v21, %v360_v24 }
 0x10a   :  { %v373_v28 = vsel %vm336_vm5, %v371_v22, 0.0  ;;  %v827_v31 = vmax.f32 %v213_v23, 0.0 }
 0x10b   :  { %v374_v30 = vadd.f32 %v373_v28, %v372_v29  ;;  %v363_v36 = vrot.slane %v362_v27, 4 }
 0x10c   :  { %v382_v39 = vmul.f32 %v325_v59, %v827_v31 }
 0x10d   :  { %v307_v32 = vpop.f32.mrf.mxu3  ;;  %v375_v38 = vrot.slane %v374_v30, 4  ;;  %v364_v44 = vadd.f32 %v363_v36, %v362_v27 }
 0x10e   :  { %v308_v35 = vadd.f32 %v652_v61, %v307_v32  ;;  %v394_v47 = vmul.f32 %v382_v39, %v827_v31  ;;  %v384_v55 = vsel %vm334_vm6, %v382_v39, 0.0 }
 0x10f   :  { %v214_v37 = vpop.f32.mrf.mxu2  ;;  %v376_v46 = vadd.f32 %v375_v38, %v374_v30  ;;  %v365_v54 = vrot.slane %v364_v44, 2  ;;  %v356_v38 = vadd.f32 %v355_v25, %v354_v8 }
 0x110   :  { %v215_v40 = vadd.f32 %v652_v61, %v214_v37  ;;  %v830_v43 = vmax.f32 %v308_v35, 0.0  ;;  %v396_v63 = vsel %vm334_vm6, %v394_v47, 0.0 }
 0x111   :  { %v377_v62 = vrot.slane %v376_v46, 2  ;;  %v366_v9 = vadd.f32 %v365_v54, %v364_v44 }
 0x112   :  { %v832_v45 = vmax.f32 %v215_v40, 0.0  ;;  %v406_v52 = vmul.f32 %v325_v59, %v830_v43 }
 0x113   :  { %v378_v16 = vadd.f32 %v377_v62, %v376_v46  ;;  %v367_v22 = vrot.slane %v366_v9, 1 }
 0x114   :  { %v383_v48 = vmul.f32 %v803_v4, %v832_v45  ;;  %v418_v3 = vmul.f32 %v406_v52, %v830_v43  ;;  %v408_v10 = vsel %vm334_vm6, %v406_v52, 0.0 }
 0x115   :  { %v309_v49 = vpop.f32.mrf.mxu3  ;;  %v379_v28 = vrot.slane %v378_v16, 1  ;;  %v368_v35 = vadd.f32 %v367_v22, %v366_v9 }
 0x116   :  { %v310_v53 = vadd.f32 %v652_v61, %v309_v49  ;;  %v385_v56 = vsel %vm336_vm5, %v383_v48, 0.0  ;;  %v395_v57 = vmul.f32 %v383_v48, %v832_v45  ;;  %v420_v18 = vsel %vm334_vm6, %v418_v3, 0.0 }
 0x117   :  { %v386_v58 = vadd.f32 %v385_v56, %v384_v55  ;;  %v380_v40 = vadd.f32 %v379_v28, %v378_v16 }
 0x118   :  { %v841_v60 = vmax.f32 %v310_v53, 0.0  ;;  %v397_v0 = vsel %vm336_vm5, %v395_v57, 0.0 }
 0x119   :  { %v387_v5 = vrot.slane %v386_v58, 4  ;;  %v398_v59 = vadd.f32 %v397_v0, %v396_v63  ;;  %v381_v50 = vadd.f32 %v380_v40, %v356_v38  ;;  %v653_v0 = vld [vmem:[%s885_s6] ss:$0 sm:$0xff] }
 0x11a   :  { %v407_v61 = vmul.f32 %v803_v4, %v841_v60  ;;  %v343_v4 = vrot.slane %v342_v6, 1 }
 0x11b   :  { %v388_v11 = vadd.f32 %v387_v5, %v386_v58  ;;  %v399_v12 = vrot.slane %v398_v59, 4 }
 0x11c   :  { %v409_v14 = vsel %vm336_vm5, %v407_v61, 0.0  ;;  %v419_v15 = vmul.f32 %v407_v61, %v841_v60  ;;  %v344_v34 = vadd.f32 %v343_v4, %v342_v6 }
 0x11d   :  { %v410_v17 = vadd.f32 %v409_v14, %v408_v10  ;;  %v389_v19 = vrot.slane %v388_v11, 2  ;;  %v400_v20 = vadd.f32 %v399_v12, %v398_v59 }
 0x11e   :  { %v421_v21 = vsel %vm336_vm5, %v419_v15, 0.0  ;;  %v369_v46 = vadd.f32 %v368_v35, %v344_v34 }
 0x11f   :  { %v411_v23 = vrot.slane %v410_v17, 4  ;;  %v422_v24 = vadd.f32 %v421_v21, %v420_v18  ;;  %v390_v26 = vadd.f32 %v389_v19, %v388_v11  ;;  %v401_v27 = vrot.slane %v400_v20, 2 }
 0x121   :  { %v412_v29 = vadd.f32 %v411_v23, %v410_v17  ;;  %v423_v30 = vrot.slane %v422_v24, 4  ;;  %v391_v32 = vrot.slane %v390_v26, 1  ;;  %v402_v33 = vadd.f32 %v401_v27, %v400_v20 }
 0x123   :  { %v413_v36 = vrot.slane %v412_v29, 2  ;;  %v424_v37 = vadd.f32 %v423_v30, %v422_v24  ;;  %v403_v39 = vrot.slane %v402_v33, 1  ;;  %v392_v41 = vadd.f32 %v391_v32, %v390_v26 }
 0x125   :  { %v414_v42 = vadd.f32 %v413_v36, %v412_v29  ;;  %v425_v44 = vrot.slane %v424_v37, 2  ;;  %v404_v47 = vadd.f32 %v403_v39, %v402_v33  ;;  %v393_v51 = vadd.f32 %v392_v41, %v369_v46 }
 0x127   :  { %v415_v48 = vrot.slane %v414_v42, 1  ;;  %v426_v49 = vadd.f32 %v425_v44, %v424_v37  ;;  %v405_v54 = vadd.f32 %v404_v47, %v381_v50 }
 0x129   :  { %v416_v52 = vadd.f32 %v415_v48, %v414_v42  ;;  %v427_v53 = vrot.slane %v426_v49, 1 }
 0x12b   :  { %v417_v55 = vadd.f32 %v416_v52, %v393_v51  ;;  %v428_v56 = vadd.f32 %v427_v53, %v426_v49 }
 0x12d   :  { %v429_v57 = vadd.f32 %v428_v56, %v405_v54  ;;  %v430_v58 = vmul.f32 0.03125, %v417_v55 }
 0x12f   :  { %v431_v62 = vmul.f32 0.03125, %v429_v57  ;;  %v432_v63 = vmul.f32 %v430_v58, %v430_v58  ;;  %v448_v5 = vsub.f32 %v799_v1, %v430_v58  ;;  %v449_v61 = vsub.f32 %v801_v2, %v430_v58 }
 0x130   :  { %v479_v15 = vsub.f32 %v841_v60, %v430_v58  ;;  %v478_v16 = vsub.f32 %v830_v43, %v430_v58  ;;  %v470_v17 = vsub.f32 %v827_v31, %v430_v58  ;;  %v471_v18 = vsub.f32 %v832_v45, %v430_v58  ;;  %v654_v60 = vld [vmem:[%s886_s7] ss:$0 sm:$0xff]  ;;  %s661_s7 = smov 48  }
 0x131   :  { %v433_v3 = vsub.f32 %v431_v62, %v432_v63  ;;  %v453_v6 = vmul.f32 %v653_v0, %v448_v5  ;;  %v454_v9 = vmul.f32 %v653_v0, %v449_v61  ;;  %v462_v2 = vsub.f32 %v808_v7, %v430_v58 }
 0x132   :  { %v463_v19 = vsub.f32 %v813_v13, %v430_v58  ;;  %v481_v21 = vmul.f32 %v653_v0, %v479_v15  ;;  %v480_v4 = vmul.f32 %v653_v0, %v478_v16  ;;  %v472_v43 = vmul.f32 %v653_v0, %v470_v17 }
 0x133   :  { %v434_v59 = vmax.f32 %v433_v3, 0.0  ;;  %v473_v22 = vmul.f32 %v653_v0, %v471_v18  ;;  %v464_v23 = vmul.f32 %v653_v0, %v462_v2 }
 0x134   :  { %v465_v45 = vmul.f32 %v653_v0, %v463_v19 }
 0x135   :  { %v435_v8 = vadd.f32 1e-05, %v434_v59 }
 0x137   :  { %655 = vrsqrt.f32 %v435_v8  ;;  %vm442_vm8 = vweird.f32 %v435_v8 }
 0x13d   :  { %v656_v10 = vpop.eup %655 }
 0x13e   :  { %v437_v11 = vmul.f32 %v656_v10, %v435_v8  ;;  %vm443_vm7 = vweird.f32 %v656_v10 }
 0x13f   :  { %vm444_vm9 = vmor %vm442_vm8, %vm443_vm7 }
 0x140   :  { %v438_v12 = vmul.f32 %v656_v10, %v437_v11 }
 0x142   :  { %v439_v14 = vmul.f32 0.5, %v438_v12 }
 0x144   :  { %v440_v1 = vsub.f32 1.5, %v439_v14 }
 0x146   :  { %v441_v20 = vmul.f32 %v656_v10, %v440_v1 }
 0x148   :  { %v445_v31 = vsel %vm444_vm9, %v656_v10, %v441_v20 }
 0x149   :  { %v482_v24 = vmul.f32 %v480_v4, %v445_v31  ;;  %v483_v25 = vmul.f32 %v481_v21, %v445_v31  ;;  %v474_v26 = vmul.f32 %v472_v43, %v445_v31  ;;  %v475_v7 = vmul.f32 %v473_v22, %v445_v31 }
 0x14a   :  { %v466_v27 = vmul.f32 %v464_v23, %v445_v31  ;;  %v467_v13 = vmul.f32 %v465_v45, %v445_v31  ;;  %v455_v28 = vmul.f32 %v453_v6, %v445_v31  ;;  %v456_v29 = vmul.f32 %v454_v9, %v445_v31 }
 0x14b   :  { %v484_v30 = vadd.f32 %v654_v60, %v482_v24  ;;  %v485_v32 = vadd.f32 %v654_v60, %v483_v25  ;;  %v476_v33 = vadd.f32 %v654_v60, %v474_v26  ;;  %v477_v34 = vadd.f32 %v654_v60, %v475_v7 }
 0x14c   :  { %v468_v35 = vadd.f32 %v654_v60, %v466_v27  ;;  %v469_v36 = vadd.f32 %v654_v60, %v467_v13  ;;  %v460_v37 = vadd.f32 %v654_v60, %v455_v28  ;;  %v461_v38 = vadd.f32 %v654_v60, %v456_v29 }
 0x14d   :  { %v646_v39 = vpack.i.bf16 %v485_v32, %v484_v30  ;;  %v641_v40 = vpack.i.bf16 %v477_v34, %v476_v33 }
 0x14e   :  { %v636_v41 = vpack.i.bf16 %v469_v36, %v468_v35 }
 0x14f   :  { %647 = vrot.lane.b32.xlu2 %v646_v39, %s661_s7  ;;  %642 = vrot.lane.b32.xlu1 %v641_v40, %s657_s12 }
 0x150   :  { %637 = vrot.lane.b32.xlu0 %v636_v41, %s662_s20 }
 0x1a9   :  { %v648_v44 = vpop.permute.xlu2 %647 }
 0x1aa   :  { %v650_v51 = vunpack.i.h.bf16 %v648_v44  ;;  %v649_v52 = vunpack.i.l.bf16 %v648_v44 }
 0x1c1   :  { %v643_v42 = vpop.permute.xlu1 %642 }
 0x1c2   :  { %v645_v46 = vunpack.i.h.bf16 %v643_v42  ;;  %v644_v47 = vunpack.i.l.bf16 %v643_v42  ;;  %v638_v48 = vpop.permute.xlu0 %637 }
 0x1c3   :  { %v640_v49 = vunpack.i.h.bf16 %v638_v48  ;;  %v639_v50 = vunpack.i.l.bf16 %v638_v48 }
 0x1c5   :  { %v510_v53 = vsel %vm334_vm6, %v460_v37, %v639_v50  ;;  %v511_v54 = vsel %vm334_vm6, %v461_v38, %v640_v49 }
 0x1c6   :  { %v512_v55 = vsel %vm64_vm2, %v510_v53, %v644_v47  ;;  %v513_v56 = vsel %vm64_vm2, %v511_v54, %v645_v46 }
 0x1c7   :  { %v515_v57 = vsel %vm514_vm10, %v512_v55, %v649_v52  ;;  %v516_v58 = vsel %vm514_vm10, %v513_v56, %v650_v51 }
 0x1c8   :  { %v517_v62 = vpack.c.bf16 %v515_v57, %v515_v57  ;;  %v518_v63 = vpack.c.bf16 %v516_v58, %v516_v58 }
 0x1ca   :  { %520 = vst.msk [vmem:[%s887_s9] sm:$0xf] %vm519_vm11, %v517_v62 }
 0x1cb   :  { %522 = vst.msk [vmem:[%s887_s9 + $0x4] sm:$0x7] %vm521_vm12, %v518_v63 }

// kernel: rotvae_forward.12
= control target key start
LH: loop header
LB: loop body
LE: loop exit
PB: predicated region body
PF: predicated region fallthrough
CT: control target
= control target key end

     0   :  { %vm108_vm0 = vsmask.f32 7424  ;;  %s995_s21 = smov 16   ;;  %vm198_vm1 = vsmask.f32 5376  ;;  %s996_s28 = smov 32   ;;  %s1584_s0 = inlined_call_operand.vmem [shape: bf16[50,16], index: 0, kind: input, shape index: {}]   ;;  %s1585_s1 = inlined_call_operand.vmem [shape: bf16[16,8], index: 1, kind: input, shape index: {}]   ;;  %s1586_s2 = inlined_call_operand.vmem [shape: bf16[32,8], index: 2, kind: input, shape index: {}]   ;;  %s1587_s4 = inlined_call_operand.vmem [shape: bf16[64,8], index: 4, kind: input, shape index: {}]   ;;  %s1588_s5 = inlined_call_operand.vmem [shape: f32[1,8], index: 5, kind: input, shape index: {}]   ;;  %s1589_s3 = inlined_call_operand.vmem [shape: bf16[32,8], index: 3, kind: input, shape index: {}]   ;;  %s1590_s8 = inlined_call_operand.vmem [shape: f32[44,1], index: 8, kind: input, shape index: {}]   ;;  %s1591_s6 = inlined_call_operand.vmem [shape: f32[1,8], index: 6, kind: input, shape index: {}]   ;;  %s1592_s7 = inlined_call_operand.vmem [shape: f32[1,8], index: 7, kind: input, shape index: {}]   ;;  %s1593_s9 = inlined_call_operand.vmem [shape: bf16[44,32], index: 9, kind: output, shape index: {}]  }
   0x1   :  { %v1054_v0 = vld [vmem:[%s1584_s0] sm:$0xff]   ;;  %v1059_v1 = vld [vmem:[%s1584_s0 + $0x8] sm:$0xff]  ;;  %v1075_v19 = vld [vmem:[%s1584_s0 + $0x10] sm:$0xff]   ;;  %vm71_vm2 = vcmask 130048   ;;  %vm292_vm3 = vcmask 1044480   ;;  %s997_s11 = smov 48  }
   0x2   :  { %v40_v2 = vld [vmem:[%s1584_s0] sm:$0xc]  ;;  %v109_v3 = vshrl.u32 %v1054_v0, 16  ;;  %v111_v4 = vshll.u32 %v1054_v0, 16  ;;  %v930_v5 = vunpack.c.h.b16 %v1054_v0  ;;  %v115_v7 = vshll.u32 %v1059_v1, 16  ;;  %v920_v32 = vld [vmem:[%s1586_s2 + $0x8] sm:$0xff] }
   0x3   :  { %v192_v6 = vunpack.c.l.b16 %v40_v2  ;;  %v119_v8 = vshrl.u32 %v1059_v1, 16  ;;  %v43_v9 = vld [vmem:[%s1584_s0] sm:$0x8]  ;;  %v39_v20 = vld [vmem:[%s1584_s0 + $0x14] sm:$0x7]  ;;  %v212_v25 = vshrl.u32 %v1075_v19, 16  ;;  %v933_v26 = vunpack.c.l.b16 %v1075_v19  ;;  %171 = vmatpush.bf16.msra.mxu1 %v920_v32 }
   0x4   :  { %v113_v10 = vrot.slane %v111_v4, 1  ;;  %v117_v12 = vrot.slane %v115_v7, 1  ;;  %v208_v14 = vrot.slane %v115_v7, 3  ;;  %v290_v18 = vunpack.c.l.b16 %v43_v9  ;;  %v918_v31 = vld [vmem:[%s1585_s1] sm:$0xff]  ;;  %v926_v35 = vld [vmem:[%s1587_s4 + $0x18] sm:$0xff]  ;;  %v922_v60 = vld [vmem:[%s1589_s3 + $0x8] sm:$0xff] }
   0x5   :  { %v195_v11 = vpack.c.b16 %v930_v5, %v192_v6  ;;  %v207_v13 = vrot.slane %v119_v8, 2  ;;  %v215_v29 = vshll.u32 %v1075_v19, 16  ;;  %v106_v30 = vunpack.c.l.b16 %v39_v20  ;;  %v42_v38 = vld [vmem:[%s1584_s0 + $0x18] sm:$0x1]  ;;  %88 = vmatpush.bf16.msra.mxu0 %v918_v31  ;;  %v919_v43 = vld [vmem:[%s1586_s2] sm:$0xff]  ;;  %362 = vmatpush.bf16.msra.mxu3 %v926_v35  ;;  %v925_v61 = vld [vmem:[%s1587_s4 + $0x10] sm:$0xff] }
   0x6   :  { %v114_v15 = vor.u32 %v113_v10, %v109_v3  ;;  %v291_v28 = vpack.c.b16 %v930_v5, %v290_v18  ;;  %v294_v36 = vrot.slane %v1059_v1, 3  ;;  %v214_v37 = vrot.slane %v212_v25, 2  ;;  %265 = vmatpush.bf16.msra.mxu2 %v922_v60  ;;  %v38_v62 = vld [vmem:[%s1584_s0 + $0x14] sm:$0x3]  ;;  %v921_v2 = vld [vmem:[%s1589_s3] sm:$0xff]  ;;  %v924_v3 = vld [vmem:[%s1587_s4 + $0x8] sm:$0xff] }
   0x7   :  { %v200_v16 = vshrl.u32 %v195_v11, 16  ;;  %v203_v17 = vshll.u32 %v195_v11, 16  ;;  %v209_v24 = vor.u32 %v208_v14, %v207_v13  ;;  %v107_v34 = vpack.c.b16 %v106_v30, %v933_v26  ;;  %172 = vmatpush.bf16.msra.mxu1 %v919_v43  ;;  %v923_v5 = vld [vmem:[%s1587_s4] sm:$0xff]  ;;  %v409_v9 = vld [vmem:[%s1590_s8 + $0x18] sm:$0xff]  ;;  %v411_v10 = vld [vmem:[%s1590_s8 + $0x28] sm:$0xf] }
   0x8   :  { %v118_v21 = vsel %vm108_vm0, %v114_v15, %v117_v12  ;;  %v293_v39 = vrot.slane %v291_v28, 3  ;;  %v217_v40 = vrot.slane %v215_v29, 3  ;;  %v121_v41 = vor.u32 %v119_v8, %v117_v12  ;;  %873 = vmatmul.msk.bf16.vlgmr.msra.gmra.mxu0 %vm71_vm2, %v1054_v0  ;;  %v406_v6 = vld [vmem:[%s1590_s8] sm:$0xff]  ;;  %v407_v8 = vld [vmem:[%s1590_s8 + $0x8] sm:$0xff]  ;;  %s1000_s13 = smov 24  }
   0x9   :  { %v202_v22 = vrot.slane %v200_v16, 2  ;;  %v205_v23 = vrot.slane %v203_v17, 3  ;;  %130 = vrot.lane.b32.xlu0 %v118_v21, %s995_s21  ;;  %v123_v42 = vshll.u32 %v107_v34, 16  ;;  %v194_v44 = vunpack.c.l.b16 %v42_v38  ;;  %363 = vmatpush.bf16.msra.mxu3 %v925_v61  ;;  %v408_v17 = vld [vmem:[%s1590_s8 + $0x10] sm:$0xff]  ;;  %v410_v21 = vld [vmem:[%s1590_s8 + $0x20] sm:$0xff] }
   0xa   :  { %v295_v46 = vsel %vm292_vm3, %v293_v39, %v294_v36  ;;  %v218_v47 = vor.u32 %v217_v40, %v214_v37  ;;  %v296_v51 = vrot.slane %v1075_v19, 3  ;;  %v127_v54 = vshrl.u32 %v107_v34, 16  ;;  %266 = vmatpush.bf16.msra.mxu2 %v921_v2  ;;  %v1190_v39 = vld [vmem:[%s1588_s5] ss:$0 sm:$0xff] }
   0xb   :  { %v206_v27 = vor.u32 %v205_v23, %v202_v22  ;;  %v125_v45 = vrot.slane %v123_v42, 1  ;;  %v197_v49 = vpack.c.b16 %v194_v44, %v194_v44  ;;  %v61_v63 = vunpack.c.l.b16 %v38_v62 }
   0xc   :  { %v219_v50 = vsel %vm198_vm1, %v209_v24, %v218_v47  ;;  %v297_v53 = vsel %vm292_vm3, %v294_v36, %v296_v51  ;;  %v998_v7 = vmov 0   ;;  %vm158_vm4 = vcmask 261120  }
   0xd   :  { %v210_v33 = vsel %vm198_vm1, %v206_v27, %v209_v24  ;;  %v126_v48 = vsel %vm108_vm0, %v121_v41, %v125_v45  ;;  %v221_v52 = vshll.u32 %v197_v49, 16  ;;  %v129_v56 = vor.u32 %v127_v54, %v125_v45  ;;  %364 = vmatpush.bf16.msra.mxu3 %v924_v3  ;;  %942 = vset.pattern.permute.xlu0 %v998_v7 }
   0xe   :  { %283 = vrot.lane.b32.xlu1 %v210_v33, %s996_s28  ;;  %132 = vrot.lane.b32.xlu2 %v126_v48, %s995_s21  ;;  %v298_v58 = vrot.slane %v197_v49, 3  ;;  %v64_v4 = vpack.c.b16 %v61_v63, %v933_v26  ;;  %vm312_vm5 = vcmask 392192   ;;  %vm351_vm6 = vcmask 523264  }
   0xf   :  { %v223_v55 = vrot.slane %v221_v52, 3  ;;  %943 = vset.pattern.permute.xlu1 %v998_v7  ;;  %944 = vset.pattern.permute.xlu2 %v998_v7  ;;  %vm448_vm7 = vcmask 64512   ;;  %vm458_vm8 = vcmask 60416   ;;  %vm840_vm12 = vcmask 195584  }
  0x10   :  { %v299_v59 = vsel %vm292_vm3, %v296_v51, %v298_v58  ;;  %vm853_vm13 = vcmask 257024   ;;  %vm859_vm14 = vcmask 254976  }
  0x11   :  { %225 = vrot.lane.b32.xlu0 %v210_v33, %s995_s21  ;;  %v224_v57 = vsel %vm198_vm1, %v218_v47, %v223_v55  ;;  %365 = vmatpush.bf16.msra.mxu3 %v923_v5 }
  0x16   :  { %300 = vrot.lane.b32.xlu1 %v295_v46, %s997_s11  ;;  %227 = vrot.lane.b32.xlu2 %v219_v50, %s995_s21 }
  0x18   :  { %874 = vmatmul.msk.bf16.gmra.mxu0 %vm71_vm2, %v1059_v1 }
  0x19   :  { %285 = vrot.lane.b32.xlu0 %v219_v50, %s996_s28 }
  0x1e   :  { %302 = vrot.lane.b32.xlu1 %v297_v53, %s997_s11  ;;  %134 = vrot.lane.b32.xlu2 %v129_v56, %s995_s21 }
  0x21   :  { %229 = vrot.lane.b32.xlu0 %v224_v57, %s995_s21 }
  0x26   :  { %287 = vrot.lane.b32.xlu1 %v224_v57, %s996_s28  ;;  %304 = vrot.lane.b32.xlu2 %v299_v59, %s997_s11 }
  0x28   :  { %875 = vmatmul.msk.bf16.gmra.mxu0 %vm71_vm2, %v64_v4 }
  0x29   :  { %414 = vperm.xlu0 %942, %v406_v6  }
  0x2e   :  { %419 = vperm.xlu1 %943, %v407_v8   ;;  %424 = vperm.xlu2 %944, %v408_v17  }
  0x31   :  { %439 = vperm.xlu0 %942, %v411_v10  }
  0x36   :  { %429 = vperm.xlu1 %943, %v409_v9   ;;  %434 = vperm.xlu2 %944, %v410_v21  }
  0x68   :  { %v133_v16 = vpop.permute.xlu2 %132 }
  0x70   :  { %v228_v22 = vpop.permute.xlu2 %227 }
  0x71   :  { %v234_v24 = vsel %vm71_vm2, %v1059_v1, %v228_v22 }
  0x78   :  { %v135_v28 = vpop.permute.xlu2 %134 }
  0x79   :  { %v141_v29 = vsel %vm71_vm2, %v64_v4, %v135_v28 }
  0x7b   :  { %v131_v11 = vpop.permute.xlu0 %130 }
  0x7c   :  { %v137_v12 = vsel %vm71_vm2, %v1054_v0, %v131_v11 }
  0x7d   :  { %884 = vmatmul.msk.bf16.vlgmr.msra.gmra.mxu1 %vm158_vm4, %v137_v12 }
  0x80   :  { %v284_v13 = vpop.permute.xlu1 %283  ;;  %v305_v33 = vpop.permute.xlu2 %304 }
  0x81   :  { %v307_v18 = vsel %vm158_vm4, %v137_v12, %v284_v13 }
  0x83   :  { %v226_v14 = vpop.permute.xlu0 %225 }
  0x84   :  { %v232_v15 = vsel %vm71_vm2, %v1054_v0, %v226_v14  ;;  %v139_v0 = vsel %vm71_vm2, %v1059_v1, %v133_v16 }
  0x85   :  { %895 = vmatmul.msk.bf16.vlgmr.msra.gmra.mxu2 %vm158_vm4, %v232_v15  ;;  %v90_v35 = vpop.f32.mrf.mxu0 }
  0x86   :  { %v91_v40 = vadd.f32 %v1190_v39, %v90_v35 }
  0x88   :  { %v301_v19 = vpop.permute.xlu1 %300  ;;  %v1194_v42 = vmax.f32 %v91_v40, 0.0  ;;  %v1206_v50 = vpop.permute.xlu2 %424 }
  0x89   :  { %v314_v20 = vsel %vm312_vm5, %v307_v18, %v301_v19 }
  0x8a   :  { %914 = vmatmul.msk.bf16.vlgmr.msra.gmra.mxu3 %vm351_vm6, %v314_v20 }
  0x8b   :  { %v286_v23 = vpop.permute.xlu0 %285 }
  0x8c   :  { %v309_v25 = vsel %vm158_vm4, %v139_v0, %v286_v23 }
  0x8d   :  { %885 = vmatmul.msk.bf16.gmra.mxu1 %vm158_vm4, %v139_v0  ;;  %v92_v36 = vpop.f32.mrf.mxu0 }
  0x8e   :  { %v93_v41 = vadd.f32 %v1190_v39, %v92_v36 }
  0x90   :  { %v303_v26 = vpop.permute.xlu1 %302  ;;  %v1198_v45 = vmax.f32 %v93_v41, 0.0  ;;  %v1232_v10 = vpop.permute.xlu2 %434 }
  0x91   :  { %v316_v27 = vsel %vm312_vm5, %v309_v25, %v303_v26 }
  0x93   :  { %v230_v30 = vpop.permute.xlu0 %229 }
  0x94   :  { %v236_v32 = vsel %vm71_vm2, %v64_v4, %v230_v30 }
  0x95   :  { %896 = vmatmul.msk.bf16.gmra.mxu2 %vm158_vm4, %v234_v24  ;;  %v95_v37 = vpop.f32.mrf.mxu0 }
  0x96   :  { %v96_v46 = vadd.f32 %v1190_v39, %v95_v37 }
  0x98   :  { %v288_v31 = vpop.permute.xlu1 %287  ;;  %v1208_v51 = vmax.f32 %v96_v46, 0.0 }
  0x99   :  { %v311_v1 = vsel %vm158_vm4, %v141_v29, %v288_v31 }
  0x9a   :  { %915 = vmatmul.msk.bf16.gmra.mxu3 %vm351_vm6, %v316_v27  ;;  %v318_v34 = vsel %vm312_vm5, %v311_v1, %v305_v33  ;;  %v444_v60 = vmul.f32 %v1206_v50, %v1208_v51 }
  0x9b   :  { %v1201_v47 = vpop.permute.xlu0 %414 }
  0x9c   :  { %v442_v49 = vmul.f32 %v1201_v47, %v1194_v42  ;;  %v452_v4 = vsel %vm448_vm7, %v444_v60, 0.0  ;;  %v470_v6 = vmul.f32 %v444_v60, %v1208_v51 }
  0x9d   :  { %886 = vmatmul.msk.bf16.gmra.mxu1 %vm158_vm4, %v141_v29  ;;  %v97_v38 = vpop.f32.mrf.mxu0 }
  0x9e   :  { %v98_v48 = vadd.f32 %v1190_v39, %v97_v38  ;;  %v468_v55 = vmul.f32 %v442_v49, %v1194_v42  ;;  %v449_v57 = vsel %vm448_vm7, %v442_v49, 0.0  ;;  %v477_v13 = vsel %vm448_vm7, %v470_v6, 0.0 }
  0xa0   :  { %v1196_v44 = vpop.permute.xlu1 %419  ;;  %v1212_v54 = vmax.f32 %v98_v48, 0.0  ;;  %v474_v63 = vsel %vm448_vm7, %v468_v55, 0.0 }
  0xa1   :  { %v443_v52 = vmul.f32 %v1196_v44, %v1198_v45 }
  0xa3   :  { %v450_v58 = vsel %vm448_vm7, %v443_v52, 0.0  ;;  %v469_v59 = vmul.f32 %v443_v52, %v1198_v45  ;;  %v1241_v18 = vpop.permute.xlu0 %439 }
  0xa4   :  { %v451_v3 = vadd.f32 %v450_v58, %v449_v57 }
  0xa5   :  { %897 = vmatmul.msk.bf16.gmra.mxu2 %vm158_vm4, %v236_v32  ;;  %v100_v43 = vpop.f32.mrf.mxu0  ;;  %v475_v5 = vsel %vm448_vm7, %v469_v59, 0.0 }
  0xa6   :  { %v101_v56 = vadd.f32 %v1190_v39, %v100_v43  ;;  %v476_v11 = vadd.f32 %v475_v5, %v474_v63  ;;  %v453_v12 = vadd.f32 %v452_v4, %v451_v3 }
  0xa8   :  { %v1221_v62 = vpop.permute.xlu1 %429  ;;  %v1224_v2 = vmax.f32 %v101_v56, 0.0  ;;  %v478_v19 = vadd.f32 %v477_v13, %v476_v11 }
  0xa9   :  { %v445_v8 = vmul.f32 %v1221_v62, %v1212_v54 }
  0xaa   :  { %916 = vmatmul.msk.bf16.gmra.mxu3 %vm351_vm6, %v318_v34  ;;  %v446_v16 = vmul.f32 %v1232_v10, %v1224_v2 }
  0xab   :  { %v471_v15 = vmul.f32 %v445_v8, %v1212_v54  ;;  %v454_v17 = vsel %vm448_vm7, %v445_v8, 0.0 }
  0xac   :  { %v455_v0 = vadd.f32 %v454_v17, %v453_v12  ;;  %v472_v22 = vmul.f32 %v446_v16, %v1224_v2  ;;  %v456_v24 = vsel %vm448_vm7, %v446_v16, 0.0 }
  0xad   :  { %v102_v61 = vpop.f32.mrf.mxu0  ;;  %v479_v21 = vsel %vm448_vm7, %v471_v15, 0.0 }
  0xae   :  { %v103_v7 = vadd.f32 %v1190_v39, %v102_v61  ;;  %v480_v26 = vadd.f32 %v479_v21, %v478_v19  ;;  %v457_v28 = vadd.f32 %v456_v24, %v455_v0  ;;  %v481_v29 = vsel %vm448_vm7, %v472_v22, 0.0 }
  0xb0   :  { %v1235_v14 = vmax.f32 %v103_v7, 0.0  ;;  %v482_v33 = vadd.f32 %v481_v29, %v480_v26 }
  0xb2   :  { %v447_v23 = vmul.f32 %v1241_v18, %v1235_v14 }
  0xb4   :  { %v473_v30 = vmul.f32 %v447_v23, %v1235_v14  ;;  %v459_v32 = vsel %vm458_vm8, %v447_v23, 0.0 }
  0xb5   :  { %v460_v35 = vadd.f32 %v459_v32, %v457_v28 }
  0xb6   :  { %v483_v36 = vsel %vm458_vm8, %v473_v30, 0.0 }
  0xb7   :  { %v484_v46 = vadd.f32 %v483_v36, %v482_v33  ;;  %v461_v49 = vrot.slane %v460_v35, 4 }
  0xb9   :  { %v485_v58 = vrot.slane %v484_v46, 4  ;;  %v1270_v61 = vadd.f32 %v461_v49, %v460_v35 }
  0xbb   :  { %v463_v16 = vrot.slane %v1270_v61, 2 }
  0xfa   :  { %v174_v53 = vpop.f32.mrf.mxu1 }
  0xfb   :  { %v175_v1 = vadd.f32 %v1190_v39, %v174_v53 }
  0xfd   :  { %v1258_v43 = vmax.f32 %v175_v1, 0.0 }
  0xff   :  { %v492_v57 = vmul.f32 %v1201_v47, %v1258_v43 }
 0x101   :  { %v516_v8 = vmul.f32 %v492_v57, %v1258_v43  ;;  %v498_v26 = vsel %vm448_vm7, %v492_v57, 0.0 }
 0x102   :  { %v176_v9 = vpop.f32.mrf.mxu1 }
 0x103   :  { %v177_v31 = vadd.f32 %v1190_v39, %v176_v9  ;;  %v1281_v9 = vadd.f32 %v485_v58, %v484_v46 }
 0x105   :  { %v1254_v37 = vmax.f32 %v177_v31, 0.0  ;;  %v487_v28 = vrot.slane %v1281_v9, 2 }
 0x107   :  { %v493_v52 = vmul.f32 %v1196_v44, %v1254_v37 }
 0x108   :  { %v268_v20 = vpop.f32.mrf.mxu2 }
 0x109   :  { %v269_v40 = vadd.f32 %v1190_v39, %v268_v20  ;;  %v517_v3 = vmul.f32 %v493_v52, %v1254_v37  ;;  %v499_v13 = vsel %vm448_vm7, %v493_v52, 0.0 }
 0x10a   :  { %v179_v25 = vpop.f32.mrf.mxu1  ;;  %v500_v31 = vadd.f32 %v499_v13, %v498_v26 }
 0x10b   :  { %v180_v41 = vadd.f32 %v1190_v39, %v179_v25  ;;  %v1263_v55 = vmax.f32 %v269_v40, 0.0  ;;  %v523_v19 = vsel %vm448_vm7, %v517_v3, 0.0 }
 0x10d   :  { %v367_v27 = vpop.f32.mrf.mxu3  ;;  %v1265_v56 = vmax.f32 %v180_v41, 0.0  ;;  %v540_v6 = vmul.f32 %v1201_v47, %v1263_v55 }
 0x10e   :  { %v368_v60 = vadd.f32 %v1190_v39, %v367_v27  ;;  %v522_v27 = vsel %vm448_vm7, %v516_v8, 0.0 }
 0x10f   :  { %v494_v7 = vmul.f32 %v1206_v50, %v1265_v56  ;;  %v564_v22 = vmul.f32 %v540_v6, %v1263_v55  ;;  %v524_v32 = vadd.f32 %v523_v19, %v522_v27 }
 0x110   :  { %v270_v34 = vpop.f32.mrf.mxu2  ;;  %v1285_v15 = vmax.f32 %v368_v60, 0.0 }
 0x111   :  { %v271_v63 = vadd.f32 %v1190_v39, %v270_v34  ;;  %v518_v23 = vmul.f32 %v494_v7, %v1265_v56  ;;  %v546_v34 = vsel %vm448_vm7, %v540_v6, 0.0  ;;  %v501_v35 = vsel %vm448_vm7, %v494_v7, 0.0 }
 0x112   :  { %v181_v38 = vpop.f32.mrf.mxu1  ;;  %v588_v1 = vmul.f32 %v1201_v47, %v1285_v15  ;;  %v570_v41 = vsel %vm448_vm7, %v564_v22, 0.0 }
 0x113   :  { %v182_v53 = vadd.f32 %v1190_v39, %v181_v38  ;;  %v1288_v17 = vmax.f32 %v271_v63, 0.0  ;;  %v525_v46 = vsel %vm448_vm7, %v518_v23, 0.0 }
 0x114   :  { %v594_v60 = vsel %vm448_vm7, %v588_v1, 0.0  ;;  %v612_v63 = vmul.f32 %v588_v1, %v1285_v15 }
 0x115   :  { %v369_v48 = vpop.f32.mrf.mxu3  ;;  %v1274_v4 = vmax.f32 %v182_v53, 0.0  ;;  %v541_v33 = vmul.f32 %v1196_v44, %v1288_v17 }
 0x116   :  { %v370_v0 = vadd.f32 %v1190_v39, %v369_v48 }
 0x117   :  { %v495_v20 = vmul.f32 %v1221_v62, %v1274_v4  ;;  %v565_v3 = vmul.f32 %v541_v33, %v1288_v17 }
 0x118   :  { %v273_v59 = vpop.f32.mrf.mxu2  ;;  %v1312_v38 = vmax.f32 %v370_v0, 0.0 }
 0x119   :  { %v274_v24 = vadd.f32 %v1190_v39, %v273_v59  ;;  %v519_v36 = vmul.f32 %v495_v20, %v1274_v4  ;;  %v503_v47 = vsel %vm448_vm7, %v495_v20, 0.0  ;;  %v502_v59 = vadd.f32 %v501_v35, %v500_v31 }
 0x11a   :  { %v184_v5 = vpop.f32.mrf.mxu1  ;;  %v589_v6 = vmul.f32 %v1196_v44, %v1312_v38 }
 0x11b   :  { %v185_v11 = vadd.f32 %v1190_v39, %v184_v5  ;;  %v1316_v48 = vmax.f32 %v274_v24, 0.0  ;;  %v527_v5 = vsel %vm448_vm7, %v519_v36, 0.0  ;;  %v547_v24 = vsel %vm448_vm7, %v541_v33, 0.0 }
 0x11d   :  { %v372_v12 = vpop.f32.mrf.mxu3  ;;  %v1294_v21 = vmax.f32 %v185_v11, 0.0  ;;  %v526_v11 = vadd.f32 %v525_v46, %v524_v32  ;;  %v542_v13 = vmul.f32 %v1206_v50, %v1316_v48 }
 0x11e   :  { %v373_v25 = vadd.f32 %v1190_v39, %v372_v12  ;;  %v504_v12 = vadd.f32 %v503_v47, %v502_v59 }
 0x11f   :  { %v496_v29 = vmul.f32 %v1232_v10, %v1294_v21  ;;  %v566_v32 = vmul.f32 %v542_v13, %v1316_v48 }
 0x120   :  { %v275_v30 = vpop.f32.mrf.mxu2  ;;  %v1318_v49 = vmax.f32 %v373_v25, 0.0  ;;  %v528_v25 = vadd.f32 %v527_v5, %v526_v11 }
 0x121   :  { %v520_v52 = vmul.f32 %v496_v29, %v1294_v21  ;;  %v276_v53 = vadd.f32 %v1190_v39, %v275_v30  ;;  %v505_v7 = vsel %vm448_vm7, %v496_v29, 0.0  ;;  %v571_v29 = vsel %vm448_vm7, %v565_v3, 0.0 }
 0x122   :  { %v186_v40 = vpop.f32.mrf.mxu1  ;;  %v590_v19 = vmul.f32 %v1206_v50, %v1318_v49  ;;  %v506_v26 = vadd.f32 %v505_v7, %v504_v12  ;;  %v613_v50 = vmul.f32 %v589_v6, %v1312_v38  ;;  %v595_v3 = vsel %vm448_vm7, %v589_v6, 0.0 }
 0x123   :  { %v187_v57 = vadd.f32 %v1190_v39, %v186_v40  ;;  %v529_v20 = vsel %vm448_vm7, %v520_v52, 0.0  ;;  %v1338_v0 = vmax.f32 %v276_v53, 0.0  ;;  %v618_v53 = vsel %vm448_vm7, %v612_v63, 0.0 }
 0x124   :  { %v530_v1 = vadd.f32 %v529_v20, %v528_v25  ;;  %v614_v35 = vmul.f32 %v590_v19, %v1318_v49  ;;  %v619_v5 = vsel %vm448_vm7, %v613_v50, 0.0  ;;  %v572_v12 = vadd.f32 %v571_v29, %v570_v41 }
 0x125   :  { %v374_v58 = vpop.f32.mrf.mxu3  ;;  %v1331_v8 = vmax.f32 %v187_v57, 0.0  ;;  %v543_v33 = vmul.f32 %v1221_v62, %v1338_v0  ;;  %v548_v57 = vadd.f32 %v547_v24, %v546_v34  ;;  %v549_v20 = vsel %vm448_vm7, %v542_v13, 0.0 }
 0x126   :  { %v375_v44 = vadd.f32 %v1190_v39, %v374_v58  ;;  %v597_v34 = vsel %vm448_vm7, %v590_v19, 0.0  ;;  %v621_v63 = vsel %vm448_vm7, %v614_v35, 0.0  ;;  %v596_v25 = vadd.f32 %v595_v3, %v594_v60 }
 0x127   :  { %v497_v22 = vmul.f32 %v1241_v18, %v1331_v8  ;;  %v551_v41 = vsel %vm448_vm7, %v543_v33, 0.0 }
 0x128   :  { %v278_v23 = vpop.f32.mrf.mxu2  ;;  %v1354_v46 = vmax.f32 %v375_v44, 0.0 }
 0x129   :  { %v279_v27 = vadd.f32 %v1190_v39, %v278_v23  ;;  %v507_v30 = vsel %vm458_vm8, %v497_v22, 0.0  ;;  %v521_v31 = vmul.f32 %v497_v22, %v1331_v8  ;;  %v573_v22 = vsel %vm448_vm7, %v566_v32, 0.0 }
 0x12a   :  { %v508_v36 = vadd.f32 %v507_v30, %v506_v26  ;;  %v567_v23 = vmul.f32 %v543_v33, %v1338_v0  ;;  %v591_v6 = vmul.f32 %v1221_v62, %v1354_v46  ;;  %v620_v26 = vadd.f32 %v619_v5, %v618_v53 }
 0x12b   :  { %v531_v40 = vsel %vm458_vm8, %v521_v31, 0.0  ;;  %v1356_v47 = vmax.f32 %v279_v27, 0.0  ;;  %v550_v30 = vadd.f32 %v549_v20, %v548_v57  ;;  %v574_v31 = vadd.f32 %v573_v22, %v572_v12 }
 0x12c   :  { %v532_v58 = vadd.f32 %v531_v40, %v530_v1  ;;  %v509_v7 = vrot.slane %v508_v36, 4  ;;  %v598_v32 = vadd.f32 %v597_v34, %v596_v25  ;;  %v622_v1 = vadd.f32 %v621_v63, %v620_v26 }
 0x12d   :  { %v377_v52 = vpop.f32.mrf.mxu3  ;;  %v544_v11 = vmul.f32 %v1232_v10, %v1356_v47  ;;  %v575_v62 = vsel %vm448_vm7, %v567_v23, 0.0  ;;  %v615_v60 = vmul.f32 %v591_v6, %v1354_v46  ;;  %v552_v40 = vadd.f32 %v551_v41, %v550_v30 }
 0x12e   :  { %v378_v59 = vadd.f32 %v1190_v39, %v377_v52  ;;  %v533_v27 = vrot.slane %v532_v58, 4  ;;  %v510_v13 = vadd.f32 %v509_v7, %v508_v36  ;;  %v599_v53 = vsel %vm448_vm7, %v591_v6, 0.0 }
 0x12f   :  { %v568_v29 = vmul.f32 %v544_v11, %v1356_v47  ;;  %v553_v35 = vsel %vm448_vm7, %v544_v11, 0.0  ;;  %v576_v7 = vadd.f32 %v575_v62, %v574_v31  ;;  %v600_v22 = vadd.f32 %v599_v53, %v598_v32 }
 0x130   :  { %v1366_v44 = vmax.f32 %v378_v59, 0.0  ;;  %v280_v24 = vpop.f32.mrf.mxu2  ;;  %v534_v52 = vadd.f32 %v533_v27, %v532_v58  ;;  %v511_v59 = vrot.slane %v510_v13, 2  ;;  %v554_v12 = vadd.f32 %v553_v35, %v552_v40 }
 0x131   :  { %v281_v19 = vadd.f32 %v1190_v39, %v280_v24  ;;  %v577_v57 = vsel %vm448_vm7, %v568_v29, 0.0  ;;  %v623_v58 = vsel %vm448_vm7, %v615_v60, 0.0  ;;  %v464_v31 = vadd.f32 %v463_v16, %v1270_v61 }
 0x132   :  { %v592_v50 = vmul.f32 %v1232_v10, %v1366_v44  ;;  %v535_v63 = vrot.slane %v534_v52, 2  ;;  %v578_v23 = vadd.f32 %v577_v57, %v576_v7  ;;  %v512_v25 = vadd.f32 %v511_v59, %v510_v13 }
 0x133   :  { %v1381_v33 = vmax.f32 %v281_v19, 0.0  ;;  %v624_v29 = vadd.f32 %v623_v58, %v622_v1  ;;  %v488_v1 = vadd.f32 %v487_v28, %v1281_v9 }
 0x134   :  { %v616_v3 = vmul.f32 %v592_v50, %v1366_v44  ;;  %v601_v11 = vsel %vm448_vm7, %v592_v50, 0.0  ;;  %v536_v60 = vadd.f32 %v535_v63, %v534_v52 }
 0x135   :  { %v379_v36 = vpop.f32.mrf.mxu3  ;;  %v545_v5 = vmul.f32 %v1241_v18, %v1381_v33  ;;  %v602_v26 = vadd.f32 %v601_v11, %v600_v22  ;;  %v489_v22 = vrot.slane %v488_v1, 1 }
 0x136   :  { %v380_v10 = vadd.f32 %v1190_v39, %v379_v36  ;;  %v625_v41 = vsel %vm448_vm7, %v616_v3, 0.0  ;;  %v513_v36 = vrot.slane %v512_v25, 1  ;;  %v465_v3 = vrot.slane %v464_v31, 1 }
 0x137   :  { %v555_v34 = vsel %vm458_vm8, %v545_v5, 0.0  ;;  %v569_v39 = vmul.f32 %v545_v5, %v1381_v33  ;;  %v537_v16 = vrot.slane %v536_v60, 1 }
 0x138   :  { %v1390_v20 = vmax.f32 %v380_v10, 0.0  ;;  %v556_v6 = vadd.f32 %v555_v34, %v554_v12  ;;  %v514_v12 = vadd.f32 %v513_v36, %v512_v25  ;;  %v466_v63 = vadd.f32 %v465_v3, %v464_v31 }
 0x139   :  { %v579_v27 = vsel %vm458_vm8, %v569_v39, 0.0 }
 0x13a   :  { %v593_v24 = vmul.f32 %v1241_v18, %v1390_v20  ;;  %v557_v50 = vrot.slane %v556_v6, 4  ;;  %v580_v19 = vadd.f32 %v579_v27, %v578_v23  ;;  %v626_v18 = vadd.f32 %v625_v41, %v624_v29 }
 0x13b   :  { %v490_v27 = vadd.f32 %v489_v22, %v488_v1  ;;  %v1415_v1 = vld [vmem:[%s1591_s6] ss:$0 sm:$0xff] }
 0x13c   :  { %v603_v30 = vsel %vm458_vm8, %v593_v24, 0.0  ;;  %v617_v62 = vmul.f32 %v593_v24, %v1390_v20  ;;  %v558_v13 = vadd.f32 %v557_v50, %v556_v6  ;;  %v581_v35 = vrot.slane %v580_v19, 4 }
 0x13d   :  { %v604_v32 = vadd.f32 %v603_v30, %v602_v26  ;;  %v538_v6 = vadd.f32 %v537_v16, %v536_v60  ;;  %v515_v26 = vadd.f32 %v514_v12, %v466_v63 }
 0x13e   :  { %v627_v53 = vsel %vm458_vm8, %v617_v62, 0.0  ;;  %v559_v10 = vrot.slane %v558_v13, 2  ;;  %v582_v59 = vadd.f32 %v581_v35, %v580_v19 }
 0x13f   :  { %v605_v40 = vrot.slane %v604_v32, 4  ;;  %v628_v57 = vadd.f32 %v627_v53, %v626_v18 }
 0x140   :  { %v560_v5 = vadd.f32 %v559_v10, %v558_v13  ;;  %v583_v7 = vrot.slane %v582_v59, 2 }
 0x141   :  { %v606_v61 = vadd.f32 %v605_v40, %v604_v32  ;;  %v629_v52 = vrot.slane %v628_v57, 4  ;;  %v539_v32 = vadd.f32 %v538_v6, %v490_v27 }
 0x142   :  { %v561_v58 = vrot.slane %v560_v5, 1  ;;  %v584_v34 = vadd.f32 %v583_v7, %v582_v59 }
 0x143   :  { %v607_v11 = vrot.slane %v606_v61, 2  ;;  %v630_v39 = vadd.f32 %v629_v52, %v628_v57 }
 0x144   :  { %v562_v24 = vadd.f32 %v561_v58, %v560_v5  ;;  %v585_v9 = vrot.slane %v584_v34, 1 }
 0x145   :  { %v608_v23 = vadd.f32 %v607_v11, %v606_v61  ;;  %v631_v28 = vrot.slane %v630_v39, 2 }
 0x146   :  { %v586_v29 = vadd.f32 %v585_v9, %v584_v34  ;;  %v563_v19 = vadd.f32 %v562_v24, %v515_v26 }
 0x147   :  { %v609_v41 = vrot.slane %v608_v23, 1  ;;  %v632_v50 = vadd.f32 %v631_v28, %v630_v39 }
 0x148   :  { %v587_v18 = vadd.f32 %v586_v29, %v539_v32  ;;  %v1490_v29 = vld [vmem:[%s1592_s7] ss:$0 sm:$0xff]  ;;  %s999_s7 = smov 8  }
 0x149   :  { %v610_v30 = vadd.f32 %v609_v41, %v608_v23  ;;  %v633_v25 = vrot.slane %v632_v50, 1 }
 0x14b   :  { %v611_v62 = vadd.f32 %v610_v30, %v563_v19  ;;  %v634_v13 = vadd.f32 %v633_v25, %v632_v50 }
 0x14d   :  { %v1408_v35 = vmul.f32 0.0078125, %v611_v62  ;;  %v635_v31 = vadd.f32 %v634_v13, %v587_v18 }
 0x14f   :  { %v638_v60 = vmul.f32 %v1408_v35, %v1408_v35  ;;  %v637_v36 = vmul.f32 0.0078125, %v635_v31  ;;  %v656_v59 = vsub.f32 %v1208_v51, %v1408_v35  ;;  %v657_v57 = vsub.f32 %v1212_v54, %v1408_v35 }
 0x150   :  { %v658_v61 = vsub.f32 %v1224_v2, %v1408_v35  ;;  %v659_v16 = vsub.f32 %v1235_v14, %v1408_v35  ;;  %v654_v7 = vsub.f32 %v1194_v42, %v1408_v35  ;;  %v655_v51 = vsub.f32 %v1198_v45, %v1408_v35 }
 0x151   :  { %v639_v40 = vsub.f32 %v637_v36, %v638_v60  ;;  %v1422_v3 = vmul.f32 %v1415_v1, %v656_v59  ;;  %v1429_v5 = vmul.f32 %v1415_v1, %v657_v57  ;;  %v737_v42 = vsub.f32 %v1390_v20, %v1408_v35 }
 0x152   :  { %v1436_v54 = vmul.f32 %v1415_v1, %v658_v61  ;;  %v1439_v52 = vmul.f32 %v1415_v1, %v659_v16  ;;  %v1442_v2 = vmul.f32 %v1415_v1, %v654_v7  ;;  %v1445_v14 = vmul.f32 %v1415_v1, %v655_v51 }
 0x153   :  { %v640_v53 = vmax.f32 %v639_v40, 0.0  ;;  %v688_v45 = vsub.f32 %v1294_v21, %v1408_v35  ;;  %v689_v22 = vsub.f32 %v1331_v8, %v1408_v35  ;;  %v686_v34 = vsub.f32 %v1265_v56, %v1408_v35 }
 0x154   :  { %v687_v39 = vsub.f32 %v1274_v4, %v1408_v35  ;;  %v684_v63 = vsub.f32 %v1258_v43, %v1408_v35  ;;  %v685_v23 = vsub.f32 %v1254_v37, %v1408_v35  ;;  %v712_v20 = vsub.f32 %v1356_v47, %v1408_v35 }
 0x155   :  { %v641_v10 = vadd.f32 1e-05, %v640_v53  ;;  %v713_v21 = vsub.f32 %v1381_v33, %v1408_v35  ;;  %v1466_v6 = vmul.f32 %v1415_v1, %v737_v42  ;;  %v694_v56 = vmul.f32 %v1415_v1, %v688_v45 }
 0x156   :  { %v710_v4 = vsub.f32 %v1316_v48, %v1408_v35  ;;  %v695_v43 = vmul.f32 %v1415_v1, %v689_v22  ;;  %v711_v37 = vsub.f32 %v1338_v0, %v1408_v35  ;;  %v708_v47 = vsub.f32 %v1263_v55, %v1408_v35 }
 0x157   :  { %993 = vrsqrt.f32 %v641_v10  ;;  %v709_v33 = vsub.f32 %v1288_v17, %v1408_v35  ;;  %v692_v9 = vmul.f32 %v1415_v1, %v686_v34  ;;  %v693_v28 = vmul.f32 %v1415_v1, %v687_v39 }
 0x158   :  { %v690_v26 = vmul.f32 %v1415_v1, %v684_v63  ;;  %v691_v48 = vmul.f32 %v1415_v1, %v685_v23  ;;  %v718_v41 = vmul.f32 %v1415_v1, %v712_v20  ;;  %v719_v0 = vmul.f32 %v1415_v1, %v713_v21 }
 0x159   :  { %vm648_vm10 = vweird.f32 %v641_v10  ;;  %v716_v55 = vmul.f32 %v1415_v1, %v710_v4  ;;  %v736_v17 = vsub.f32 %v1366_v44, %v1408_v35  ;;  %v717_v50 = vmul.f32 %v1415_v1, %v711_v37 }
 0x15a   :  { %v714_v19 = vmul.f32 %v1415_v1, %v708_v47  ;;  %v715_v30 = vmul.f32 %v1415_v1, %v709_v33  ;;  %v734_v32 = vsub.f32 %v1318_v49, %v1408_v35  ;;  %v735_v62 = vsub.f32 %v1354_v46, %v1408_v35 }
 0x15b   :  { %v732_v44 = vsub.f32 %v1285_v15, %v1408_v35  ;;  %v733_v18 = vsub.f32 %v1312_v38, %v1408_v35  ;;  %v742_v21 = vmul.f32 %v1415_v1, %v736_v17 }
 0x15c   :  { %v740_v16 = vmul.f32 %v1415_v1, %v734_v32  ;;  %v741_v63 = vmul.f32 %v1415_v1, %v735_v62 }
 0x15d   :  { %v994_v12 = vpop.eup %993  ;;  %v738_v4 = vmul.f32 %v1415_v1, %v732_v44 }
 0x15e   :  { %v643_v11 = vmul.f32 %v994_v12, %v641_v10  ;;  %vm649_vm9 = vweird.f32 %v994_v12 }
 0x15f   :  { %vm650_vm11 = vmor %vm648_vm10, %vm649_vm9 }
 0x160   :  { %v644_v58 = vmul.f32 %v994_v12, %v643_v11 }
 0x162   :  { %v645_v8 = vmul.f32 0.5, %v644_v58 }
 0x164   :  { %v646_v24 = vsub.f32 1.5, %v645_v8 }
 0x166   :  { %v647_v27 = vmul.f32 %v994_v12, %v646_v24 }
 0x168   :  { %v651_v25 = vsel %vm650_vm11, %v994_v12, %v647_v27 }
 0x169   :  { %v700_v13 = vmul.f32 %v694_v56, %v651_v25  ;;  %v701_v31 = vmul.f32 %v695_v43, %v651_v25  ;;  %v698_v60 = vmul.f32 %v692_v9, %v651_v25  ;;  %v699_v36 = vmul.f32 %v693_v28, %v651_v25 }
 0x16a   :  { %v696_v40 = vmul.f32 %v690_v26, %v651_v25  ;;  %v697_v53 = vmul.f32 %v691_v48, %v651_v25  ;;  %v724_v10 = vmul.f32 %v718_v41, %v651_v25  ;;  %v725_v59 = vmul.f32 %v719_v0, %v651_v25 }
 0x16b   :  { %v706_v49 = vadd.f32 %v1490_v29, %v700_v13  ;;  %v707_v57 = vadd.f32 %v1490_v29, %v701_v31  ;;  %v704_v46 = vadd.f32 %v1490_v29, %v698_v60  ;;  %v705_v61 = vadd.f32 %v1490_v29, %v699_v36 }
 0x16c   :  { %v702_v15 = vadd.f32 %v1490_v29, %v696_v40  ;;  %v703_v38 = vadd.f32 %v1490_v29, %v697_v53  ;;  %v730_v35 = vadd.f32 %v1490_v29, %v724_v10  ;;  %v722_v12 = vmul.f32 %v716_v55, %v651_v25 }
 0x16d   :  { %v955_v7 = vpack.i.bf16 %v707_v57, %v706_v49  ;;  %v950_v51 = vpack.i.bf16 %v705_v61, %v704_v46  ;;  %v723_v11 = vmul.f32 %v717_v50, %v651_v25  ;;  %v731_v45 = vadd.f32 %v1490_v29, %v725_v59 }
 0x16e   :  { %v945_v42 = vpack.i.bf16 %v703_v38, %v702_v15  ;;  %v720_v22 = vmul.f32 %v714_v19, %v651_v25  ;;  %v721_v58 = vmul.f32 %v715_v30, %v651_v25  ;;  %v728_v34 = vadd.f32 %v1490_v29, %v722_v12 }
 0x16f   :  { %956 = vrot.lane.b32.xlu0 %v955_v7, %s999_s7  ;;  %951 = vrot.lane.b32.xlu2 %v950_v51, %s999_s7  ;;  %v729_v39 = vadd.f32 %v1490_v29, %v723_v11  ;;  %v746_v8 = vmul.f32 %v740_v16, %v651_v25  ;;  %v747_v56 = vmul.f32 %v741_v63, %v651_v25 }
 0x170   :  { %946 = vrot.lane.b32.xlu1 %v945_v42, %s999_s7  ;;  %v726_v23 = vadd.f32 %v1490_v29, %v720_v22  ;;  %v727_v20 = vadd.f32 %v1490_v29, %v721_v58  ;;  %v739_v43 = vmul.f32 %v1415_v1, %v733_v18  ;;  %v970_v37 = vpack.i.bf16 %v731_v45, %v730_v35 }
 0x171   :  { %v748_v47 = vmul.f32 %v742_v21, %v651_v25  ;;  %v749_v33 = vmul.f32 %v1466_v6, %v651_v25  ;;  %v752_v24 = vadd.f32 %v1490_v29, %v746_v8  ;;  %v965_v9 = vpack.i.bf16 %v729_v39, %v728_v34 }
 0x172   :  { %v753_v28 = vadd.f32 %v1490_v29, %v747_v56  ;;  %v671_v26 = vmul.f32 %v1422_v3, %v651_v25  ;;  %v672_v48 = vmul.f32 %v1429_v5, %v651_v25  ;;  %v960_v41 = vpack.i.bf16 %v727_v20, %v726_v23 }
 0x173   :  { %v744_v0 = vmul.f32 %v738_v4, %v651_v25  ;;  %v673_v27 = vmul.f32 %v1436_v54, %v651_v25  ;;  %v674_v55 = vmul.f32 %v1439_v52, %v651_v25  ;;  %v669_v50 = vmul.f32 %v1442_v2, %v651_v25 }
 0x174   :  { %v980_v1 = vpack.i.bf16 %v753_v28, %v752_v24  ;;  %v680_v17 = vadd.f32 %v1490_v29, %v671_v26  ;;  %v681_v6 = vadd.f32 %v1490_v29, %v672_v48  ;;  %v745_v19 = vmul.f32 %v739_v43, %v651_v25 }
 0x175   :  { %v682_v30 = vadd.f32 %v1490_v29, %v673_v27  ;;  %v683_v3 = vadd.f32 %v1490_v29, %v674_v55  ;;  %v670_v5 = vmul.f32 %v1445_v14, %v651_v25  ;;  %v678_v54 = vadd.f32 %v1490_v29, %v669_v50 }
 0x176   :  { %v754_v32 = vadd.f32 %v1490_v29, %v748_v47  ;;  %v755_v2 = vadd.f32 %v1490_v29, %v749_v33  ;;  %v750_v62 = vadd.f32 %v1490_v29, %v744_v0  ;;  %v751_v44 = vadd.f32 %v1490_v29, %v745_v19 }
 0x177   :  { %971 = vrot.lane.b32.xlu0 %v970_v37, %s995_s21  ;;  %966 = vrot.lane.b32.xlu2 %v965_v9, %s995_s21  ;;  %v679_v52 = vadd.f32 %v1490_v29, %v670_v5 }
 0x178   :  { %961 = vrot.lane.b32.xlu1 %v960_v41, %s995_s21  ;;  %v985_v18 = vpack.i.bf16 %v755_v2, %v754_v32  ;;  %v975_v14 = vpack.i.bf16 %v751_v44, %v750_v62 }
 0x17f   :  { %986 = vrot.lane.b32.xlu0 %v985_v18, %s1000_s13  ;;  %981 = vrot.lane.b32.xlu2 %v980_v1, %s1000_s13 }
 0x180   :  { %976 = vrot.lane.b32.xlu1 %v975_v14, %s1000_s13 }
 0x1c9   :  { %v952_v25 = vpop.permute.xlu2 %951 }
 0x1ca   :  { %v954_v31 = vunpack.i.h.bf16 %v952_v25  ;;  %v953_v60 = vunpack.i.l.bf16 %v952_v25 }
 0x1cc   :  { %v830_v10 = vsel %vm448_vm7, %v680_v17, %v953_v60  ;;  %v831_v59 = vsel %vm448_vm7, %v681_v6, %v954_v31 }
 0x1d1   :  { %v967_v13 = vpop.permute.xlu2 %966 }
 0x1d2   :  { %v969_v36 = vunpack.i.h.bf16 %v967_v13  ;;  %v968_v40 = vunpack.i.l.bf16 %v967_v13 }
 0x1d4   :  { %v836_v57 = vsel %vm71_vm2, %v830_v10, %v968_v40  ;;  %v837_v46 = vsel %vm71_vm2, %v831_v59, %v969_v36 }
 0x1d9   :  { %v982_v53 = vpop.permute.xlu2 %981 }
 0x1da   :  { %v984_v49 = vunpack.i.h.bf16 %v982_v53  ;;  %v983_v29 = vunpack.i.l.bf16 %v982_v53 }
 0x1dc   :  { %v843_v61 = vsel %vm840_vm12, %v836_v57, %v983_v29  ;;  %v844_v15 = vsel %vm840_vm12, %v837_v46, %v984_v49 }
 0x1dd   :  { %v849_v38 = vpack.c.bf16 %v843_v61, %v843_v61  ;;  %v850_v35 = vpack.c.bf16 %v844_v15, %v844_v15 }
 0x1df   :  { %856 = vst.msk [vmem:[%s1593_s9 + $0x8] sm:$0xf] %vm853_vm13, %v849_v38 }
 0x1e0   :  { %857 = vst.msk [vmem:[%s1593_s9 + $0xc] sm:$0xf] %vm853_vm13, %v850_v35 }
 0x1e1   :  { %v957_v16 = vpop.permute.xlu0 %956 }
 0x1e2   :  { %v947_v7 = vpop.permute.xlu1 %946  ;;  %v959_v11 = vunpack.i.h.bf16 %v957_v16  ;;  %v958_v42 = vunpack.i.l.bf16 %v957_v16 }
 0x1e3   :  { %v949_v45 = vunpack.i.h.bf16 %v947_v7  ;;  %v948_v22 = vunpack.i.l.bf16 %v947_v7 }
 0x1e4   :  { %v832_v23 = vsel %vm448_vm7, %v682_v30, %v958_v42  ;;  %v833_v20 = vsel %vm448_vm7, %v683_v3, %v959_v11 }
 0x1e5   :  { %v828_v8 = vsel %vm448_vm7, %v678_v54, %v948_v22  ;;  %v829_v56 = vsel %vm448_vm7, %v679_v52, %v949_v45 }
 0x1e9   :  { %v972_v51 = vpop.permute.xlu0 %971 }
 0x1ea   :  { %v962_v12 = vpop.permute.xlu1 %961  ;;  %v974_v58 = vunpack.i.h.bf16 %v972_v51  ;;  %v973_v34 = vunpack.i.l.bf16 %v972_v51 }
 0x1eb   :  { %v964_v39 = vunpack.i.h.bf16 %v962_v12  ;;  %v963_v63 = vunpack.i.l.bf16 %v962_v12 }
 0x1ec   :  { %v838_v47 = vsel %vm71_vm2, %v832_v23, %v973_v34  ;;  %v839_v33 = vsel %vm71_vm2, %v833_v20, %v974_v58 }
 0x1ed   :  { %v834_v28 = vsel %vm71_vm2, %v828_v8, %v963_v63  ;;  %v835_v26 = vsel %vm71_vm2, %v829_v56, %v964_v39 }
 0x1f1   :  { %v987_v21 = vpop.permute.xlu0 %986 }
 0x1f2   :  { %v989_v4 = vunpack.i.h.bf16 %v987_v21  ;;  %v988_v43 = vunpack.i.l.bf16 %v987_v21  ;;  %v977_v37 = vpop.permute.xlu1 %976 }
 0x1f3   :  { %v979_v24 = vunpack.i.h.bf16 %v977_v37  ;;  %v978_v9 = vunpack.i.l.bf16 %v977_v37 }
 0x1f4   :  { %v845_v48 = vsel %vm840_vm12, %v838_v47, %v988_v43  ;;  %v846_v41 = vsel %vm840_vm12, %v839_v33, %v989_v4 }
 0x1f5   :  { %v851_v0 = vpack.c.bf16 %v845_v48, %v845_v48  ;;  %v852_v27 = vpack.c.bf16 %v846_v41, %v846_v41  ;;  %v841_v55 = vsel %vm840_vm12, %v834_v28, %v978_v9  ;;  %v842_v1 = vsel %vm840_vm12, %v835_v26, %v979_v24 }
 0x1f6   :  { %v847_v17 = vpack.c.bf16 %v841_v55, %v841_v55  ;;  %v848_v6 = vpack.c.bf16 %v842_v1, %v842_v1 }
 0x1f7   :  { %858 = vst.msk [vmem:[%s1593_s9 + $0x10] sm:$0xf] %vm853_vm13, %v851_v0 }
 0x1f8   :  { %860 = vst.msk [vmem:[%s1593_s9 + $0x14] sm:$0x3] %vm859_vm14, %v852_v27 }
 0x1f9   :  { %854 = vst.msk [vmem:[%s1593_s9] sm:$0xf] %vm853_vm13, %v847_v17 }
 0x1fa   :  { %855 = vst.msk [vmem:[%s1593_s9 + $0x4] sm:$0xf] %vm853_vm13, %v848_v6 }

// kernel: rotvae_forward.13
= control target key start
LH: loop header
LB: loop body
LE: loop exit
PB: predicated region body
PF: predicated region fallthrough
CT: control target
= control target key end

     0   :  { %vm198_vm0 = vsmask.f32 7424  ;;  %s1976_s7 = smov 8   ;;  %s1977_s10 = smov 16   ;;  %vm638_vm1 = vcmask 1046528   ;;  %vm102_vm2 = vcmask 64512   ;;  %s2670_s0 = inlined_call_operand.vmem [shape: bf16[162,8], index: 0, kind: input, shape index: {}]   ;;  %s2671_s2 = inlined_call_operand.vmem [shape: bf16[16,1], index: 2, kind: input, shape index: {}]   ;;  %s2672_s3 = inlined_call_operand.vmem [shape: bf16[16,1], index: 3, kind: input, shape index: {}]   ;;  %s2673_s4 = inlined_call_operand.vmem [shape: bf16[32,1], index: 4, kind: input, shape index: {}]   ;;  %s2674_s1 = inlined_call_operand.vmem [shape: bf16[8,1], index: 1, kind: input, shape index: {}]   ;;  %s2675_s5 = inlined_call_operand.<no memory space> [shape: f32[1,1], index: 5, kind: input, shape index: {}]   ;;  %s2676_s6 = inlined_call_operand.vmem [shape: f32[152,4], index: 6, kind: output, shape index: {}]  }
   0x1   :  { %v2020_v0 = vld [vmem:[%s2670_s0] sm:$0xff]   ;;  %v2025_v1 = vld [vmem:[%s2670_s0 + $0x8] sm:$0xff]   ;;  %v2041_v17 = vld [vmem:[%s2670_s0 + $0x10] sm:$0xff]   ;;  %s1978_s15 = smov 24   ;;  %vm317_vm3 = vcmask 130048   ;;  %vm698_vm4 = vcmask 195584  }
   0x2   :  { %v1652_v2 = vld [vmem:[%s2670_s0 + $0xc] sm:$0xff]   ;;  %v199_v3 = vshrl.u32 %v2020_v0, 16  ;;  %v201_v4 = vshll.u32 %v2020_v0, 16  ;;  %v205_v5 = vshll.u32 %v2025_v1, 16  ;;  %v1574_v6 = vunpack.c.h.b16 %v2020_v0  ;;  %v48_v10 = vld [vmem:[%s2670_s0 + $0x4] sm:$0xe] }
   0x3   :  { %v1577_v7 = vunpack.c.l.b16 %v2025_v1  ;;  %v418_v12 = vshll.u32 %v1652_v2, 16  ;;  %v636_v16 = vunpack.c.l.b16 %v48_v10  ;;  %v209_v21 = vshrl.u32 %v2025_v1, 16  ;;  %v1654_v22 = vld [vmem:[%s2670_s0 + $0x14] sm:$0xff]   ;;  %v1656_v36 = vld [vmem:[%s2670_s0 + $0x1c] sm:$0xff]   ;;  %v1658_v55 = vld [vmem:[%s2670_s0 + $0x24] sm:$0xff]  }
   0x4   :  { %v203_v8 = vrot.slane %v201_v4, 1  ;;  %v207_v9 = vrot.slane %v205_v5, 1  ;;  %v212_v23 = vshll.u32 %v2041_v17, 16  ;;  %v422_v29 = vshrl.u32 %v1652_v2, 16  ;;  %v2062_v38 = vld [vmem:[%s2670_s0 + $0x18] sm:$0xff]   ;;  %v2074_v50 = vld [vmem:[%s2670_s0 + $0x20] sm:$0xff]  }
   0x5   :  { %v400_v11 = vpack.c.b16 %v1577_v7, %v1574_v6  ;;  %v420_v20 = vrot.slane %v418_v12, 1  ;;  %v637_v25 = vpack.c.b16 %v1577_v7, %v636_v16  ;;  %v426_v30 = vshll.u32 %v1654_v22, 16  ;;  %v1660_v5 = vld [vmem:[%s2670_s0 + $0x2c] sm:$0xff]   ;;  %v1662_v16 = vld [vmem:[%s2670_s0 + $0x34] sm:$0xff]  }
   0x6   :  { %v204_v13 = vor.u32 %v203_v8, %v199_v3  ;;  %v211_v26 = vor.u32 %v209_v21, %v207_v9  ;;  %v214_v27 = vrot.slane %v212_v23, 1  ;;  %v640_v33 = vrot.slane %v1652_v2, 1  ;;  %v2093_v3 = vld [vmem:[%s2670_s0 + $0x28] sm:$0xff]  }
   0x7   :  { %v411_v14 = vshrl.u32 %v400_v11, 16  ;;  %v413_v15 = vshll.u32 %v400_v11, 16  ;;  %v639_v32 = vrot.slane %v637_v25, 1  ;;  %v424_v34 = vor.u32 %v422_v29, %v420_v20  ;;  %v1567_v25 = vld [vmem:[%s2671_s2] sm:$0xff] }
   0x8   :  { %v208_v18 = vsel %vm198_vm0, %v204_v13, %v207_v9  ;;  %v215_v31 = vsel %vm198_vm0, %v211_v26, %v214_v27  ;;  %v428_v35 = vrot.slane %v426_v30, 1  ;;  %v216_v39 = vshrl.u32 %v2041_v17, 16  ;;  %345 = vmatpush.bf16.msra.mxu1 %v1567_v25 }
   0x9   :  { %269 = vrot.lane.b32.xlu0 %v208_v18, %s1976_s7  ;;  %v415_v19 = vrot.slane %v413_v15, 1  ;;  %271 = vrot.lane.b32.xlu2 %v215_v31, %s1976_s7  ;;  %v641_v37 = vsel %vm638_vm1, %v639_v32, %v640_v33  ;;  %v430_v41 = vshrl.u32 %v1654_v22, 16  ;;  %v434_v42 = vshll.u32 %v1656_v36, 16  ;;  %v2128_v32 = vld [vmem:[%s2670_s0 + $0x38] sm:$0xff]  }
   0xa   :  { %v429_v40 = vsel %vm198_vm0, %v424_v34, %v428_v35  ;;  %v219_v43 = vshll.u32 %v2062_v38, 16  ;;  %v642_v44 = vrot.slane %v1654_v22, 1  ;;  %v218_v45 = vor.u32 %v216_v39, %v214_v27 }
   0xb   :  { %v416_v24 = vor.u32 %v415_v19, %v411_v14  ;;  %v432_v46 = vor.u32 %v430_v41, %v428_v35  ;;  %v436_v47 = vrot.slane %v434_v42, 1  ;;  %v223_v53 = vshrl.u32 %v2062_v38, 16  ;;  %v2113_v19 = vld [vmem:[%s2670_s0 + $0x30] sm:$0xff]  }
   0xc   :  { %v221_v48 = vrot.slane %v219_v43, 1  ;;  %v643_v49 = vsel %vm638_vm1, %v640_v33, %v642_v44  ;;  %v226_v54 = vshll.u32 %v2074_v50, 16  ;;  %v644_v58 = vrot.slane %v1656_v36, 1 }
   0xd   :  { %v421_v28 = vsel %vm198_vm0, %v416_v24, %v420_v20  ;;  %v437_v52 = vsel %vm198_vm0, %v432_v46, %v436_v47  ;;  %v438_v59 = vshrl.u32 %v1656_v36, 16  ;;  %v442_v60 = vshll.u32 %v1658_v55, 16 }
   0xe   :  { %615 = vrot.lane.b32.xlu1 %v421_v28, %s1977_s10  ;;  %v222_v51 = vsel %vm198_vm0, %v218_v45, %v221_v48  ;;  %v225_v56 = vor.u32 %v223_v53, %v221_v48  ;;  %v228_v57 = vrot.slane %v226_v54, 1  ;;  %v645_v61 = vsel %vm638_vm1, %v642_v44, %v644_v58  ;;  %v2147_v48 = vld [vmem:[%s2670_s0 + $0x40] sm:$0xff]  }
   0xf   :  { %v440_v63 = vor.u32 %v438_v59, %v436_v47  ;;  %v444_v2 = vrot.slane %v442_v60, 1  ;;  %v646_v4 = vrot.slane %v1658_v55, 1  ;;  %v230_v7 = vshrl.u32 %v2074_v50, 16 }
  0x10   :  { %v229_v62 = vsel %vm198_vm0, %v225_v56, %v228_v57  ;;  %v233_v8 = vshll.u32 %v2093_v3, 16  ;;  %v446_v10 = vshrl.u32 %v1658_v55, 16  ;;  %v450_v11 = vshll.u32 %v1660_v5, 16 }
  0x11   :  { %489 = vrot.lane.b32.xlu0 %v421_v28, %s1976_s7  ;;  %491 = vrot.lane.b32.xlu2 %v429_v40, %s1976_s7  ;;  %v445_v6 = vsel %vm198_vm0, %v440_v63, %v444_v2  ;;  %v647_v9 = vsel %vm638_vm1, %v644_v58, %v646_v4  ;;  %v232_v12 = vor.u32 %v230_v7, %v228_v57  ;;  %v237_v20 = vshrl.u32 %v2093_v3, 16  ;;  %v44_v58 = vld [vmem:[%s2670_s0 + $0x48] sm:$0xf] }
  0x12   :  { %v235_v13 = vrot.slane %v233_v8, 1  ;;  %v448_v14 = vor.u32 %v446_v10, %v444_v2  ;;  %v452_v15 = vrot.slane %v450_v11, 1  ;;  %v454_v22 = vshrl.u32 %v1660_v5, 16  ;;  %v1568_v8 = vld [vmem:[%s2672_s3] sm:$0xff]  ;;  %v1532_v11 = vld [vmem:[%s2670_s0 + $0x4c] sm:$0xf] }
  0x13   :  { %v458_v23 = vshll.u32 %v1662_v16, 16  ;;  %v240_v24 = vshll.u32 %v2113_v19, 16  ;;  %v648_v26 = vrot.slane %v1660_v5, 1  ;;  %v244_v35 = vshrl.u32 %v2113_v19, 16  ;;  %564 = vmatpush.bf16.msra.mxu2 %v1568_v8  ;;  %v1569_v10 = vld [vmem:[%s2673_s4] sm:$0xff] }
  0x14   :  { %v236_v18 = vsel %vm198_vm0, %v232_v12, %v235_v13  ;;  %v453_v21 = vsel %vm198_vm0, %v448_v14, %v452_v15  ;;  %v239_v27 = vor.u32 %v237_v20, %v235_v13  ;;  %v456_v28 = vor.u32 %v454_v22, %v452_v15  ;;  %v1566_v12 = vld [vmem:[%s2670_s0 + $0x4c] sm:$0x10]  ;;  %v45_v20 = vld [vmem:[%s2670_s0 + $0x4c] sm:$0x1] }
  0x15   :  { %v460_v29 = vrot.slane %v458_v23, 1  ;;  %v242_v30 = vrot.slane %v240_v24, 1  ;;  %v649_v31 = vsel %vm638_vm1, %v646_v4, %v648_v26  ;;  %v247_v36 = vshll.u32 %v2128_v32, 16 }
  0x16   :  { %658 = vrot.lane.b32.xlu1 %v641_v37, %s1978_s15  ;;  %v1663_v37 = vld [vmem:[%s2670_s0 + $0x3c] sm:$0xff]   ;;  %v650_v41 = vrot.slane %v1662_v16, 1  ;;  %v462_v42 = vshrl.u32 %v1662_v16, 16  ;;  %v254_v53 = vshll.u32 %v2147_v48, 16  ;;  %v1606_v59 = vunpack.c.h.b16 %v2147_v48 }
  0x17   :  { %v243_v33 = vsel %vm198_vm0, %v239_v27, %v242_v30  ;;  %v461_v34 = vsel %vm198_vm0, %v456_v28, %v460_v29  ;;  %v246_v39 = vor.u32 %v244_v35, %v242_v30  ;;  %v466_v43 = vshll.u32 %v1663_v37, 16 }
  0x18   :  { %v651_v44 = vsel %vm638_vm1, %v648_v26, %v650_v41  ;;  %v464_v46 = vor.u32 %v462_v42, %v460_v29  ;;  %v256_v56 = vrot.slane %v254_v53, 1  ;;  %v2162_v60 = vunpack.c.l.b16 %v44_v58 }
  0x19   :  { %617 = vrot.lane.b32.xlu0 %v429_v40, %s1977_s10  ;;  %273 = vrot.lane.b32.xlu2 %v222_v51, %s1976_s7  ;;  %v249_v40 = vrot.slane %v247_v36, 1  ;;  %v468_v47 = vrot.slane %v466_v43, 1  ;;  %v1533_v13 = vor.u32 %v1566_v12, %v1532_v11  ;;  %v196_v22 = vunpack.c.l.b16 %v45_v20 }
  0x1a   :  { %v258_v28 = vshrl.u32 %v2147_v48, 16  ;;  %vm735_vm5 = vcmask 261120   ;;  %vm133_vm6 = vcmask 1043456   ;;  %vm1422_vm7 = vcmask 7168  }
  0x1b   :  { %v250_v45 = vsel %vm198_vm0, %v246_v39, %v249_v40  ;;  %v469_v51 = vsel %vm198_vm0, %v464_v46, %v468_v47  ;;  %v482_v15 = vshll.u32 %v1533_v13, 16  ;;  %v197_v23 = vpack.c.b16 %v196_v22, %v2162_v60 }
  0x1c   :  { %v260_v30 = vor.u32 %v258_v28, %v256_v56  ;;  %v486_v35 = vshrl.u32 %v1533_v13, 16  ;;  %vm1442_vm8 = vcmask 15360   ;;  %vm1462_vm9 = vcmask 23552  }
  0x1d   :  { %v262_v24 = vshll.u32 %v197_v23, 16  ;;  %v266_v25 = vshrl.u32 %v197_v23, 16  ;;  %vm1482_vm10 = vcmask 31744  }
  0x1e   :  { %660 = vrot.lane.b32.xlu1 %v643_v49, %s1978_s15  ;;  %v652_v49 = vrot.slane %v1663_v37, 1 }
  0x1f   :  { %v264_v26 = vrot.slane %v262_v24, 1 }
  0x20   :  { %v653_v54 = vsel %vm638_vm1, %v650_v41, %v652_v49 }
  0x21   :  { %493 = vrot.lane.b32.xlu0 %v437_v52, %s1976_s7  ;;  %662 = vrot.lane.b32.xlu2 %v645_v61, %s1978_s15  ;;  %v408_v61 = vpack.c.b16 %v2162_v60, %v1606_v59  ;;  %v268_v27 = vor.u32 %v266_v25, %v264_v26  ;;  %v11_v25 = vstv %s2675_s5  ;;  %s1979_s5 = smov 1  }
  0x22   :  { %12 = vst [vmem:[#allocation2] sm:$0x1] %v11_v25 }
  0x23   :  { %v474_v63 = vshll.u32 %v408_v61, 16  ;;  %v654_v5 = vrot.slane %v408_v61, 1  ;;  %v478_v14 = vshrl.u32 %v408_v61, 16 }
  0x25   :  { %v476_v4 = vrot.slane %v474_v63, 1  ;;  %v655_v7 = vsel %vm638_vm1, %v652_v49, %v654_v5 }
  0x26   :  { %619 = vrot.lane.b32.xlu1 %v437_v52, %s1977_s10  ;;  %v251_v52 = vshrl.u32 %v2128_v32, 16 }
  0x27   :  { %v480_v16 = vor.u32 %v478_v14, %v476_v4 }
  0x28   :  { %v253_v55 = vor.u32 %v251_v52, %v249_v40 }
  0x29   :  { %275 = vrot.lane.b32.xlu0 %v229_v62, %s1976_s7  ;;  %621 = vrot.lane.b32.xlu2 %v445_v6, %s1977_s10  ;;  %v470_v62 = vshrl.u32 %v1663_v37, 16 }
  0x2a   :  { %v257_v57 = vsel %vm198_vm0, %v253_v55, %v256_v56 }
  0x2b   :  { %v472_v2 = vor.u32 %v470_v62, %v468_v47 }
  0x2e   :  { %495 = vrot.lane.b32.xlu1 %v445_v6, %s1976_s7  ;;  %v477_v6 = vsel %vm198_vm0, %v472_v2, %v476_v4 }
  0x31   :  { %664 = vrot.lane.b32.xlu0 %v647_v9, %s1978_s15  ;;  %497 = vrot.lane.b32.xlu2 %v453_v21, %s1976_s7  ;;  %v1570_v9 = vld [vmem:[%s2673_s4 + $0x8] sm:$0xff] }
  0x32   :  { %762 = vmatpush.bf16.msra.mxu3 %v1570_v9 }
  0x36   :  { %277 = vrot.lane.b32.xlu1 %v236_v18, %s1976_s7  ;;  %763 = vmatpush.bf16.msra.mxu3 %v1569_v10  ;;  %v484_v18 = vrot.slane %v482_v15, 1 }
  0x38   :  { %v488_v36 = vor.u32 %v486_v35, %v484_v18 }
  0x39   :  { %623 = vrot.lane.b32.xlu0 %v453_v21, %s1977_s10  ;;  %279 = vrot.lane.b32.xlu2 %v243_v33, %s1976_s7  ;;  %v485_v21 = vsel %vm198_vm0, %v480_v16, %v484_v18  ;;  %v656_v33 = vrot.slane %v1533_v13, 1 }
  0x3b   :  { %v657_v40 = vsel %vm638_vm1, %v654_v5, %v656_v33  ;;  %v50_v5 = vld [vmem:[%s2674_s1] sm:$0xf] }
  0x3e   :  { %666 = vrot.lane.b32.xlu1 %v649_v31, %s1978_s15 }
  0x41   :  { %499 = vrot.lane.b32.xlu0 %v461_v34, %s1976_s7  ;;  %668 = vrot.lane.b32.xlu2 %v651_v44, %s1978_s15 }
  0x46   :  { %625 = vrot.lane.b32.xlu1 %v461_v34, %s1977_s10  ;;  %v265_v34 = vsel %vm198_vm0, %v260_v30, %v264_v26 }
  0x49   :  { %281 = vrot.lane.b32.xlu0 %v250_v45, %s1976_s7  ;;  %627 = vrot.lane.b32.xlu2 %v469_v51, %s1977_s10 }
  0x4e   :  { %501 = vrot.lane.b32.xlu1 %v469_v51, %s1976_s7 }
  0x51   :  { %670 = vrot.lane.b32.xlu0 %v653_v54, %s1978_s15  ;;  %503 = vrot.lane.b32.xlu2 %v477_v6, %s1976_s7 }
  0x56   :  { %283 = vrot.lane.b32.xlu1 %v257_v57, %s1976_s7 }
  0x59   :  { %629 = vrot.lane.b32.xlu0 %v477_v6, %s1977_s10  ;;  %285 = vrot.lane.b32.xlu2 %v265_v34, %s1976_s7  ;;  %v135_v6 = vsel %vm133_vm6, %v50_v5, 0 }
  0x5a   :  { %144 = vmatpush.bf16.msra.mxu0 %v135_v6 }
  0x5d   :  { %1506 = vmatmul.msk.bf16.vlgmr.msra.gmra.mxu0 %vm102_vm2, %v2020_v0 }
  0x5e   :  { %672 = vrot.lane.b32.xlu1 %v655_v7, %s1978_s15 }
  0x61   :  { %505 = vrot.lane.b32.xlu0 %v485_v21, %s1976_s7  ;;  %674 = vrot.lane.b32.xlu2 %v657_v40, %s1978_s15 }
  0x63   :  { %v272_v42 = vpop.permute.xlu2 %271 }
  0x64   :  { %v292_v46 = vsel %vm102_vm2, %v2025_v1, %v272_v42 }
  0x66   :  { %631 = vrot.lane.b32.xlu1 %v485_v21, %s1977_s10 }
  0x69   :  { %287 = vrot.lane.b32.xlu0 %v268_v27, %s1976_s7  ;;  %633 = vrot.lane.b32.xlu2 %v488_v36, %s1977_s10  ;;  %s1980_s10 = smov 2  }
  0x6b   :  { %v492_v47 = vpop.permute.xlu2 %491 }
  0x6c   :  { %v512_v49 = vsel %vm102_vm2, %v2025_v1, %v492_v47 }
  0x6d   :  { %1507 = vmatmul.msk.bf16.gmra.mxu0 %vm102_vm2, %v2025_v1 }
  0x6e   :  { %507 = vrot.lane.b32.xlu1 %v488_v36, %s1976_s7 }
  0x71   :  { %676 = vrot.lane.b32.xlu0 %v656_v33, %s1978_s15  ;;  %s1981_s15 = smov 3  }
  0x73   :  { %v274_v54 = vpop.permute.xlu2 %273 }
  0x74   :  { %v294_v56 = vsel %vm102_vm2, %v2041_v17, %v274_v54 }
  0x7b   :  { %v270_v29 = vpop.permute.xlu0 %269  ;;  %v663_v62 = vpop.permute.xlu2 %662 }
  0x7c   :  { %v290_v31 = vsel %vm102_vm2, %v2020_v0, %v270_v29 }
  0x7d   :  { %1520 = vmatmul.msk.bf16.vlgmr.msra.gmra.mxu1 %vm317_vm3, %v290_v31  ;;  %1508 = vmatmul.msk.bf16.gmra.mxu0 %vm102_vm2, %v2041_v17 }
  0x80   :  { %v616_v37 = vpop.permute.xlu1 %615 }
  0x81   :  { %v679_v43 = vsel %vm317_vm3, %v290_v31, %v616_v37 }
  0x83   :  { %v490_v39 = vpop.permute.xlu0 %489  ;;  %v622_v9 = vpop.permute.xlu2 %621 }
  0x84   :  { %v510_v41 = vsel %vm102_vm2, %v2020_v0, %v490_v39 }
  0x85   :  { %1538 = vmatmul.msk.bf16.vlgmr.msra.gmra.mxu2 %vm317_vm3, %v510_v41 }
  0x88   :  { %v659_v44 = vpop.permute.xlu1 %658 }
  0x89   :  { %v700_v45 = vsel %vm698_vm4, %v679_v43, %v659_v44 }
  0x8a   :  { %1556 = vmatmul.msk.bf16.vlgmr.msra.gmra.mxu3 %vm735_vm5, %v700_v45  ;;  %v2288_v45 = vld [vmem:[#allocation2] ss:$0 sm:$0xff] }
  0x8b   :  { %v618_v51 = vpop.permute.xlu0 %617  ;;  %v498_v15 = vpop.permute.xlu2 %497 }
  0x8c   :  { %v681_v52 = vsel %vm317_vm3, %v292_v46, %v618_v51  ;;  %v518_v0 = vsel %vm102_vm2, %v2074_v50, %v498_v15 }
  0x8d   :  { %1521 = vmatmul.msk.bf16.gmra.mxu1 %vm317_vm3, %v292_v46  ;;  %1509 = vmatmul.msk.bf16.gmra.mxu0 %vm102_vm2, %v2062_v38 }
  0x90   :  { %v661_v53 = vpop.permute.xlu1 %660 }
  0x91   :  { %v702_v55 = vsel %vm698_vm4, %v681_v52, %v661_v53 }
  0x93   :  { %v494_v57 = vpop.permute.xlu0 %493  ;;  %v280_v21 = vpop.permute.xlu2 %279 }
  0x94   :  { %v514_v58 = vsel %vm102_vm2, %v2041_v17, %v494_v57  ;;  %v300_v23 = vsel %vm102_vm2, %v2093_v3, %v280_v21 }
  0x95   :  { %1539 = vmatmul.msk.bf16.gmra.mxu2 %vm317_vm3, %v512_v49 }
  0x98   :  { %v620_v59 = vpop.permute.xlu1 %619 }
  0x99   :  { %v683_v61 = vsel %vm317_vm3, %v294_v56, %v620_v59 }
  0x9a   :  { %1557 = vmatmul.msk.bf16.gmra.mxu3 %vm735_vm5, %v702_v55  ;;  %v704_v2 = vsel %vm698_vm4, %v683_v61, %v663_v62 }
  0x9b   :  { %v276_v63 = vpop.permute.xlu0 %275  ;;  %v669_v28 = vpop.permute.xlu2 %668 }
  0x9c   :  { %v296_v4 = vsel %vm102_vm2, %v2062_v38, %v276_v63  ;;  %v2305_v63 = vpack.c.b16 %v2162_v60, %v2162_v60 }
  0x9d   :  { %1522 = vmatmul.msk.bf16.gmra.mxu1 %vm317_vm3, %v294_v56  ;;  %v685_v10 = vsel %vm317_vm3, %v296_v4, %v622_v9  ;;  %1510 = vmatmul.msk.bf16.gmra.mxu0 %vm102_vm2, %v2074_v50 }
  0xa0   :  { %v496_v7 = vpop.permute.xlu1 %495 }
  0xa1   :  { %v516_v8 = vsel %vm102_vm2, %v2062_v38, %v496_v7 }
  0xa3   :  { %v665_v11 = vpop.permute.xlu0 %664  ;;  %v628_v34 = vpop.permute.xlu2 %627 }
  0xa4   :  { %v706_v13 = vsel %vm698_vm4, %v685_v10, %v665_v11 }
  0xa5   :  { %1540 = vmatmul.msk.bf16.gmra.mxu2 %vm317_vm3, %v514_v58 }
  0xa8   :  { %v278_v12 = vpop.permute.xlu1 %277 }
  0xa9   :  { %v298_v14 = vsel %vm102_vm2, %v2074_v50, %v278_v12 }
  0xaa   :  { %1558 = vmatmul.msk.bf16.gmra.mxu3 %vm735_vm5, %v704_v2 }
  0xab   :  { %v624_v16 = vpop.permute.xlu0 %623  ;;  %v504_v41 = vpop.permute.xlu2 %503 }
  0xac   :  { %v687_v18 = vsel %vm317_vm3, %v298_v14, %v624_v16  ;;  %v524_v38 = vsel %vm102_vm2, %v2128_v32, %v504_v41 }
  0xad   :  { %1523 = vmatmul.msk.bf16.gmra.mxu1 %vm317_vm3, %v296_v4  ;;  %1511 = vmatmul.msk.bf16.gmra.mxu0 %vm102_vm2, %v2093_v3 }
  0xb0   :  { %v667_v20 = vpop.permute.xlu1 %666 }
  0xb1   :  { %v708_v22 = vsel %vm698_vm4, %v687_v18, %v667_v20 }
  0xb3   :  { %v500_v24 = vpop.permute.xlu0 %499  ;;  %v286_v46 = vpop.permute.xlu2 %285 }
  0xb4   :  { %v520_v1 = vsel %vm102_vm2, %v2093_v3, %v500_v24  ;;  %v306_v51 = vsel %vm102_vm2, %v2147_v48, %v286_v46 }
  0xb5   :  { %1541 = vmatmul.msk.bf16.gmra.mxu2 %vm317_vm3, %v516_v8 }
  0xb8   :  { %v626_v26 = vpop.permute.xlu1 %625 }
  0xb9   :  { %v689_v27 = vsel %vm317_vm3, %v300_v23, %v626_v26 }
  0xba   :  { %1559 = vmatmul.msk.bf16.gmra.mxu3 %vm735_vm5, %v706_v13  ;;  %v710_v30 = vsel %vm698_vm4, %v689_v27, %v669_v28 }
  0xbb   :  { %v282_v29 = vpop.permute.xlu0 %281  ;;  %v675_v62 = vpop.permute.xlu2 %674 }
  0xbc   :  { %v302_v31 = vsel %vm102_vm2, %v2113_v19, %v282_v29 }
  0xbd   :  { %1524 = vmatmul.msk.bf16.gmra.mxu1 %vm317_vm3, %v298_v14  ;;  %v691_v35 = vsel %vm317_vm3, %v302_v31, %v628_v34  ;;  %1512 = vmatmul.msk.bf16.gmra.mxu0 %vm102_vm2, %v2113_v19 }
  0xc0   :  { %v502_v33 = vpop.permute.xlu1 %501 }
  0xc1   :  { %v522_v17 = vsel %vm102_vm2, %v2113_v19, %v502_v33 }
  0xc3   :  { %v671_v36 = vpop.permute.xlu0 %670  ;;  %v634_v27 = vpop.permute.xlu2 %633 }
  0xc4   :  { %v712_v39 = vsel %vm698_vm4, %v691_v35, %v671_v36 }
  0xc5   :  { %1542 = vmatmul.msk.bf16.gmra.mxu2 %vm317_vm3, %v518_v0 }
  0xc8   :  { %v284_v37 = vpop.permute.xlu1 %283 }
  0xc9   :  { %v304_v40 = vsel %vm102_vm2, %v2128_v32, %v284_v37 }
  0xca   :  { %1560 = vmatmul.msk.bf16.gmra.mxu3 %vm735_vm5, %v708_v22 }
  0xcb   :  { %v630_v42 = vpop.permute.xlu0 %629 }
  0xcc   :  { %v693_v43 = vsel %vm317_vm3, %v304_v40, %v630_v42 }
  0xcd   :  { %1525 = vmatmul.msk.bf16.gmra.mxu1 %vm317_vm3, %v300_v23  ;;  %1513 = vmatmul.msk.bf16.gmra.mxu0 %vm102_vm2, %v2128_v32 }
  0xd0   :  { %v673_v44 = vpop.permute.xlu1 %672 }
  0xd1   :  { %v714_v47 = vsel %vm698_vm4, %v693_v43, %v673_v44 }
  0xd3   :  { %v506_v54 = vpop.permute.xlu0 %505 }
  0xd4   :  { %v526_v56 = vsel %vm102_vm2, %v2147_v48, %v506_v54 }
  0xd5   :  { %1543 = vmatmul.msk.bf16.gmra.mxu2 %vm317_vm3, %v520_v1 }
  0xd8   :  { %v632_v57 = vpop.permute.xlu1 %631 }
  0xd9   :  { %v695_v61 = vsel %vm317_vm3, %v306_v51, %v632_v57 }
  0xda   :  { %1561 = vmatmul.msk.bf16.gmra.mxu3 %vm735_vm5, %v710_v30  ;;  %v716_v8 = vsel %vm698_vm4, %v695_v61, %v675_v62 }
  0xdb   :  { %v288_v7 = vpop.permute.xlu0 %287 }
  0xdc   :  { %v308_v10 = vsel %vm102_vm2, %v2305_v63, %v288_v7 }
  0xdd   :  { %1526 = vmatmul.msk.bf16.gmra.mxu1 %vm317_vm3, %v302_v31  ;;  %v697_v34 = vsel %vm317_vm3, %v308_v10, %v634_v27  ;;  %1514 = vmatmul.msk.bf16.gmra.mxu0 %vm102_vm2, %v2147_v48 }
  0xe0   :  { %v508_v16 = vpop.permute.xlu1 %507 }
  0xe1   :  { %v528_v26 = vsel %vm102_vm2, %v2305_v63, %v508_v16 }
  0xe3   :  { %v677_v35 = vpop.permute.xlu0 %676 }
  0xe4   :  { %v718_v42 = vsel %vm698_vm4, %v697_v34, %v677_v35 }
  0xe5   :  { %1544 = vmatmul.msk.bf16.gmra.mxu2 %vm317_vm3, %v522_v17 }
  0xea   :  { %1562 = vmatmul.msk.bf16.gmra.mxu3 %vm735_vm5, %v712_v39 }
  0xed   :  { %1527 = vmatmul.msk.bf16.gmra.mxu1 %vm317_vm3, %v304_v40  ;;  %1515 = vmatmul.msk.bf16.gmra.mxu0 %vm102_vm2, %v2305_v63 }
  0xf5   :  { %1545 = vmatmul.msk.bf16.gmra.mxu2 %vm317_vm3, %v524_v38 }
  0xfa   :  { %1563 = vmatmul.msk.bf16.gmra.mxu3 %vm735_vm5, %v714_v47  ;;  %v347_v49 = vpop.f32.mrf.mxu1 }
  0xfb   :  { %v348_v52 = vadd.f32 %v2288_v45, %v347_v49 }
  0xfd   :  { %v909_v50 = vsub.f32 0.0, %v348_v52  ;;  %1528 = vmatmul.msk.bf16.gmra.mxu1 %vm317_vm3, %v306_v51 }
  0xff   :  { %v928_v53 = vmul.f32 1.442695, %v909_v50 }
 0x101   :  { %1671 = vpow2.f32 %v928_v53 }
 0x102   :  { %v349_v55 = vpop.f32.mrf.mxu1 }
 0x103   :  { %v350_v58 = vadd.f32 %v2288_v45, %v349_v55 }
 0x105   :  { %v910_v59 = vsub.f32 0.0, %v350_v58  ;;  %1546 = vmatmul.msk.bf16.gmra.mxu2 %vm317_vm3, %v526_v56 }
 0x107   :  { %v1672_v2 = vpop.eup %1671  ;;  %v930_v4 = vmul.f32 1.442695, %v910_v59 }
 0x108   :  { %v966_v5 = vadd.f32 1.0, %v1672_v2  ;;  %v566_v6 = vpop.f32.mrf.mxu2 }
 0x109   :  { %1673 = vpow2.f32 %v930_v4  ;;  %v567_v3 = vadd.f32 %v2288_v45, %v566_v6 }
 0x10a   :  { %1675 = vrcp.f32 %v966_v5  ;;  %1564 = vmatmul.msk.bf16.gmra.mxu3 %vm735_vm5, %v716_v8  ;;  %v352_v9 = vpop.f32.mrf.mxu1 }
 0x10b   :  { %v1004_v11 = vsub.f32 0.0, %v567_v3  ;;  %v353_v60 = vadd.f32 %v2288_v45, %v352_v9 }
 0x10d   :  { %v1023_v12 = vmul.f32 1.442695, %v1004_v11  ;;  %v911_v13 = vsub.f32 0.0, %v353_v60  ;;  %v765_v14 = vpop.f32.mrf.mxu3  ;;  %1529 = vmatmul.msk.bf16.gmra.mxu1 %vm317_vm3, %v308_v10 }
 0x10e   :  { %v766_v15 = vadd.f32 %v2288_v45, %v765_v14 }
 0x10f   :  { %v1674_v0 = vpop.eup %1673  ;;  %1677 = vpow2.f32 %v1023_v12  ;;  %v932_v23 = vmul.f32 1.442695, %v911_v13 }
 0x110   :  { %v1676_v18 = vpop.eup %1675  ;;  %v967_v20 = vadd.f32 1.0, %v1674_v0  ;;  %v1099_v21 = vsub.f32 0.0, %v766_v15  ;;  %v568_v22 = vpop.f32.mrf.mxu2 }
 0x111   :  { %v569_v24 = vadd.f32 %v2288_v45, %v568_v22  ;;  %1213 = vrot.lane.b32.xlu1 %v1676_v18, %s1979_s5 }
 0x112   :  { %1679 = vrcp.f32 %v967_v20  ;;  %v1118_v1 = vmul.f32 1.442695, %v1099_v21  ;;  %v354_v25 = vpop.f32.mrf.mxu1 }
 0x113   :  { %v1005_v28 = vsub.f32 0.0, %v569_v24  ;;  %v355_v29 = vadd.f32 %v2288_v45, %v354_v25 }
 0x114   :  { %1681 = vpow2.f32 %v1118_v1 }
 0x115   :  { %v1678_v30 = vpop.eup %1677  ;;  %1683 = vpow2.f32 %v932_v23  ;;  %v912_v31 = vsub.f32 0.0, %v355_v29  ;;  %v767_v33 = vpop.f32.mrf.mxu3  ;;  %1547 = vmatmul.msk.bf16.gmra.mxu2 %vm317_vm3, %v528_v26  ;;  %v1025_v36 = vmul.f32 1.442695, %v1005_v28 }
 0x116   :  { %v1061_v17 = vadd.f32 1.0, %v1678_v30  ;;  %v768_v37 = vadd.f32 %v2288_v45, %v767_v33 }
 0x117   :  { %v934_v39 = vmul.f32 1.442695, %v912_v31 }
 0x118   :  { %v1680_v19 = vpop.eup %1679  ;;  %1685 = vrcp.f32 %v1061_v17  ;;  %v1100_v40 = vsub.f32 0.0, %v768_v37  ;;  %v571_v41 = vpop.f32.mrf.mxu2 }
 0x119   :  { %v572_v38 = vadd.f32 %v2288_v45, %v571_v41  ;;  %1215 = vrot.lane.b32.xlu2 %v1680_v19, %s1979_s5  ;;  %1687 = vpow2.f32 %v1025_v36 }
 0x11a   :  { %v1682_v43 = vpop.eup %1681  ;;  %v1120_v44 = vmul.f32 1.442695, %v1100_v40  ;;  %1565 = vmatmul.msk.bf16.gmra.mxu3 %vm735_vm5, %v718_v42  ;;  %v357_v46 = vpop.f32.mrf.mxu1  ;;  %1689 = vpow2.f32 %v934_v39 }
 0x11b   :  { %v1684_v47 = vpop.eup %1683  ;;  %v1156_v49 = vadd.f32 1.0, %v1682_v43  ;;  %v1006_v51 = vsub.f32 0.0, %v572_v38  ;;  %v358_v52 = vadd.f32 %v2288_v45, %v357_v46 }
 0x11c   :  { %1691 = vpow2.f32 %v1120_v44  ;;  %v968_v54 = vadd.f32 1.0, %v1684_v47 }
 0x11d   :  { %1693 = vrcp.f32 %v1156_v49  ;;  %v770_v50 = vpop.f32.mrf.mxu3  ;;  %v1027_v56 = vmul.f32 1.442695, %v1006_v51  ;;  %v913_v62 = vsub.f32 0.0, %v358_v52 }
 0x11e   :  { %v1686_v53 = vpop.eup %1685  ;;  %v771_v55 = vadd.f32 %v2288_v45, %v770_v50  ;;  %1695 = vrcp.f32 %v968_v54 }
 0x11f   :  { %v1688_v57 = vpop.eup %1687  ;;  %1697 = vpow2.f32 %v1027_v56  ;;  %v936_v10 = vmul.f32 1.442695, %v913_v62 }
 0x120   :  { %v1101_v58 = vsub.f32 0.0, %v771_v55  ;;  %v573_v59 = vpop.f32.mrf.mxu2  ;;  %v1690_v61 = vpop.eup %1689  ;;  %v1062_v8 = vadd.f32 1.0, %v1688_v57 }
 0x121   :  { %1289 = vrot.lane.b32.xlu2 %v1686_v53, %s1980_s10  ;;  %v574_v9 = vadd.f32 %v2288_v45, %v573_v59  ;;  %v969_v12 = vadd.f32 1.0, %v1690_v61 }
 0x122   :  { %v1692_v2 = vpop.eup %1691  ;;  %v1122_v4 = vmul.f32 1.442695, %v1101_v58  ;;  %v359_v5 = vpop.f32.mrf.mxu1 }
 0x123   :  { %v1694_v6 = vpop.eup %1693  ;;  %v1157_v7 = vadd.f32 1.0, %v1692_v2  ;;  %v360_v3 = vadd.f32 %v2288_v45, %v359_v5  ;;  %v1007_v15 = vsub.f32 0.0, %v574_v9 }
 0x124   :  { %1699 = vpow2.f32 %v1122_v4  ;;  %1365 = vrot.lane.b32.xlu0 %v1694_v6, %s1981_s15  ;;  %v1696_v14 = vpop.eup %1695 }
 0x125   :  { %1701 = vrcp.f32 %v1157_v7  ;;  %v914_v11 = vsub.f32 0.0, %v360_v3  ;;  %v772_v60 = vpop.f32.mrf.mxu3  ;;  %v1698_v18 = vpop.eup %1697  ;;  %v1029_v27 = vmul.f32 1.442695, %v1007_v15 }
 0x126   :  { %v773_v13 = vadd.f32 %v2288_v45, %v772_v60  ;;  %1703 = vrcp.f32 %v1062_v8  ;;  %v1063_v28 = vadd.f32 1.0, %v1698_v18 }
 0x127   :  { %v938_v32 = vmul.f32 1.442695, %v914_v11  ;;  %1705 = vpow2.f32 %v936_v10 }
 0x128   :  { %v1102_v0 = vsub.f32 0.0, %v773_v13  ;;  %v576_v16 = vpop.f32.mrf.mxu2  ;;  %1707 = vrcp.f32 %v969_v12 }
 0x129   :  { %v577_v20 = vadd.f32 %v2288_v45, %v576_v16  ;;  %1709 = vpow2.f32 %v938_v32 }
 0x12a   :  { %v1700_v21 = vpop.eup %1699  ;;  %v1124_v22 = vmul.f32 1.442695, %v1102_v0  ;;  %v362_v23 = vpop.f32.mrf.mxu1 }
 0x12b   :  { %v1702_v24 = vpop.eup %1701  ;;  %v1158_v1 = vadd.f32 1.0, %v1700_v21  ;;  %v1008_v25 = vsub.f32 0.0, %v577_v20  ;;  %v363_v26 = vadd.f32 %v2288_v45, %v362_v23 }
 0x12c   :  { %1711 = vpow2.f32 %v1124_v22  ;;  %1367 = vrot.lane.b32.xlu1 %v1702_v24, %s1981_s15  ;;  %1217 = vrot.lane.b32.xlu0 %v1696_v14, %s1979_s5  ;;  %v1704_v31 = vpop.eup %1703  ;;  %v2357_v14 = vpop.f32.mrf.mxu0 }
 0x12d   :  { %1713 = vrcp.f32 %v1158_v1  ;;  %v915_v29 = vsub.f32 0.0, %v363_v26  ;;  %v775_v30 = vpop.f32.mrf.mxu3  ;;  %v1031_v33 = vmul.f32 1.442695, %v1008_v25  ;;  %v1706_v34 = vpop.eup %1705 }
 0x12e   :  { %v776_v17 = vadd.f32 %v2288_v45, %v775_v30  ;;  %v1708_v36 = vpop.eup %1707  ;;  %1715 = vpow2.f32 %v1029_v27  ;;  %v970_v38 = vadd.f32 1.0, %v1706_v34 }
 0x12f   :  { %v940_v35 = vmul.f32 1.442695, %v915_v29  ;;  %v1710_v19 = vpop.eup %1709  ;;  %1717 = vrcp.f32 %v1063_v28 }
 0x130   :  { %v1103_v37 = vsub.f32 0.0, %v776_v17  ;;  %v578_v39 = vpop.f32.mrf.mxu2  ;;  %1719 = vpow2.f32 %v1031_v33  ;;  %v971_v50 = vadd.f32 1.0, %v1710_v19 }
 0x131   :  { %v579_v40 = vadd.f32 %v2288_v45, %v578_v39  ;;  %1721 = vpow2.f32 %v940_v35 }
 0x132   :  { %v1712_v41 = vpop.eup %1711  ;;  %v1126_v42 = vmul.f32 1.442695, %v1103_v37  ;;  %v364_v43 = vpop.f32.mrf.mxu1 }
 0x133   :  { %v1714_v44 = vpop.eup %1713  ;;  %v1159_v46 = vadd.f32 1.0, %v1712_v41  ;;  %v1009_v47 = vsub.f32 0.0, %v579_v40  ;;  %v365_v49 = vadd.f32 %v2288_v45, %v364_v43 }
 0x134   :  { %1723 = vpow2.f32 %v1126_v42  ;;  %1219 = vrot.lane.b32.xlu1 %v1708_v36, %s1979_s5  ;;  %1291 = vrot.lane.b32.xlu0 %v1704_v31, %s1980_s10  ;;  %v1716_v52 = vpop.eup %1715 }
 0x135   :  { %1725 = vrcp.f32 %v1159_v46  ;;  %1369 = vrot.lane.b32.xlu2 %v1714_v44, %s1981_s15  ;;  %v777_v51 = vpop.f32.mrf.mxu3  ;;  %v1718_v53 = vpop.eup %1717  ;;  %v1033_v54 = vmul.f32 1.442695, %v1009_v47  ;;  %v916_v59 = vsub.f32 0.0, %v365_v49  ;;  %v1064_v62 = vadd.f32 1.0, %v1716_v52 }
 0x136   :  { %1727 = vrcp.f32 %v970_v38  ;;  %v778_v48 = vadd.f32 %v2288_v45, %v777_v51  ;;  %v1720_v55 = vpop.eup %1719  ;;  %v2368_v38 = vpop.f32.mrf.mxu0 }
 0x137   :  { %v1722_v58 = vpop.eup %1721  ;;  %1729 = vrcp.f32 %v971_v50  ;;  %v1065_v8 = vadd.f32 1.0, %v1720_v55  ;;  %v942_v10 = vmul.f32 1.442695, %v916_v59 }
 0x138   :  { %v1104_v56 = vsub.f32 0.0, %v778_v48  ;;  %v581_v57 = vpop.f32.mrf.mxu2  ;;  %1731 = vpow2.f32 %v1033_v54  ;;  %v972_v12 = vadd.f32 1.0, %v1722_v58 }
 0x139   :  { %v582_v9 = vadd.f32 %v2288_v45, %v581_v57 }
 0x13a   :  { %v1724_v61 = vpop.eup %1723  ;;  %v1128_v2 = vmul.f32 1.442695, %v1104_v56  ;;  %v367_v4 = vpop.f32.mrf.mxu1 }
 0x13b   :  { %v1726_v5 = vpop.eup %1725  ;;  %v1160_v6 = vadd.f32 1.0, %v1724_v61  ;;  %v368_v7 = vadd.f32 %v2288_v45, %v367_v4  ;;  %v1010_v0 = vsub.f32 0.0, %v582_v9 }
 0x13c   :  { %v1728_v3 = vpop.eup %1727  ;;  %1733 = vpow2.f32 %v1128_v2  ;;  %1293 = vrot.lane.b32.xlu1 %v1718_v53, %s1980_s10  ;;  %1371 = vrot.lane.b32.xlu0 %v1726_v5, %s1981_s15 }
 0x13d   :  { %1735 = vrcp.f32 %v1160_v6  ;;  %v917_v11 = vsub.f32 0.0, %v368_v7  ;;  %1221 = vrot.lane.b32.xlu2 %v1728_v3, %s1979_s5  ;;  %v780_v60 = vpop.f32.mrf.mxu3  ;;  %v1730_v15 = vpop.eup %1729  ;;  %v1035_v29 = vmul.f32 1.442695, %v1010_v0 }
 0x13e   :  { %1737 = vrcp.f32 %v1064_v62  ;;  %v781_v13 = vadd.f32 %v2288_v45, %v780_v60  ;;  %v1732_v20 = vpop.eup %1731  ;;  %v2375_v2 = vpop.f32.mrf.mxu0 }
 0x13f   :  { %v944_v32 = vmul.f32 1.442695, %v917_v11  ;;  %1739 = vrcp.f32 %v1065_v8  ;;  %v1066_v30 = vadd.f32 1.0, %v1732_v20 }
 0x140   :  { %v1105_v16 = vsub.f32 0.0, %v781_v13  ;;  %v583_v18 = vpop.f32.mrf.mxu2  ;;  %1741 = vpow2.f32 %v942_v10 }
 0x141   :  { %v584_v21 = vadd.f32 %v2288_v45, %v583_v18  ;;  %1743 = vrcp.f32 %v972_v12 }
 0x142   :  { %v1734_v22 = vpop.eup %1733  ;;  %v1130_v23 = vmul.f32 1.442695, %v1105_v16  ;;  %v369_v24 = vpop.f32.mrf.mxu1  ;;  %1745 = vpow2.f32 %v944_v32 }
 0x143   :  { %v1736_v1 = vpop.eup %1735  ;;  %v1161_v25 = vadd.f32 1.0, %v1734_v22  ;;  %v1011_v26 = vsub.f32 0.0, %v584_v21  ;;  %v370_v27 = vadd.f32 %v2288_v45, %v369_v24 }
 0x144   :  { %v1738_v28 = vpop.eup %1737  ;;  %1747 = vpow2.f32 %v1130_v23  ;;  %1373 = vrot.lane.b32.xlu1 %v1736_v1, %s1981_s15  ;;  %1223 = vrot.lane.b32.xlu0 %v1730_v15, %s1979_s5 }
 0x145   :  { %1749 = vrcp.f32 %v1161_v25  ;;  %v918_v31 = vsub.f32 0.0, %v370_v27  ;;  %1295 = vrot.lane.b32.xlu2 %v1738_v28, %s1980_s10  ;;  %v782_v33 = vpop.f32.mrf.mxu3  ;;  %v1740_v63 = vpop.eup %1739  ;;  %v1037_v17 = vmul.f32 1.442695, %v1011_v26 }
 0x146   :  { %v783_v34 = vadd.f32 %v2288_v45, %v782_v33  ;;  %v1742_v35 = vpop.eup %1741  ;;  %1751 = vpow2.f32 %v1035_v29  ;;  %v2384_v1 = vpop.f32.mrf.mxu0 }
 0x147   :  { %v946_v36 = vmul.f32 1.442695, %v918_v31  ;;  %v1744_v37 = vpop.eup %1743  ;;  %1753 = vrcp.f32 %v1066_v30  ;;  %v973_v43 = vadd.f32 1.0, %v1742_v35 }
 0x148   :  { %v1106_v39 = vsub.f32 0.0, %v783_v34  ;;  %v586_v19 = vpop.f32.mrf.mxu2  ;;  %v1746_v40 = vpop.eup %1745  ;;  %1755 = vpow2.f32 %v1037_v17 }
 0x149   :  { %v587_v41 = vadd.f32 %v2288_v45, %v586_v19  ;;  %1757 = vpow2.f32 %v946_v36  ;;  %v974_v53 = vadd.f32 1.0, %v1746_v40 }
 0x14a   :  { %v1748_v42 = vpop.eup %1747  ;;  %v1132_v44 = vmul.f32 1.442695, %v1106_v39  ;;  %v372_v46 = vpop.f32.mrf.mxu1 }
 0x14b   :  { %v1750_v47 = vpop.eup %1749  ;;  %v1162_v49 = vadd.f32 1.0, %v1748_v42  ;;  %v1012_v51 = vsub.f32 0.0, %v587_v41  ;;  %v373_v52 = vadd.f32 %v2288_v45, %v372_v46 }
 0x14c   :  { %1759 = vpow2.f32 %v1132_v44  ;;  %1297 = vrot.lane.b32.xlu0 %v1740_v63, %s1980_s10  ;;  %1225 = vrot.lane.b32.xlu1 %v1744_v37, %s1979_s5  ;;  %v1752_v48 = vpop.eup %1751 }
 0x14d   :  { %1761 = vrcp.f32 %v1162_v49  ;;  %1375 = vrot.lane.b32.xlu2 %v1750_v47, %s1981_s15  ;;  %v785_v50 = vpop.f32.mrf.mxu3  ;;  %v1754_v55 = vpop.eup %1753  ;;  %v1039_v56 = vmul.f32 1.442695, %v1012_v51  ;;  %v919_v62 = vsub.f32 0.0, %v373_v52  ;;  %v1067_v5 = vadd.f32 1.0, %v1752_v48 }
 0x14e   :  { %1763 = vrcp.f32 %v973_v43  ;;  %v786_v54 = vadd.f32 %v2288_v45, %v785_v50  ;;  %v1756_v57 = vpop.eup %1755  ;;  %v2392_v47 = vpop.f32.mrf.mxu0 }
 0x14f   :  { %v1758_v61 = vpop.eup %1757  ;;  %1765 = vrcp.f32 %v974_v53  ;;  %v1068_v11 = vadd.f32 1.0, %v1756_v57  ;;  %v948_v12 = vmul.f32 1.442695, %v919_v62 }
 0x150   :  { %v1107_v58 = vsub.f32 0.0, %v786_v54  ;;  %v588_v59 = vpop.f32.mrf.mxu2  ;;  %1767 = vpow2.f32 %v1039_v56  ;;  %v975_v15 = vadd.f32 1.0, %v1758_v61 }
 0x151   :  { %v589_v60 = vadd.f32 %v2288_v45, %v588_v59 }
 0x152   :  { %v1760_v4 = vpop.eup %1759  ;;  %v1134_v6 = vmul.f32 1.442695, %v1107_v58  ;;  %v374_v7 = vpop.f32.mrf.mxu1 }
 0x153   :  { %v1762_v3 = vpop.eup %1761  ;;  %v1163_v8 = vadd.f32 1.0, %v1760_v4  ;;  %v375_v9 = vadd.f32 %v2288_v45, %v374_v7  ;;  %v1013_v20 = vsub.f32 0.0, %v589_v60 }
 0x154   :  { %v1764_v10 = vpop.eup %1763  ;;  %1769 = vpow2.f32 %v1134_v6  ;;  %1299 = vrot.lane.b32.xlu1 %v1754_v55, %s1980_s10  ;;  %1377 = vrot.lane.b32.xlu0 %v1762_v3, %s1981_s15 }
 0x155   :  { %1771 = vrcp.f32 %v1163_v8  ;;  %v920_v13 = vsub.f32 0.0, %v375_v9  ;;  %1227 = vrot.lane.b32.xlu2 %v1764_v10, %s1979_s5  ;;  %v787_v32 = vpop.f32.mrf.mxu3  ;;  %v1766_v18 = vpop.eup %1765  ;;  %v1041_v63 = vmul.f32 1.442695, %v1013_v20  ;;  %v147_v20 = vadd.f32 %v2288_v45, %v2357_v14 }
 0x156   :  { %1773 = vrcp.f32 %v1067_v5  ;;  %v788_v0 = vadd.f32 %v2288_v45, %v787_v32  ;;  %v1768_v23 = vpop.eup %1767  ;;  %v2400_v10 = vpop.f32.mrf.mxu0 }
 0x157   :  { %v950_v16 = vmul.f32 1.442695, %v920_v13  ;;  %1775 = vrcp.f32 %v1068_v11  ;;  %v1069_v17 = vadd.f32 1.0, %v1768_v23 }
 0x158   :  { %v1108_v21 = vsub.f32 0.0, %v788_v0  ;;  %v591_v22 = vpop.f32.mrf.mxu2  ;;  %1777 = vpow2.f32 %v948_v12 }
 0x159   :  { %v592_v24 = vadd.f32 %v2288_v45, %v591_v22  ;;  %1779 = vrcp.f32 %v975_v15 }
 0x15a   :  { %v1770_v25 = vpop.eup %1769  ;;  %v1136_v26 = vmul.f32 1.442695, %v1108_v21  ;;  %v377_v27 = vpop.f32.mrf.mxu1  ;;  %1781 = vpow2.f32 %v950_v16 }
 0x15b   :  { %v1772_v28 = vpop.eup %1771  ;;  %v1164_v29 = vadd.f32 1.0, %v1770_v25  ;;  %v1014_v30 = vsub.f32 0.0, %v592_v24  ;;  %v378_v31 = vadd.f32 %v2288_v45, %v377_v27 }
 0x15c   :  { %v1774_v33 = vpop.eup %1773  ;;  %1783 = vpow2.f32 %v1136_v26  ;;  %1379 = vrot.lane.b32.xlu1 %v1772_v28, %s1981_s15  ;;  %1229 = vrot.lane.b32.xlu0 %v1766_v18, %s1979_s5 }
 0x15d   :  { %1785 = vrcp.f32 %v1164_v29  ;;  %v921_v34 = vsub.f32 0.0, %v378_v31  ;;  %1301 = vrot.lane.b32.xlu2 %v1774_v33, %s1980_s10  ;;  %v790_v35 = vpop.f32.mrf.mxu3  ;;  %v1776_v36 = vpop.eup %1775  ;;  %v1043_v37 = vmul.f32 1.442695, %v1014_v30  ;;  %v814_v29 = vsub.f32 0.0, %v147_v20 }
 0x15e   :  { %v791_v39 = vadd.f32 %v2288_v45, %v790_v35  ;;  %v1778_v19 = vpop.eup %1777  ;;  %1787 = vpow2.f32 %v1041_v63  ;;  %v2410_v63 = vpop.f32.mrf.mxu0 }
 0x15f   :  { %v952_v40 = vmul.f32 1.442695, %v921_v34  ;;  %v1780_v41 = vpop.eup %1779  ;;  %1789 = vrcp.f32 %v1069_v17  ;;  %v976_v51 = vadd.f32 1.0, %v1778_v19 }
 0x160   :  { %v1109_v42 = vsub.f32 0.0, %v791_v39  ;;  %v593_v43 = vpop.f32.mrf.mxu2  ;;  %v1782_v44 = vpop.eup %1781  ;;  %1791 = vpow2.f32 %v1043_v37 }
 0x161   :  { %v594_v46 = vadd.f32 %v2288_v45, %v593_v43  ;;  %1793 = vpow2.f32 %v952_v40  ;;  %v977_v56 = vadd.f32 1.0, %v1782_v44 }
 0x162   :  { %v1784_v49 = vpop.eup %1783  ;;  %v1138_v52 = vmul.f32 1.442695, %v1109_v42  ;;  %v379_v50 = vpop.f32.mrf.mxu1  ;;  %v833_v42 = vmul.f32 1.442695, %v814_v29 }
 0x163   :  { %v1786_v48 = vpop.eup %1785  ;;  %v1165_v53 = vadd.f32 1.0, %v1784_v49  ;;  %v1015_v54 = vsub.f32 0.0, %v594_v46  ;;  %v380_v55 = vadd.f32 %v2288_v45, %v379_v50 }
 0x164   :  { %1795 = vpow2.f32 %v1138_v52  ;;  %1231 = vrot.lane.b32.xlu1 %v1780_v41, %s1979_s5  ;;  %1303 = vrot.lane.b32.xlu0 %v1776_v36, %s1980_s10  ;;  %v1788_v59 = vpop.eup %1787 }
 0x165   :  { %1797 = vrcp.f32 %v1165_v53  ;;  %v922_v57 = vsub.f32 0.0, %v380_v55  ;;  %1381 = vrot.lane.b32.xlu2 %v1786_v48, %s1981_s15  ;;  %v792_v58 = vpop.f32.mrf.mxu3  ;;  %v1045_v61 = vmul.f32 1.442695, %v1015_v54  ;;  %v1790_v4 = vpop.eup %1789  ;;  %v1070_v60 = vadd.f32 1.0, %v1788_v59 }
 0x166   :  { %1799 = vrcp.f32 %v976_v51  ;;  %v793_v62 = vadd.f32 %v2288_v45, %v792_v58  ;;  %v1792_v6 = vpop.eup %1791 }
 0x167   :  { %v954_v5 = vmul.f32 1.442695, %v922_v57  ;;  %v1794_v8 = vpop.eup %1793  ;;  %1801 = vrcp.f32 %v977_v56  ;;  %v1071_v21 = vadd.f32 1.0, %v1792_v6  ;;  %v2417_v56 = vpop.f32.mrf.mxu0 }
 0x168   :  { %v1110_v7 = vsub.f32 0.0, %v793_v62  ;;  %v596_v3 = vpop.f32.mrf.mxu2  ;;  %1803 = vpow2.f32 %v1045_v61  ;;  %v978_v23 = vadd.f32 1.0, %v1794_v8 }
 0x169   :  { %v597_v9 = vadd.f32 %v2288_v45, %v596_v3  ;;  %1805 = vpow2.f32 %v954_v5  ;;  %v149_v5 = vadd.f32 %v2288_v45, %v2368_v38 }
 0x16a   :  { %v1796_v11 = vpop.eup %1795  ;;  %v1140_v12 = vmul.f32 1.442695, %v1110_v7  ;;  %v382_v13 = vpop.f32.mrf.mxu1 }
 0x16b   :  { %v1798_v32 = vpop.eup %1797  ;;  %v1166_v15 = vadd.f32 1.0, %v1796_v11  ;;  %v1016_v0 = vsub.f32 0.0, %v597_v9  ;;  %v383_v16 = vadd.f32 %v2288_v45, %v382_v13  ;;  %v815_v13 = vsub.f32 0.0, %v149_v5 }
 0x16c   :  { %v1800_v18 = vpop.eup %1799  ;;  %1807 = vpow2.f32 %v1140_v12  ;;  %1305 = vrot.lane.b32.xlu1 %v1790_v4, %s1980_s10  ;;  %1383 = vrot.lane.b32.xlu0 %v1798_v32, %s1981_s15 }
 0x16d   :  { %1809 = vrcp.f32 %v1166_v15  ;;  %1233 = vrot.lane.b32.xlu2 %v1800_v18, %s1979_s5  ;;  %v795_v22 = vpop.f32.mrf.mxu3  ;;  %v923_v24 = vsub.f32 0.0, %v383_v16  ;;  %v1802_v26 = vpop.eup %1801  ;;  %v1047_v27 = vmul.f32 1.442695, %v1016_v0  ;;  %v835_v29 = vmul.f32 1.442695, %v815_v13 }
 0x16e   :  { %1811 = vrcp.f32 %v1070_v60  ;;  %v796_v25 = vadd.f32 %v2288_v45, %v795_v22  ;;  %v1804_v28 = vpop.eup %1803 }
 0x16f   :  { %v1806_v31 = vpop.eup %1805  ;;  %1813 = vrcp.f32 %v1071_v21  ;;  %v956_v34 = vmul.f32 1.442695, %v923_v24  ;;  %v1072_v43 = vadd.f32 1.0, %v1804_v28  ;;  %v152_v21 = vadd.f32 %v2288_v45, %v2375_v2 }
 0x170   :  { %v1111_v14 = vsub.f32 0.0, %v796_v25  ;;  %v598_v30 = vpop.f32.mrf.mxu2  ;;  %1815 = vrcp.f32 %v978_v23  ;;  %v979_v46 = vadd.f32 1.0, %v1806_v31  ;;  %v2431_v23 = vpop.f32.mrf.mxu0 }
 0x171   :  { %v599_v33 = vadd.f32 %v2288_v45, %v598_v30  ;;  %1817 = vpow2.f32 %v1047_v27  ;;  %v816_v2 = vsub.f32 0.0, %v152_v21 }
 0x172   :  { %v1808_v17 = vpop.eup %1807  ;;  %v1142_v35 = vmul.f32 1.442695, %v1111_v14  ;;  %v384_v36 = vpop.f32.mrf.mxu1 }
 0x173   :  { %v1810_v37 = vpop.eup %1809  ;;  %v1167_v39 = vadd.f32 1.0, %v1808_v17  ;;  %v1017_v19 = vsub.f32 0.0, %v599_v33  ;;  %v385_v40 = vadd.f32 %v2288_v45, %v384_v36  ;;  %v2427_v15 = vpop.permute.xlu2 %1215 }
 0x174   :  { %v1812_v41 = vpop.eup %1811  ;;  %1819 = vpow2.f32 %v1142_v35  ;;  %1385 = vrot.lane.b32.xlu1 %v1810_v37, %s1981_s15  ;;  %1235 = vrot.lane.b32.xlu0 %v1802_v26, %s1979_s5  ;;  %v154_v37 = vadd.f32 %v2288_v45, %v2384_v1 }
 0x175   :  { %1821 = vrcp.f32 %v1167_v39  ;;  %1307 = vrot.lane.b32.xlu2 %v1812_v41, %s1980_s10  ;;  %v797_v44 = vpop.f32.mrf.mxu3  ;;  %v924_v49 = vsub.f32 0.0, %v385_v40  ;;  %v1814_v52 = vpop.eup %1813  ;;  %v1049_v50 = vmul.f32 1.442695, %v1017_v19 }
 0x176   :  { %1823 = vpow2.f32 %v956_v34  ;;  %v798_v51 = vadd.f32 %v2288_v45, %v797_v44  ;;  %v1816_v48 = vpop.eup %1815 }
 0x177   :  { %1825 = vpow2.f32 %v833_v42  ;;  %v1818_v55 = vpop.eup %1817  ;;  %v958_v58 = vmul.f32 1.442695, %v924_v49 }
 0x178   :  { %v1112_v53 = vsub.f32 0.0, %v798_v51  ;;  %v601_v54 = vpop.f32.mrf.mxu2  ;;  %1827 = vrcp.f32 %v1072_v43  ;;  %v1073_v11 = vadd.f32 1.0, %v1818_v55  ;;  %v2443_v51 = vld [vmem:[#allocation2] ss:$0 sm:$0xff] }
 0x179   :  { %1829 = vrcp.f32 %v979_v46  ;;  %v602_v61 = vadd.f32 %v2288_v45, %v601_v54 }
 0x17a   :  { %v1820_v57 = vpop.eup %1819  ;;  %v1144_v59 = vmul.f32 1.442695, %v1112_v53  ;;  %v387_v62 = vpop.f32.mrf.mxu1  ;;  %1831 = vpow2.f32 %v1049_v50  ;;  %v837_v50 = vmul.f32 1.442695, %v816_v2 }
 0x17b   :  { %v1822_v4 = vpop.eup %1821  ;;  %v1168_v6 = vadd.f32 1.0, %v1820_v57  ;;  %v388_v3 = vadd.f32 %v2288_v45, %v387_v62  ;;  %v1018_v60 = vsub.f32 0.0, %v602_v61  ;;  %v2441_v40 = vpop.permute.xlu2 %1289 }
 0x17c   :  { %v1824_v7 = vpop.eup %1823  ;;  %1833 = vpow2.f32 %v1144_v59  ;;  %1309 = vrot.lane.b32.xlu0 %v1814_v52, %s1980_s10  ;;  %1237 = vrot.lane.b32.xlu1 %v1816_v48, %s1979_s5  ;;  %v2447_v59 = vpop.f32.mrf.mxu0 }
 0x17d   :  { %1835 = vrcp.f32 %v1168_v6  ;;  %1387 = vrot.lane.b32.xlu2 %v1822_v4, %s1981_s15  ;;  %v800_v8 = vpop.f32.mrf.mxu3  ;;  %v1826_v9 = vpop.eup %1825  ;;  %v980_v32 = vadd.f32 1.0, %v1824_v7  ;;  %v925_v22 = vsub.f32 0.0, %v388_v3  ;;  %v1051_v25 = vmul.f32 1.442695, %v1018_v60 }
 0x17e   :  { %1837 = vpow2.f32 %v958_v58  ;;  %v801_v38 = vadd.f32 %v2288_v45, %v800_v8  ;;  %v1828_v12 = vpop.eup %1827  ;;  %v871_v33 = vadd.f32 1.0, %v1826_v9 }
 0x17f   :  { %v1830_v0 = vpop.eup %1829  ;;  %1839 = vrcp.f32 %v1073_v11  ;;  %v960_v34 = vmul.f32 1.442695, %v925_v22 }
 0x180   :  { %v1113_v16 = vsub.f32 0.0, %v801_v38  ;;  %v603_v18 = vpop.f32.mrf.mxu2  ;;  %v1832_v20 = vpop.eup %1831  ;;  %1841 = vrcp.f32 %v980_v32 }
 0x181   :  { %v604_v30 = vadd.f32 %v2288_v45, %v603_v18  ;;  %v1074_v36 = vadd.f32 1.0, %v1832_v20 }
 0x182   :  { %v1834_v24 = vpop.eup %1833  ;;  %v1146_v26 = vmul.f32 1.442695, %v1113_v16  ;;  %v389_v27 = vpop.f32.mrf.mxu1 }
 0x183   :  { %v1836_v28 = vpop.eup %1835  ;;  %v1169_v14 = vadd.f32 1.0, %v1834_v24  ;;  %v390_v17 = vadd.f32 %v2288_v45, %v389_v27  ;;  %v1019_v41 = vsub.f32 0.0, %v604_v30  ;;  %v1214_v13 = vpop.permute.xlu1 %1213 }
 0x184   :  { %v1838_v31 = vpop.eup %1837  ;;  %1843 = vpow2.f32 %v1146_v26  ;;  %1311 = vrot.lane.b32.xlu1 %v1828_v12, %s1980_s10  ;;  %1389 = vrot.lane.b32.xlu0 %v1836_v28, %s1981_s15 }
 0x185   :  { %1845 = vrcp.f32 %v1169_v14  ;;  %1239 = vrot.lane.b32.xlu2 %v1830_v0, %s1979_s5  ;;  %v802_v35 = vpop.f32.mrf.mxu3  ;;  %v981_v19 = vadd.f32 1.0, %v1838_v31  ;;  %v1840_v42 = vpop.eup %1839  ;;  %v926_v43 = vsub.f32 0.0, %v390_v17  ;;  %v1053_v57 = vmul.f32 1.442695, %v1019_v41 }
 0x186   :  { %1847 = vpow2.f32 %v1051_v25  ;;  %v803_v39 = vadd.f32 %v2288_v45, %v802_v35  ;;  %v1842_v49 = vpop.eup %1841  ;;  %v817_v45 = vsub.f32 0.0, %v154_v37 }
 0x187   :  { %1849 = vpow2.f32 %v835_v29  ;;  %v962_v62 = vmul.f32 1.442695, %v926_v43 }
 0x188   :  { %1851 = vrcp.f32 %v871_v33  ;;  %v1114_v44 = vsub.f32 0.0, %v803_v39  ;;  %v606_v46 = vpop.f32.mrf.mxu2  ;;  %v839_v8 = vmul.f32 1.442695, %v817_v45  ;;  %v2460_v33 = vpop.f32.mrf.mxu0 }
 0x189   :  { %1853 = vpow2.f32 %v960_v34  ;;  %v607_v52 = vadd.f32 %v2443_v51, %v606_v46 }
 0x18a   :  { %v1844_v1 = vpop.eup %1843  ;;  %1855 = vrcp.f32 %v1074_v36  ;;  %v1148_v48 = vmul.f32 1.442695, %v1114_v44  ;;  %v392_v53 = vpop.f32.mrf.mxu1 }
 0x18b   :  { %v1846_v54 = vpop.eup %1845  ;;  %1857 = vrcp.f32 %v981_v19  ;;  %v1170_v55 = vadd.f32 1.0, %v1844_v1  ;;  %v393_v58 = vadd.f32 %v2443_v51, %v392_v53  ;;  %v1020_v4 = vsub.f32 0.0, %v607_v52 }
 0x18c   :  { %v1848_v61 = vpop.eup %1847  ;;  %1859 = vpow2.f32 %v1148_v48  ;;  %1391 = vrot.lane.b32.xlu1 %v1846_v54, %s1981_s15  ;;  %1241 = vrot.lane.b32.xlu0 %v1842_v49, %s1979_s5  ;;  %v157_v48 = vadd.f32 %v2443_v51, %v2392_v47 }
 0x18d   :  { %v1850_v5 = vpop.eup %1849  ;;  %1861 = vrcp.f32 %v1170_v55  ;;  %v927_v6 = vsub.f32 0.0, %v393_v58  ;;  %1313 = vrot.lane.b32.xlu2 %v1840_v42, %s1980_s10  ;;  %v805_v7 = vpop.f32.mrf.mxu3  ;;  %v1075_v11 = vadd.f32 1.0, %v1848_v61  ;;  %v1055_v32 = vmul.f32 1.442695, %v1020_v4 }
 0x18e   :  { %v1852_v3 = vpop.eup %1851  ;;  %1863 = vpow2.f32 %v837_v50  ;;  %v806_v22 = vadd.f32 %v2443_v51, %v805_v7  ;;  %v872_v2 = vadd.f32 1.0, %v1850_v5 }
 0x18f   :  { %v1854_v9 = vpop.eup %1853  ;;  %1865 = vpow2.f32 %v1053_v57  ;;  %v964_v60 = vmul.f32 1.442695, %v927_v6  ;;  %v2452_v38 = vpop.permute.xlu2 %1369  ;;  %v1423_v26 = vsel %vm1422_vm7, %v1852_v3, %v1214_v13  ;;  %v818_v3 = vsub.f32 0.0, %v157_v48 }
 0x190   :  { %v1856_v12 = vpop.eup %1855  ;;  %1867 = vpow2.f32 %v962_v62  ;;  %v608_v0 = vpop.f32.mrf.mxu2  ;;  %v982_v21 = vadd.f32 1.0, %v1854_v9  ;;  %v1115_v34 = vsub.f32 0.0, %v806_v22  ;;  %v1443_v35 = vsel %vm1442_vm8, %v1423_v26, %v2441_v40 }
 0x191   :  { %v1858_v16 = vpop.eup %1857  ;;  %1869 = vpow2.f32 %v964_v60  ;;  %v609_v18 = vadd.f32 %v2443_v51, %v608_v0  ;;  %v2481_v60 = vpop.f32.mrf.mxu0  ;;  %v841_v22 = vmul.f32 1.442695, %v818_v3 }
 0x192   :  { %v1860_v20 = vpop.eup %1859  ;;  %1871 = vpow2.f32 %v839_v8  ;;  %v394_v24 = vpop.f32.mrf.mxu1  ;;  %v1150_v50 = vmul.f32 1.442695, %v1115_v34  ;;  %v162_v8 = vadd.f32 %v2443_v51, %v2410_v63 }
 0x193   :  { %v1862_v25 = vpop.eup %1861  ;;  %1873 = vrcp.f32 %v1075_v11  ;;  %v1171_v27 = vadd.f32 1.0, %v1860_v20  ;;  %v1021_v28 = vsub.f32 0.0, %v609_v18 }
 0x194   :  { %v1864_v29 = vpop.eup %1863  ;;  %1875 = vpow2.f32 %v1055_v32  ;;  %1243 = vrot.lane.b32.xlu1 %v1858_v16, %s1979_s5  ;;  %1315 = vrot.lane.b32.xlu0 %v1856_v12, %s1980_s10  ;;  %v820_v24 = vsub.f32 0.0, %v162_v8 }
 0x195   :  { %v1866_v14 = vpop.eup %1865  ;;  %1877 = vrcp.f32 %v1171_v27  ;;  %v1057_v30 = vmul.f32 1.442695, %v1021_v28  ;;  %1393 = vrot.lane.b32.xlu2 %v1862_v25, %s1981_s15  ;;  %v807_v31 = vpop.f32.mrf.mxu3  ;;  %v873_v57 = vadd.f32 1.0, %v1864_v29  ;;  %v159_v29 = vadd.f32 %v2443_v51, %v2400_v10 }
 0x196   :  { %v1868_v17 = vpop.eup %1867  ;;  %1879 = vrcp.f32 %v982_v21  ;;  %v1366_v36 = vpop.permute.xlu0 %1365  ;;  %v808_v39 = vadd.f32 %v2443_v51, %v807_v31  ;;  %v1076_v43 = vadd.f32 1.0, %v1866_v14 }
 0x197   :  { %v1870_v37 = vpop.eup %1869  ;;  %v2465_v19 = vpop.permute.xlu2 %1221  ;;  %v1463_v41 = vsel %vm1462_vm9, %v1443_v35, %v1366_v36  ;;  %1881 = vpow2.f32 %v1057_v30  ;;  %v983_v40 = vadd.f32 1.0, %v1868_v17 }
 0x198   :  { %v1872_v42 = vpop.eup %1871  ;;  %v984_v44 = vadd.f32 1.0, %v1870_v37  ;;  %1483 = vst.msk [vmem:[%s2676_s6] sm:$0xff] %vm1482_vm10, %v1463_v41  ;;  %v611_v46 = vpop.f32.mrf.mxu2  ;;  %1883 = vrcp.f32 %v872_v2  ;;  %v1116_v53 = vsub.f32 0.0, %v808_v39  ;;  %v845_v2 = vmul.f32 1.442695, %v820_v24 }
 0x199   :  { %v1874_v49 = vpop.eup %1873  ;;  %v612_v52 = vadd.f32 %v2443_v51, %v611_v46  ;;  %v874_v58 = vadd.f32 1.0, %v1872_v42  ;;  %v2498_v10 = vpop.f32.mrf.mxu0  ;;  %v819_v42 = vsub.f32 0.0, %v159_v29 }
 0x19a   :  { %v1876_v1 = vpop.eup %1875  ;;  %1885 = vrcp.f32 %v984_v44  ;;  %v1152_v9 = vmul.f32 1.442695, %v1116_v53 }
 0x19b   :  { %v1878_v45 = vpop.eup %1877  ;;  %v1022_v54 = vsub.f32 0.0, %v612_v52  ;;  %1887 = vrcp.f32 %v1076_v43  ;;  %v1077_v5 = vadd.f32 1.0, %v1876_v1  ;;  %v843_v1 = vmul.f32 1.442695, %v819_v42 }
 0x19c   :  { %v1880_v55 = vpop.eup %1879  ;;  %1317 = vrot.lane.b32.xlu1 %v1874_v49, %s1980_s10  ;;  %1395 = vrot.lane.b32.xlu0 %v1878_v45, %s1981_s15  ;;  %1889 = vrcp.f32 %v983_v40  ;;  %v172_v42 = vadd.f32 %v2443_v51, %v2460_v33 }
 0x19d   :  { %v1059_v61 = vmul.f32 1.442695, %v1022_v54  ;;  %1245 = vrot.lane.b32.xlu2 %v1880_v55, %s1979_s5  ;;  %v810_v62 = vpop.f32.mrf.mxu3  ;;  %v1882_v4 = vpop.eup %1881  ;;  %1891 = vpow2.f32 %v1150_v50 }
 0x19e   :  { %v811_v47 = vadd.f32 %v2443_v51, %v810_v62  ;;  %v1368_v6 = vpop.permute.xlu1 %1367  ;;  %v1218_v7 = vpop.permute.xlu0 %1217  ;;  %v1078_v16 = vadd.f32 1.0, %v1882_v4 }
 0x19f   :  { %1893 = vpow2.f32 %v1059_v61  ;;  %v1296_v11 = vpop.permute.xlu2 %1295  ;;  %v1884_v12 = vpop.eup %1883 }
 0x1a0   :  { %1895 = vrcp.f32 %v873_v57  ;;  %v1117_v13 = vsub.f32 0.0, %v811_v47  ;;  %v613_v32 = vpop.f32.mrf.mxu2  ;;  %v1886_v0 = vpop.eup %1885  ;;  %v1424_v28 = vsel %vm1422_vm7, %v1884_v12, %v2427_v15 }
 0x1a1   :  { %1897 = vrcp.f32 %v874_v58  ;;  %v1888_v18 = vpop.eup %1887  ;;  %v2520_v47 = vpop.f32.mrf.mxu0 }
 0x1a2   :  { %1899 = vrcp.f32 %v1077_v5  ;;  %v1154_v20 = vmul.f32 1.442695, %v1117_v13  ;;  %v1890_v21 = vpop.eup %1889 }
 0x1a3   :  { %1901 = vpow2.f32 %v1152_v9  ;;  %v1892_v63 = vpop.eup %1891 }
 0x1a4   :  { %1903 = vpow2.f32 %v1154_v20  ;;  %1247 = vrot.lane.b32.xlu0 %v1890_v21, %s1979_s5  ;;  %1249 = vrot.lane.b32.xlu1 %v1886_v0, %s1979_s5  ;;  %v1172_v37 = vadd.f32 1.0, %v1892_v63 }
 0x1a5   :  { %v1894_v25 = vpop.eup %1893  ;;  %1905 = vrcp.f32 %v1078_v16  ;;  %1319 = vrot.lane.b32.xlu2 %v1888_v18, %s1980_s10  ;;  %v812_v26 = vpop.f32.mrf.mxu3  ;;  %v167_v16 = vadd.f32 %v2443_v51, %v2431_v23 }
 0x1a6   :  { %v1896_v27 = vpop.eup %1895  ;;  %v1079_v14 = vadd.f32 1.0, %v1894_v25  ;;  %v1220_v30 = vpop.permute.xlu1 %1219  ;;  %1907 = vpow2.f32 %v841_v22 }
 0x1a7   :  { %v1292_v31 = vpop.permute.xlu0 %1291  ;;  %v1898_v17 = vpop.eup %1897  ;;  %v1425_v50 = vsel %vm1422_vm7, %v1896_v27, %v1218_v7 }
 0x1a8   :  { %v2490_v34 = vpop.permute.xlu2 %1375  ;;  %v1444_v35 = vsel %vm1442_vm8, %v1424_v28, %v1292_v31  ;;  %v1900_v36 = vpop.eup %1899  ;;  %1909 = vrcp.f32 %v1079_v14  ;;  %v1426_v46 = vsel %vm1422_vm7, %v1898_v17, %v1220_v30 }
 0x1a9   :  { %v1464_v39 = vsel %vm1462_vm9, %v1444_v35, %v1368_v6  ;;  %v1902_v41 = vpop.eup %1901  ;;  %1911 = vpow2.f32 %v845_v2  ;;  %v1446_v48 = vsel %vm1442_vm8, %v1426_v46, %v1296_v11  ;;  %v2531_v18 = vpop.f32.mrf.mxu0 }
 0x1aa   :  { %1484 = vst.msk [vmem:[%s2676_s6 + $0x8] sm:$0xff] %vm1482_vm10, %v1464_v39  ;;  %v1904_v15 = vpop.eup %1903  ;;  %1913 = vrcp.f32 %v1172_v37  ;;  %v1173_v49 = vadd.f32 1.0, %v1902_v41 }
 0x1ab   :  { %v1906_v43 = vpop.eup %1905  ;;  %v1174_v44 = vadd.f32 1.0, %v1904_v15 }
 0x1ac   :  { %1321 = vrot.lane.b32.xlu0 %v1900_v36, %s1980_s10  ;;  %1323 = vrot.lane.b32.xlu1 %v1906_v43, %s1980_s10  ;;  %v1908_v40 = vpop.eup %1907 }
 0x1ad   :  { %1915 = vrcp.f32 %v1174_v44  ;;  %v875_v62 = vadd.f32 1.0, %v1908_v40  ;;  %v824_v40 = vsub.f32 0.0, %v172_v42 }
 0x1ae   :  { %v1910_v52 = vpop.eup %1909  ;;  %v1294_v45 = vpop.permute.xlu1 %1293  ;;  %1917 = vrcp.f32 %v1173_v49 }
 0x1af   :  { %v1372_v53 = vpop.permute.xlu0 %1371  ;;  %v1445_v54 = vsel %vm1442_vm8, %v1425_v50, %v1294_v45  ;;  %1325 = vrot.lane.b32.xlu2 %v1910_v52, %s1980_s10  ;;  %v1912_v61 = vpop.eup %1911  ;;  %1919 = vpow2.f32 %v843_v1  ;;  %v177_v1 = vadd.f32 %v2443_v51, %v2498_v10 }
 0x1b0   :  { %v2506_v55 = vpop.permute.xlu2 %1227  ;;  %v1466_v57 = vsel %vm1462_vm9, %v1446_v48, %v1372_v53  ;;  %v1465_v58 = vsel %vm1462_vm9, %v1445_v54, %v2452_v38  ;;  %v1914_v4 = vpop.eup %1913  ;;  %v164_v38 = vadd.f32 %v2443_v51, %v2417_v56  ;;  %1921 = vrcp.f32 %v875_v62 }
 0x1b1   :  { %1486 = vst.msk [vmem:[%s2676_s6 + $0x18] sm:$0xff] %vm1482_vm10, %v1466_v57  ;;  %v877_v7 = vadd.f32 1.0, %v1912_v61  ;;  %v169_v56 = vadd.f32 %v2443_v51, %v2447_v59  ;;  %v822_v59 = vsub.f32 0.0, %v167_v16  ;;  %v2550_v39 = vpop.f32.mrf.mxu0  ;;  %v853_v53 = vmul.f32 1.442695, %v824_v40 }
 0x1b2   :  { %1485 = vst.msk [vmem:[%s2676_s6 + $0x10] sm:$0xff] %vm1482_vm10, %v1465_v58  ;;  %v821_v12 = vsub.f32 0.0, %v164_v38  ;;  %v826_v54 = vsub.f32 0.0, %v177_v1  ;;  %v174_v57 = vadd.f32 %v2443_v51, %v2481_v60 }
 0x1b3   :  { %v1916_v5 = vpop.eup %1915  ;;  %1923 = vrcp.f32 %v877_v7  ;;  %v823_v24 = vsub.f32 0.0, %v169_v56  ;;  %v849_v28 = vmul.f32 1.442695, %v822_v59 }
 0x1b4   :  { %1397 = vrot.lane.b32.xlu1 %v1914_v4, %s1981_s15  ;;  %1401 = vrot.lane.b32.xlu0 %v1916_v5, %s1981_s15  ;;  %v1918_v6 = vpop.eup %1917  ;;  %v847_v0 = vmul.f32 1.442695, %v821_v12  ;;  %v857_v4 = vmul.f32 1.442695, %v826_v54 }
 0x1b5   :  { %v1920_v11 = vpop.eup %1919  ;;  %v851_v23 = vmul.f32 1.442695, %v823_v24 }
 0x1b6   :  { %v1374_v3 = vpop.permute.xlu1 %1373  ;;  %v1922_v13 = vpop.eup %1921  ;;  %v876_v32 = vadd.f32 1.0, %v1920_v11 }
 0x1b7   :  { %v1224_v8 = vpop.permute.xlu0 %1223  ;;  %1399 = vrot.lane.b32.xlu2 %v1918_v6, %s1981_s15  ;;  %v1427_v20 = vsel %vm1422_vm7, %v1922_v13, %v2465_v19 }
 0x1b8   :  { %v1302_v9 = vpop.permute.xlu2 %1301  ;;  %1925 = vrcp.f32 %v876_v32 }
 0x1b9   :  { %v1924_v26 = vpop.eup %1923  ;;  %1927 = vpow2.f32 %v847_v0  ;;  %v2566_v45 = vpop.f32.mrf.mxu0 }
 0x1ba   :  { %1929 = vpow2.f32 %v851_v23 }
 0x1bb   :  { %1931 = vpow2.f32 %v849_v28 }
 0x1be   :  { %v1226_v21 = vpop.permute.xlu1 %1225  ;;  %v1926_v29 = vpop.eup %1925 }
 0x1bf   :  { %v1298_v22 = vpop.permute.xlu0 %1297  ;;  %v1429_v19 = vsel %vm1422_vm7, %v1924_v26, %v1226_v21  ;;  %v1928_v14 = vpop.eup %1927  ;;  %v1428_v30 = vsel %vm1422_vm7, %v1926_v29, %v1224_v8  ;;  %v184_v29 = vadd.f32 %v2443_v51, %v2550_v39 }
 0x1c0   :  { %v2535_v63 = vpop.permute.xlu2 %1381  ;;  %v1447_v25 = vsel %vm1442_vm8, %v1427_v20, %v1298_v22  ;;  %v1449_v17 = vsel %vm1442_vm8, %v1429_v19, %v1302_v9  ;;  %v878_v15 = vadd.f32 1.0, %v1928_v14  ;;  %v1930_v43 = vpop.eup %1929  ;;  %v179_v22 = vadd.f32 %v2443_v51, %v2520_v47 }
 0x1c1   :  { %v1467_v27 = vsel %vm1462_vm9, %v1447_v25, %v1374_v3  ;;  %v1932_v44 = vpop.eup %1931  ;;  %v2578_v5 = vpop.f32.mrf.mxu0 }
 0x1c2   :  { %1487 = vst.msk [vmem:[%s2676_s6 + $0x20] sm:$0xff] %vm1482_vm10, %v1467_v27  ;;  %1933 = vrcp.f32 %v878_v15  ;;  %v879_v52 = vadd.f32 1.0, %v1932_v44  ;;  %v827_v27 = vsub.f32 0.0, %v179_v22 }
 0x1c4   :  { %v859_v14 = vmul.f32 1.442695, %v827_v27 }
 0x1c6   :  { %v1300_v31 = vpop.permute.xlu1 %1299 }
 0x1c7   :  { %v1378_v2 = vpop.permute.xlu0 %1377  ;;  %v1448_v35 = vsel %vm1442_vm8, %v1428_v30, %v1300_v31  ;;  %v182_v30 = vadd.f32 %v2443_v51, %v2531_v18 }
 0x1c8   :  { %v2547_v36 = vpop.permute.xlu2 %1233  ;;  %v1469_v37 = vsel %vm1462_vm9, %v1449_v17, %v1378_v2  ;;  %v1468_v41 = vsel %vm1462_vm9, %v1448_v35, %v2490_v34  ;;  %v880_v34 = vadd.f32 1.0, %v1930_v43  ;;  %v1934_v48 = vpop.eup %1933  ;;  %v829_v2 = vsub.f32 0.0, %v184_v29 }
 0x1c9   :  { %1489 = vst.msk [vmem:[%s2676_s6 + $0x30] sm:$0xff] %vm1482_vm10, %v1469_v37  ;;  %v1430_v33 = vsel %vm1422_vm7, %v1934_v48, %v2506_v55  ;;  %v825_v55 = vsub.f32 0.0, %v174_v57  ;;  %v191_v20 = vpop.f32.mrf.mxu0  ;;  %v828_v15 = vsub.f32 0.0, %v182_v30  ;;  %v189_v57 = vadd.f32 %v2443_v51, %v2578_v5 }
 0x1ca   :  { %1488 = vst.msk [vmem:[%s2676_s6 + $0x28] sm:$0xff] %vm1482_vm10, %v1468_v41  ;;  %1935 = vrcp.f32 %v880_v34  ;;  %v863_v18 = vmul.f32 1.442695, %v829_v2 }
 0x1cb   :  { %1937 = vrcp.f32 %v879_v52  ;;  %v855_v8 = vmul.f32 1.442695, %v825_v55  ;;  %v861_v39 = vmul.f32 1.442695, %v828_v15 }
 0x1cc   :  { %1939 = vpow2.f32 %v853_v53 }
 0x1cd   :  { %1941 = vpow2.f32 %v857_v4  ;;  %v192_v4 = vadd.f32 %v2443_v51, %v191_v20 }
 0x1ce   :  { %v1380_v46 = vpop.permute.xlu1 %1379  ;;  %1943 = vpow2.f32 %v855_v8 }
 0x1cf   :  { %v1230_v49 = vpop.permute.xlu0 %1229 }
 0x1d0   :  { %v1308_v50 = vpop.permute.xlu2 %1307  ;;  %v1936_v38 = vpop.eup %1935 }
 0x1d1   :  { %v1938_v6 = vpop.eup %1937  ;;  %v193_v23 = vpop.f32.mrf.mxu0 }
 0x1d2   :  { %v1940_v3 = vpop.eup %1939  ;;  %v1431_v9 = vsel %vm1422_vm7, %v1938_v6, %v1230_v49  ;;  %v187_v6 = vadd.f32 %v2443_v51, %v2566_v45 }
 0x1d3   :  { %v881_v16 = vadd.f32 1.0, %v1940_v3  ;;  %v1942_v21 = vpop.eup %1941 }
 0x1d4   :  { %v1944_v59 = vpop.eup %1943 }
 0x1d5   :  { %1945 = vrcp.f32 %v881_v16  ;;  %v882_v28 = vadd.f32 1.0, %v1944_v59 }
 0x1d6   :  { %v1232_v58 = vpop.permute.xlu1 %1231 }
 0x1d7   :  { %v1304_v61 = vpop.permute.xlu0 %1303  ;;  %v1432_v60 = vsel %vm1422_vm7, %v1936_v38, %v1232_v58  ;;  %v831_v38 = vsub.f32 0.0, %v189_v57 }
 0x1d8   :  { %v1450_v62 = vsel %vm1442_vm8, %v1430_v33, %v1304_v61  ;;  %v1388_v7 = vpop.permute.xlu2 %1387  ;;  %v1452_v12 = vsel %vm1442_vm8, %v1432_v60, %v1308_v50 }
 0x1d9   :  { %v1470_v10 = vsel %vm1462_vm9, %v1450_v62, %v1380_v46  ;;  %v867_v8 = vmul.f32 1.442695, %v831_v38 }
 0x1da   :  { %1490 = vst.msk [vmem:[%s2676_s6 + $0x38] sm:$0xff] %vm1482_vm10, %v1470_v10 }
 0x1db   :  { %v1946_v19 = vpop.eup %1945 }
 0x1dc   :  { %v1433_v47 = vsel %vm1422_vm7, %v1946_v19, %v2547_v36 }
 0x1de   :  { %v1306_v11 = vpop.permute.xlu1 %1305 }
 0x1df   :  { %v1384_v13 = vpop.permute.xlu0 %1383  ;;  %v1451_v32 = vsel %vm1442_vm8, %v1431_v9, %v1306_v11  ;;  %v830_v11 = vsub.f32 0.0, %v187_v6 }
 0x1e0   :  { %v1472_v56 = vsel %vm1462_vm9, %v1452_v12, %v1384_v13  ;;  %v1471_v0 = vsel %vm1462_vm9, %v1451_v32, %v2535_v63  ;;  %v1240_v24 = vpop.permute.xlu2 %1239  ;;  %v883_v63 = vadd.f32 1.0, %v1942_v21 }
 0x1e1   :  { %1492 = vst.msk [vmem:[%s2676_s6 + $0x48] sm:$0xff] %vm1482_vm10, %v1472_v56  ;;  %v865_v56 = vmul.f32 1.442695, %v830_v11 }
 0x1e2   :  { %1491 = vst.msk [vmem:[%s2676_s6 + $0x40] sm:$0xff] %vm1482_vm10, %v1471_v0  ;;  %1947 = vrcp.f32 %v883_v63 }
 0x1e3   :  { %1949 = vrcp.f32 %v882_v28 }
 0x1e4   :  { %1951 = vpow2.f32 %v859_v14 }
 0x1e5   :  { %1953 = vpow2.f32 %v863_v18 }
 0x1e6   :  { %v1386_v25 = vpop.permute.xlu1 %1385  ;;  %1955 = vpow2.f32 %v861_v39 }
 0x1e7   :  { %v1236_v26 = vpop.permute.xlu0 %1235 }
 0x1e8   :  { %v1314_v35 = vpop.permute.xlu2 %1313  ;;  %v1948_v41 = vpop.eup %1947 }
 0x1e9   :  { %v1950_v43 = vpop.eup %1949 }
 0x1ea   :  { %v1952_v44 = vpop.eup %1951  ;;  %v1434_v46 = vsel %vm1422_vm7, %v1950_v43, %v1236_v26 }
 0x1eb   :  { %v884_v48 = vadd.f32 1.0, %v1952_v44  ;;  %v1954_v54 = vpop.eup %1953 }
 0x1ec   :  { %v1956_v33 = vpop.eup %1955  ;;  %v886_v62 = vadd.f32 1.0, %v1954_v54 }
 0x1ed   :  { %1957 = vrcp.f32 %v884_v48  ;;  %v885_v10 = vadd.f32 1.0, %v1956_v33 }
 0x1ee   :  { %v1238_v31 = vpop.permute.xlu1 %1237  ;;  %1959 = vrcp.f32 %v886_v62 }
 0x1ef   :  { %v1310_v17 = vpop.permute.xlu0 %1309  ;;  %v1435_v36 = vsel %vm1422_vm7, %v1948_v41, %v1238_v31  ;;  %1961 = vrcp.f32 %v885_v10 }
 0x1f0   :  { %v1453_v37 = vsel %vm1442_vm8, %v1433_v47, %v1310_v17  ;;  %v1455_v34 = vsel %vm1442_vm8, %v1435_v36, %v1314_v35  ;;  %v1394_v53 = vpop.permute.xlu2 %1393  ;;  %1963 = vpow2.f32 %v867_v8 }
 0x1f1   :  { %v1473_v42 = vsel %vm1462_vm9, %v1453_v37, %v1386_v25 }
 0x1f2   :  { %1493 = vst.msk [vmem:[%s2676_s6 + $0x50] sm:$0xff] %vm1482_vm10, %v1473_v42 }
 0x1f3   :  { %v1958_v55 = vpop.eup %1957 }
 0x1f4   :  { %v1436_v3 = vsel %vm1422_vm7, %v1958_v55, %v1240_v24  ;;  %v1960_v51 = vpop.eup %1959 }
 0x1f5   :  { %v1962_v45 = vpop.eup %1961 }
 0x1f6   :  { %v1312_v49 = vpop.permute.xlu1 %1311  ;;  %v1964_v26 = vpop.eup %1963 }
 0x1f7   :  { %v1390_v40 = vpop.permute.xlu0 %1389  ;;  %v1454_v52 = vsel %vm1442_vm8, %v1434_v46, %v1312_v49  ;;  %v888_v23 = vadd.f32 1.0, %v1964_v26 }
 0x1f8   :  { %v1475_v1 = vsel %vm1462_vm9, %v1455_v34, %v1390_v40  ;;  %v1474_v50 = vsel %vm1462_vm9, %v1454_v52, %v1388_v7  ;;  %v1246_v60 = vpop.permute.xlu2 %1245  ;;  %v832_v7 = vsub.f32 0.0, %v192_v4 }
 0x1f9   :  { %1495 = vst.msk [vmem:[%s2676_s6 + $0x60] sm:$0xff] %vm1482_vm10, %v1475_v1 }
 0x1fa   :  { %1494 = vst.msk [vmem:[%s2676_s6 + $0x58] sm:$0xff] %vm1482_vm10, %v1474_v50  ;;  %v869_v32 = vmul.f32 1.442695, %v832_v7 }
 0x1fc   :  { %1965 = vpow2.f32 %v869_v32 }
 0x1fd   :  { %1967 = vpow2.f32 %v865_v56 }
 0x1fe   :  { %v1392_v58 = vpop.permute.xlu1 %1391  ;;  %1969 = vrcp.f32 %v888_v23 }
 0x1ff   :  { %v1242_v61 = vpop.permute.xlu0 %1241 }
 0x200   :  { %v1320_v16 = vpop.permute.xlu2 %1319  ;;  %v1437_v20 = vsel %vm1422_vm7, %v1962_v45, %v1242_v61 }
 0x202   :  { %v1966_v27 = vpop.eup %1965 }
 0x203   :  { %v1968_v19 = vpop.eup %1967  ;;  %v889_v29 = vadd.f32 1.0, %v1966_v27 }
 0x204   :  { %v887_v47 = vadd.f32 1.0, %v1968_v19  ;;  %v1970_v31 = vpop.eup %1969 }
 0x205   :  { %1971 = vrcp.f32 %v889_v29 }
 0x206   :  { %v1244_v9 = vpop.permute.xlu1 %1243  ;;  %1973 = vrcp.f32 %v887_v47 }
 0x207   :  { %v1316_v5 = vpop.permute.xlu0 %1315  ;;  %v1438_v0 = vsel %vm1422_vm7, %v1960_v51, %v1244_v9 }
 0x208   :  { %v1456_v12 = vsel %vm1442_vm8, %v1436_v3, %v1316_v5  ;;  %v1458_v22 = vsel %vm1442_vm8, %v1438_v0, %v1320_v16 }
 0x209   :  { %v1476_v13 = vsel %vm1462_vm9, %v1456_v12, %v1392_v58  ;;  %v1326_v28 = vpop.permute.xlu2 %1325 }
 0x20a   :  { %1496 = vst.msk [vmem:[%s2676_s6 + $0x68] sm:$0xff] %vm1482_vm10, %v1476_v13 }
 0x20b   :  { %v1972_v15 = vpop.eup %1971 }
 0x20c   :  { %v1974_v18 = vpop.eup %1973 }
 0x20d   :  { %v1439_v39 = vsel %vm1422_vm7, %v1974_v18, %v1246_v60 }
 0x20e   :  { %v1318_v21 = vpop.permute.xlu1 %1317 }
 0x20f   :  { %v1396_v24 = vpop.permute.xlu0 %1395  ;;  %v1457_v63 = vsel %vm1442_vm8, %v1437_v20, %v1318_v21 }
 0x210   :  { %v1478_v25 = vsel %vm1462_vm9, %v1458_v22, %v1396_v24  ;;  %v1477_v59 = vsel %vm1462_vm9, %v1457_v63, %v1394_v53 }
 0x211   :  { %1498 = vst.msk [vmem:[%s2676_s6 + $0x78] sm:$0xff] %vm1482_vm10, %v1478_v25  ;;  %v1400_v37 = vpop.permute.xlu2 %1399 }
 0x212   :  { %1497 = vst.msk [vmem:[%s2676_s6 + $0x70] sm:$0xff] %vm1482_vm10, %v1477_v59 }
 0x216   :  { %v1250_v14 = vpop.permute.xlu1 %1249 }
 0x217   :  { %v1248_v30 = vpop.permute.xlu0 %1247  ;;  %v1441_v36 = vsel %vm1422_vm7, %v1972_v15, %v1250_v14 }
 0x218   :  { %v1440_v17 = vsel %vm1422_vm7, %v1970_v31, %v1248_v30  ;;  %v1461_v46 = vsel %vm1442_vm8, %v1441_v36, %v1326_v28 }
 0x21e   :  { %v1324_v2 = vpop.permute.xlu1 %1323 }
 0x21f   :  { %v1322_v35 = vpop.permute.xlu0 %1321  ;;  %v1460_v41 = vsel %vm1442_vm8, %v1440_v17, %v1324_v2 }
 0x220   :  { %v1480_v42 = vsel %vm1462_vm9, %v1460_v41, %v1400_v37  ;;  %v1459_v43 = vsel %vm1442_vm8, %v1439_v39, %v1322_v35 }
 0x221   :  { %1500 = vst.msk [vmem:[%s2676_s6 + $0x88] sm:$0xff] %vm1482_vm10, %v1480_v42 }
 0x226   :  { %v1398_v44 = vpop.permute.xlu1 %1397 }
 0x227   :  { %v1402_v49 = vpop.permute.xlu0 %1401  ;;  %v1479_v34 = vsel %vm1462_vm9, %v1459_v43, %v1398_v44 }
 0x228   :  { %v1481_v40 = vsel %vm1462_vm9, %v1461_v46, %v1402_v49  ;;  %1499 = vst.msk [vmem:[%s2676_s6 + $0x80] sm:$0xff] %vm1482_vm10, %v1479_v34 }
 0x229   :  { %1501 = vst.msk [vmem:[%s2676_s6 + $0x90] sm:$0xff] %vm1482_vm10, %v1481_v40 }

</bundles_post_ra>
